<compile_context>
chip_gen: v6e
topology: v6e:2x2x1
jax: 0.10.0
libtpu: 0.0.40
codegen_flags: <defaults>
</compile_context>

<pallas_src>
import jax
import jax.numpy as jnp
from jax.experimental import pallas as pl
from jax.experimental.pallas import tpu as pltpu


LANES = 128          # lane width of a vreg
CHUNK_ROWS = 8       # sublanes per inner chunk -> 8 x 128 = 1024 samples/chunk
CHUNK = CHUNK_ROWS * LANES

# Layer dims (in, out) and static offsets into the flattened parameter vector.
_DIMS = [(1, 11), (11, 29), (29, 11), (11, 1)]
_W1, _B1 = 0, 11          # w1 (11,1)=11,  b1 (11,)
_W2, _B2 = 22, 341        # w2 (29,11)=319, b2 (29,)
_W3, _B3 = 370, 689       # w3 (11,29)=319, b3 (11,)
_W4, _B4 = 700, 711       # w4 (1,11)=11,  b4 (1,)
_N_PARAMS = 712


def _elu(x):
    # ELU with alpha=1.0 (PyTorch default): x if x > 0 else exp(x) - 1.
    return jnp.where(x > 0, x, jnp.exp(x) - 1.0)


def _dense_feature_planes(wb_ref, w_off, b_off, fin, fout, h):
    """y_j = b[j] + sum_i w[j,i] * h_i, with w/b read as SMEM scalars.

    `h` is a Python list of `fin` dense (CHUNK_ROWS, LANES) activation planes.
    Each term is a scalar * dense-vreg FMA (no broadcasts, no MXU).  The
    accumulation is split into two partial chains to shorten the serial VALU
    dependency for the 29-wide layer.
    """
    out = []
    for j in range(fout):
        base = w_off + j * fin
        acc0 = wb_ref[b_off + j] + wb_ref[base] * h[0]
        if fin == 1:
            out.append(acc0)
            continue
        acc1 = wb_ref[base + 1] * h[1]
        for i in range(2, fin, 2):
            acc0 = acc0 + wb_ref[base + i] * h[i]
        for i in range(3, fin, 2):
            acc1 = acc1 + wb_ref[base + i] * h[i]
        out.append(acc0 + acc1)
    return out


def discriminator_kernel(wb_ref, x_ref, o_ref):
    # wb_ref: (712,) f32 in SMEM (flattened w1,b1,...,w4,b4)
    # x_ref / o_ref: (block_rows, 128) f32 dense sample slabs in VMEM
    block_rows = x_ref.shape[0]
    num_chunks = block_rows // CHUNK_ROWS

    @pl.loop(0, num_chunks)
    def _(c):
        r0 = pl.multiple_of(c * CHUNK_ROWS, CHUNK_ROWS)
        xs = x_ref[pl.ds(r0, CHUNK_ROWS), :]          # (8, 128): 1024 samples

        h = _dense_feature_planes(wb_ref, _W1, _B1, 1, 11, [xs])
        h = [_elu(p) for p in h]
        h = _dense_feature_planes(wb_ref, _W2, _B2, 11, 29, h)
        h = [_elu(p) for p in h]
        h = _dense_feature_planes(wb_ref, _W3, _B3, 29, 11, h)
        h = [_elu(p) for p in h]
        z = _dense_feature_planes(wb_ref, _W4, _B4, 11, 1, h)[0]

        # Exact sigmoid (exp goes to the idle EUP slot); dense (8,128) store.
        o_ref[pl.ds(r0, CHUNK_ROWS), :] = 1.0 / (1.0 + jnp.exp(-z))


def _tensorcores_per_chip():
    """Best-effort TensorCore-per-device count (v4/v5p/v7x expose 2)."""
    try:
        kind = jax.devices()[0].device_kind.lower()
    except Exception:
        return 1
    if "v7" in kind or "v4" in kind or "v5p" in kind:
        return 2
    return 1


def _flatten_params(params):
    wb = jnp.concatenate([
        params["w1"].reshape(-1), params["b1"].reshape(-1),
        params["w2"].reshape(-1), params["b2"].reshape(-1),
        params["w3"].reshape(-1), params["b3"].reshape(-1),
        params["w4"].reshape(-1), params["b4"].reshape(-1),
    ]).astype(jnp.float32)
    assert wb.shape[0] == _N_PARAMS
    return wb


def discriminator_forward(x, params, *, block_samples=16384):
    """x: (B, 1) float32.  params: w1..w4 (out,in), b1..b4 (out,)."""
    B = x.shape[0]
    assert x.ndim == 2 and x.shape[1] == 1

    wb = _flatten_params(params)

    # --- grid / block sizing -------------------------------------------------
    chunks_total = pl.cdiv(max(B, 1), CHUNK)
    max_chunks_per_block = max(1, block_samples // CHUNK)
    num_tc = _tensorcores_per_chip()

    if num_tc >= 2:
        # Round the number of "parallel" grid steps up to a multiple of the
        # TensorCore count so every core gets an equal shard.
        n_blocks = max(num_tc, pl.cdiv(chunks_total, max_chunks_per_block))
        if n_blocks % num_tc:
            n_blocks += num_tc - (n_blocks % num_tc)
        chunks_per_block = pl.cdiv(chunks_total, n_blocks)
    else:
        # Single-TC parts: one grid step for small batches (no split overhead).
        chunks_per_block = min(chunks_total, max_chunks_per_block)
        n_blocks = pl.cdiv(chunks_total, chunks_per_block)

    block_rows = chunks_per_block * CHUNK_ROWS
    rows_total = n_blocks * block_rows
    total = rows_total * LANES

    # Batch-dense slab: both sublanes and lanes filled with samples.
    xt = jnp.pad(x[:, 0].astype(jnp.float32), (0, total - B)).reshape(
        rows_total, LANES)

    out = pl.pallas_call(
        discriminator_kernel,
        out_shape=jax.ShapeDtypeStruct((rows_total, LANES), jnp.float32),
        grid=(n_blocks,),
        in_specs=[
            # Flattened params as SMEM scalars (1-D avoids 2-D SMEM padding).
            pl.BlockSpec(memory_space=pltpu.MemorySpace.SMEM),
            # Dense (block_rows, 128) input slab per grid step.
            pl.BlockSpec((block_rows, LANES), lambda i: (i, 0)),
        ],
        out_specs=pl.BlockSpec((block_rows, LANES), lambda i: (i, 0)),
        compiler_params=pltpu.CompilerParams(
            dimension_semantics=("parallel",)),
    )(wb, xt)

    return out.reshape(-1)[:B].reshape(B, 1)


def init_params(key):
    """Deterministic synthetic parameters in PyTorch layout:
    weight (out_features, in_features), bias (out_features,)."""
    params = {}
    for idx, (fin, fout) in enumerate(_DIMS, start=1):
        key, kw, kb = jax.random.split(key, 3)
        bound = 1.0 / (fin ** 0.5)              # PyTorch default init range
        params[f"w{idx}"] = jax.random.uniform(
            kw, (fout, fin), jnp.float32, -bound, bound)
        params[f"b{idx}"] = jax.random.uniform(
            kb, (fout,), jnp.float32, -bound, bound)
    return params


def reference_forward(x, params):
    """Plain-JAX reference (batch-major, y = x @ W.T + b) matching PyTorch."""
    h = x
    for idx in range(1, 5):
        w, b = params[f"w{idx}"], params[f"b{idx}"]
        h = h @ w.T + b
        if idx < 4:
            h = jax.nn.elu(h)
    return jax.nn.sigmoid(h)


if __name__ == "__main__":
    key = jax.random.PRNGKey(0)
    kx, kp = jax.random.split(key)
    params = init_params(kp)

    # Small batch: single grid step, single 1024-sample inner chunk (padded).
    B = 32
    x = jax.random.normal(kx, (B, 1), dtype=jnp.float32)
    out = jax.block_until_ready(discriminator_forward(x, params))
    ref = reference_forward(x, params)
    assert out.shape == (B, 1)
    assert jnp.allclose(out, ref, atol=1e-5, rtol=1e-5), "mismatch (B=32)"

    # Non-divisible batch spanning several inner chunks (padding + pl.loop).
    B2 = 3000
    x2 = jax.random.normal(jax.random.PRNGKey(1), (B2, 1), dtype=jnp.float32)
    out2 = jax.block_until_ready(discriminator_forward(x2, params))
    ref2 = reference_forward(x2, params)
    assert out2.shape == (B2, 1)
    assert jnp.allclose(out2, ref2, atol=1e-5, rtol=1e-5), "mismatch (B=3000)"

    # Force a multi-block "parallel" grid with small blocks (same batch).
    out3 = jax.block_until_ready(
        discriminator_forward(x2, params, block_samples=1024))
    assert out3.shape == (B2, 1)
    assert jnp.allclose(out3, ref2, atol=1e-5, rtol=1e-5), "mismatch (multi-block)"

    print("KERNEL_OK")
</pallas_src>

<mosaic_0001>
module attributes {stable_mosaic.version = 11 : i64} {
  func.func @discriminator_kernel(%arg0: i32, %arg1: memref<712xf32, #tpu.memory_space<smem>>, %arg2: memref<8x128xf32, #tpu.memory_space<vmem>>, %arg3: memref<8x128xf32, #tpu.memory_space<vmem>>) attributes {dimension_semantics = [#tpu.dimension_semantics<parallel>], iteration_bounds = array<i64: 1>, scalar_prefetch = 0 : i64, scratch_operands = 0 : i64, tpu.core_type = #tpu.core_type<tc>, window_params = [{transform_indices = @transform_0, window_bounds = array<i64: 712>}, {transform_indices = @transform_1, window_bounds = array<i64: 8, 128>}, {transform_indices = @transform_2, window_bounds = array<i64: 8, 128>}]} {
    %c0_i32 = arith.constant 0 : i32
    %c1_i32 = arith.constant 1 : i32
    %0 = arith.muli %c0_i32, %c1_i32 : i32
    %c0_i32_0 = arith.constant 0 : i32
    %1 = arith.addi %c0_i32_0, %0 : i32
    %c8_i32 = arith.constant 8 : i32
    %2 = arith.muli %1, %c8_i32 : i32
    %3 = tpu.assume_multiple %2, 8 : i32
    %4 = arith.index_cast %3 : i32 to index
    %c0 = arith.constant 0 : index
    %5 = vector.load %arg2[%4, %c0] : memref<8x128xf32, #tpu.memory_space<vmem>>, vector<8x128xf32>
    %c11 = arith.constant 11 : index
    %6 = memref.load %arg1[%c11] : memref<712xf32, #tpu.memory_space<smem>>
    %c0_1 = arith.constant 0 : index
    %7 = memref.load %arg1[%c0_1] : memref<712xf32, #tpu.memory_space<smem>>
    %8 = vector.broadcast %7 : f32 to vector<8x128xf32>
    %9 = arith.mulf %8, %5 : vector<8x128xf32>
    %10 = vector.broadcast %6 : f32 to vector<8x128xf32>
    %11 = arith.addf %10, %9 : vector<8x128xf32>
    %c12 = arith.constant 12 : index
    %12 = memref.load %arg1[%c12] : memref<712xf32, #tpu.memory_space<smem>>
    %c1 = arith.constant 1 : index
    %13 = memref.load %arg1[%c1] : memref<712xf32, #tpu.memory_space<smem>>
    %14 = vector.broadcast %13 : f32 to vector<8x128xf32>
    %15 = arith.mulf %14, %5 : vector<8x128xf32>
    %16 = vector.broadcast %12 : f32 to vector<8x128xf32>
    %17 = arith.addf %16, %15 : vector<8x128xf32>
    %c13 = arith.constant 13 : index
    %18 = memref.load %arg1[%c13] : memref<712xf32, #tpu.memory_space<smem>>
    %c2 = arith.constant 2 : index
    %19 = memref.load %arg1[%c2] : memref<712xf32, #tpu.memory_space<smem>>
    %20 = vector.broadcast %19 : f32 to vector<8x128xf32>
    %21 = arith.mulf %20, %5 : vector<8x128xf32>
    %22 = vector.broadcast %18 : f32 to vector<8x128xf32>
    %23 = arith.addf %22, %21 : vector<8x128xf32>
    %c14 = arith.constant 14 : index
    %24 = memref.load %arg1[%c14] : memref<712xf32, #tpu.memory_space<smem>>
    %c3 = arith.constant 3 : index
    %25 = memref.load %arg1[%c3] : memref<712xf32, #tpu.memory_space<smem>>
    %26 = vector.broadcast %25 : f32 to vector<8x128xf32>
    %27 = arith.mulf %26, %5 : vector<8x128xf32>
    %28 = vector.broadcast %24 : f32 to vector<8x128xf32>
    %29 = arith.addf %28, %27 : vector<8x128xf32>
    %c15 = arith.constant 15 : index
    %30 = memref.load %arg1[%c15] : memref<712xf32, #tpu.memory_space<smem>>
    %c4 = arith.constant 4 : index
    %31 = memref.load %arg1[%c4] : memref<712xf32, #tpu.memory_space<smem>>
    %32 = vector.broadcast %31 : f32 to vector<8x128xf32>
    %33 = arith.mulf %32, %5 : vector<8x128xf32>
    %34 = vector.broadcast %30 : f32 to vector<8x128xf32>
    %35 = arith.addf %34, %33 : vector<8x128xf32>
    %c16 = arith.constant 16 : index
    %36 = memref.load %arg1[%c16] : memref<712xf32, #tpu.memory_space<smem>>
    %c5 = arith.constant 5 : index
    %37 = memref.load %arg1[%c5] : memref<712xf32, #tpu.memory_space<smem>>
    %38 = vector.broadcast %37 : f32 to vector<8x128xf32>
    %39 = arith.mulf %38, %5 : vector<8x128xf32>
    %40 = vector.broadcast %36 : f32 to vector<8x128xf32>
    %41 = arith.addf %40, %39 : vector<8x128xf32>
    %c17 = arith.constant 17 : index
    %42 = memref.load %arg1[%c17] : memref<712xf32, #tpu.memory_space<smem>>
    %c6 = arith.constant 6 : index
    %43 = memref.load %arg1[%c6] : memref<712xf32, #tpu.memory_space<smem>>
    %44 = vector.broadcast %43 : f32 to vector<8x128xf32>
    %45 = arith.mulf %44, %5 : vector<8x128xf32>
    %46 = vector.broadcast %42 : f32 to vector<8x128xf32>
    %47 = arith.addf %46, %45 : vector<8x128xf32>
    %c18 = arith.constant 18 : index
    %48 = memref.load %arg1[%c18] : memref<712xf32, #tpu.memory_space<smem>>
    %c7 = arith.constant 7 : index
    %49 = memref.load %arg1[%c7] : memref<712xf32, #tpu.memory_space<smem>>
    %50 = vector.broadcast %49 : f32 to vector<8x128xf32>
    %51 = arith.mulf %50, %5 : vector<8x128xf32>
    %52 = vector.broadcast %48 : f32 to vector<8x128xf32>
    %53 = arith.addf %52, %51 : vector<8x128xf32>
    %c19 = arith.constant 19 : index
    %54 = memref.load %arg1[%c19] : memref<712xf32, #tpu.memory_space<smem>>
    %c8 = arith.constant 8 : index
    %55 = memref.load %arg1[%c8] : memref<712xf32, #tpu.memory_space<smem>>
    %56 = vector.broadcast %55 : f32 to vector<8x128xf32>
    %57 = arith.mulf %56, %5 : vector<8x128xf32>
    %58 = vector.broadcast %54 : f32 to vector<8x128xf32>
    %59 = arith.addf %58, %57 : vector<8x128xf32>
    %c20 = arith.constant 20 : index
    %60 = memref.load %arg1[%c20] : memref<712xf32, #tpu.memory_space<smem>>
    %c9 = arith.constant 9 : index
    %61 = memref.load %arg1[%c9] : memref<712xf32, #tpu.memory_space<smem>>
    %62 = vector.broadcast %61 : f32 to vector<8x128xf32>
    %63 = arith.mulf %62, %5 : vector<8x128xf32>
    %64 = vector.broadcast %60 : f32 to vector<8x128xf32>
    %65 = arith.addf %64, %63 : vector<8x128xf32>
    %c21 = arith.constant 21 : index
    %66 = memref.load %arg1[%c21] : memref<712xf32, #tpu.memory_space<smem>>
    %c10 = arith.constant 10 : index
    %67 = memref.load %arg1[%c10] : memref<712xf32, #tpu.memory_space<smem>>
    %68 = vector.broadcast %67 : f32 to vector<8x128xf32>
    %69 = arith.mulf %68, %5 : vector<8x128xf32>
    %70 = vector.broadcast %66 : f32 to vector<8x128xf32>
    %71 = arith.addf %70, %69 : vector<8x128xf32>
    %cst = arith.constant 0.000000e+00 : f32
    %72 = vector.broadcast %cst : f32 to vector<8x128xf32>
    %73 = arith.cmpf ogt, %11, %72 : vector<8x128xf32>
    %74 = math.exp %11 : vector<8x128xf32>
    %cst_2 = arith.constant 1.000000e+00 : f32
    %75 = vector.broadcast %cst_2 : f32 to vector<8x128xf32>
    %76 = arith.subf %74, %75 : vector<8x128xf32>
    %77 = arith.select %73, %11, %76 : vector<8x128xi1>, vector<8x128xf32>
    %cst_3 = arith.constant 0.000000e+00 : f32
    %78 = vector.broadcast %cst_3 : f32 to vector<8x128xf32>
    %79 = arith.cmpf ogt, %17, %78 : vector<8x128xf32>
    %80 = math.exp %17 : vector<8x128xf32>
    %cst_4 = arith.constant 1.000000e+00 : f32
    %81 = vector.broadcast %cst_4 : f32 to vector<8x128xf32>
    %82 = arith.subf %80, %81 : vector<8x128xf32>
    %83 = arith.select %79, %17, %82 : vector<8x128xi1>, vector<8x128xf32>
    %cst_5 = arith.constant 0.000000e+00 : f32
    %84 = vector.broadcast %cst_5 : f32 to vector<8x128xf32>
    %85 = arith.cmpf ogt, %23, %84 : vector<8x128xf32>
    %86 = math.exp %23 : vector<8x128xf32>
    %cst_6 = arith.constant 1.000000e+00 : f32
    %87 = vector.broadcast %cst_6 : f32 to vector<8x128xf32>
    %88 = arith.subf %86, %87 : vector<8x128xf32>
    %89 = arith.select %85, %23, %88 : vector<8x128xi1>, vector<8x128xf32>
    %cst_7 = arith.constant 0.000000e+00 : f32
    %90 = vector.broadcast %cst_7 : f32 to vector<8x128xf32>
    %91 = arith.cmpf ogt, %29, %90 : vector<8x128xf32>
    %92 = math.exp %29 : vector<8x128xf32>
    %cst_8 = arith.constant 1.000000e+00 : f32
    %93 = vector.broadcast %cst_8 : f32 to vector<8x128xf32>
    %94 = arith.subf %92, %93 : vector<8x128xf32>
    %95 = arith.select %91, %29, %94 : vector<8x128xi1>, vector<8x128xf32>
    %cst_9 = arith.constant 0.000000e+00 : f32
    %96 = vector.broadcast %cst_9 : f32 to vector<8x128xf32>
    %97 = arith.cmpf ogt, %35, %96 : vector<8x128xf32>
    %98 = math.exp %35 : vector<8x128xf32>
    %cst_10 = arith.constant 1.000000e+00 : f32
    %99 = vector.broadcast %cst_10 : f32 to vector<8x128xf32>
    %100 = arith.subf %98, %99 : vector<8x128xf32>
    %101 = arith.select %97, %35, %100 : vector<8x128xi1>, vector<8x128xf32>
    %cst_11 = arith.constant 0.000000e+00 : f32
    %102 = vector.broadcast %cst_11 : f32 to vector<8x128xf32>
    %103 = arith.cmpf ogt, %41, %102 : vector<8x128xf32>
    %104 = math.exp %41 : vector<8x128xf32>
    %cst_12 = arith.constant 1.000000e+00 : f32
    %105 = vector.broadcast %cst_12 : f32 to vector<8x128xf32>
    %106 = arith.subf %104, %105 : vector<8x128xf32>
    %107 = arith.select %103, %41, %106 : vector<8x128xi1>, vector<8x128xf32>
    %cst_13 = arith.constant 0.000000e+00 : f32
    %108 = vector.broadcast %cst_13 : f32 to vector<8x128xf32>
    %109 = arith.cmpf ogt, %47, %108 : vector<8x128xf32>
    %110 = math.exp %47 : vector<8x128xf32>
    %cst_14 = arith.constant 1.000000e+00 : f32
    %111 = vector.broadcast %cst_14 : f32 to vector<8x128xf32>
    %112 = arith.subf %110, %111 : vector<8x128xf32>
    %113 = arith.select %109, %47, %112 : vector<8x128xi1>, vector<8x128xf32>
    %cst_15 = arith.constant 0.000000e+00 : f32
    %114 = vector.broadcast %cst_15 : f32 to vector<8x128xf32>
    %115 = arith.cmpf ogt, %53, %114 : vector<8x128xf32>
    %116 = math.exp %53 : vector<8x128xf32>
    %cst_16 = arith.constant 1.000000e+00 : f32
    %117 = vector.broadcast %cst_16 : f32 to vector<8x128xf32>
    %118 = arith.subf %116, %117 : vector<8x128xf32>
    %119 = arith.select %115, %53, %118 : vector<8x128xi1>, vector<8x128xf32>
    %cst_17 = arith.constant 0.000000e+00 : f32
    %120 = vector.broadcast %cst_17 : f32 to vector<8x128xf32>
    %121 = arith.cmpf ogt, %59, %120 : vector<8x128xf32>
    %122 = math.exp %59 : vector<8x128xf32>
    %cst_18 = arith.constant 1.000000e+00 : f32
    %123 = vector.broadcast %cst_18 : f32 to vector<8x128xf32>
    %124 = arith.subf %122, %123 : vector<8x128xf32>
    %125 = arith.select %121, %59, %124 : vector<8x128xi1>, vector<8x128xf32>
    %cst_19 = arith.constant 0.000000e+00 : f32
    %126 = vector.broadcast %cst_19 : f32 to vector<8x128xf32>
    %127 = arith.cmpf ogt, %65, %126 : vector<8x128xf32>
    %128 = math.exp %65 : vector<8x128xf32>
    %cst_20 = arith.constant 1.000000e+00 : f32
    %129 = vector.broadcast %cst_20 : f32 to vector<8x128xf32>
    %130 = arith.subf %128, %129 : vector<8x128xf32>
    %131 = arith.select %127, %65, %130 : vector<8x128xi1>, vector<8x128xf32>
    %cst_21 = arith.constant 0.000000e+00 : f32
    %132 = vector.broadcast %cst_21 : f32 to vector<8x128xf32>
    %133 = arith.cmpf ogt, %71, %132 : vector<8x128xf32>
    %134 = math.exp %71 : vector<8x128xf32>
    %cst_22 = arith.constant 1.000000e+00 : f32
    %135 = vector.broadcast %cst_22 : f32 to vector<8x128xf32>
    %136 = arith.subf %134, %135 : vector<8x128xf32>
    %137 = arith.select %133, %71, %136 : vector<8x128xi1>, vector<8x128xf32>
    %c341 = arith.constant 341 : index
    %138 = memref.load %arg1[%c341] : memref<712xf32, #tpu.memory_space<smem>>
    %c22 = arith.constant 22 : index
    %139 = memref.load %arg1[%c22] : memref<712xf32, #tpu.memory_space<smem>>
    %140 = vector.broadcast %139 : f32 to vector<8x128xf32>
    %141 = arith.mulf %140, %77 : vector<8x128xf32>
    %142 = vector.broadcast %138 : f32 to vector<8x128xf32>
    %143 = arith.addf %142, %141 : vector<8x128xf32>
    %c23 = arith.constant 23 : index
    %144 = memref.load %arg1[%c23] : memref<712xf32, #tpu.memory_space<smem>>
    %145 = vector.broadcast %144 : f32 to vector<8x128xf32>
    %146 = arith.mulf %145, %83 : vector<8x128xf32>
    %c24 = arith.constant 24 : index
    %147 = memref.load %arg1[%c24] : memref<712xf32, #tpu.memory_space<smem>>
    %148 = vector.broadcast %147 : f32 to vector<8x128xf32>
    %149 = arith.mulf %148, %89 : vector<8x128xf32>
    %150 = arith.addf %143, %149 : vector<8x128xf32>
    %c26 = arith.constant 26 : index
    %151 = memref.load %arg1[%c26] : memref<712xf32, #tpu.memory_space<smem>>
    %152 = vector.broadcast %151 : f32 to vector<8x128xf32>
    %153 = arith.mulf %152, %101 : vector<8x128xf32>
    %154 = arith.addf %150, %153 : vector<8x128xf32>
    %c28 = arith.constant 28 : index
    %155 = memref.load %arg1[%c28] : memref<712xf32, #tpu.memory_space<smem>>
    %156 = vector.broadcast %155 : f32 to vector<8x128xf32>
    %157 = arith.mulf %156, %113 : vector<8x128xf32>
    %158 = arith.addf %154, %157 : vector<8x128xf32>
    %c30 = arith.constant 30 : index
    %159 = memref.load %arg1[%c30] : memref<712xf32, #tpu.memory_space<smem>>
    %160 = vector.broadcast %159 : f32 to vector<8x128xf32>
    %161 = arith.mulf %160, %125 : vector<8x128xf32>
    %162 = arith.addf %158, %161 : vector<8x128xf32>
    %c32 = arith.constant 32 : index
    %163 = memref.load %arg1[%c32] : memref<712xf32, #tpu.memory_space<smem>>
    %164 = vector.broadcast %163 : f32 to vector<8x128xf32>
    %165 = arith.mulf %164, %137 : vector<8x128xf32>
    %166 = arith.addf %162, %165 : vector<8x128xf32>
    %c25 = arith.constant 25 : index
    %167 = memref.load %arg1[%c25] : memref<712xf32, #tpu.memory_space<smem>>
    %168 = vector.broadcast %167 : f32 to vector<8x128xf32>
    %169 = arith.mulf %168, %95 : vector<8x128xf32>
    %170 = arith.addf %146, %169 : vector<8x128xf32>
    %c27 = arith.constant 27 : index
    %171 = memref.load %arg1[%c27] : memref<712xf32, #tpu.memory_space<smem>>
    %172 = vector.broadcast %171 : f32 to vector<8x128xf32>
    %173 = arith.mulf %172, %107 : vector<8x128xf32>
    %174 = arith.addf %170, %173 : vector<8x128xf32>
    %c29 = arith.constant 29 : index
    %175 = memref.load %arg1[%c29] : memref<712xf32, #tpu.memory_space<smem>>
    %176 = vector.broadcast %175 : f32 to vector<8x128xf32>
    %177 = arith.mulf %176, %119 : vector<8x128xf32>
    %178 = arith.addf %174, %177 : vector<8x128xf32>
    %c31 = arith.constant 31 : index
    %179 = memref.load %arg1[%c31] : memref<712xf32, #tpu.memory_space<smem>>
    %180 = vector.broadcast %179 : f32 to vector<8x128xf32>
    %181 = arith.mulf %180, %131 : vector<8x128xf32>
    %182 = arith.addf %178, %181 : vector<8x128xf32>
    %183 = arith.addf %166, %182 : vector<8x128xf32>
    %c342 = arith.constant 342 : index
    %184 = memref.load %arg1[%c342] : memref<712xf32, #tpu.memory_space<smem>>
    %c33 = arith.constant 33 : index
    %185 = memref.load %arg1[%c33] : memref<712xf32, #tpu.memory_space<smem>>
    %186 = vector.broadcast %185 : f32 to vector<8x128xf32>
    %187 = arith.mulf %186, %77 : vector<8x128xf32>
    %188 = vector.broadcast %184 : f32 to vector<8x128xf32>
    %189 = arith.addf %188, %187 : vector<8x128xf32>
    %c34 = arith.constant 34 : index
    %190 = memref.load %arg1[%c34] : memref<712xf32, #tpu.memory_space<smem>>
    %191 = vector.broadcast %190 : f32 to vector<8x128xf32>
    %192 = arith.mulf %191, %83 : vector<8x128xf32>
    %c35 = arith.constant 35 : index
    %193 = memref.load %arg1[%c35] : memref<712xf32, #tpu.memory_space<smem>>
    %194 = vector.broadcast %193 : f32 to vector<8x128xf32>
    %195 = arith.mulf %194, %89 : vector<8x128xf32>
    %196 = arith.addf %189, %195 : vector<8x128xf32>
    %c37 = arith.constant 37 : index
    %197 = memref.load %arg1[%c37] : memref<712xf32, #tpu.memory_space<smem>>
    %198 = vector.broadcast %197 : f32 to vector<8x128xf32>
    %199 = arith.mulf %198, %101 : vector<8x128xf32>
    %200 = arith.addf %196, %199 : vector<8x128xf32>
    %c39 = arith.constant 39 : index
    %201 = memref.load %arg1[%c39] : memref<712xf32, #tpu.memory_space<smem>>
    %202 = vector.broadcast %201 : f32 to vector<8x128xf32>
    %203 = arith.mulf %202, %113 : vector<8x128xf32>
    %204 = arith.addf %200, %203 : vector<8x128xf32>
    %c41 = arith.constant 41 : index
    %205 = memref.load %arg1[%c41] : memref<712xf32, #tpu.memory_space<smem>>
    %206 = vector.broadcast %205 : f32 to vector<8x128xf32>
    %207 = arith.mulf %206, %125 : vector<8x128xf32>
    %208 = arith.addf %204, %207 : vector<8x128xf32>
    %c43 = arith.constant 43 : index
    %209 = memref.load %arg1[%c43] : memref<712xf32, #tpu.memory_space<smem>>
    %210 = vector.broadcast %209 : f32 to vector<8x128xf32>
    %211 = arith.mulf %210, %137 : vector<8x128xf32>
    %212 = arith.addf %208, %211 : vector<8x128xf32>
    %c36 = arith.constant 36 : index
    %213 = memref.load %arg1[%c36] : memref<712xf32, #tpu.memory_space<smem>>
    %214 = vector.broadcast %213 : f32 to vector<8x128xf32>
    %215 = arith.mulf %214, %95 : vector<8x128xf32>
    %216 = arith.addf %192, %215 : vector<8x128xf32>
    %c38 = arith.constant 38 : index
    %217 = memref.load %arg1[%c38] : memref<712xf32, #tpu.memory_space<smem>>
    %218 = vector.broadcast %217 : f32 to vector<8x128xf32>
    %219 = arith.mulf %218, %107 : vector<8x128xf32>
    %220 = arith.addf %216, %219 : vector<8x128xf32>
    %c40 = arith.constant 40 : index
    %221 = memref.load %arg1[%c40] : memref<712xf32, #tpu.memory_space<smem>>
    %222 = vector.broadcast %221 : f32 to vector<8x128xf32>
    %223 = arith.mulf %222, %119 : vector<8x128xf32>
    %224 = arith.addf %220, %223 : vector<8x128xf32>
    %c42 = arith.constant 42 : index
    %225 = memref.load %arg1[%c42] : memref<712xf32, #tpu.memory_space<smem>>
    %226 = vector.broadcast %225 : f32 to vector<8x128xf32>
    %227 = arith.mulf %226, %131 : vector<8x128xf32>
    %228 = arith.addf %224, %227 : vector<8x128xf32>
    %229 = arith.addf %212, %228 : vector<8x128xf32>
    %c343 = arith.constant 343 : index
    %230 = memref.load %arg1[%c343] : memref<712xf32, #tpu.memory_space<smem>>
    %c44 = arith.constant 44 : index
    %231 = memref.load %arg1[%c44] : memref<712xf32, #tpu.memory_space<smem>>
    %232 = vector.broadcast %231 : f32 to vector<8x128xf32>
    %233 = arith.mulf %232, %77 : vector<8x128xf32>
    %234 = vector.broadcast %230 : f32 to vector<8x128xf32>
    %235 = arith.addf %234, %233 : vector<8x128xf32>
    %c45 = arith.constant 45 : index
    %236 = memref.load %arg1[%c45] : memref<712xf32, #tpu.memory_space<smem>>
    %237 = vector.broadcast %236 : f32 to vector<8x128xf32>
    %238 = arith.mulf %237, %83 : vector<8x128xf32>
    %c46 = arith.constant 46 : index
    %239 = memref.load %arg1[%c46] : memref<712xf32, #tpu.memory_space<smem>>
    %240 = vector.broadcast %239 : f32 to vector<8x128xf32>
    %241 = arith.mulf %240, %89 : vector<8x128xf32>
    %242 = arith.addf %235, %241 : vector<8x128xf32>
    %c48 = arith.constant 48 : index
    %243 = memref.load %arg1[%c48] : memref<712xf32, #tpu.memory_space<smem>>
    %244 = vector.broadcast %243 : f32 to vector<8x128xf32>
    %245 = arith.mulf %244, %101 : vector<8x128xf32>
    %246 = arith.addf %242, %245 : vector<8x128xf32>
    %c50 = arith.constant 50 : index
    %247 = memref.load %arg1[%c50] : memref<712xf32, #tpu.memory_space<smem>>
    %248 = vector.broadcast %247 : f32 to vector<8x128xf32>
    %249 = arith.mulf %248, %113 : vector<8x128xf32>
    %250 = arith.addf %246, %249 : vector<8x128xf32>
    %c52 = arith.constant 52 : index
    %251 = memref.load %arg1[%c52] : memref<712xf32, #tpu.memory_space<smem>>
    %252 = vector.broadcast %251 : f32 to vector<8x128xf32>
    %253 = arith.mulf %252, %125 : vector<8x128xf32>
    %254 = arith.addf %250, %253 : vector<8x128xf32>
    %c54 = arith.constant 54 : index
    %255 = memref.load %arg1[%c54] : memref<712xf32, #tpu.memory_space<smem>>
    %256 = vector.broadcast %255 : f32 to vector<8x128xf32>
    %257 = arith.mulf %256, %137 : vector<8x128xf32>
    %258 = arith.addf %254, %257 : vector<8x128xf32>
    %c47 = arith.constant 47 : index
    %259 = memref.load %arg1[%c47] : memref<712xf32, #tpu.memory_space<smem>>
    %260 = vector.broadcast %259 : f32 to vector<8x128xf32>
    %261 = arith.mulf %260, %95 : vector<8x128xf32>
    %262 = arith.addf %238, %261 : vector<8x128xf32>
    %c49 = arith.constant 49 : index
    %263 = memref.load %arg1[%c49] : memref<712xf32, #tpu.memory_space<smem>>
    %264 = vector.broadcast %263 : f32 to vector<8x128xf32>
    %265 = arith.mulf %264, %107 : vector<8x128xf32>
    %266 = arith.addf %262, %265 : vector<8x128xf32>
    %c51 = arith.constant 51 : index
    %267 = memref.load %arg1[%c51] : memref<712xf32, #tpu.memory_space<smem>>
    %268 = vector.broadcast %267 : f32 to vector<8x128xf32>
    %269 = arith.mulf %268, %119 : vector<8x128xf32>
    %270 = arith.addf %266, %269 : vector<8x128xf32>
    %c53 = arith.constant 53 : index
    %271 = memref.load %arg1[%c53] : memref<712xf32, #tpu.memory_space<smem>>
    %272 = vector.broadcast %271 : f32 to vector<8x128xf32>
    %273 = arith.mulf %272, %131 : vector<8x128xf32>
    %274 = arith.addf %270, %273 : vector<8x128xf32>
    %275 = arith.addf %258, %274 : vector<8x128xf32>
    %c344 = arith.constant 344 : index
    %276 = memref.load %arg1[%c344] : memref<712xf32, #tpu.memory_space<smem>>
    %c55 = arith.constant 55 : index
    %277 = memref.load %arg1[%c55] : memref<712xf32, #tpu.memory_space<smem>>
    %278 = vector.broadcast %277 : f32 to vector<8x128xf32>
    %279 = arith.mulf %278, %77 : vector<8x128xf32>
    %280 = vector.broadcast %276 : f32 to vector<8x128xf32>
    %281 = arith.addf %280, %279 : vector<8x128xf32>
    %c56 = arith.constant 56 : index
    %282 = memref.load %arg1[%c56] : memref<712xf32, #tpu.memory_space<smem>>
    %283 = vector.broadcast %282 : f32 to vector<8x128xf32>
    %284 = arith.mulf %283, %83 : vector<8x128xf32>
    %c57 = arith.constant 57 : index
    %285 = memref.load %arg1[%c57] : memref<712xf32, #tpu.memory_space<smem>>
    %286 = vector.broadcast %285 : f32 to vector<8x128xf32>
    %287 = arith.mulf %286, %89 : vector<8x128xf32>
    %288 = arith.addf %281, %287 : vector<8x128xf32>
    %c59 = arith.constant 59 : index
    %289 = memref.load %arg1[%c59] : memref<712xf32, #tpu.memory_space<smem>>
    %290 = vector.broadcast %289 : f32 to vector<8x128xf32>
    %291 = arith.mulf %290, %101 : vector<8x128xf32>
    %292 = arith.addf %288, %291 : vector<8x128xf32>
    %c61 = arith.constant 61 : index
    %293 = memref.load %arg1[%c61] : memref<712xf32, #tpu.memory_space<smem>>
    %294 = vector.broadcast %293 : f32 to vector<8x128xf32>
    %295 = arith.mulf %294, %113 : vector<8x128xf32>
    %296 = arith.addf %292, %295 : vector<8x128xf32>
    %c63 = arith.constant 63 : index
    %297 = memref.load %arg1[%c63] : memref<712xf32, #tpu.memory_space<smem>>
    %298 = vector.broadcast %297 : f32 to vector<8x128xf32>
    %299 = arith.mulf %298, %125 : vector<8x128xf32>
    %300 = arith.addf %296, %299 : vector<8x128xf32>
    %c65 = arith.constant 65 : index
    %301 = memref.load %arg1[%c65] : memref<712xf32, #tpu.memory_space<smem>>
    %302 = vector.broadcast %301 : f32 to vector<8x128xf32>
    %303 = arith.mulf %302, %137 : vector<8x128xf32>
    %304 = arith.addf %300, %303 : vector<8x128xf32>
    %c58 = arith.constant 58 : index
    %305 = memref.load %arg1[%c58] : memref<712xf32, #tpu.memory_space<smem>>
    %306 = vector.broadcast %305 : f32 to vector<8x128xf32>
    %307 = arith.mulf %306, %95 : vector<8x128xf32>
    %308 = arith.addf %284, %307 : vector<8x128xf32>
    %c60 = arith.constant 60 : index
    %309 = memref.load %arg1[%c60] : memref<712xf32, #tpu.memory_space<smem>>
    %310 = vector.broadcast %309 : f32 to vector<8x128xf32>
    %311 = arith.mulf %310, %107 : vector<8x128xf32>
    %312 = arith.addf %308, %311 : vector<8x128xf32>
    %c62 = arith.constant 62 : index
    %313 = memref.load %arg1[%c62] : memref<712xf32, #tpu.memory_space<smem>>
    %314 = vector.broadcast %313 : f32 to vector<8x128xf32>
    %315 = arith.mulf %314, %119 : vector<8x128xf32>
    %316 = arith.addf %312, %315 : vector<8x128xf32>
    %c64 = arith.constant 64 : index
    %317 = memref.load %arg1[%c64] : memref<712xf32, #tpu.memory_space<smem>>
    %318 = vector.broadcast %317 : f32 to vector<8x128xf32>
    %319 = arith.mulf %318, %131 : vector<8x128xf32>
    %320 = arith.addf %316, %319 : vector<8x128xf32>
    %321 = arith.addf %304, %320 : vector<8x128xf32>
    %c345 = arith.constant 345 : index
    %322 = memref.load %arg1[%c345] : memref<712xf32, #tpu.memory_space<smem>>
    %c66 = arith.constant 66 : index
    %323 = memref.load %arg1[%c66] : memref<712xf32, #tpu.memory_space<smem>>
    %324 = vector.broadcast %323 : f32 to vector<8x128xf32>
    %325 = arith.mulf %324, %77 : vector<8x128xf32>
    %326 = vector.broadcast %322 : f32 to vector<8x128xf32>
    %327 = arith.addf %326, %325 : vector<8x128xf32>
    %c67 = arith.constant 67 : index
    %328 = memref.load %arg1[%c67] : memref<712xf32, #tpu.memory_space<smem>>
    %329 = vector.broadcast %328 : f32 to vector<8x128xf32>
    %330 = arith.mulf %329, %83 : vector<8x128xf32>
    %c68 = arith.constant 68 : index
    %331 = memref.load %arg1[%c68] : memref<712xf32, #tpu.memory_space<smem>>
    %332 = vector.broadcast %331 : f32 to vector<8x128xf32>
    %333 = arith.mulf %332, %89 : vector<8x128xf32>
    %334 = arith.addf %327, %333 : vector<8x128xf32>
    %c70 = arith.constant 70 : index
    %335 = memref.load %arg1[%c70] : memref<712xf32, #tpu.memory_space<smem>>
    %336 = vector.broadcast %335 : f32 to vector<8x128xf32>
    %337 = arith.mulf %336, %101 : vector<8x128xf32>
    %338 = arith.addf %334, %337 : vector<8x128xf32>
    %c72 = arith.constant 72 : index
    %339 = memref.load %arg1[%c72] : memref<712xf32, #tpu.memory_space<smem>>
    %340 = vector.broadcast %339 : f32 to vector<8x128xf32>
    %341 = arith.mulf %340, %113 : vector<8x128xf32>
    %342 = arith.addf %338, %341 : vector<8x128xf32>
    %c74 = arith.constant 74 : index
    %343 = memref.load %arg1[%c74] : memref<712xf32, #tpu.memory_space<smem>>
    %344 = vector.broadcast %343 : f32 to vector<8x128xf32>
    %345 = arith.mulf %344, %125 : vector<8x128xf32>
    %346 = arith.addf %342, %345 : vector<8x128xf32>
    %c76 = arith.constant 76 : index
    %347 = memref.load %arg1[%c76] : memref<712xf32, #tpu.memory_space<smem>>
    %348 = vector.broadcast %347 : f32 to vector<8x128xf32>
    %349 = arith.mulf %348, %137 : vector<8x128xf32>
    %350 = arith.addf %346, %349 : vector<8x128xf32>
    %c69 = arith.constant 69 : index
    %351 = memref.load %arg1[%c69] : memref<712xf32, #tpu.memory_space<smem>>
    %352 = vector.broadcast %351 : f32 to vector<8x128xf32>
    %353 = arith.mulf %352, %95 : vector<8x128xf32>
    %354 = arith.addf %330, %353 : vector<8x128xf32>
    %c71 = arith.constant 71 : index
    %355 = memref.load %arg1[%c71] : memref<712xf32, #tpu.memory_space<smem>>
    %356 = vector.broadcast %355 : f32 to vector<8x128xf32>
    %357 = arith.mulf %356, %107 : vector<8x128xf32>
    %358 = arith.addf %354, %357 : vector<8x128xf32>
    %c73 = arith.constant 73 : index
    %359 = memref.load %arg1[%c73] : memref<712xf32, #tpu.memory_space<smem>>
    %360 = vector.broadcast %359 : f32 to vector<8x128xf32>
    %361 = arith.mulf %360, %119 : vector<8x128xf32>
    %362 = arith.addf %358, %361 : vector<8x128xf32>
    %c75 = arith.constant 75 : index
    %363 = memref.load %arg1[%c75] : memref<712xf32, #tpu.memory_space<smem>>
    %364 = vector.broadcast %363 : f32 to vector<8x128xf32>
    %365 = arith.mulf %364, %131 : vector<8x128xf32>
    %366 = arith.addf %362, %365 : vector<8x128xf32>
    %367 = arith.addf %350, %366 : vector<8x128xf32>
    %c346 = arith.constant 346 : index
    %368 = memref.load %arg1[%c346] : memref<712xf32, #tpu.memory_space<smem>>
    %c77 = arith.constant 77 : index
    %369 = memref.load %arg1[%c77] : memref<712xf32, #tpu.memory_space<smem>>
    %370 = vector.broadcast %369 : f32 to vector<8x128xf32>
    %371 = arith.mulf %370, %77 : vector<8x128xf32>
    %372 = vector.broadcast %368 : f32 to vector<8x128xf32>
    %373 = arith.addf %372, %371 : vector<8x128xf32>
    %c78 = arith.constant 78 : index
    %374 = memref.load %arg1[%c78] : memref<712xf32, #tpu.memory_space<smem>>
    %375 = vector.broadcast %374 : f32 to vector<8x128xf32>
    %376 = arith.mulf %375, %83 : vector<8x128xf32>
    %c79 = arith.constant 79 : index
    %377 = memref.load %arg1[%c79] : memref<712xf32, #tpu.memory_space<smem>>
    %378 = vector.broadcast %377 : f32 to vector<8x128xf32>
    %379 = arith.mulf %378, %89 : vector<8x128xf32>
    %380 = arith.addf %373, %379 : vector<8x128xf32>
    %c81 = arith.constant 81 : index
    %381 = memref.load %arg1[%c81] : memref<712xf32, #tpu.memory_space<smem>>
    %382 = vector.broadcast %381 : f32 to vector<8x128xf32>
    %383 = arith.mulf %382, %101 : vector<8x128xf32>
    %384 = arith.addf %380, %383 : vector<8x128xf32>
    %c83 = arith.constant 83 : index
    %385 = memref.load %arg1[%c83] : memref<712xf32, #tpu.memory_space<smem>>
    %386 = vector.broadcast %385 : f32 to vector<8x128xf32>
    %387 = arith.mulf %386, %113 : vector<8x128xf32>
    %388 = arith.addf %384, %387 : vector<8x128xf32>
    %c85 = arith.constant 85 : index
    %389 = memref.load %arg1[%c85] : memref<712xf32, #tpu.memory_space<smem>>
    %390 = vector.broadcast %389 : f32 to vector<8x128xf32>
    %391 = arith.mulf %390, %125 : vector<8x128xf32>
    %392 = arith.addf %388, %391 : vector<8x128xf32>
    %c87 = arith.constant 87 : index
    %393 = memref.load %arg1[%c87] : memref<712xf32, #tpu.memory_space<smem>>
    %394 = vector.broadcast %393 : f32 to vector<8x128xf32>
    %395 = arith.mulf %394, %137 : vector<8x128xf32>
    %396 = arith.addf %392, %395 : vector<8x128xf32>
    %c80 = arith.constant 80 : index
    %397 = memref.load %arg1[%c80] : memref<712xf32, #tpu.memory_space<smem>>
    %398 = vector.broadcast %397 : f32 to vector<8x128xf32>
    %399 = arith.mulf %398, %95 : vector<8x128xf32>
    %400 = arith.addf %376, %399 : vector<8x128xf32>
    %c82 = arith.constant 82 : index
    %401 = memref.load %arg1[%c82] : memref<712xf32, #tpu.memory_space<smem>>
    %402 = vector.broadcast %401 : f32 to vector<8x128xf32>
    %403 = arith.mulf %402, %107 : vector<8x128xf32>
    %404 = arith.addf %400, %403 : vector<8x128xf32>
    %c84 = arith.constant 84 : index
    %405 = memref.load %arg1[%c84] : memref<712xf32, #tpu.memory_space<smem>>
    %406 = vector.broadcast %405 : f32 to vector<8x128xf32>
    %407 = arith.mulf %406, %119 : vector<8x128xf32>
    %408 = arith.addf %404, %407 : vector<8x128xf32>
    %c86 = arith.constant 86 : index
    %409 = memref.load %arg1[%c86] : memref<712xf32, #tpu.memory_space<smem>>
    %410 = vector.broadcast %409 : f32 to vector<8x128xf32>
    %411 = arith.mulf %410, %131 : vector<8x128xf32>
    %412 = arith.addf %408, %411 : vector<8x128xf32>
    %413 = arith.addf %396, %412 : vector<8x128xf32>
    %c347 = arith.constant 347 : index
    %414 = memref.load %arg1[%c347] : memref<712xf32, #tpu.memory_space<smem>>
    %c88 = arith.constant 88 : index
    %415 = memref.load %arg1[%c88] : memref<712xf32, #tpu.memory_space<smem>>
    %416 = vector.broadcast %415 : f32 to vector<8x128xf32>
    %417 = arith.mulf %416, %77 : vector<8x128xf32>
    %418 = vector.broadcast %414 : f32 to vector<8x128xf32>
    %419 = arith.addf %418, %417 : vector<8x128xf32>
    %c89 = arith.constant 89 : index
    %420 = memref.load %arg1[%c89] : memref<712xf32, #tpu.memory_space<smem>>
    %421 = vector.broadcast %420 : f32 to vector<8x128xf32>
    %422 = arith.mulf %421, %83 : vector<8x128xf32>
    %c90 = arith.constant 90 : index
    %423 = memref.load %arg1[%c90] : memref<712xf32, #tpu.memory_space<smem>>
    %424 = vector.broadcast %423 : f32 to vector<8x128xf32>
    %425 = arith.mulf %424, %89 : vector<8x128xf32>
    %426 = arith.addf %419, %425 : vector<8x128xf32>
    %c92 = arith.constant 92 : index
    %427 = memref.load %arg1[%c92] : memref<712xf32, #tpu.memory_space<smem>>
    %428 = vector.broadcast %427 : f32 to vector<8x128xf32>
    %429 = arith.mulf %428, %101 : vector<8x128xf32>
    %430 = arith.addf %426, %429 : vector<8x128xf32>
    %c94 = arith.constant 94 : index
    %431 = memref.load %arg1[%c94] : memref<712xf32, #tpu.memory_space<smem>>
    %432 = vector.broadcast %431 : f32 to vector<8x128xf32>
    %433 = arith.mulf %432, %113 : vector<8x128xf32>
    %434 = arith.addf %430, %433 : vector<8x128xf32>
    %c96 = arith.constant 96 : index
    %435 = memref.load %arg1[%c96] : memref<712xf32, #tpu.memory_space<smem>>
    %436 = vector.broadcast %435 : f32 to vector<8x128xf32>
    %437 = arith.mulf %436, %125 : vector<8x128xf32>
    %438 = arith.addf %434, %437 : vector<8x128xf32>
    %c98 = arith.constant 98 : index
    %439 = memref.load %arg1[%c98] : memref<712xf32, #tpu.memory_space<smem>>
    %440 = vector.broadcast %439 : f32 to vector<8x128xf32>
    %441 = arith.mulf %440, %137 : vector<8x128xf32>
    %442 = arith.addf %438, %441 : vector<8x128xf32>
    %c91 = arith.constant 91 : index
    %443 = memref.load %arg1[%c91] : memref<712xf32, #tpu.memory_space<smem>>
    %444 = vector.broadcast %443 : f32 to vector<8x128xf32>
    %445 = arith.mulf %444, %95 : vector<8x128xf32>
    %446 = arith.addf %422, %445 : vector<8x128xf32>
    %c93 = arith.constant 93 : index
    %447 = memref.load %arg1[%c93] : memref<712xf32, #tpu.memory_space<smem>>
    %448 = vector.broadcast %447 : f32 to vector<8x128xf32>
    %449 = arith.mulf %448, %107 : vector<8x128xf32>
    %450 = arith.addf %446, %449 : vector<8x128xf32>
    %c95 = arith.constant 95 : index
    %451 = memref.load %arg1[%c95] : memref<712xf32, #tpu.memory_space<smem>>
    %452 = vector.broadcast %451 : f32 to vector<8x128xf32>
    %453 = arith.mulf %452, %119 : vector<8x128xf32>
    %454 = arith.addf %450, %453 : vector<8x128xf32>
    %c97 = arith.constant 97 : index
    %455 = memref.load %arg1[%c97] : memref<712xf32, #tpu.memory_space<smem>>
    %456 = vector.broadcast %455 : f32 to vector<8x128xf32>
    %457 = arith.mulf %456, %131 : vector<8x128xf32>
    %458 = arith.addf %454, %457 : vector<8x128xf32>
    %459 = arith.addf %442, %458 : vector<8x128xf32>
    %c348 = arith.constant 348 : index
    %460 = memref.load %arg1[%c348] : memref<712xf32, #tpu.memory_space<smem>>
    %c99 = arith.constant 99 : index
    %461 = memref.load %arg1[%c99] : memref<712xf32, #tpu.memory_space<smem>>
    %462 = vector.broadcast %461 : f32 to vector<8x128xf32>
    %463 = arith.mulf %462, %77 : vector<8x128xf32>
    %464 = vector.broadcast %460 : f32 to vector<8x128xf32>
    %465 = arith.addf %464, %463 : vector<8x128xf32>
    %c100 = arith.constant 100 : index
    %466 = memref.load %arg1[%c100] : memref<712xf32, #tpu.memory_space<smem>>
    %467 = vector.broadcast %466 : f32 to vector<8x128xf32>
    %468 = arith.mulf %467, %83 : vector<8x128xf32>
    %c101 = arith.constant 101 : index
    %469 = memref.load %arg1[%c101] : memref<712xf32, #tpu.memory_space<smem>>
    %470 = vector.broadcast %469 : f32 to vector<8x128xf32>
    %471 = arith.mulf %470, %89 : vector<8x128xf32>
    %472 = arith.addf %465, %471 : vector<8x128xf32>
    %c103 = arith.constant 103 : index
    %473 = memref.load %arg1[%c103] : memref<712xf32, #tpu.memory_space<smem>>
    %474 = vector.broadcast %473 : f32 to vector<8x128xf32>
    %475 = arith.mulf %474, %101 : vector<8x128xf32>
    %476 = arith.addf %472, %475 : vector<8x128xf32>
    %c105 = arith.constant 105 : index
    %477 = memref.load %arg1[%c105] : memref<712xf32, #tpu.memory_space<smem>>
    %478 = vector.broadcast %477 : f32 to vector<8x128xf32>
    %479 = arith.mulf %478, %113 : vector<8x128xf32>
    %480 = arith.addf %476, %479 : vector<8x128xf32>
    %c107 = arith.constant 107 : index
    %481 = memref.load %arg1[%c107] : memref<712xf32, #tpu.memory_space<smem>>
    %482 = vector.broadcast %481 : f32 to vector<8x128xf32>
    %483 = arith.mulf %482, %125 : vector<8x128xf32>
    %484 = arith.addf %480, %483 : vector<8x128xf32>
    %c109 = arith.constant 109 : index
    %485 = memref.load %arg1[%c109] : memref<712xf32, #tpu.memory_space<smem>>
    %486 = vector.broadcast %485 : f32 to vector<8x128xf32>
    %487 = arith.mulf %486, %137 : vector<8x128xf32>
    %488 = arith.addf %484, %487 : vector<8x128xf32>
    %c102 = arith.constant 102 : index
    %489 = memref.load %arg1[%c102] : memref<712xf32, #tpu.memory_space<smem>>
    %490 = vector.broadcast %489 : f32 to vector<8x128xf32>
    %491 = arith.mulf %490, %95 : vector<8x128xf32>
    %492 = arith.addf %468, %491 : vector<8x128xf32>
    %c104 = arith.constant 104 : index
    %493 = memref.load %arg1[%c104] : memref<712xf32, #tpu.memory_space<smem>>
    %494 = vector.broadcast %493 : f32 to vector<8x128xf32>
    %495 = arith.mulf %494, %107 : vector<8x128xf32>
    %496 = arith.addf %492, %495 : vector<8x128xf32>
    %c106 = arith.constant 106 : index
    %497 = memref.load %arg1[%c106] : memref<712xf32, #tpu.memory_space<smem>>
    %498 = vector.broadcast %497 : f32 to vector<8x128xf32>
    %499 = arith.mulf %498, %119 : vector<8x128xf32>
    %500 = arith.addf %496, %499 : vector<8x128xf32>
    %c108 = arith.constant 108 : index
    %501 = memref.load %arg1[%c108] : memref<712xf32, #tpu.memory_space<smem>>
    %502 = vector.broadcast %501 : f32 to vector<8x128xf32>
    %503 = arith.mulf %502, %131 : vector<8x128xf32>
    %504 = arith.addf %500, %503 : vector<8x128xf32>
    %505 = arith.addf %488, %504 : vector<8x128xf32>
    %c349 = arith.constant 349 : index
    %506 = memref.load %arg1[%c349] : memref<712xf32, #tpu.memory_space<smem>>
    %c110 = arith.constant 110 : index
    %507 = memref.load %arg1[%c110] : memref<712xf32, #tpu.memory_space<smem>>
    %508 = vector.broadcast %507 : f32 to vector<8x128xf32>
    %509 = arith.mulf %508, %77 : vector<8x128xf32>
    %510 = vector.broadcast %506 : f32 to vector<8x128xf32>
    %511 = arith.addf %510, %509 : vector<8x128xf32>
    %c111 = arith.constant 111 : index
    %512 = memref.load %arg1[%c111] : memref<712xf32, #tpu.memory_space<smem>>
    %513 = vector.broadcast %512 : f32 to vector<8x128xf32>
    %514 = arith.mulf %513, %83 : vector<8x128xf32>
    %c112 = arith.constant 112 : index
    %515 = memref.load %arg1[%c112] : memref<712xf32, #tpu.memory_space<smem>>
    %516 = vector.broadcast %515 : f32 to vector<8x128xf32>
    %517 = arith.mulf %516, %89 : vector<8x128xf32>
    %518 = arith.addf %511, %517 : vector<8x128xf32>
    %c114 = arith.constant 114 : index
    %519 = memref.load %arg1[%c114] : memref<712xf32, #tpu.memory_space<smem>>
    %520 = vector.broadcast %519 : f32 to vector<8x128xf32>
    %521 = arith.mulf %520, %101 : vector<8x128xf32>
    %522 = arith.addf %518, %521 : vector<8x128xf32>
    %c116 = arith.constant 116 : index
    %523 = memref.load %arg1[%c116] : memref<712xf32, #tpu.memory_space<smem>>
    %524 = vector.broadcast %523 : f32 to vector<8x128xf32>
    %525 = arith.mulf %524, %113 : vector<8x128xf32>
    %526 = arith.addf %522, %525 : vector<8x128xf32>
    %c118 = arith.constant 118 : index
    %527 = memref.load %arg1[%c118] : memref<712xf32, #tpu.memory_space<smem>>
    %528 = vector.broadcast %527 : f32 to vector<8x128xf32>
    %529 = arith.mulf %528, %125 : vector<8x128xf32>
    %530 = arith.addf %526, %529 : vector<8x128xf32>
    %c120 = arith.constant 120 : index
    %531 = memref.load %arg1[%c120] : memref<712xf32, #tpu.memory_space<smem>>
    %532 = vector.broadcast %531 : f32 to vector<8x128xf32>
    %533 = arith.mulf %532, %137 : vector<8x128xf32>
    %534 = arith.addf %530, %533 : vector<8x128xf32>
    %c113 = arith.constant 113 : index
    %535 = memref.load %arg1[%c113] : memref<712xf32, #tpu.memory_space<smem>>
    %536 = vector.broadcast %535 : f32 to vector<8x128xf32>
    %537 = arith.mulf %536, %95 : vector<8x128xf32>
    %538 = arith.addf %514, %537 : vector<8x128xf32>
    %c115 = arith.constant 115 : index
    %539 = memref.load %arg1[%c115] : memref<712xf32, #tpu.memory_space<smem>>
    %540 = vector.broadcast %539 : f32 to vector<8x128xf32>
    %541 = arith.mulf %540, %107 : vector<8x128xf32>
    %542 = arith.addf %538, %541 : vector<8x128xf32>
    %c117 = arith.constant 117 : index
    %543 = memref.load %arg1[%c117] : memref<712xf32, #tpu.memory_space<smem>>
    %544 = vector.broadcast %543 : f32 to vector<8x128xf32>
    %545 = arith.mulf %544, %119 : vector<8x128xf32>
    %546 = arith.addf %542, %545 : vector<8x128xf32>
    %c119 = arith.constant 119 : index
    %547 = memref.load %arg1[%c119] : memref<712xf32, #tpu.memory_space<smem>>
    %548 = vector.broadcast %547 : f32 to vector<8x128xf32>
    %549 = arith.mulf %548, %131 : vector<8x128xf32>
    %550 = arith.addf %546, %549 : vector<8x128xf32>
    %551 = arith.addf %534, %550 : vector<8x128xf32>
    %c350 = arith.constant 350 : index
    %552 = memref.load %arg1[%c350] : memref<712xf32, #tpu.memory_space<smem>>
    %c121 = arith.constant 121 : index
    %553 = memref.load %arg1[%c121] : memref<712xf32, #tpu.memory_space<smem>>
    %554 = vector.broadcast %553 : f32 to vector<8x128xf32>
    %555 = arith.mulf %554, %77 : vector<8x128xf32>
    %556 = vector.broadcast %552 : f32 to vector<8x128xf32>
    %557 = arith.addf %556, %555 : vector<8x128xf32>
    %c122 = arith.constant 122 : index
    %558 = memref.load %arg1[%c122] : memref<712xf32, #tpu.memory_space<smem>>
    %559 = vector.broadcast %558 : f32 to vector<8x128xf32>
    %560 = arith.mulf %559, %83 : vector<8x128xf32>
    %c123 = arith.constant 123 : index
    %561 = memref.load %arg1[%c123] : memref<712xf32, #tpu.memory_space<smem>>
    %562 = vector.broadcast %561 : f32 to vector<8x128xf32>
    %563 = arith.mulf %562, %89 : vector<8x128xf32>
    %564 = arith.addf %557, %563 : vector<8x128xf32>
    %c125 = arith.constant 125 : index
    %565 = memref.load %arg1[%c125] : memref<712xf32, #tpu.memory_space<smem>>
    %566 = vector.broadcast %565 : f32 to vector<8x128xf32>
    %567 = arith.mulf %566, %101 : vector<8x128xf32>
    %568 = arith.addf %564, %567 : vector<8x128xf32>
    %c127 = arith.constant 127 : index
    %569 = memref.load %arg1[%c127] : memref<712xf32, #tpu.memory_space<smem>>
    %570 = vector.broadcast %569 : f32 to vector<8x128xf32>
    %571 = arith.mulf %570, %113 : vector<8x128xf32>
    %572 = arith.addf %568, %571 : vector<8x128xf32>
    %c129 = arith.constant 129 : index
    %573 = memref.load %arg1[%c129] : memref<712xf32, #tpu.memory_space<smem>>
    %574 = vector.broadcast %573 : f32 to vector<8x128xf32>
    %575 = arith.mulf %574, %125 : vector<8x128xf32>
    %576 = arith.addf %572, %575 : vector<8x128xf32>
    %c131 = arith.constant 131 : index
    %577 = memref.load %arg1[%c131] : memref<712xf32, #tpu.memory_space<smem>>
    %578 = vector.broadcast %577 : f32 to vector<8x128xf32>
    %579 = arith.mulf %578, %137 : vector<8x128xf32>
    %580 = arith.addf %576, %579 : vector<8x128xf32>
    %c124 = arith.constant 124 : index
    %581 = memref.load %arg1[%c124] : memref<712xf32, #tpu.memory_space<smem>>
    %582 = vector.broadcast %581 : f32 to vector<8x128xf32>
    %583 = arith.mulf %582, %95 : vector<8x128xf32>
    %584 = arith.addf %560, %583 : vector<8x128xf32>
    %c126 = arith.constant 126 : index
    %585 = memref.load %arg1[%c126] : memref<712xf32, #tpu.memory_space<smem>>
    %586 = vector.broadcast %585 : f32 to vector<8x128xf32>
    %587 = arith.mulf %586, %107 : vector<8x128xf32>
    %588 = arith.addf %584, %587 : vector<8x128xf32>
    %c128 = arith.constant 128 : index
    %589 = memref.load %arg1[%c128] : memref<712xf32, #tpu.memory_space<smem>>
    %590 = vector.broadcast %589 : f32 to vector<8x128xf32>
    %591 = arith.mulf %590, %119 : vector<8x128xf32>
    %592 = arith.addf %588, %591 : vector<8x128xf32>
    %c130 = arith.constant 130 : index
    %593 = memref.load %arg1[%c130] : memref<712xf32, #tpu.memory_space<smem>>
    %594 = vector.broadcast %593 : f32 to vector<8x128xf32>
    %595 = arith.mulf %594, %131 : vector<8x128xf32>
    %596 = arith.addf %592, %595 : vector<8x128xf32>
    %597 = arith.addf %580, %596 : vector<8x128xf32>
    %c351 = arith.constant 351 : index
    %598 = memref.load %arg1[%c351] : memref<712xf32, #tpu.memory_space<smem>>
    %c132 = arith.constant 132 : index
    %599 = memref.load %arg1[%c132] : memref<712xf32, #tpu.memory_space<smem>>
    %600 = vector.broadcast %599 : f32 to vector<8x128xf32>
    %601 = arith.mulf %600, %77 : vector<8x128xf32>
    %602 = vector.broadcast %598 : f32 to vector<8x128xf32>
    %603 = arith.addf %602, %601 : vector<8x128xf32>
    %c133 = arith.constant 133 : index
    %604 = memref.load %arg1[%c133] : memref<712xf32, #tpu.memory_space<smem>>
    %605 = vector.broadcast %604 : f32 to vector<8x128xf32>
    %606 = arith.mulf %605, %83 : vector<8x128xf32>
    %c134 = arith.constant 134 : index
    %607 = memref.load %arg1[%c134] : memref<712xf32, #tpu.memory_space<smem>>
    %608 = vector.broadcast %607 : f32 to vector<8x128xf32>
    %609 = arith.mulf %608, %89 : vector<8x128xf32>
    %610 = arith.addf %603, %609 : vector<8x128xf32>
    %c136 = arith.constant 136 : index
    %611 = memref.load %arg1[%c136] : memref<712xf32, #tpu.memory_space<smem>>
    %612 = vector.broadcast %611 : f32 to vector<8x128xf32>
    %613 = arith.mulf %612, %101 : vector<8x128xf32>
    %614 = arith.addf %610, %613 : vector<8x128xf32>
    %c138 = arith.constant 138 : index
    %615 = memref.load %arg1[%c138] : memref<712xf32, #tpu.memory_space<smem>>
    %616 = vector.broadcast %615 : f32 to vector<8x128xf32>
    %617 = arith.mulf %616, %113 : vector<8x128xf32>
    %618 = arith.addf %614, %617 : vector<8x128xf32>
    %c140 = arith.constant 140 : index
    %619 = memref.load %arg1[%c140] : memref<712xf32, #tpu.memory_space<smem>>
    %620 = vector.broadcast %619 : f32 to vector<8x128xf32>
    %621 = arith.mulf %620, %125 : vector<8x128xf32>
    %622 = arith.addf %618, %621 : vector<8x128xf32>
    %c142 = arith.constant 142 : index
    %623 = memref.load %arg1[%c142] : memref<712xf32, #tpu.memory_space<smem>>
    %624 = vector.broadcast %623 : f32 to vector<8x128xf32>
    %625 = arith.mulf %624, %137 : vector<8x128xf32>
    %626 = arith.addf %622, %625 : vector<8x128xf32>
    %c135 = arith.constant 135 : index
    %627 = memref.load %arg1[%c135] : memref<712xf32, #tpu.memory_space<smem>>
    %628 = vector.broadcast %627 : f32 to vector<8x128xf32>
    %629 = arith.mulf %628, %95 : vector<8x128xf32>
    %630 = arith.addf %606, %629 : vector<8x128xf32>
    %c137 = arith.constant 137 : index
    %631 = memref.load %arg1[%c137] : memref<712xf32, #tpu.memory_space<smem>>
    %632 = vector.broadcast %631 : f32 to vector<8x128xf32>
    %633 = arith.mulf %632, %107 : vector<8x128xf32>
    %634 = arith.addf %630, %633 : vector<8x128xf32>
    %c139 = arith.constant 139 : index
    %635 = memref.load %arg1[%c139] : memref<712xf32, #tpu.memory_space<smem>>
    %636 = vector.broadcast %635 : f32 to vector<8x128xf32>
    %637 = arith.mulf %636, %119 : vector<8x128xf32>
    %638 = arith.addf %634, %637 : vector<8x128xf32>
    %c141 = arith.constant 141 : index
    %639 = memref.load %arg1[%c141] : memref<712xf32, #tpu.memory_space<smem>>
    %640 = vector.broadcast %639 : f32 to vector<8x128xf32>
    %641 = arith.mulf %640, %131 : vector<8x128xf32>
    %642 = arith.addf %638, %641 : vector<8x128xf32>
    %643 = arith.addf %626, %642 : vector<8x128xf32>
    %c352 = arith.constant 352 : index
    %644 = memref.load %arg1[%c352] : memref<712xf32, #tpu.memory_space<smem>>
    %c143 = arith.constant 143 : index
    %645 = memref.load %arg1[%c143] : memref<712xf32, #tpu.memory_space<smem>>
    %646 = vector.broadcast %645 : f32 to vector<8x128xf32>
    %647 = arith.mulf %646, %77 : vector<8x128xf32>
    %648 = vector.broadcast %644 : f32 to vector<8x128xf32>
    %649 = arith.addf %648, %647 : vector<8x128xf32>
    %c144 = arith.constant 144 : index
    %650 = memref.load %arg1[%c144] : memref<712xf32, #tpu.memory_space<smem>>
    %651 = vector.broadcast %650 : f32 to vector<8x128xf32>
    %652 = arith.mulf %651, %83 : vector<8x128xf32>
    %c145 = arith.constant 145 : index
    %653 = memref.load %arg1[%c145] : memref<712xf32, #tpu.memory_space<smem>>
    %654 = vector.broadcast %653 : f32 to vector<8x128xf32>
    %655 = arith.mulf %654, %89 : vector<8x128xf32>
    %656 = arith.addf %649, %655 : vector<8x128xf32>
    %c147 = arith.constant 147 : index
    %657 = memref.load %arg1[%c147] : memref<712xf32, #tpu.memory_space<smem>>
    %658 = vector.broadcast %657 : f32 to vector<8x128xf32>
    %659 = arith.mulf %658, %101 : vector<8x128xf32>
    %660 = arith.addf %656, %659 : vector<8x128xf32>
    %c149 = arith.constant 149 : index
    %661 = memref.load %arg1[%c149] : memref<712xf32, #tpu.memory_space<smem>>
    %662 = vector.broadcast %661 : f32 to vector<8x128xf32>
    %663 = arith.mulf %662, %113 : vector<8x128xf32>
    %664 = arith.addf %660, %663 : vector<8x128xf32>
    %c151 = arith.constant 151 : index
    %665 = memref.load %arg1[%c151] : memref<712xf32, #tpu.memory_space<smem>>
    %666 = vector.broadcast %665 : f32 to vector<8x128xf32>
    %667 = arith.mulf %666, %125 : vector<8x128xf32>
    %668 = arith.addf %664, %667 : vector<8x128xf32>
    %c153 = arith.constant 153 : index
    %669 = memref.load %arg1[%c153] : memref<712xf32, #tpu.memory_space<smem>>
    %670 = vector.broadcast %669 : f32 to vector<8x128xf32>
    %671 = arith.mulf %670, %137 : vector<8x128xf32>
    %672 = arith.addf %668, %671 : vector<8x128xf32>
    %c146 = arith.constant 146 : index
    %673 = memref.load %arg1[%c146] : memref<712xf32, #tpu.memory_space<smem>>
    %674 = vector.broadcast %673 : f32 to vector<8x128xf32>
    %675 = arith.mulf %674, %95 : vector<8x128xf32>
    %676 = arith.addf %652, %675 : vector<8x128xf32>
    %c148 = arith.constant 148 : index
    %677 = memref.load %arg1[%c148] : memref<712xf32, #tpu.memory_space<smem>>
    %678 = vector.broadcast %677 : f32 to vector<8x128xf32>
    %679 = arith.mulf %678, %107 : vector<8x128xf32>
    %680 = arith.addf %676, %679 : vector<8x128xf32>
    %c150 = arith.constant 150 : index
    %681 = memref.load %arg1[%c150] : memref<712xf32, #tpu.memory_space<smem>>
    %682 = vector.broadcast %681 : f32 to vector<8x128xf32>
    %683 = arith.mulf %682, %119 : vector<8x128xf32>
    %684 = arith.addf %680, %683 : vector<8x128xf32>
    %c152 = arith.constant 152 : index
    %685 = memref.load %arg1[%c152] : memref<712xf32, #tpu.memory_space<smem>>
    %686 = vector.broadcast %685 : f32 to vector<8x128xf32>
    %687 = arith.mulf %686, %131 : vector<8x128xf32>
    %688 = arith.addf %684, %687 : vector<8x128xf32>
    %689 = arith.addf %672, %688 : vector<8x128xf32>
    %c353 = arith.constant 353 : index
    %690 = memref.load %arg1[%c353] : memref<712xf32, #tpu.memory_space<smem>>
    %c154 = arith.constant 154 : index
    %691 = memref.load %arg1[%c154] : memref<712xf32, #tpu.memory_space<smem>>
    %692 = vector.broadcast %691 : f32 to vector<8x128xf32>
    %693 = arith.mulf %692, %77 : vector<8x128xf32>
    %694 = vector.broadcast %690 : f32 to vector<8x128xf32>
    %695 = arith.addf %694, %693 : vector<8x128xf32>
    %c155 = arith.constant 155 : index
    %696 = memref.load %arg1[%c155] : memref<712xf32, #tpu.memory_space<smem>>
    %697 = vector.broadcast %696 : f32 to vector<8x128xf32>
    %698 = arith.mulf %697, %83 : vector<8x128xf32>
    %c156 = arith.constant 156 : index
    %699 = memref.load %arg1[%c156] : memref<712xf32, #tpu.memory_space<smem>>
    %700 = vector.broadcast %699 : f32 to vector<8x128xf32>
    %701 = arith.mulf %700, %89 : vector<8x128xf32>
    %702 = arith.addf %695, %701 : vector<8x128xf32>
    %c158 = arith.constant 158 : index
    %703 = memref.load %arg1[%c158] : memref<712xf32, #tpu.memory_space<smem>>
    %704 = vector.broadcast %703 : f32 to vector<8x128xf32>
    %705 = arith.mulf %704, %101 : vector<8x128xf32>
    %706 = arith.addf %702, %705 : vector<8x128xf32>
    %c160 = arith.constant 160 : index
    %707 = memref.load %arg1[%c160] : memref<712xf32, #tpu.memory_space<smem>>
    %708 = vector.broadcast %707 : f32 to vector<8x128xf32>
    %709 = arith.mulf %708, %113 : vector<8x128xf32>
    %710 = arith.addf %706, %709 : vector<8x128xf32>
    %c162 = arith.constant 162 : index
    %711 = memref.load %arg1[%c162] : memref<712xf32, #tpu.memory_space<smem>>
    %712 = vector.broadcast %711 : f32 to vector<8x128xf32>
    %713 = arith.mulf %712, %125 : vector<8x128xf32>
    %714 = arith.addf %710, %713 : vector<8x128xf32>
    %c164 = arith.constant 164 : index
    %715 = memref.load %arg1[%c164] : memref<712xf32, #tpu.memory_space<smem>>
    %716 = vector.broadcast %715 : f32 to vector<8x128xf32>
    %717 = arith.mulf %716, %137 : vector<8x128xf32>
    %718 = arith.addf %714, %717 : vector<8x128xf32>
    %c157 = arith.constant 157 : index
    %719 = memref.load %arg1[%c157] : memref<712xf32, #tpu.memory_space<smem>>
    %720 = vector.broadcast %719 : f32 to vector<8x128xf32>
    %721 = arith.mulf %720, %95 : vector<8x128xf32>
    %722 = arith.addf %698, %721 : vector<8x128xf32>
    %c159 = arith.constant 159 : index
    %723 = memref.load %arg1[%c159] : memref<712xf32, #tpu.memory_space<smem>>
    %724 = vector.broadcast %723 : f32 to vector<8x128xf32>
    %725 = arith.mulf %724, %107 : vector<8x128xf32>
    %726 = arith.addf %722, %725 : vector<8x128xf32>
    %c161 = arith.constant 161 : index
    %727 = memref.load %arg1[%c161] : memref<712xf32, #tpu.memory_space<smem>>
    %728 = vector.broadcast %727 : f32 to vector<8x128xf32>
    %729 = arith.mulf %728, %119 : vector<8x128xf32>
    %730 = arith.addf %726, %729 : vector<8x128xf32>
    %c163 = arith.constant 163 : index
    %731 = memref.load %arg1[%c163] : memref<712xf32, #tpu.memory_space<smem>>
    %732 = vector.broadcast %731 : f32 to vector<8x128xf32>
    %733 = arith.mulf %732, %131 : vector<8x128xf32>
    %734 = arith.addf %730, %733 : vector<8x128xf32>
    %735 = arith.addf %718, %734 : vector<8x128xf32>
    %c354 = arith.constant 354 : index
    %736 = memref.load %arg1[%c354] : memref<712xf32, #tpu.memory_space<smem>>
    %c165 = arith.constant 165 : index
    %737 = memref.load %arg1[%c165] : memref<712xf32, #tpu.memory_space<smem>>
    %738 = vector.broadcast %737 : f32 to vector<8x128xf32>
    %739 = arith.mulf %738, %77 : vector<8x128xf32>
    %740 = vector.broadcast %736 : f32 to vector<8x128xf32>
    %741 = arith.addf %740, %739 : vector<8x128xf32>
    %c166 = arith.constant 166 : index
    %742 = memref.load %arg1[%c166] : memref<712xf32, #tpu.memory_space<smem>>
    %743 = vector.broadcast %742 : f32 to vector<8x128xf32>
    %744 = arith.mulf %743, %83 : vector<8x128xf32>
    %c167 = arith.constant 167 : index
    %745 = memref.load %arg1[%c167] : memref<712xf32, #tpu.memory_space<smem>>
    %746 = vector.broadcast %745 : f32 to vector<8x128xf32>
    %747 = arith.mulf %746, %89 : vector<8x128xf32>
    %748 = arith.addf %741, %747 : vector<8x128xf32>
    %c169 = arith.constant 169 : index
    %749 = memref.load %arg1[%c169] : memref<712xf32, #tpu.memory_space<smem>>
    %750 = vector.broadcast %749 : f32 to vector<8x128xf32>
    %751 = arith.mulf %750, %101 : vector<8x128xf32>
    %752 = arith.addf %748, %751 : vector<8x128xf32>
    %c171 = arith.constant 171 : index
    %753 = memref.load %arg1[%c171] : memref<712xf32, #tpu.memory_space<smem>>
    %754 = vector.broadcast %753 : f32 to vector<8x128xf32>
    %755 = arith.mulf %754, %113 : vector<8x128xf32>
    %756 = arith.addf %752, %755 : vector<8x128xf32>
    %c173 = arith.constant 173 : index
    %757 = memref.load %arg1[%c173] : memref<712xf32, #tpu.memory_space<smem>>
    %758 = vector.broadcast %757 : f32 to vector<8x128xf32>
    %759 = arith.mulf %758, %125 : vector<8x128xf32>
    %760 = arith.addf %756, %759 : vector<8x128xf32>
    %c175 = arith.constant 175 : index
    %761 = memref.load %arg1[%c175] : memref<712xf32, #tpu.memory_space<smem>>
    %762 = vector.broadcast %761 : f32 to vector<8x128xf32>
    %763 = arith.mulf %762, %137 : vector<8x128xf32>
    %764 = arith.addf %760, %763 : vector<8x128xf32>
    %c168 = arith.constant 168 : index
    %765 = memref.load %arg1[%c168] : memref<712xf32, #tpu.memory_space<smem>>
    %766 = vector.broadcast %765 : f32 to vector<8x128xf32>
    %767 = arith.mulf %766, %95 : vector<8x128xf32>
    %768 = arith.addf %744, %767 : vector<8x128xf32>
    %c170 = arith.constant 170 : index
    %769 = memref.load %arg1[%c170] : memref<712xf32, #tpu.memory_space<smem>>
    %770 = vector.broadcast %769 : f32 to vector<8x128xf32>
    %771 = arith.mulf %770, %107 : vector<8x128xf32>
    %772 = arith.addf %768, %771 : vector<8x128xf32>
    %c172 = arith.constant 172 : index
    %773 = memref.load %arg1[%c172] : memref<712xf32, #tpu.memory_space<smem>>
    %774 = vector.broadcast %773 : f32 to vector<8x128xf32>
    %775 = arith.mulf %774, %119 : vector<8x128xf32>
    %776 = arith.addf %772, %775 : vector<8x128xf32>
    %c174 = arith.constant 174 : index
    %777 = memref.load %arg1[%c174] : memref<712xf32, #tpu.memory_space<smem>>
    %778 = vector.broadcast %777 : f32 to vector<8x128xf32>
    %779 = arith.mulf %778, %131 : vector<8x128xf32>
    %780 = arith.addf %776, %779 : vector<8x128xf32>
    %781 = arith.addf %764, %780 : vector<8x128xf32>
    %c355 = arith.constant 355 : index
    %782 = memref.load %arg1[%c355] : memref<712xf32, #tpu.memory_space<smem>>
    %c176 = arith.constant 176 : index
    %783 = memref.load %arg1[%c176] : memref<712xf32, #tpu.memory_space<smem>>
    %784 = vector.broadcast %783 : f32 to vector<8x128xf32>
    %785 = arith.mulf %784, %77 : vector<8x128xf32>
    %786 = vector.broadcast %782 : f32 to vector<8x128xf32>
    %787 = arith.addf %786, %785 : vector<8x128xf32>
    %c177 = arith.constant 177 : index
    %788 = memref.load %arg1[%c177] : memref<712xf32, #tpu.memory_space<smem>>
    %789 = vector.broadcast %788 : f32 to vector<8x128xf32>
    %790 = arith.mulf %789, %83 : vector<8x128xf32>
    %c178 = arith.constant 178 : index
    %791 = memref.load %arg1[%c178] : memref<712xf32, #tpu.memory_space<smem>>
    %792 = vector.broadcast %791 : f32 to vector<8x128xf32>
    %793 = arith.mulf %792, %89 : vector<8x128xf32>
    %794 = arith.addf %787, %793 : vector<8x128xf32>
    %c180 = arith.constant 180 : index
    %795 = memref.load %arg1[%c180] : memref<712xf32, #tpu.memory_space<smem>>
    %796 = vector.broadcast %795 : f32 to vector<8x128xf32>
    %797 = arith.mulf %796, %101 : vector<8x128xf32>
    %798 = arith.addf %794, %797 : vector<8x128xf32>
    %c182 = arith.constant 182 : index
    %799 = memref.load %arg1[%c182] : memref<712xf32, #tpu.memory_space<smem>>
    %800 = vector.broadcast %799 : f32 to vector<8x128xf32>
    %801 = arith.mulf %800, %113 : vector<8x128xf32>
    %802 = arith.addf %798, %801 : vector<8x128xf32>
    %c184 = arith.constant 184 : index
    %803 = memref.load %arg1[%c184] : memref<712xf32, #tpu.memory_space<smem>>
    %804 = vector.broadcast %803 : f32 to vector<8x128xf32>
    %805 = arith.mulf %804, %125 : vector<8x128xf32>
    %806 = arith.addf %802, %805 : vector<8x128xf32>
    %c186 = arith.constant 186 : index
    %807 = memref.load %arg1[%c186] : memref<712xf32, #tpu.memory_space<smem>>
    %808 = vector.broadcast %807 : f32 to vector<8x128xf32>
    %809 = arith.mulf %808, %137 : vector<8x128xf32>
    %810 = arith.addf %806, %809 : vector<8x128xf32>
    %c179 = arith.constant 179 : index
    %811 = memref.load %arg1[%c179] : memref<712xf32, #tpu.memory_space<smem>>
    %812 = vector.broadcast %811 : f32 to vector<8x128xf32>
    %813 = arith.mulf %812, %95 : vector<8x128xf32>
    %814 = arith.addf %790, %813 : vector<8x128xf32>
    %c181 = arith.constant 181 : index
    %815 = memref.load %arg1[%c181] : memref<712xf32, #tpu.memory_space<smem>>
    %816 = vector.broadcast %815 : f32 to vector<8x128xf32>
    %817 = arith.mulf %816, %107 : vector<8x128xf32>
    %818 = arith.addf %814, %817 : vector<8x128xf32>
    %c183 = arith.constant 183 : index
    %819 = memref.load %arg1[%c183] : memref<712xf32, #tpu.memory_space<smem>>
    %820 = vector.broadcast %819 : f32 to vector<8x128xf32>
    %821 = arith.mulf %820, %119 : vector<8x128xf32>
    %822 = arith.addf %818, %821 : vector<8x128xf32>
    %c185 = arith.constant 185 : index
    %823 = memref.load %arg1[%c185] : memref<712xf32, #tpu.memory_space<smem>>
    %824 = vector.broadcast %823 : f32 to vector<8x128xf32>
    %825 = arith.mulf %824, %131 : vector<8x128xf32>
    %826 = arith.addf %822, %825 : vector<8x128xf32>
    %827 = arith.addf %810, %826 : vector<8x128xf32>
    %c356 = arith.constant 356 : index
    %828 = memref.load %arg1[%c356] : memref<712xf32, #tpu.memory_space<smem>>
    %c187 = arith.constant 187 : index
    %829 = memref.load %arg1[%c187] : memref<712xf32, #tpu.memory_space<smem>>
    %830 = vector.broadcast %829 : f32 to vector<8x128xf32>
    %831 = arith.mulf %830, %77 : vector<8x128xf32>
    %832 = vector.broadcast %828 : f32 to vector<8x128xf32>
    %833 = arith.addf %832, %831 : vector<8x128xf32>
    %c188 = arith.constant 188 : index
    %834 = memref.load %arg1[%c188] : memref<712xf32, #tpu.memory_space<smem>>
    %835 = vector.broadcast %834 : f32 to vector<8x128xf32>
    %836 = arith.mulf %835, %83 : vector<8x128xf32>
    %c189 = arith.constant 189 : index
    %837 = memref.load %arg1[%c189] : memref<712xf32, #tpu.memory_space<smem>>
    %838 = vector.broadcast %837 : f32 to vector<8x128xf32>
    %839 = arith.mulf %838, %89 : vector<8x128xf32>
    %840 = arith.addf %833, %839 : vector<8x128xf32>
    %c191 = arith.constant 191 : index
    %841 = memref.load %arg1[%c191] : memref<712xf32, #tpu.memory_space<smem>>
    %842 = vector.broadcast %841 : f32 to vector<8x128xf32>
    %843 = arith.mulf %842, %101 : vector<8x128xf32>
    %844 = arith.addf %840, %843 : vector<8x128xf32>
    %c193 = arith.constant 193 : index
    %845 = memref.load %arg1[%c193] : memref<712xf32, #tpu.memory_space<smem>>
    %846 = vector.broadcast %845 : f32 to vector<8x128xf32>
    %847 = arith.mulf %846, %113 : vector<8x128xf32>
    %848 = arith.addf %844, %847 : vector<8x128xf32>
    %c195 = arith.constant 195 : index
    %849 = memref.load %arg1[%c195] : memref<712xf32, #tpu.memory_space<smem>>
    %850 = vector.broadcast %849 : f32 to vector<8x128xf32>
    %851 = arith.mulf %850, %125 : vector<8x128xf32>
    %852 = arith.addf %848, %851 : vector<8x128xf32>
    %c197 = arith.constant 197 : index
    %853 = memref.load %arg1[%c197] : memref<712xf32, #tpu.memory_space<smem>>
    %854 = vector.broadcast %853 : f32 to vector<8x128xf32>
    %855 = arith.mulf %854, %137 : vector<8x128xf32>
    %856 = arith.addf %852, %855 : vector<8x128xf32>
    %c190 = arith.constant 190 : index
    %857 = memref.load %arg1[%c190] : memref<712xf32, #tpu.memory_space<smem>>
    %858 = vector.broadcast %857 : f32 to vector<8x128xf32>
    %859 = arith.mulf %858, %95 : vector<8x128xf32>
    %860 = arith.addf %836, %859 : vector<8x128xf32>
    %c192 = arith.constant 192 : index
    %861 = memref.load %arg1[%c192] : memref<712xf32, #tpu.memory_space<smem>>
    %862 = vector.broadcast %861 : f32 to vector<8x128xf32>
    %863 = arith.mulf %862, %107 : vector<8x128xf32>
    %864 = arith.addf %860, %863 : vector<8x128xf32>
    %c194 = arith.constant 194 : index
    %865 = memref.load %arg1[%c194] : memref<712xf32, #tpu.memory_space<smem>>
    %866 = vector.broadcast %865 : f32 to vector<8x128xf32>
    %867 = arith.mulf %866, %119 : vector<8x128xf32>
    %868 = arith.addf %864, %867 : vector<8x128xf32>
    %c196 = arith.constant 196 : index
    %869 = memref.load %arg1[%c196] : memref<712xf32, #tpu.memory_space<smem>>
    %870 = vector.broadcast %869 : f32 to vector<8x128xf32>
    %871 = arith.mulf %870, %131 : vector<8x128xf32>
    %872 = arith.addf %868, %871 : vector<8x128xf32>
    %873 = arith.addf %856, %872 : vector<8x128xf32>
    %c357 = arith.constant 357 : index
    %874 = memref.load %arg1[%c357] : memref<712xf32, #tpu.memory_space<smem>>
    %c198 = arith.constant 198 : index
    %875 = memref.load %arg1[%c198] : memref<712xf32, #tpu.memory_space<smem>>
    %876 = vector.broadcast %875 : f32 to vector<8x128xf32>
    %877 = arith.mulf %876, %77 : vector<8x128xf32>
    %878 = vector.broadcast %874 : f32 to vector<8x128xf32>
    %879 = arith.addf %878, %877 : vector<8x128xf32>
    %c199 = arith.constant 199 : index
    %880 = memref.load %arg1[%c199] : memref<712xf32, #tpu.memory_space<smem>>
    %881 = vector.broadcast %880 : f32 to vector<8x128xf32>
    %882 = arith.mulf %881, %83 : vector<8x128xf32>
    %c200 = arith.constant 200 : index
    %883 = memref.load %arg1[%c200] : memref<712xf32, #tpu.memory_space<smem>>
    %884 = vector.broadcast %883 : f32 to vector<8x128xf32>
    %885 = arith.mulf %884, %89 : vector<8x128xf32>
    %886 = arith.addf %879, %885 : vector<8x128xf32>
    %c202 = arith.constant 202 : index
    %887 = memref.load %arg1[%c202] : memref<712xf32, #tpu.memory_space<smem>>
    %888 = vector.broadcast %887 : f32 to vector<8x128xf32>
    %889 = arith.mulf %888, %101 : vector<8x128xf32>
    %890 = arith.addf %886, %889 : vector<8x128xf32>
    %c204 = arith.constant 204 : index
    %891 = memref.load %arg1[%c204] : memref<712xf32, #tpu.memory_space<smem>>
    %892 = vector.broadcast %891 : f32 to vector<8x128xf32>
    %893 = arith.mulf %892, %113 : vector<8x128xf32>
    %894 = arith.addf %890, %893 : vector<8x128xf32>
    %c206 = arith.constant 206 : index
    %895 = memref.load %arg1[%c206] : memref<712xf32, #tpu.memory_space<smem>>
    %896 = vector.broadcast %895 : f32 to vector<8x128xf32>
    %897 = arith.mulf %896, %125 : vector<8x128xf32>
    %898 = arith.addf %894, %897 : vector<8x128xf32>
    %c208 = arith.constant 208 : index
    %899 = memref.load %arg1[%c208] : memref<712xf32, #tpu.memory_space<smem>>
    %900 = vector.broadcast %899 : f32 to vector<8x128xf32>
    %901 = arith.mulf %900, %137 : vector<8x128xf32>
    %902 = arith.addf %898, %901 : vector<8x128xf32>
    %c201 = arith.constant 201 : index
    %903 = memref.load %arg1[%c201] : memref<712xf32, #tpu.memory_space<smem>>
    %904 = vector.broadcast %903 : f32 to vector<8x128xf32>
    %905 = arith.mulf %904, %95 : vector<8x128xf32>
    %906 = arith.addf %882, %905 : vector<8x128xf32>
    %c203 = arith.constant 203 : index
    %907 = memref.load %arg1[%c203] : memref<712xf32, #tpu.memory_space<smem>>
    %908 = vector.broadcast %907 : f32 to vector<8x128xf32>
    %909 = arith.mulf %908, %107 : vector<8x128xf32>
    %910 = arith.addf %906, %909 : vector<8x128xf32>
    %c205 = arith.constant 205 : index
    %911 = memref.load %arg1[%c205] : memref<712xf32, #tpu.memory_space<smem>>
    %912 = vector.broadcast %911 : f32 to vector<8x128xf32>
    %913 = arith.mulf %912, %119 : vector<8x128xf32>
    %914 = arith.addf %910, %913 : vector<8x128xf32>
    %c207 = arith.constant 207 : index
    %915 = memref.load %arg1[%c207] : memref<712xf32, #tpu.memory_space<smem>>
    %916 = vector.broadcast %915 : f32 to vector<8x128xf32>
    %917 = arith.mulf %916, %131 : vector<8x128xf32>
    %918 = arith.addf %914, %917 : vector<8x128xf32>
    %919 = arith.addf %902, %918 : vector<8x128xf32>
    %c358 = arith.constant 358 : index
    %920 = memref.load %arg1[%c358] : memref<712xf32, #tpu.memory_space<smem>>
    %c209 = arith.constant 209 : index
    %921 = memref.load %arg1[%c209] : memref<712xf32, #tpu.memory_space<smem>>
    %922 = vector.broadcast %921 : f32 to vector<8x128xf32>
    %923 = arith.mulf %922, %77 : vector<8x128xf32>
    %924 = vector.broadcast %920 : f32 to vector<8x128xf32>
    %925 = arith.addf %924, %923 : vector<8x128xf32>
    %c210 = arith.constant 210 : index
    %926 = memref.load %arg1[%c210] : memref<712xf32, #tpu.memory_space<smem>>
    %927 = vector.broadcast %926 : f32 to vector<8x128xf32>
    %928 = arith.mulf %927, %83 : vector<8x128xf32>
    %c211 = arith.constant 211 : index
    %929 = memref.load %arg1[%c211] : memref<712xf32, #tpu.memory_space<smem>>
    %930 = vector.broadcast %929 : f32 to vector<8x128xf32>
    %931 = arith.mulf %930, %89 : vector<8x128xf32>
    %932 = arith.addf %925, %931 : vector<8x128xf32>
    %c213 = arith.constant 213 : index
    %933 = memref.load %arg1[%c213] : memref<712xf32, #tpu.memory_space<smem>>
    %934 = vector.broadcast %933 : f32 to vector<8x128xf32>
    %935 = arith.mulf %934, %101 : vector<8x128xf32>
    %936 = arith.addf %932, %935 : vector<8x128xf32>
    %c215 = arith.constant 215 : index
    %937 = memref.load %arg1[%c215] : memref<712xf32, #tpu.memory_space<smem>>
    %938 = vector.broadcast %937 : f32 to vector<8x128xf32>
    %939 = arith.mulf %938, %113 : vector<8x128xf32>
    %940 = arith.addf %936, %939 : vector<8x128xf32>
    %c217 = arith.constant 217 : index
    %941 = memref.load %arg1[%c217] : memref<712xf32, #tpu.memory_space<smem>>
    %942 = vector.broadcast %941 : f32 to vector<8x128xf32>
    %943 = arith.mulf %942, %125 : vector<8x128xf32>
    %944 = arith.addf %940, %943 : vector<8x128xf32>
    %c219 = arith.constant 219 : index
    %945 = memref.load %arg1[%c219] : memref<712xf32, #tpu.memory_space<smem>>
    %946 = vector.broadcast %945 : f32 to vector<8x128xf32>
    %947 = arith.mulf %946, %137 : vector<8x128xf32>
    %948 = arith.addf %944, %947 : vector<8x128xf32>
    %c212 = arith.constant 212 : index
    %949 = memref.load %arg1[%c212] : memref<712xf32, #tpu.memory_space<smem>>
    %950 = vector.broadcast %949 : f32 to vector<8x128xf32>
    %951 = arith.mulf %950, %95 : vector<8x128xf32>
    %952 = arith.addf %928, %951 : vector<8x128xf32>
    %c214 = arith.constant 214 : index
    %953 = memref.load %arg1[%c214] : memref<712xf32, #tpu.memory_space<smem>>
    %954 = vector.broadcast %953 : f32 to vector<8x128xf32>
    %955 = arith.mulf %954, %107 : vector<8x128xf32>
    %956 = arith.addf %952, %955 : vector<8x128xf32>
    %c216 = arith.constant 216 : index
    %957 = memref.load %arg1[%c216] : memref<712xf32, #tpu.memory_space<smem>>
    %958 = vector.broadcast %957 : f32 to vector<8x128xf32>
    %959 = arith.mulf %958, %119 : vector<8x128xf32>
    %960 = arith.addf %956, %959 : vector<8x128xf32>
    %c218 = arith.constant 218 : index
    %961 = memref.load %arg1[%c218] : memref<712xf32, #tpu.memory_space<smem>>
    %962 = vector.broadcast %961 : f32 to vector<8x128xf32>
    %963 = arith.mulf %962, %131 : vector<8x128xf32>
    %964 = arith.addf %960, %963 : vector<8x128xf32>
    %965 = arith.addf %948, %964 : vector<8x128xf32>
    %c359 = arith.constant 359 : index
    %966 = memref.load %arg1[%c359] : memref<712xf32, #tpu.memory_space<smem>>
    %c220 = arith.constant 220 : index
    %967 = memref.load %arg1[%c220] : memref<712xf32, #tpu.memory_space<smem>>
    %968 = vector.broadcast %967 : f32 to vector<8x128xf32>
    %969 = arith.mulf %968, %77 : vector<8x128xf32>
    %970 = vector.broadcast %966 : f32 to vector<8x128xf32>
    %971 = arith.addf %970, %969 : vector<8x128xf32>
    %c221 = arith.constant 221 : index
    %972 = memref.load %arg1[%c221] : memref<712xf32, #tpu.memory_space<smem>>
    %973 = vector.broadcast %972 : f32 to vector<8x128xf32>
    %974 = arith.mulf %973, %83 : vector<8x128xf32>
    %c222 = arith.constant 222 : index
    %975 = memref.load %arg1[%c222] : memref<712xf32, #tpu.memory_space<smem>>
    %976 = vector.broadcast %975 : f32 to vector<8x128xf32>
    %977 = arith.mulf %976, %89 : vector<8x128xf32>
    %978 = arith.addf %971, %977 : vector<8x128xf32>
    %c224 = arith.constant 224 : index
    %979 = memref.load %arg1[%c224] : memref<712xf32, #tpu.memory_space<smem>>
    %980 = vector.broadcast %979 : f32 to vector<8x128xf32>
    %981 = arith.mulf %980, %101 : vector<8x128xf32>
    %982 = arith.addf %978, %981 : vector<8x128xf32>
    %c226 = arith.constant 226 : index
    %983 = memref.load %arg1[%c226] : memref<712xf32, #tpu.memory_space<smem>>
    %984 = vector.broadcast %983 : f32 to vector<8x128xf32>
    %985 = arith.mulf %984, %113 : vector<8x128xf32>
    %986 = arith.addf %982, %985 : vector<8x128xf32>
    %c228 = arith.constant 228 : index
    %987 = memref.load %arg1[%c228] : memref<712xf32, #tpu.memory_space<smem>>
    %988 = vector.broadcast %987 : f32 to vector<8x128xf32>
    %989 = arith.mulf %988, %125 : vector<8x128xf32>
    %990 = arith.addf %986, %989 : vector<8x128xf32>
    %c230 = arith.constant 230 : index
    %991 = memref.load %arg1[%c230] : memref<712xf32, #tpu.memory_space<smem>>
    %992 = vector.broadcast %991 : f32 to vector<8x128xf32>
    %993 = arith.mulf %992, %137 : vector<8x128xf32>
    %994 = arith.addf %990, %993 : vector<8x128xf32>
    %c223 = arith.constant 223 : index
    %995 = memref.load %arg1[%c223] : memref<712xf32, #tpu.memory_space<smem>>
    %996 = vector.broadcast %995 : f32 to vector<8x128xf32>
    %997 = arith.mulf %996, %95 : vector<8x128xf32>
    %998 = arith.addf %974, %997 : vector<8x128xf32>
    %c225 = arith.constant 225 : index
    %999 = memref.load %arg1[%c225] : memref<712xf32, #tpu.memory_space<smem>>
    %1000 = vector.broadcast %999 : f32 to vector<8x128xf32>
    %1001 = arith.mulf %1000, %107 : vector<8x128xf32>
    %1002 = arith.addf %998, %1001 : vector<8x128xf32>
    %c227 = arith.constant 227 : index
    %1003 = memref.load %arg1[%c227] : memref<712xf32, #tpu.memory_space<smem>>
    %1004 = vector.broadcast %1003 : f32 to vector<8x128xf32>
    %1005 = arith.mulf %1004, %119 : vector<8x128xf32>
    %1006 = arith.addf %1002, %1005 : vector<8x128xf32>
    %c229 = arith.constant 229 : index
    %1007 = memref.load %arg1[%c229] : memref<712xf32, #tpu.memory_space<smem>>
    %1008 = vector.broadcast %1007 : f32 to vector<8x128xf32>
    %1009 = arith.mulf %1008, %131 : vector<8x128xf32>
    %1010 = arith.addf %1006, %1009 : vector<8x128xf32>
    %1011 = arith.addf %994, %1010 : vector<8x128xf32>
    %c360 = arith.constant 360 : index
    %1012 = memref.load %arg1[%c360] : memref<712xf32, #tpu.memory_space<smem>>
    %c231 = arith.constant 231 : index
    %1013 = memref.load %arg1[%c231] : memref<712xf32, #tpu.memory_space<smem>>
    %1014 = vector.broadcast %1013 : f32 to vector<8x128xf32>
    %1015 = arith.mulf %1014, %77 : vector<8x128xf32>
    %1016 = vector.broadcast %1012 : f32 to vector<8x128xf32>
    %1017 = arith.addf %1016, %1015 : vector<8x128xf32>
    %c232 = arith.constant 232 : index
    %1018 = memref.load %arg1[%c232] : memref<712xf32, #tpu.memory_space<smem>>
    %1019 = vector.broadcast %1018 : f32 to vector<8x128xf32>
    %1020 = arith.mulf %1019, %83 : vector<8x128xf32>
    %c233 = arith.constant 233 : index
    %1021 = memref.load %arg1[%c233] : memref<712xf32, #tpu.memory_space<smem>>
    %1022 = vector.broadcast %1021 : f32 to vector<8x128xf32>
    %1023 = arith.mulf %1022, %89 : vector<8x128xf32>
    %1024 = arith.addf %1017, %1023 : vector<8x128xf32>
    %c235 = arith.constant 235 : index
    %1025 = memref.load %arg1[%c235] : memref<712xf32, #tpu.memory_space<smem>>
    %1026 = vector.broadcast %1025 : f32 to vector<8x128xf32>
    %1027 = arith.mulf %1026, %101 : vector<8x128xf32>
    %1028 = arith.addf %1024, %1027 : vector<8x128xf32>
    %c237 = arith.constant 237 : index
    %1029 = memref.load %arg1[%c237] : memref<712xf32, #tpu.memory_space<smem>>
    %1030 = vector.broadcast %1029 : f32 to vector<8x128xf32>
    %1031 = arith.mulf %1030, %113 : vector<8x128xf32>
    %1032 = arith.addf %1028, %1031 : vector<8x128xf32>
    %c239 = arith.constant 239 : index
    %1033 = memref.load %arg1[%c239] : memref<712xf32, #tpu.memory_space<smem>>
    %1034 = vector.broadcast %1033 : f32 to vector<8x128xf32>
    %1035 = arith.mulf %1034, %125 : vector<8x128xf32>
    %1036 = arith.addf %1032, %1035 : vector<8x128xf32>
    %c241 = arith.constant 241 : index
    %1037 = memref.load %arg1[%c241] : memref<712xf32, #tpu.memory_space<smem>>
    %1038 = vector.broadcast %1037 : f32 to vector<8x128xf32>
    %1039 = arith.mulf %1038, %137 : vector<8x128xf32>
    %1040 = arith.addf %1036, %1039 : vector<8x128xf32>
    %c234 = arith.constant 234 : index
    %1041 = memref.load %arg1[%c234] : memref<712xf32, #tpu.memory_space<smem>>
    %1042 = vector.broadcast %1041 : f32 to vector<8x128xf32>
    %1043 = arith.mulf %1042, %95 : vector<8x128xf32>
    %1044 = arith.addf %1020, %1043 : vector<8x128xf32>
    %c236 = arith.constant 236 : index
    %1045 = memref.load %arg1[%c236] : memref<712xf32, #tpu.memory_space<smem>>
    %1046 = vector.broadcast %1045 : f32 to vector<8x128xf32>
    %1047 = arith.mulf %1046, %107 : vector<8x128xf32>
    %1048 = arith.addf %1044, %1047 : vector<8x128xf32>
    %c238 = arith.constant 238 : index
    %1049 = memref.load %arg1[%c238] : memref<712xf32, #tpu.memory_space<smem>>
    %1050 = vector.broadcast %1049 : f32 to vector<8x128xf32>
    %1051 = arith.mulf %1050, %119 : vector<8x128xf32>
    %1052 = arith.addf %1048, %1051 : vector<8x128xf32>
    %c240 = arith.constant 240 : index
    %1053 = memref.load %arg1[%c240] : memref<712xf32, #tpu.memory_space<smem>>
    %1054 = vector.broadcast %1053 : f32 to vector<8x128xf32>
    %1055 = arith.mulf %1054, %131 : vector<8x128xf32>
    %1056 = arith.addf %1052, %1055 : vector<8x128xf32>
    %1057 = arith.addf %1040, %1056 : vector<8x128xf32>
    %c361 = arith.constant 361 : index
    %1058 = memref.load %arg1[%c361] : memref<712xf32, #tpu.memory_space<smem>>
    %c242 = arith.constant 242 : index
    %1059 = memref.load %arg1[%c242] : memref<712xf32, #tpu.memory_space<smem>>
    %1060 = vector.broadcast %1059 : f32 to vector<8x128xf32>
    %1061 = arith.mulf %1060, %77 : vector<8x128xf32>
    %1062 = vector.broadcast %1058 : f32 to vector<8x128xf32>
    %1063 = arith.addf %1062, %1061 : vector<8x128xf32>
    %c243 = arith.constant 243 : index
    %1064 = memref.load %arg1[%c243] : memref<712xf32, #tpu.memory_space<smem>>
    %1065 = vector.broadcast %1064 : f32 to vector<8x128xf32>
    %1066 = arith.mulf %1065, %83 : vector<8x128xf32>
    %c244 = arith.constant 244 : index
    %1067 = memref.load %arg1[%c244] : memref<712xf32, #tpu.memory_space<smem>>
    %1068 = vector.broadcast %1067 : f32 to vector<8x128xf32>
    %1069 = arith.mulf %1068, %89 : vector<8x128xf32>
    %1070 = arith.addf %1063, %1069 : vector<8x128xf32>
    %c246 = arith.constant 246 : index
    %1071 = memref.load %arg1[%c246] : memref<712xf32, #tpu.memory_space<smem>>
    %1072 = vector.broadcast %1071 : f32 to vector<8x128xf32>
    %1073 = arith.mulf %1072, %101 : vector<8x128xf32>
    %1074 = arith.addf %1070, %1073 : vector<8x128xf32>
    %c248 = arith.constant 248 : index
    %1075 = memref.load %arg1[%c248] : memref<712xf32, #tpu.memory_space<smem>>
    %1076 = vector.broadcast %1075 : f32 to vector<8x128xf32>
    %1077 = arith.mulf %1076, %113 : vector<8x128xf32>
    %1078 = arith.addf %1074, %1077 : vector<8x128xf32>
    %c250 = arith.constant 250 : index
    %1079 = memref.load %arg1[%c250] : memref<712xf32, #tpu.memory_space<smem>>
    %1080 = vector.broadcast %1079 : f32 to vector<8x128xf32>
    %1081 = arith.mulf %1080, %125 : vector<8x128xf32>
    %1082 = arith.addf %1078, %1081 : vector<8x128xf32>
    %c252 = arith.constant 252 : index
    %1083 = memref.load %arg1[%c252] : memref<712xf32, #tpu.memory_space<smem>>
    %1084 = vector.broadcast %1083 : f32 to vector<8x128xf32>
    %1085 = arith.mulf %1084, %137 : vector<8x128xf32>
    %1086 = arith.addf %1082, %1085 : vector<8x128xf32>
    %c245 = arith.constant 245 : index
    %1087 = memref.load %arg1[%c245] : memref<712xf32, #tpu.memory_space<smem>>
    %1088 = vector.broadcast %1087 : f32 to vector<8x128xf32>
    %1089 = arith.mulf %1088, %95 : vector<8x128xf32>
    %1090 = arith.addf %1066, %1089 : vector<8x128xf32>
    %c247 = arith.constant 247 : index
    %1091 = memref.load %arg1[%c247] : memref<712xf32, #tpu.memory_space<smem>>
    %1092 = vector.broadcast %1091 : f32 to vector<8x128xf32>
    %1093 = arith.mulf %1092, %107 : vector<8x128xf32>
    %1094 = arith.addf %1090, %1093 : vector<8x128xf32>
    %c249 = arith.constant 249 : index
    %1095 = memref.load %arg1[%c249] : memref<712xf32, #tpu.memory_space<smem>>
    %1096 = vector.broadcast %1095 : f32 to vector<8x128xf32>
    %1097 = arith.mulf %1096, %119 : vector<8x128xf32>
    %1098 = arith.addf %1094, %1097 : vector<8x128xf32>
    %c251 = arith.constant 251 : index
    %1099 = memref.load %arg1[%c251] : memref<712xf32, #tpu.memory_space<smem>>
    %1100 = vector.broadcast %1099 : f32 to vector<8x128xf32>
    %1101 = arith.mulf %1100, %131 : vector<8x128xf32>
    %1102 = arith.addf %1098, %1101 : vector<8x128xf32>
    %1103 = arith.addf %1086, %1102 : vector<8x128xf32>
    %c362 = arith.constant 362 : index
    %1104 = memref.load %arg1[%c362] : memref<712xf32, #tpu.memory_space<smem>>
    %c253 = arith.constant 253 : index
    %1105 = memref.load %arg1[%c253] : memref<712xf32, #tpu.memory_space<smem>>
    %1106 = vector.broadcast %1105 : f32 to vector<8x128xf32>
    %1107 = arith.mulf %1106, %77 : vector<8x128xf32>
    %1108 = vector.broadcast %1104 : f32 to vector<8x128xf32>
    %1109 = arith.addf %1108, %1107 : vector<8x128xf32>
    %c254 = arith.constant 254 : index
    %1110 = memref.load %arg1[%c254] : memref<712xf32, #tpu.memory_space<smem>>
    %1111 = vector.broadcast %1110 : f32 to vector<8x128xf32>
    %1112 = arith.mulf %1111, %83 : vector<8x128xf32>
    %c255 = arith.constant 255 : index
    %1113 = memref.load %arg1[%c255] : memref<712xf32, #tpu.memory_space<smem>>
    %1114 = vector.broadcast %1113 : f32 to vector<8x128xf32>
    %1115 = arith.mulf %1114, %89 : vector<8x128xf32>
    %1116 = arith.addf %1109, %1115 : vector<8x128xf32>
    %c257 = arith.constant 257 : index
    %1117 = memref.load %arg1[%c257] : memref<712xf32, #tpu.memory_space<smem>>
    %1118 = vector.broadcast %1117 : f32 to vector<8x128xf32>
    %1119 = arith.mulf %1118, %101 : vector<8x128xf32>
    %1120 = arith.addf %1116, %1119 : vector<8x128xf32>
    %c259 = arith.constant 259 : index
    %1121 = memref.load %arg1[%c259] : memref<712xf32, #tpu.memory_space<smem>>
    %1122 = vector.broadcast %1121 : f32 to vector<8x128xf32>
    %1123 = arith.mulf %1122, %113 : vector<8x128xf32>
    %1124 = arith.addf %1120, %1123 : vector<8x128xf32>
    %c261 = arith.constant 261 : index
    %1125 = memref.load %arg1[%c261] : memref<712xf32, #tpu.memory_space<smem>>
    %1126 = vector.broadcast %1125 : f32 to vector<8x128xf32>
    %1127 = arith.mulf %1126, %125 : vector<8x128xf32>
    %1128 = arith.addf %1124, %1127 : vector<8x128xf32>
    %c263 = arith.constant 263 : index
    %1129 = memref.load %arg1[%c263] : memref<712xf32, #tpu.memory_space<smem>>
    %1130 = vector.broadcast %1129 : f32 to vector<8x128xf32>
    %1131 = arith.mulf %1130, %137 : vector<8x128xf32>
    %1132 = arith.addf %1128, %1131 : vector<8x128xf32>
    %c256 = arith.constant 256 : index
    %1133 = memref.load %arg1[%c256] : memref<712xf32, #tpu.memory_space<smem>>
    %1134 = vector.broadcast %1133 : f32 to vector<8x128xf32>
    %1135 = arith.mulf %1134, %95 : vector<8x128xf32>
    %1136 = arith.addf %1112, %1135 : vector<8x128xf32>
    %c258 = arith.constant 258 : index
    %1137 = memref.load %arg1[%c258] : memref<712xf32, #tpu.memory_space<smem>>
    %1138 = vector.broadcast %1137 : f32 to vector<8x128xf32>
    %1139 = arith.mulf %1138, %107 : vector<8x128xf32>
    %1140 = arith.addf %1136, %1139 : vector<8x128xf32>
    %c260 = arith.constant 260 : index
    %1141 = memref.load %arg1[%c260] : memref<712xf32, #tpu.memory_space<smem>>
    %1142 = vector.broadcast %1141 : f32 to vector<8x128xf32>
    %1143 = arith.mulf %1142, %119 : vector<8x128xf32>
    %1144 = arith.addf %1140, %1143 : vector<8x128xf32>
    %c262 = arith.constant 262 : index
    %1145 = memref.load %arg1[%c262] : memref<712xf32, #tpu.memory_space<smem>>
    %1146 = vector.broadcast %1145 : f32 to vector<8x128xf32>
    %1147 = arith.mulf %1146, %131 : vector<8x128xf32>
    %1148 = arith.addf %1144, %1147 : vector<8x128xf32>
    %1149 = arith.addf %1132, %1148 : vector<8x128xf32>
    %c363 = arith.constant 363 : index
    %1150 = memref.load %arg1[%c363] : memref<712xf32, #tpu.memory_space<smem>>
    %c264 = arith.constant 264 : index
    %1151 = memref.load %arg1[%c264] : memref<712xf32, #tpu.memory_space<smem>>
    %1152 = vector.broadcast %1151 : f32 to vector<8x128xf32>
    %1153 = arith.mulf %1152, %77 : vector<8x128xf32>
    %1154 = vector.broadcast %1150 : f32 to vector<8x128xf32>
    %1155 = arith.addf %1154, %1153 : vector<8x128xf32>
    %c265 = arith.constant 265 : index
    %1156 = memref.load %arg1[%c265] : memref<712xf32, #tpu.memory_space<smem>>
    %1157 = vector.broadcast %1156 : f32 to vector<8x128xf32>
    %1158 = arith.mulf %1157, %83 : vector<8x128xf32>
    %c266 = arith.constant 266 : index
    %1159 = memref.load %arg1[%c266] : memref<712xf32, #tpu.memory_space<smem>>
    %1160 = vector.broadcast %1159 : f32 to vector<8x128xf32>
    %1161 = arith.mulf %1160, %89 : vector<8x128xf32>
    %1162 = arith.addf %1155, %1161 : vector<8x128xf32>
    %c268 = arith.constant 268 : index
    %1163 = memref.load %arg1[%c268] : memref<712xf32, #tpu.memory_space<smem>>
    %1164 = vector.broadcast %1163 : f32 to vector<8x128xf32>
    %1165 = arith.mulf %1164, %101 : vector<8x128xf32>
    %1166 = arith.addf %1162, %1165 : vector<8x128xf32>
    %c270 = arith.constant 270 : index
    %1167 = memref.load %arg1[%c270] : memref<712xf32, #tpu.memory_space<smem>>
    %1168 = vector.broadcast %1167 : f32 to vector<8x128xf32>
    %1169 = arith.mulf %1168, %113 : vector<8x128xf32>
    %1170 = arith.addf %1166, %1169 : vector<8x128xf32>
    %c272 = arith.constant 272 : index
    %1171 = memref.load %arg1[%c272] : memref<712xf32, #tpu.memory_space<smem>>
    %1172 = vector.broadcast %1171 : f32 to vector<8x128xf32>
    %1173 = arith.mulf %1172, %125 : vector<8x128xf32>
    %1174 = arith.addf %1170, %1173 : vector<8x128xf32>
    %c274 = arith.constant 274 : index
    %1175 = memref.load %arg1[%c274] : memref<712xf32, #tpu.memory_space<smem>>
    %1176 = vector.broadcast %1175 : f32 to vector<8x128xf32>
    %1177 = arith.mulf %1176, %137 : vector<8x128xf32>
    %1178 = arith.addf %1174, %1177 : vector<8x128xf32>
    %c267 = arith.constant 267 : index
    %1179 = memref.load %arg1[%c267] : memref<712xf32, #tpu.memory_space<smem>>
    %1180 = vector.broadcast %1179 : f32 to vector<8x128xf32>
    %1181 = arith.mulf %1180, %95 : vector<8x128xf32>
    %1182 = arith.addf %1158, %1181 : vector<8x128xf32>
    %c269 = arith.constant 269 : index
    %1183 = memref.load %arg1[%c269] : memref<712xf32, #tpu.memory_space<smem>>
    %1184 = vector.broadcast %1183 : f32 to vector<8x128xf32>
    %1185 = arith.mulf %1184, %107 : vector<8x128xf32>
    %1186 = arith.addf %1182, %1185 : vector<8x128xf32>
    %c271 = arith.constant 271 : index
    %1187 = memref.load %arg1[%c271] : memref<712xf32, #tpu.memory_space<smem>>
    %1188 = vector.broadcast %1187 : f32 to vector<8x128xf32>
    %1189 = arith.mulf %1188, %119 : vector<8x128xf32>
    %1190 = arith.addf %1186, %1189 : vector<8x128xf32>
    %c273 = arith.constant 273 : index
    %1191 = memref.load %arg1[%c273] : memref<712xf32, #tpu.memory_space<smem>>
    %1192 = vector.broadcast %1191 : f32 to vector<8x128xf32>
    %1193 = arith.mulf %1192, %131 : vector<8x128xf32>
    %1194 = arith.addf %1190, %1193 : vector<8x128xf32>
    %1195 = arith.addf %1178, %1194 : vector<8x128xf32>
    %c364 = arith.constant 364 : index
    %1196 = memref.load %arg1[%c364] : memref<712xf32, #tpu.memory_space<smem>>
    %c275 = arith.constant 275 : index
    %1197 = memref.load %arg1[%c275] : memref<712xf32, #tpu.memory_space<smem>>
    %1198 = vector.broadcast %1197 : f32 to vector<8x128xf32>
    %1199 = arith.mulf %1198, %77 : vector<8x128xf32>
    %1200 = vector.broadcast %1196 : f32 to vector<8x128xf32>
    %1201 = arith.addf %1200, %1199 : vector<8x128xf32>
    %c276 = arith.constant 276 : index
    %1202 = memref.load %arg1[%c276] : memref<712xf32, #tpu.memory_space<smem>>
    %1203 = vector.broadcast %1202 : f32 to vector<8x128xf32>
    %1204 = arith.mulf %1203, %83 : vector<8x128xf32>
    %c277 = arith.constant 277 : index
    %1205 = memref.load %arg1[%c277] : memref<712xf32, #tpu.memory_space<smem>>
    %1206 = vector.broadcast %1205 : f32 to vector<8x128xf32>
    %1207 = arith.mulf %1206, %89 : vector<8x128xf32>
    %1208 = arith.addf %1201, %1207 : vector<8x128xf32>
    %c279 = arith.constant 279 : index
    %1209 = memref.load %arg1[%c279] : memref<712xf32, #tpu.memory_space<smem>>
    %1210 = vector.broadcast %1209 : f32 to vector<8x128xf32>
    %1211 = arith.mulf %1210, %101 : vector<8x128xf32>
    %1212 = arith.addf %1208, %1211 : vector<8x128xf32>
    %c281 = arith.constant 281 : index
    %1213 = memref.load %arg1[%c281] : memref<712xf32, #tpu.memory_space<smem>>
    %1214 = vector.broadcast %1213 : f32 to vector<8x128xf32>
    %1215 = arith.mulf %1214, %113 : vector<8x128xf32>
    %1216 = arith.addf %1212, %1215 : vector<8x128xf32>
    %c283 = arith.constant 283 : index
    %1217 = memref.load %arg1[%c283] : memref<712xf32, #tpu.memory_space<smem>>
    %1218 = vector.broadcast %1217 : f32 to vector<8x128xf32>
    %1219 = arith.mulf %1218, %125 : vector<8x128xf32>
    %1220 = arith.addf %1216, %1219 : vector<8x128xf32>
    %c285 = arith.constant 285 : index
    %1221 = memref.load %arg1[%c285] : memref<712xf32, #tpu.memory_space<smem>>
    %1222 = vector.broadcast %1221 : f32 to vector<8x128xf32>
    %1223 = arith.mulf %1222, %137 : vector<8x128xf32>
    %1224 = arith.addf %1220, %1223 : vector<8x128xf32>
    %c278 = arith.constant 278 : index
    %1225 = memref.load %arg1[%c278] : memref<712xf32, #tpu.memory_space<smem>>
    %1226 = vector.broadcast %1225 : f32 to vector<8x128xf32>
    %1227 = arith.mulf %1226, %95 : vector<8x128xf32>
    %1228 = arith.addf %1204, %1227 : vector<8x128xf32>
    %c280 = arith.constant 280 : index
    %1229 = memref.load %arg1[%c280] : memref<712xf32, #tpu.memory_space<smem>>
    %1230 = vector.broadcast %1229 : f32 to vector<8x128xf32>
    %1231 = arith.mulf %1230, %107 : vector<8x128xf32>
    %1232 = arith.addf %1228, %1231 : vector<8x128xf32>
    %c282 = arith.constant 282 : index
    %1233 = memref.load %arg1[%c282] : memref<712xf32, #tpu.memory_space<smem>>
    %1234 = vector.broadcast %1233 : f32 to vector<8x128xf32>
    %1235 = arith.mulf %1234, %119 : vector<8x128xf32>
    %1236 = arith.addf %1232, %1235 : vector<8x128xf32>
    %c284 = arith.constant 284 : index
    %1237 = memref.load %arg1[%c284] : memref<712xf32, #tpu.memory_space<smem>>
    %1238 = vector.broadcast %1237 : f32 to vector<8x128xf32>
    %1239 = arith.mulf %1238, %131 : vector<8x128xf32>
    %1240 = arith.addf %1236, %1239 : vector<8x128xf32>
    %1241 = arith.addf %1224, %1240 : vector<8x128xf32>
    %c365 = arith.constant 365 : index
    %1242 = memref.load %arg1[%c365] : memref<712xf32, #tpu.memory_space<smem>>
    %c286 = arith.constant 286 : index
    %1243 = memref.load %arg1[%c286] : memref<712xf32, #tpu.memory_space<smem>>
    %1244 = vector.broadcast %1243 : f32 to vector<8x128xf32>
    %1245 = arith.mulf %1244, %77 : vector<8x128xf32>
    %1246 = vector.broadcast %1242 : f32 to vector<8x128xf32>
    %1247 = arith.addf %1246, %1245 : vector<8x128xf32>
    %c287 = arith.constant 287 : index
    %1248 = memref.load %arg1[%c287] : memref<712xf32, #tpu.memory_space<smem>>
    %1249 = vector.broadcast %1248 : f32 to vector<8x128xf32>
    %1250 = arith.mulf %1249, %83 : vector<8x128xf32>
    %c288 = arith.constant 288 : index
    %1251 = memref.load %arg1[%c288] : memref<712xf32, #tpu.memory_space<smem>>
    %1252 = vector.broadcast %1251 : f32 to vector<8x128xf32>
    %1253 = arith.mulf %1252, %89 : vector<8x128xf32>
    %1254 = arith.addf %1247, %1253 : vector<8x128xf32>
    %c290 = arith.constant 290 : index
    %1255 = memref.load %arg1[%c290] : memref<712xf32, #tpu.memory_space<smem>>
    %1256 = vector.broadcast %1255 : f32 to vector<8x128xf32>
    %1257 = arith.mulf %1256, %101 : vector<8x128xf32>
    %1258 = arith.addf %1254, %1257 : vector<8x128xf32>
    %c292 = arith.constant 292 : index
    %1259 = memref.load %arg1[%c292] : memref<712xf32, #tpu.memory_space<smem>>
    %1260 = vector.broadcast %1259 : f32 to vector<8x128xf32>
    %1261 = arith.mulf %1260, %113 : vector<8x128xf32>
    %1262 = arith.addf %1258, %1261 : vector<8x128xf32>
    %c294 = arith.constant 294 : index
    %1263 = memref.load %arg1[%c294] : memref<712xf32, #tpu.memory_space<smem>>
    %1264 = vector.broadcast %1263 : f32 to vector<8x128xf32>
    %1265 = arith.mulf %1264, %125 : vector<8x128xf32>
    %1266 = arith.addf %1262, %1265 : vector<8x128xf32>
    %c296 = arith.constant 296 : index
    %1267 = memref.load %arg1[%c296] : memref<712xf32, #tpu.memory_space<smem>>
    %1268 = vector.broadcast %1267 : f32 to vector<8x128xf32>
    %1269 = arith.mulf %1268, %137 : vector<8x128xf32>
    %1270 = arith.addf %1266, %1269 : vector<8x128xf32>
    %c289 = arith.constant 289 : index
    %1271 = memref.load %arg1[%c289] : memref<712xf32, #tpu.memory_space<smem>>
    %1272 = vector.broadcast %1271 : f32 to vector<8x128xf32>
    %1273 = arith.mulf %1272, %95 : vector<8x128xf32>
    %1274 = arith.addf %1250, %1273 : vector<8x128xf32>
    %c291 = arith.constant 291 : index
    %1275 = memref.load %arg1[%c291] : memref<712xf32, #tpu.memory_space<smem>>
    %1276 = vector.broadcast %1275 : f32 to vector<8x128xf32>
    %1277 = arith.mulf %1276, %107 : vector<8x128xf32>
    %1278 = arith.addf %1274, %1277 : vector<8x128xf32>
    %c293 = arith.constant 293 : index
    %1279 = memref.load %arg1[%c293] : memref<712xf32, #tpu.memory_space<smem>>
    %1280 = vector.broadcast %1279 : f32 to vector<8x128xf32>
    %1281 = arith.mulf %1280, %119 : vector<8x128xf32>
    %1282 = arith.addf %1278, %1281 : vector<8x128xf32>
    %c295 = arith.constant 295 : index
    %1283 = memref.load %arg1[%c295] : memref<712xf32, #tpu.memory_space<smem>>
    %1284 = vector.broadcast %1283 : f32 to vector<8x128xf32>
    %1285 = arith.mulf %1284, %131 : vector<8x128xf32>
    %1286 = arith.addf %1282, %1285 : vector<8x128xf32>
    %1287 = arith.addf %1270, %1286 : vector<8x128xf32>
    %c366 = arith.constant 366 : index
    %1288 = memref.load %arg1[%c366] : memref<712xf32, #tpu.memory_space<smem>>
    %c297 = arith.constant 297 : index
    %1289 = memref.load %arg1[%c297] : memref<712xf32, #tpu.memory_space<smem>>
    %1290 = vector.broadcast %1289 : f32 to vector<8x128xf32>
    %1291 = arith.mulf %1290, %77 : vector<8x128xf32>
    %1292 = vector.broadcast %1288 : f32 to vector<8x128xf32>
    %1293 = arith.addf %1292, %1291 : vector<8x128xf32>
    %c298 = arith.constant 298 : index
    %1294 = memref.load %arg1[%c298] : memref<712xf32, #tpu.memory_space<smem>>
    %1295 = vector.broadcast %1294 : f32 to vector<8x128xf32>
    %1296 = arith.mulf %1295, %83 : vector<8x128xf32>
    %c299 = arith.constant 299 : index
    %1297 = memref.load %arg1[%c299] : memref<712xf32, #tpu.memory_space<smem>>
    %1298 = vector.broadcast %1297 : f32 to vector<8x128xf32>
    %1299 = arith.mulf %1298, %89 : vector<8x128xf32>
    %1300 = arith.addf %1293, %1299 : vector<8x128xf32>
    %c301 = arith.constant 301 : index
    %1301 = memref.load %arg1[%c301] : memref<712xf32, #tpu.memory_space<smem>>
    %1302 = vector.broadcast %1301 : f32 to vector<8x128xf32>
    %1303 = arith.mulf %1302, %101 : vector<8x128xf32>
    %1304 = arith.addf %1300, %1303 : vector<8x128xf32>
    %c303 = arith.constant 303 : index
    %1305 = memref.load %arg1[%c303] : memref<712xf32, #tpu.memory_space<smem>>
    %1306 = vector.broadcast %1305 : f32 to vector<8x128xf32>
    %1307 = arith.mulf %1306, %113 : vector<8x128xf32>
    %1308 = arith.addf %1304, %1307 : vector<8x128xf32>
    %c305 = arith.constant 305 : index
    %1309 = memref.load %arg1[%c305] : memref<712xf32, #tpu.memory_space<smem>>
    %1310 = vector.broadcast %1309 : f32 to vector<8x128xf32>
    %1311 = arith.mulf %1310, %125 : vector<8x128xf32>
    %1312 = arith.addf %1308, %1311 : vector<8x128xf32>
    %c307 = arith.constant 307 : index
    %1313 = memref.load %arg1[%c307] : memref<712xf32, #tpu.memory_space<smem>>
    %1314 = vector.broadcast %1313 : f32 to vector<8x128xf32>
    %1315 = arith.mulf %1314, %137 : vector<8x128xf32>
    %1316 = arith.addf %1312, %1315 : vector<8x128xf32>
    %c300 = arith.constant 300 : index
    %1317 = memref.load %arg1[%c300] : memref<712xf32, #tpu.memory_space<smem>>
    %1318 = vector.broadcast %1317 : f32 to vector<8x128xf32>
    %1319 = arith.mulf %1318, %95 : vector<8x128xf32>
    %1320 = arith.addf %1296, %1319 : vector<8x128xf32>
    %c302 = arith.constant 302 : index
    %1321 = memref.load %arg1[%c302] : memref<712xf32, #tpu.memory_space<smem>>
    %1322 = vector.broadcast %1321 : f32 to vector<8x128xf32>
    %1323 = arith.mulf %1322, %107 : vector<8x128xf32>
    %1324 = arith.addf %1320, %1323 : vector<8x128xf32>
    %c304 = arith.constant 304 : index
    %1325 = memref.load %arg1[%c304] : memref<712xf32, #tpu.memory_space<smem>>
    %1326 = vector.broadcast %1325 : f32 to vector<8x128xf32>
    %1327 = arith.mulf %1326, %119 : vector<8x128xf32>
    %1328 = arith.addf %1324, %1327 : vector<8x128xf32>
    %c306 = arith.constant 306 : index
    %1329 = memref.load %arg1[%c306] : memref<712xf32, #tpu.memory_space<smem>>
    %1330 = vector.broadcast %1329 : f32 to vector<8x128xf32>
    %1331 = arith.mulf %1330, %131 : vector<8x128xf32>
    %1332 = arith.addf %1328, %1331 : vector<8x128xf32>
    %1333 = arith.addf %1316, %1332 : vector<8x128xf32>
    %c367 = arith.constant 367 : index
    %1334 = memref.load %arg1[%c367] : memref<712xf32, #tpu.memory_space<smem>>
    %c308 = arith.constant 308 : index
    %1335 = memref.load %arg1[%c308] : memref<712xf32, #tpu.memory_space<smem>>
    %1336 = vector.broadcast %1335 : f32 to vector<8x128xf32>
    %1337 = arith.mulf %1336, %77 : vector<8x128xf32>
    %1338 = vector.broadcast %1334 : f32 to vector<8x128xf32>
    %1339 = arith.addf %1338, %1337 : vector<8x128xf32>
    %c309 = arith.constant 309 : index
    %1340 = memref.load %arg1[%c309] : memref<712xf32, #tpu.memory_space<smem>>
    %1341 = vector.broadcast %1340 : f32 to vector<8x128xf32>
    %1342 = arith.mulf %1341, %83 : vector<8x128xf32>
    %c310 = arith.constant 310 : index
    %1343 = memref.load %arg1[%c310] : memref<712xf32, #tpu.memory_space<smem>>
    %1344 = vector.broadcast %1343 : f32 to vector<8x128xf32>
    %1345 = arith.mulf %1344, %89 : vector<8x128xf32>
    %1346 = arith.addf %1339, %1345 : vector<8x128xf32>
    %c312 = arith.constant 312 : index
    %1347 = memref.load %arg1[%c312] : memref<712xf32, #tpu.memory_space<smem>>
    %1348 = vector.broadcast %1347 : f32 to vector<8x128xf32>
    %1349 = arith.mulf %1348, %101 : vector<8x128xf32>
    %1350 = arith.addf %1346, %1349 : vector<8x128xf32>
    %c314 = arith.constant 314 : index
    %1351 = memref.load %arg1[%c314] : memref<712xf32, #tpu.memory_space<smem>>
    %1352 = vector.broadcast %1351 : f32 to vector<8x128xf32>
    %1353 = arith.mulf %1352, %113 : vector<8x128xf32>
    %1354 = arith.addf %1350, %1353 : vector<8x128xf32>
    %c316 = arith.constant 316 : index
    %1355 = memref.load %arg1[%c316] : memref<712xf32, #tpu.memory_space<smem>>
    %1356 = vector.broadcast %1355 : f32 to vector<8x128xf32>
    %1357 = arith.mulf %1356, %125 : vector<8x128xf32>
    %1358 = arith.addf %1354, %1357 : vector<8x128xf32>
    %c318 = arith.constant 318 : index
    %1359 = memref.load %arg1[%c318] : memref<712xf32, #tpu.memory_space<smem>>
    %1360 = vector.broadcast %1359 : f32 to vector<8x128xf32>
    %1361 = arith.mulf %1360, %137 : vector<8x128xf32>
    %1362 = arith.addf %1358, %1361 : vector<8x128xf32>
    %c311 = arith.constant 311 : index
    %1363 = memref.load %arg1[%c311] : memref<712xf32, #tpu.memory_space<smem>>
    %1364 = vector.broadcast %1363 : f32 to vector<8x128xf32>
    %1365 = arith.mulf %1364, %95 : vector<8x128xf32>
    %1366 = arith.addf %1342, %1365 : vector<8x128xf32>
    %c313 = arith.constant 313 : index
    %1367 = memref.load %arg1[%c313] : memref<712xf32, #tpu.memory_space<smem>>
    %1368 = vector.broadcast %1367 : f32 to vector<8x128xf32>
    %1369 = arith.mulf %1368, %107 : vector<8x128xf32>
    %1370 = arith.addf %1366, %1369 : vector<8x128xf32>
    %c315 = arith.constant 315 : index
    %1371 = memref.load %arg1[%c315] : memref<712xf32, #tpu.memory_space<smem>>
    %1372 = vector.broadcast %1371 : f32 to vector<8x128xf32>
    %1373 = arith.mulf %1372, %119 : vector<8x128xf32>
    %1374 = arith.addf %1370, %1373 : vector<8x128xf32>
    %c317 = arith.constant 317 : index
    %1375 = memref.load %arg1[%c317] : memref<712xf32, #tpu.memory_space<smem>>
    %1376 = vector.broadcast %1375 : f32 to vector<8x128xf32>
    %1377 = arith.mulf %1376, %131 : vector<8x128xf32>
    %1378 = arith.addf %1374, %1377 : vector<8x128xf32>
    %1379 = arith.addf %1362, %1378 : vector<8x128xf32>
    %c368 = arith.constant 368 : index
    %1380 = memref.load %arg1[%c368] : memref<712xf32, #tpu.memory_space<smem>>
    %c319 = arith.constant 319 : index
    %1381 = memref.load %arg1[%c319] : memref<712xf32, #tpu.memory_space<smem>>
    %1382 = vector.broadcast %1381 : f32 to vector<8x128xf32>
    %1383 = arith.mulf %1382, %77 : vector<8x128xf32>
    %1384 = vector.broadcast %1380 : f32 to vector<8x128xf32>
    %1385 = arith.addf %1384, %1383 : vector<8x128xf32>
    %c320 = arith.constant 320 : index
    %1386 = memref.load %arg1[%c320] : memref<712xf32, #tpu.memory_space<smem>>
    %1387 = vector.broadcast %1386 : f32 to vector<8x128xf32>
    %1388 = arith.mulf %1387, %83 : vector<8x128xf32>
    %c321 = arith.constant 321 : index
    %1389 = memref.load %arg1[%c321] : memref<712xf32, #tpu.memory_space<smem>>
    %1390 = vector.broadcast %1389 : f32 to vector<8x128xf32>
    %1391 = arith.mulf %1390, %89 : vector<8x128xf32>
    %1392 = arith.addf %1385, %1391 : vector<8x128xf32>
    %c323 = arith.constant 323 : index
    %1393 = memref.load %arg1[%c323] : memref<712xf32, #tpu.memory_space<smem>>
    %1394 = vector.broadcast %1393 : f32 to vector<8x128xf32>
    %1395 = arith.mulf %1394, %101 : vector<8x128xf32>
    %1396 = arith.addf %1392, %1395 : vector<8x128xf32>
    %c325 = arith.constant 325 : index
    %1397 = memref.load %arg1[%c325] : memref<712xf32, #tpu.memory_space<smem>>
    %1398 = vector.broadcast %1397 : f32 to vector<8x128xf32>
    %1399 = arith.mulf %1398, %113 : vector<8x128xf32>
    %1400 = arith.addf %1396, %1399 : vector<8x128xf32>
    %c327 = arith.constant 327 : index
    %1401 = memref.load %arg1[%c327] : memref<712xf32, #tpu.memory_space<smem>>
    %1402 = vector.broadcast %1401 : f32 to vector<8x128xf32>
    %1403 = arith.mulf %1402, %125 : vector<8x128xf32>
    %1404 = arith.addf %1400, %1403 : vector<8x128xf32>
    %c329 = arith.constant 329 : index
    %1405 = memref.load %arg1[%c329] : memref<712xf32, #tpu.memory_space<smem>>
    %1406 = vector.broadcast %1405 : f32 to vector<8x128xf32>
    %1407 = arith.mulf %1406, %137 : vector<8x128xf32>
    %1408 = arith.addf %1404, %1407 : vector<8x128xf32>
    %c322 = arith.constant 322 : index
    %1409 = memref.load %arg1[%c322] : memref<712xf32, #tpu.memory_space<smem>>
    %1410 = vector.broadcast %1409 : f32 to vector<8x128xf32>
    %1411 = arith.mulf %1410, %95 : vector<8x128xf32>
    %1412 = arith.addf %1388, %1411 : vector<8x128xf32>
    %c324 = arith.constant 324 : index
    %1413 = memref.load %arg1[%c324] : memref<712xf32, #tpu.memory_space<smem>>
    %1414 = vector.broadcast %1413 : f32 to vector<8x128xf32>
    %1415 = arith.mulf %1414, %107 : vector<8x128xf32>
    %1416 = arith.addf %1412, %1415 : vector<8x128xf32>
    %c326 = arith.constant 326 : index
    %1417 = memref.load %arg1[%c326] : memref<712xf32, #tpu.memory_space<smem>>
    %1418 = vector.broadcast %1417 : f32 to vector<8x128xf32>
    %1419 = arith.mulf %1418, %119 : vector<8x128xf32>
    %1420 = arith.addf %1416, %1419 : vector<8x128xf32>
    %c328 = arith.constant 328 : index
    %1421 = memref.load %arg1[%c328] : memref<712xf32, #tpu.memory_space<smem>>
    %1422 = vector.broadcast %1421 : f32 to vector<8x128xf32>
    %1423 = arith.mulf %1422, %131 : vector<8x128xf32>
    %1424 = arith.addf %1420, %1423 : vector<8x128xf32>
    %1425 = arith.addf %1408, %1424 : vector<8x128xf32>
    %c369 = arith.constant 369 : index
    %1426 = memref.load %arg1[%c369] : memref<712xf32, #tpu.memory_space<smem>>
    %c330 = arith.constant 330 : index
    %1427 = memref.load %arg1[%c330] : memref<712xf32, #tpu.memory_space<smem>>
    %1428 = vector.broadcast %1427 : f32 to vector<8x128xf32>
    %1429 = arith.mulf %1428, %77 : vector<8x128xf32>
    %1430 = vector.broadcast %1426 : f32 to vector<8x128xf32>
    %1431 = arith.addf %1430, %1429 : vector<8x128xf32>
    %c331 = arith.constant 331 : index
    %1432 = memref.load %arg1[%c331] : memref<712xf32, #tpu.memory_space<smem>>
    %1433 = vector.broadcast %1432 : f32 to vector<8x128xf32>
    %1434 = arith.mulf %1433, %83 : vector<8x128xf32>
    %c332 = arith.constant 332 : index
    %1435 = memref.load %arg1[%c332] : memref<712xf32, #tpu.memory_space<smem>>
    %1436 = vector.broadcast %1435 : f32 to vector<8x128xf32>
    %1437 = arith.mulf %1436, %89 : vector<8x128xf32>
    %1438 = arith.addf %1431, %1437 : vector<8x128xf32>
    %c334 = arith.constant 334 : index
    %1439 = memref.load %arg1[%c334] : memref<712xf32, #tpu.memory_space<smem>>
    %1440 = vector.broadcast %1439 : f32 to vector<8x128xf32>
    %1441 = arith.mulf %1440, %101 : vector<8x128xf32>
    %1442 = arith.addf %1438, %1441 : vector<8x128xf32>
    %c336 = arith.constant 336 : index
    %1443 = memref.load %arg1[%c336] : memref<712xf32, #tpu.memory_space<smem>>
    %1444 = vector.broadcast %1443 : f32 to vector<8x128xf32>
    %1445 = arith.mulf %1444, %113 : vector<8x128xf32>
    %1446 = arith.addf %1442, %1445 : vector<8x128xf32>
    %c338 = arith.constant 338 : index
    %1447 = memref.load %arg1[%c338] : memref<712xf32, #tpu.memory_space<smem>>
    %1448 = vector.broadcast %1447 : f32 to vector<8x128xf32>
    %1449 = arith.mulf %1448, %125 : vector<8x128xf32>
    %1450 = arith.addf %1446, %1449 : vector<8x128xf32>
    %c340 = arith.constant 340 : index
    %1451 = memref.load %arg1[%c340] : memref<712xf32, #tpu.memory_space<smem>>
    %1452 = vector.broadcast %1451 : f32 to vector<8x128xf32>
    %1453 = arith.mulf %1452, %137 : vector<8x128xf32>
    %1454 = arith.addf %1450, %1453 : vector<8x128xf32>
    %c333 = arith.constant 333 : index
    %1455 = memref.load %arg1[%c333] : memref<712xf32, #tpu.memory_space<smem>>
    %1456 = vector.broadcast %1455 : f32 to vector<8x128xf32>
    %1457 = arith.mulf %1456, %95 : vector<8x128xf32>
    %1458 = arith.addf %1434, %1457 : vector<8x128xf32>
    %c335 = arith.constant 335 : index
    %1459 = memref.load %arg1[%c335] : memref<712xf32, #tpu.memory_space<smem>>
    %1460 = vector.broadcast %1459 : f32 to vector<8x128xf32>
    %1461 = arith.mulf %1460, %107 : vector<8x128xf32>
    %1462 = arith.addf %1458, %1461 : vector<8x128xf32>
    %c337 = arith.constant 337 : index
    %1463 = memref.load %arg1[%c337] : memref<712xf32, #tpu.memory_space<smem>>
    %1464 = vector.broadcast %1463 : f32 to vector<8x128xf32>
    %1465 = arith.mulf %1464, %119 : vector<8x128xf32>
    %1466 = arith.addf %1462, %1465 : vector<8x128xf32>
    %c339 = arith.constant 339 : index
    %1467 = memref.load %arg1[%c339] : memref<712xf32, #tpu.memory_space<smem>>
    %1468 = vector.broadcast %1467 : f32 to vector<8x128xf32>
    %1469 = arith.mulf %1468, %131 : vector<8x128xf32>
    %1470 = arith.addf %1466, %1469 : vector<8x128xf32>
    %1471 = arith.addf %1454, %1470 : vector<8x128xf32>
    %cst_23 = arith.constant 0.000000e+00 : f32
    %1472 = vector.broadcast %cst_23 : f32 to vector<8x128xf32>
    %1473 = arith.cmpf ogt, %183, %1472 : vector<8x128xf32>
    %1474 = math.exp %183 : vector<8x128xf32>
    %cst_24 = arith.constant 1.000000e+00 : f32
    %1475 = vector.broadcast %cst_24 : f32 to vector<8x128xf32>
    %1476 = arith.subf %1474, %1475 : vector<8x128xf32>
    %1477 = arith.select %1473, %183, %1476 : vector<8x128xi1>, vector<8x128xf32>
    %cst_25 = arith.constant 0.000000e+00 : f32
    %1478 = vector.broadcast %cst_25 : f32 to vector<8x128xf32>
    %1479 = arith.cmpf ogt, %229, %1478 : vector<8x128xf32>
    %1480 = math.exp %229 : vector<8x128xf32>
    %cst_26 = arith.constant 1.000000e+00 : f32
    %1481 = vector.broadcast %cst_26 : f32 to vector<8x128xf32>
    %1482 = arith.subf %1480, %1481 : vector<8x128xf32>
    %1483 = arith.select %1479, %229, %1482 : vector<8x128xi1>, vector<8x128xf32>
    %cst_27 = arith.constant 0.000000e+00 : f32
    %1484 = vector.broadcast %cst_27 : f32 to vector<8x128xf32>
    %1485 = arith.cmpf ogt, %275, %1484 : vector<8x128xf32>
    %1486 = math.exp %275 : vector<8x128xf32>
    %cst_28 = arith.constant 1.000000e+00 : f32
    %1487 = vector.broadcast %cst_28 : f32 to vector<8x128xf32>
    %1488 = arith.subf %1486, %1487 : vector<8x128xf32>
    %1489 = arith.select %1485, %275, %1488 : vector<8x128xi1>, vector<8x128xf32>
    %cst_29 = arith.constant 0.000000e+00 : f32
    %1490 = vector.broadcast %cst_29 : f32 to vector<8x128xf32>
    %1491 = arith.cmpf ogt, %321, %1490 : vector<8x128xf32>
    %1492 = math.exp %321 : vector<8x128xf32>
    %cst_30 = arith.constant 1.000000e+00 : f32
    %1493 = vector.broadcast %cst_30 : f32 to vector<8x128xf32>
    %1494 = arith.subf %1492, %1493 : vector<8x128xf32>
    %1495 = arith.select %1491, %321, %1494 : vector<8x128xi1>, vector<8x128xf32>
    %cst_31 = arith.constant 0.000000e+00 : f32
    %1496 = vector.broadcast %cst_31 : f32 to vector<8x128xf32>
    %1497 = arith.cmpf ogt, %367, %1496 : vector<8x128xf32>
    %1498 = math.exp %367 : vector<8x128xf32>
    %cst_32 = arith.constant 1.000000e+00 : f32
    %1499 = vector.broadcast %cst_32 : f32 to vector<8x128xf32>
    %1500 = arith.subf %1498, %1499 : vector<8x128xf32>
    %1501 = arith.select %1497, %367, %1500 : vector<8x128xi1>, vector<8x128xf32>
    %cst_33 = arith.constant 0.000000e+00 : f32
    %1502 = vector.broadcast %cst_33 : f32 to vector<8x128xf32>
    %1503 = arith.cmpf ogt, %413, %1502 : vector<8x128xf32>
    %1504 = math.exp %413 : vector<8x128xf32>
    %cst_34 = arith.constant 1.000000e+00 : f32
    %1505 = vector.broadcast %cst_34 : f32 to vector<8x128xf32>
    %1506 = arith.subf %1504, %1505 : vector<8x128xf32>
    %1507 = arith.select %1503, %413, %1506 : vector<8x128xi1>, vector<8x128xf32>
    %cst_35 = arith.constant 0.000000e+00 : f32
    %1508 = vector.broadcast %cst_35 : f32 to vector<8x128xf32>
    %1509 = arith.cmpf ogt, %459, %1508 : vector<8x128xf32>
    %1510 = math.exp %459 : vector<8x128xf32>
    %cst_36 = arith.constant 1.000000e+00 : f32
    %1511 = vector.broadcast %cst_36 : f32 to vector<8x128xf32>
    %1512 = arith.subf %1510, %1511 : vector<8x128xf32>
    %1513 = arith.select %1509, %459, %1512 : vector<8x128xi1>, vector<8x128xf32>
    %cst_37 = arith.constant 0.000000e+00 : f32
    %1514 = vector.broadcast %cst_37 : f32 to vector<8x128xf32>
    %1515 = arith.cmpf ogt, %505, %1514 : vector<8x128xf32>
    %1516 = math.exp %505 : vector<8x128xf32>
    %cst_38 = arith.constant 1.000000e+00 : f32
    %1517 = vector.broadcast %cst_38 : f32 to vector<8x128xf32>
    %1518 = arith.subf %1516, %1517 : vector<8x128xf32>
    %1519 = arith.select %1515, %505, %1518 : vector<8x128xi1>, vector<8x128xf32>
    %cst_39 = arith.constant 0.000000e+00 : f32
    %1520 = vector.broadcast %cst_39 : f32 to vector<8x128xf32>
    %1521 = arith.cmpf ogt, %551, %1520 : vector<8x128xf32>
    %1522 = math.exp %551 : vector<8x128xf32>
    %cst_40 = arith.constant 1.000000e+00 : f32
    %1523 = vector.broadcast %cst_40 : f32 to vector<8x128xf32>
    %1524 = arith.subf %1522, %1523 : vector<8x128xf32>
    %1525 = arith.select %1521, %551, %1524 : vector<8x128xi1>, vector<8x128xf32>
    %cst_41 = arith.constant 0.000000e+00 : f32
    %1526 = vector.broadcast %cst_41 : f32 to vector<8x128xf32>
    %1527 = arith.cmpf ogt, %597, %1526 : vector<8x128xf32>
    %1528 = math.exp %597 : vector<8x128xf32>
    %cst_42 = arith.constant 1.000000e+00 : f32
    %1529 = vector.broadcast %cst_42 : f32 to vector<8x128xf32>
    %1530 = arith.subf %1528, %1529 : vector<8x128xf32>
    %1531 = arith.select %1527, %597, %1530 : vector<8x128xi1>, vector<8x128xf32>
    %cst_43 = arith.constant 0.000000e+00 : f32
    %1532 = vector.broadcast %cst_43 : f32 to vector<8x128xf32>
    %1533 = arith.cmpf ogt, %643, %1532 : vector<8x128xf32>
    %1534 = math.exp %643 : vector<8x128xf32>
    %cst_44 = arith.constant 1.000000e+00 : f32
    %1535 = vector.broadcast %cst_44 : f32 to vector<8x128xf32>
    %1536 = arith.subf %1534, %1535 : vector<8x128xf32>
    %1537 = arith.select %1533, %643, %1536 : vector<8x128xi1>, vector<8x128xf32>
    %cst_45 = arith.constant 0.000000e+00 : f32
    %1538 = vector.broadcast %cst_45 : f32 to vector<8x128xf32>
    %1539 = arith.cmpf ogt, %689, %1538 : vector<8x128xf32>
    %1540 = math.exp %689 : vector<8x128xf32>
    %cst_46 = arith.constant 1.000000e+00 : f32
    %1541 = vector.broadcast %cst_46 : f32 to vector<8x128xf32>
    %1542 = arith.subf %1540, %1541 : vector<8x128xf32>
    %1543 = arith.select %1539, %689, %1542 : vector<8x128xi1>, vector<8x128xf32>
    %cst_47 = arith.constant 0.000000e+00 : f32
    %1544 = vector.broadcast %cst_47 : f32 to vector<8x128xf32>
    %1545 = arith.cmpf ogt, %735, %1544 : vector<8x128xf32>
    %1546 = math.exp %735 : vector<8x128xf32>
    %cst_48 = arith.constant 1.000000e+00 : f32
    %1547 = vector.broadcast %cst_48 : f32 to vector<8x128xf32>
    %1548 = arith.subf %1546, %1547 : vector<8x128xf32>
    %1549 = arith.select %1545, %735, %1548 : vector<8x128xi1>, vector<8x128xf32>
    %cst_49 = arith.constant 0.000000e+00 : f32
    %1550 = vector.broadcast %cst_49 : f32 to vector<8x128xf32>
    %1551 = arith.cmpf ogt, %781, %1550 : vector<8x128xf32>
    %1552 = math.exp %781 : vector<8x128xf32>
    %cst_50 = arith.constant 1.000000e+00 : f32
    %1553 = vector.broadcast %cst_50 : f32 to vector<8x128xf32>
    %1554 = arith.subf %1552, %1553 : vector<8x128xf32>
    %1555 = arith.select %1551, %781, %1554 : vector<8x128xi1>, vector<8x128xf32>
    %cst_51 = arith.constant 0.000000e+00 : f32
    %1556 = vector.broadcast %cst_51 : f32 to vector<8x128xf32>
    %1557 = arith.cmpf ogt, %827, %1556 : vector<8x128xf32>
    %1558 = math.exp %827 : vector<8x128xf32>
    %cst_52 = arith.constant 1.000000e+00 : f32
    %1559 = vector.broadcast %cst_52 : f32 to vector<8x128xf32>
    %1560 = arith.subf %1558, %1559 : vector<8x128xf32>
    %1561 = arith.select %1557, %827, %1560 : vector<8x128xi1>, vector<8x128xf32>
    %cst_53 = arith.constant 0.000000e+00 : f32
    %1562 = vector.broadcast %cst_53 : f32 to vector<8x128xf32>
    %1563 = arith.cmpf ogt, %873, %1562 : vector<8x128xf32>
    %1564 = math.exp %873 : vector<8x128xf32>
    %cst_54 = arith.constant 1.000000e+00 : f32
    %1565 = vector.broadcast %cst_54 : f32 to vector<8x128xf32>
    %1566 = arith.subf %1564, %1565 : vector<8x128xf32>
    %1567 = arith.select %1563, %873, %1566 : vector<8x128xi1>, vector<8x128xf32>
    %cst_55 = arith.constant 0.000000e+00 : f32
    %1568 = vector.broadcast %cst_55 : f32 to vector<8x128xf32>
    %1569 = arith.cmpf ogt, %919, %1568 : vector<8x128xf32>
    %1570 = math.exp %919 : vector<8x128xf32>
    %cst_56 = arith.constant 1.000000e+00 : f32
    %1571 = vector.broadcast %cst_56 : f32 to vector<8x128xf32>
    %1572 = arith.subf %1570, %1571 : vector<8x128xf32>
    %1573 = arith.select %1569, %919, %1572 : vector<8x128xi1>, vector<8x128xf32>
    %cst_57 = arith.constant 0.000000e+00 : f32
    %1574 = vector.broadcast %cst_57 : f32 to vector<8x128xf32>
    %1575 = arith.cmpf ogt, %965, %1574 : vector<8x128xf32>
    %1576 = math.exp %965 : vector<8x128xf32>
    %cst_58 = arith.constant 1.000000e+00 : f32
    %1577 = vector.broadcast %cst_58 : f32 to vector<8x128xf32>
    %1578 = arith.subf %1576, %1577 : vector<8x128xf32>
    %1579 = arith.select %1575, %965, %1578 : vector<8x128xi1>, vector<8x128xf32>
    %cst_59 = arith.constant 0.000000e+00 : f32
    %1580 = vector.broadcast %cst_59 : f32 to vector<8x128xf32>
    %1581 = arith.cmpf ogt, %1011, %1580 : vector<8x128xf32>
    %1582 = math.exp %1011 : vector<8x128xf32>
    %cst_60 = arith.constant 1.000000e+00 : f32
    %1583 = vector.broadcast %cst_60 : f32 to vector<8x128xf32>
    %1584 = arith.subf %1582, %1583 : vector<8x128xf32>
    %1585 = arith.select %1581, %1011, %1584 : vector<8x128xi1>, vector<8x128xf32>
    %cst_61 = arith.constant 0.000000e+00 : f32
    %1586 = vector.broadcast %cst_61 : f32 to vector<8x128xf32>
    %1587 = arith.cmpf ogt, %1057, %1586 : vector<8x128xf32>
    %1588 = math.exp %1057 : vector<8x128xf32>
    %cst_62 = arith.constant 1.000000e+00 : f32
    %1589 = vector.broadcast %cst_62 : f32 to vector<8x128xf32>
    %1590 = arith.subf %1588, %1589 : vector<8x128xf32>
    %1591 = arith.select %1587, %1057, %1590 : vector<8x128xi1>, vector<8x128xf32>
    %cst_63 = arith.constant 0.000000e+00 : f32
    %1592 = vector.broadcast %cst_63 : f32 to vector<8x128xf32>
    %1593 = arith.cmpf ogt, %1103, %1592 : vector<8x128xf32>
    %1594 = math.exp %1103 : vector<8x128xf32>
    %cst_64 = arith.constant 1.000000e+00 : f32
    %1595 = vector.broadcast %cst_64 : f32 to vector<8x128xf32>
    %1596 = arith.subf %1594, %1595 : vector<8x128xf32>
    %1597 = arith.select %1593, %1103, %1596 : vector<8x128xi1>, vector<8x128xf32>
    %cst_65 = arith.constant 0.000000e+00 : f32
    %1598 = vector.broadcast %cst_65 : f32 to vector<8x128xf32>
    %1599 = arith.cmpf ogt, %1149, %1598 : vector<8x128xf32>
    %1600 = math.exp %1149 : vector<8x128xf32>
    %cst_66 = arith.constant 1.000000e+00 : f32
    %1601 = vector.broadcast %cst_66 : f32 to vector<8x128xf32>
    %1602 = arith.subf %1600, %1601 : vector<8x128xf32>
    %1603 = arith.select %1599, %1149, %1602 : vector<8x128xi1>, vector<8x128xf32>
    %cst_67 = arith.constant 0.000000e+00 : f32
    %1604 = vector.broadcast %cst_67 : f32 to vector<8x128xf32>
    %1605 = arith.cmpf ogt, %1195, %1604 : vector<8x128xf32>
    %1606 = math.exp %1195 : vector<8x128xf32>
    %cst_68 = arith.constant 1.000000e+00 : f32
    %1607 = vector.broadcast %cst_68 : f32 to vector<8x128xf32>
    %1608 = arith.subf %1606, %1607 : vector<8x128xf32>
    %1609 = arith.select %1605, %1195, %1608 : vector<8x128xi1>, vector<8x128xf32>
    %cst_69 = arith.constant 0.000000e+00 : f32
    %1610 = vector.broadcast %cst_69 : f32 to vector<8x128xf32>
    %1611 = arith.cmpf ogt, %1241, %1610 : vector<8x128xf32>
    %1612 = math.exp %1241 : vector<8x128xf32>
    %cst_70 = arith.constant 1.000000e+00 : f32
    %1613 = vector.broadcast %cst_70 : f32 to vector<8x128xf32>
    %1614 = arith.subf %1612, %1613 : vector<8x128xf32>
    %1615 = arith.select %1611, %1241, %1614 : vector<8x128xi1>, vector<8x128xf32>
    %cst_71 = arith.constant 0.000000e+00 : f32
    %1616 = vector.broadcast %cst_71 : f32 to vector<8x128xf32>
    %1617 = arith.cmpf ogt, %1287, %1616 : vector<8x128xf32>
    %1618 = math.exp %1287 : vector<8x128xf32>
    %cst_72 = arith.constant 1.000000e+00 : f32
    %1619 = vector.broadcast %cst_72 : f32 to vector<8x128xf32>
    %1620 = arith.subf %1618, %1619 : vector<8x128xf32>
    %1621 = arith.select %1617, %1287, %1620 : vector<8x128xi1>, vector<8x128xf32>
    %cst_73 = arith.constant 0.000000e+00 : f32
    %1622 = vector.broadcast %cst_73 : f32 to vector<8x128xf32>
    %1623 = arith.cmpf ogt, %1333, %1622 : vector<8x128xf32>
    %1624 = math.exp %1333 : vector<8x128xf32>
    %cst_74 = arith.constant 1.000000e+00 : f32
    %1625 = vector.broadcast %cst_74 : f32 to vector<8x128xf32>
    %1626 = arith.subf %1624, %1625 : vector<8x128xf32>
    %1627 = arith.select %1623, %1333, %1626 : vector<8x128xi1>, vector<8x128xf32>
    %cst_75 = arith.constant 0.000000e+00 : f32
    %1628 = vector.broadcast %cst_75 : f32 to vector<8x128xf32>
    %1629 = arith.cmpf ogt, %1379, %1628 : vector<8x128xf32>
    %1630 = math.exp %1379 : vector<8x128xf32>
    %cst_76 = arith.constant 1.000000e+00 : f32
    %1631 = vector.broadcast %cst_76 : f32 to vector<8x128xf32>
    %1632 = arith.subf %1630, %1631 : vector<8x128xf32>
    %1633 = arith.select %1629, %1379, %1632 : vector<8x128xi1>, vector<8x128xf32>
    %cst_77 = arith.constant 0.000000e+00 : f32
    %1634 = vector.broadcast %cst_77 : f32 to vector<8x128xf32>
    %1635 = arith.cmpf ogt, %1425, %1634 : vector<8x128xf32>
    %1636 = math.exp %1425 : vector<8x128xf32>
    %cst_78 = arith.constant 1.000000e+00 : f32
    %1637 = vector.broadcast %cst_78 : f32 to vector<8x128xf32>
    %1638 = arith.subf %1636, %1637 : vector<8x128xf32>
    %1639 = arith.select %1635, %1425, %1638 : vector<8x128xi1>, vector<8x128xf32>
    %cst_79 = arith.constant 0.000000e+00 : f32
    %1640 = vector.broadcast %cst_79 : f32 to vector<8x128xf32>
    %1641 = arith.cmpf ogt, %1471, %1640 : vector<8x128xf32>
    %1642 = math.exp %1471 : vector<8x128xf32>
    %cst_80 = arith.constant 1.000000e+00 : f32
    %1643 = vector.broadcast %cst_80 : f32 to vector<8x128xf32>
    %1644 = arith.subf %1642, %1643 : vector<8x128xf32>
    %1645 = arith.select %1641, %1471, %1644 : vector<8x128xi1>, vector<8x128xf32>
    %c689 = arith.constant 689 : index
    %1646 = memref.load %arg1[%c689] : memref<712xf32, #tpu.memory_space<smem>>
    %c370 = arith.constant 370 : index
    %1647 = memref.load %arg1[%c370] : memref<712xf32, #tpu.memory_space<smem>>
    %1648 = vector.broadcast %1647 : f32 to vector<8x128xf32>
    %1649 = arith.mulf %1648, %1477 : vector<8x128xf32>
    %1650 = vector.broadcast %1646 : f32 to vector<8x128xf32>
    %1651 = arith.addf %1650, %1649 : vector<8x128xf32>
    %c371 = arith.constant 371 : index
    %1652 = memref.load %arg1[%c371] : memref<712xf32, #tpu.memory_space<smem>>
    %1653 = vector.broadcast %1652 : f32 to vector<8x128xf32>
    %1654 = arith.mulf %1653, %1483 : vector<8x128xf32>
    %c372 = arith.constant 372 : index
    %1655 = memref.load %arg1[%c372] : memref<712xf32, #tpu.memory_space<smem>>
    %1656 = vector.broadcast %1655 : f32 to vector<8x128xf32>
    %1657 = arith.mulf %1656, %1489 : vector<8x128xf32>
    %1658 = arith.addf %1651, %1657 : vector<8x128xf32>
    %c374 = arith.constant 374 : index
    %1659 = memref.load %arg1[%c374] : memref<712xf32, #tpu.memory_space<smem>>
    %1660 = vector.broadcast %1659 : f32 to vector<8x128xf32>
    %1661 = arith.mulf %1660, %1501 : vector<8x128xf32>
    %1662 = arith.addf %1658, %1661 : vector<8x128xf32>
    %c376 = arith.constant 376 : index
    %1663 = memref.load %arg1[%c376] : memref<712xf32, #tpu.memory_space<smem>>
    %1664 = vector.broadcast %1663 : f32 to vector<8x128xf32>
    %1665 = arith.mulf %1664, %1513 : vector<8x128xf32>
    %1666 = arith.addf %1662, %1665 : vector<8x128xf32>
    %c378 = arith.constant 378 : index
    %1667 = memref.load %arg1[%c378] : memref<712xf32, #tpu.memory_space<smem>>
    %1668 = vector.broadcast %1667 : f32 to vector<8x128xf32>
    %1669 = arith.mulf %1668, %1525 : vector<8x128xf32>
    %1670 = arith.addf %1666, %1669 : vector<8x128xf32>
    %c380 = arith.constant 380 : index
    %1671 = memref.load %arg1[%c380] : memref<712xf32, #tpu.memory_space<smem>>
    %1672 = vector.broadcast %1671 : f32 to vector<8x128xf32>
    %1673 = arith.mulf %1672, %1537 : vector<8x128xf32>
    %1674 = arith.addf %1670, %1673 : vector<8x128xf32>
    %c382 = arith.constant 382 : index
    %1675 = memref.load %arg1[%c382] : memref<712xf32, #tpu.memory_space<smem>>
    %1676 = vector.broadcast %1675 : f32 to vector<8x128xf32>
    %1677 = arith.mulf %1676, %1549 : vector<8x128xf32>
    %1678 = arith.addf %1674, %1677 : vector<8x128xf32>
    %c384 = arith.constant 384 : index
    %1679 = memref.load %arg1[%c384] : memref<712xf32, #tpu.memory_space<smem>>
    %1680 = vector.broadcast %1679 : f32 to vector<8x128xf32>
    %1681 = arith.mulf %1680, %1561 : vector<8x128xf32>
    %1682 = arith.addf %1678, %1681 : vector<8x128xf32>
    %c386 = arith.constant 386 : index
    %1683 = memref.load %arg1[%c386] : memref<712xf32, #tpu.memory_space<smem>>
    %1684 = vector.broadcast %1683 : f32 to vector<8x128xf32>
    %1685 = arith.mulf %1684, %1573 : vector<8x128xf32>
    %1686 = arith.addf %1682, %1685 : vector<8x128xf32>
    %c388 = arith.constant 388 : index
    %1687 = memref.load %arg1[%c388] : memref<712xf32, #tpu.memory_space<smem>>
    %1688 = vector.broadcast %1687 : f32 to vector<8x128xf32>
    %1689 = arith.mulf %1688, %1585 : vector<8x128xf32>
    %1690 = arith.addf %1686, %1689 : vector<8x128xf32>
    %c390 = arith.constant 390 : index
    %1691 = memref.load %arg1[%c390] : memref<712xf32, #tpu.memory_space<smem>>
    %1692 = vector.broadcast %1691 : f32 to vector<8x128xf32>
    %1693 = arith.mulf %1692, %1597 : vector<8x128xf32>
    %1694 = arith.addf %1690, %1693 : vector<8x128xf32>
    %c392 = arith.constant 392 : index
    %1695 = memref.load %arg1[%c392] : memref<712xf32, #tpu.memory_space<smem>>
    %1696 = vector.broadcast %1695 : f32 to vector<8x128xf32>
    %1697 = arith.mulf %1696, %1609 : vector<8x128xf32>
    %1698 = arith.addf %1694, %1697 : vector<8x128xf32>
    %c394 = arith.constant 394 : index
    %1699 = memref.load %arg1[%c394] : memref<712xf32, #tpu.memory_space<smem>>
    %1700 = vector.broadcast %1699 : f32 to vector<8x128xf32>
    %1701 = arith.mulf %1700, %1621 : vector<8x128xf32>
    %1702 = arith.addf %1698, %1701 : vector<8x128xf32>
    %c396 = arith.constant 396 : index
    %1703 = memref.load %arg1[%c396] : memref<712xf32, #tpu.memory_space<smem>>
    %1704 = vector.broadcast %1703 : f32 to vector<8x128xf32>
    %1705 = arith.mulf %1704, %1633 : vector<8x128xf32>
    %1706 = arith.addf %1702, %1705 : vector<8x128xf32>
    %c398 = arith.constant 398 : index
    %1707 = memref.load %arg1[%c398] : memref<712xf32, #tpu.memory_space<smem>>
    %1708 = vector.broadcast %1707 : f32 to vector<8x128xf32>
    %1709 = arith.mulf %1708, %1645 : vector<8x128xf32>
    %1710 = arith.addf %1706, %1709 : vector<8x128xf32>
    %c373 = arith.constant 373 : index
    %1711 = memref.load %arg1[%c373] : memref<712xf32, #tpu.memory_space<smem>>
    %1712 = vector.broadcast %1711 : f32 to vector<8x128xf32>
    %1713 = arith.mulf %1712, %1495 : vector<8x128xf32>
    %1714 = arith.addf %1654, %1713 : vector<8x128xf32>
    %c375 = arith.constant 375 : index
    %1715 = memref.load %arg1[%c375] : memref<712xf32, #tpu.memory_space<smem>>
    %1716 = vector.broadcast %1715 : f32 to vector<8x128xf32>
    %1717 = arith.mulf %1716, %1507 : vector<8x128xf32>
    %1718 = arith.addf %1714, %1717 : vector<8x128xf32>
    %c377 = arith.constant 377 : index
    %1719 = memref.load %arg1[%c377] : memref<712xf32, #tpu.memory_space<smem>>
    %1720 = vector.broadcast %1719 : f32 to vector<8x128xf32>
    %1721 = arith.mulf %1720, %1519 : vector<8x128xf32>
    %1722 = arith.addf %1718, %1721 : vector<8x128xf32>
    %c379 = arith.constant 379 : index
    %1723 = memref.load %arg1[%c379] : memref<712xf32, #tpu.memory_space<smem>>
    %1724 = vector.broadcast %1723 : f32 to vector<8x128xf32>
    %1725 = arith.mulf %1724, %1531 : vector<8x128xf32>
    %1726 = arith.addf %1722, %1725 : vector<8x128xf32>
    %c381 = arith.constant 381 : index
    %1727 = memref.load %arg1[%c381] : memref<712xf32, #tpu.memory_space<smem>>
    %1728 = vector.broadcast %1727 : f32 to vector<8x128xf32>
    %1729 = arith.mulf %1728, %1543 : vector<8x128xf32>
    %1730 = arith.addf %1726, %1729 : vector<8x128xf32>
    %c383 = arith.constant 383 : index
    %1731 = memref.load %arg1[%c383] : memref<712xf32, #tpu.memory_space<smem>>
    %1732 = vector.broadcast %1731 : f32 to vector<8x128xf32>
    %1733 = arith.mulf %1732, %1555 : vector<8x128xf32>
    %1734 = arith.addf %1730, %1733 : vector<8x128xf32>
    %c385 = arith.constant 385 : index
    %1735 = memref.load %arg1[%c385] : memref<712xf32, #tpu.memory_space<smem>>
    %1736 = vector.broadcast %1735 : f32 to vector<8x128xf32>
    %1737 = arith.mulf %1736, %1567 : vector<8x128xf32>
    %1738 = arith.addf %1734, %1737 : vector<8x128xf32>
    %c387 = arith.constant 387 : index
    %1739 = memref.load %arg1[%c387] : memref<712xf32, #tpu.memory_space<smem>>
    %1740 = vector.broadcast %1739 : f32 to vector<8x128xf32>
    %1741 = arith.mulf %1740, %1579 : vector<8x128xf32>
    %1742 = arith.addf %1738, %1741 : vector<8x128xf32>
    %c389 = arith.constant 389 : index
    %1743 = memref.load %arg1[%c389] : memref<712xf32, #tpu.memory_space<smem>>
    %1744 = vector.broadcast %1743 : f32 to vector<8x128xf32>
    %1745 = arith.mulf %1744, %1591 : vector<8x128xf32>
    %1746 = arith.addf %1742, %1745 : vector<8x128xf32>
    %c391 = arith.constant 391 : index
    %1747 = memref.load %arg1[%c391] : memref<712xf32, #tpu.memory_space<smem>>
    %1748 = vector.broadcast %1747 : f32 to vector<8x128xf32>
    %1749 = arith.mulf %1748, %1603 : vector<8x128xf32>
    %1750 = arith.addf %1746, %1749 : vector<8x128xf32>
    %c393 = arith.constant 393 : index
    %1751 = memref.load %arg1[%c393] : memref<712xf32, #tpu.memory_space<smem>>
    %1752 = vector.broadcast %1751 : f32 to vector<8x128xf32>
    %1753 = arith.mulf %1752, %1615 : vector<8x128xf32>
    %1754 = arith.addf %1750, %1753 : vector<8x128xf32>
    %c395 = arith.constant 395 : index
    %1755 = memref.load %arg1[%c395] : memref<712xf32, #tpu.memory_space<smem>>
    %1756 = vector.broadcast %1755 : f32 to vector<8x128xf32>
    %1757 = arith.mulf %1756, %1627 : vector<8x128xf32>
    %1758 = arith.addf %1754, %1757 : vector<8x128xf32>
    %c397 = arith.constant 397 : index
    %1759 = memref.load %arg1[%c397] : memref<712xf32, #tpu.memory_space<smem>>
    %1760 = vector.broadcast %1759 : f32 to vector<8x128xf32>
    %1761 = arith.mulf %1760, %1639 : vector<8x128xf32>
    %1762 = arith.addf %1758, %1761 : vector<8x128xf32>
    %1763 = arith.addf %1710, %1762 : vector<8x128xf32>
    %c690 = arith.constant 690 : index
    %1764 = memref.load %arg1[%c690] : memref<712xf32, #tpu.memory_space<smem>>
    %c399 = arith.constant 399 : index
    %1765 = memref.load %arg1[%c399] : memref<712xf32, #tpu.memory_space<smem>>
    %1766 = vector.broadcast %1765 : f32 to vector<8x128xf32>
    %1767 = arith.mulf %1766, %1477 : vector<8x128xf32>
    %1768 = vector.broadcast %1764 : f32 to vector<8x128xf32>
    %1769 = arith.addf %1768, %1767 : vector<8x128xf32>
    %c400 = arith.constant 400 : index
    %1770 = memref.load %arg1[%c400] : memref<712xf32, #tpu.memory_space<smem>>
    %1771 = vector.broadcast %1770 : f32 to vector<8x128xf32>
    %1772 = arith.mulf %1771, %1483 : vector<8x128xf32>
    %c401 = arith.constant 401 : index
    %1773 = memref.load %arg1[%c401] : memref<712xf32, #tpu.memory_space<smem>>
    %1774 = vector.broadcast %1773 : f32 to vector<8x128xf32>
    %1775 = arith.mulf %1774, %1489 : vector<8x128xf32>
    %1776 = arith.addf %1769, %1775 : vector<8x128xf32>
    %c403 = arith.constant 403 : index
    %1777 = memref.load %arg1[%c403] : memref<712xf32, #tpu.memory_space<smem>>
    %1778 = vector.broadcast %1777 : f32 to vector<8x128xf32>
    %1779 = arith.mulf %1778, %1501 : vector<8x128xf32>
    %1780 = arith.addf %1776, %1779 : vector<8x128xf32>
    %c405 = arith.constant 405 : index
    %1781 = memref.load %arg1[%c405] : memref<712xf32, #tpu.memory_space<smem>>
    %1782 = vector.broadcast %1781 : f32 to vector<8x128xf32>
    %1783 = arith.mulf %1782, %1513 : vector<8x128xf32>
    %1784 = arith.addf %1780, %1783 : vector<8x128xf32>
    %c407 = arith.constant 407 : index
    %1785 = memref.load %arg1[%c407] : memref<712xf32, #tpu.memory_space<smem>>
    %1786 = vector.broadcast %1785 : f32 to vector<8x128xf32>
    %1787 = arith.mulf %1786, %1525 : vector<8x128xf32>
    %1788 = arith.addf %1784, %1787 : vector<8x128xf32>
    %c409 = arith.constant 409 : index
    %1789 = memref.load %arg1[%c409] : memref<712xf32, #tpu.memory_space<smem>>
    %1790 = vector.broadcast %1789 : f32 to vector<8x128xf32>
    %1791 = arith.mulf %1790, %1537 : vector<8x128xf32>
    %1792 = arith.addf %1788, %1791 : vector<8x128xf32>
    %c411 = arith.constant 411 : index
    %1793 = memref.load %arg1[%c411] : memref<712xf32, #tpu.memory_space<smem>>
    %1794 = vector.broadcast %1793 : f32 to vector<8x128xf32>
    %1795 = arith.mulf %1794, %1549 : vector<8x128xf32>
    %1796 = arith.addf %1792, %1795 : vector<8x128xf32>
    %c413 = arith.constant 413 : index
    %1797 = memref.load %arg1[%c413] : memref<712xf32, #tpu.memory_space<smem>>
    %1798 = vector.broadcast %1797 : f32 to vector<8x128xf32>
    %1799 = arith.mulf %1798, %1561 : vector<8x128xf32>
    %1800 = arith.addf %1796, %1799 : vector<8x128xf32>
    %c415 = arith.constant 415 : index
    %1801 = memref.load %arg1[%c415] : memref<712xf32, #tpu.memory_space<smem>>
    %1802 = vector.broadcast %1801 : f32 to vector<8x128xf32>
    %1803 = arith.mulf %1802, %1573 : vector<8x128xf32>
    %1804 = arith.addf %1800, %1803 : vector<8x128xf32>
    %c417 = arith.constant 417 : index
    %1805 = memref.load %arg1[%c417] : memref<712xf32, #tpu.memory_space<smem>>
    %1806 = vector.broadcast %1805 : f32 to vector<8x128xf32>
    %1807 = arith.mulf %1806, %1585 : vector<8x128xf32>
    %1808 = arith.addf %1804, %1807 : vector<8x128xf32>
    %c419 = arith.constant 419 : index
    %1809 = memref.load %arg1[%c419] : memref<712xf32, #tpu.memory_space<smem>>
    %1810 = vector.broadcast %1809 : f32 to vector<8x128xf32>
    %1811 = arith.mulf %1810, %1597 : vector<8x128xf32>
    %1812 = arith.addf %1808, %1811 : vector<8x128xf32>
    %c421 = arith.constant 421 : index
    %1813 = memref.load %arg1[%c421] : memref<712xf32, #tpu.memory_space<smem>>
    %1814 = vector.broadcast %1813 : f32 to vector<8x128xf32>
    %1815 = arith.mulf %1814, %1609 : vector<8x128xf32>
    %1816 = arith.addf %1812, %1815 : vector<8x128xf32>
    %c423 = arith.constant 423 : index
    %1817 = memref.load %arg1[%c423] : memref<712xf32, #tpu.memory_space<smem>>
    %1818 = vector.broadcast %1817 : f32 to vector<8x128xf32>
    %1819 = arith.mulf %1818, %1621 : vector<8x128xf32>
    %1820 = arith.addf %1816, %1819 : vector<8x128xf32>
    %c425 = arith.constant 425 : index
    %1821 = memref.load %arg1[%c425] : memref<712xf32, #tpu.memory_space<smem>>
    %1822 = vector.broadcast %1821 : f32 to vector<8x128xf32>
    %1823 = arith.mulf %1822, %1633 : vector<8x128xf32>
    %1824 = arith.addf %1820, %1823 : vector<8x128xf32>
    %c427 = arith.constant 427 : index
    %1825 = memref.load %arg1[%c427] : memref<712xf32, #tpu.memory_space<smem>>
    %1826 = vector.broadcast %1825 : f32 to vector<8x128xf32>
    %1827 = arith.mulf %1826, %1645 : vector<8x128xf32>
    %1828 = arith.addf %1824, %1827 : vector<8x128xf32>
    %c402 = arith.constant 402 : index
    %1829 = memref.load %arg1[%c402] : memref<712xf32, #tpu.memory_space<smem>>
    %1830 = vector.broadcast %1829 : f32 to vector<8x128xf32>
    %1831 = arith.mulf %1830, %1495 : vector<8x128xf32>
    %1832 = arith.addf %1772, %1831 : vector<8x128xf32>
    %c404 = arith.constant 404 : index
    %1833 = memref.load %arg1[%c404] : memref<712xf32, #tpu.memory_space<smem>>
    %1834 = vector.broadcast %1833 : f32 to vector<8x128xf32>
    %1835 = arith.mulf %1834, %1507 : vector<8x128xf32>
    %1836 = arith.addf %1832, %1835 : vector<8x128xf32>
    %c406 = arith.constant 406 : index
    %1837 = memref.load %arg1[%c406] : memref<712xf32, #tpu.memory_space<smem>>
    %1838 = vector.broadcast %1837 : f32 to vector<8x128xf32>
    %1839 = arith.mulf %1838, %1519 : vector<8x128xf32>
    %1840 = arith.addf %1836, %1839 : vector<8x128xf32>
    %c408 = arith.constant 408 : index
    %1841 = memref.load %arg1[%c408] : memref<712xf32, #tpu.memory_space<smem>>
    %1842 = vector.broadcast %1841 : f32 to vector<8x128xf32>
    %1843 = arith.mulf %1842, %1531 : vector<8x128xf32>
    %1844 = arith.addf %1840, %1843 : vector<8x128xf32>
    %c410 = arith.constant 410 : index
    %1845 = memref.load %arg1[%c410] : memref<712xf32, #tpu.memory_space<smem>>
    %1846 = vector.broadcast %1845 : f32 to vector<8x128xf32>
    %1847 = arith.mulf %1846, %1543 : vector<8x128xf32>
    %1848 = arith.addf %1844, %1847 : vector<8x128xf32>
    %c412 = arith.constant 412 : index
    %1849 = memref.load %arg1[%c412] : memref<712xf32, #tpu.memory_space<smem>>
    %1850 = vector.broadcast %1849 : f32 to vector<8x128xf32>
    %1851 = arith.mulf %1850, %1555 : vector<8x128xf32>
    %1852 = arith.addf %1848, %1851 : vector<8x128xf32>
    %c414 = arith.constant 414 : index
    %1853 = memref.load %arg1[%c414] : memref<712xf32, #tpu.memory_space<smem>>
    %1854 = vector.broadcast %1853 : f32 to vector<8x128xf32>
    %1855 = arith.mulf %1854, %1567 : vector<8x128xf32>
    %1856 = arith.addf %1852, %1855 : vector<8x128xf32>
    %c416 = arith.constant 416 : index
    %1857 = memref.load %arg1[%c416] : memref<712xf32, #tpu.memory_space<smem>>
    %1858 = vector.broadcast %1857 : f32 to vector<8x128xf32>
    %1859 = arith.mulf %1858, %1579 : vector<8x128xf32>
    %1860 = arith.addf %1856, %1859 : vector<8x128xf32>
    %c418 = arith.constant 418 : index
    %1861 = memref.load %arg1[%c418] : memref<712xf32, #tpu.memory_space<smem>>
    %1862 = vector.broadcast %1861 : f32 to vector<8x128xf32>
    %1863 = arith.mulf %1862, %1591 : vector<8x128xf32>
    %1864 = arith.addf %1860, %1863 : vector<8x128xf32>
    %c420 = arith.constant 420 : index
    %1865 = memref.load %arg1[%c420] : memref<712xf32, #tpu.memory_space<smem>>
    %1866 = vector.broadcast %1865 : f32 to vector<8x128xf32>
    %1867 = arith.mulf %1866, %1603 : vector<8x128xf32>
    %1868 = arith.addf %1864, %1867 : vector<8x128xf32>
    %c422 = arith.constant 422 : index
    %1869 = memref.load %arg1[%c422] : memref<712xf32, #tpu.memory_space<smem>>
    %1870 = vector.broadcast %1869 : f32 to vector<8x128xf32>
    %1871 = arith.mulf %1870, %1615 : vector<8x128xf32>
    %1872 = arith.addf %1868, %1871 : vector<8x128xf32>
    %c424 = arith.constant 424 : index
    %1873 = memref.load %arg1[%c424] : memref<712xf32, #tpu.memory_space<smem>>
    %1874 = vector.broadcast %1873 : f32 to vector<8x128xf32>
    %1875 = arith.mulf %1874, %1627 : vector<8x128xf32>
    %1876 = arith.addf %1872, %1875 : vector<8x128xf32>
    %c426 = arith.constant 426 : index
    %1877 = memref.load %arg1[%c426] : memref<712xf32, #tpu.memory_space<smem>>
    %1878 = vector.broadcast %1877 : f32 to vector<8x128xf32>
    %1879 = arith.mulf %1878, %1639 : vector<8x128xf32>
    %1880 = arith.addf %1876, %1879 : vector<8x128xf32>
    %1881 = arith.addf %1828, %1880 : vector<8x128xf32>
    %c691 = arith.constant 691 : index
    %1882 = memref.load %arg1[%c691] : memref<712xf32, #tpu.memory_space<smem>>
    %c428 = arith.constant 428 : index
    %1883 = memref.load %arg1[%c428] : memref<712xf32, #tpu.memory_space<smem>>
    %1884 = vector.broadcast %1883 : f32 to vector<8x128xf32>
    %1885 = arith.mulf %1884, %1477 : vector<8x128xf32>
    %1886 = vector.broadcast %1882 : f32 to vector<8x128xf32>
    %1887 = arith.addf %1886, %1885 : vector<8x128xf32>
    %c429 = arith.constant 429 : index
    %1888 = memref.load %arg1[%c429] : memref<712xf32, #tpu.memory_space<smem>>
    %1889 = vector.broadcast %1888 : f32 to vector<8x128xf32>
    %1890 = arith.mulf %1889, %1483 : vector<8x128xf32>
    %c430 = arith.constant 430 : index
    %1891 = memref.load %arg1[%c430] : memref<712xf32, #tpu.memory_space<smem>>
    %1892 = vector.broadcast %1891 : f32 to vector<8x128xf32>
    %1893 = arith.mulf %1892, %1489 : vector<8x128xf32>
    %1894 = arith.addf %1887, %1893 : vector<8x128xf32>
    %c432 = arith.constant 432 : index
    %1895 = memref.load %arg1[%c432] : memref<712xf32, #tpu.memory_space<smem>>
    %1896 = vector.broadcast %1895 : f32 to vector<8x128xf32>
    %1897 = arith.mulf %1896, %1501 : vector<8x128xf32>
    %1898 = arith.addf %1894, %1897 : vector<8x128xf32>
    %c434 = arith.constant 434 : index
    %1899 = memref.load %arg1[%c434] : memref<712xf32, #tpu.memory_space<smem>>
    %1900 = vector.broadcast %1899 : f32 to vector<8x128xf32>
    %1901 = arith.mulf %1900, %1513 : vector<8x128xf32>
    %1902 = arith.addf %1898, %1901 : vector<8x128xf32>
    %c436 = arith.constant 436 : index
    %1903 = memref.load %arg1[%c436] : memref<712xf32, #tpu.memory_space<smem>>
    %1904 = vector.broadcast %1903 : f32 to vector<8x128xf32>
    %1905 = arith.mulf %1904, %1525 : vector<8x128xf32>
    %1906 = arith.addf %1902, %1905 : vector<8x128xf32>
    %c438 = arith.constant 438 : index
    %1907 = memref.load %arg1[%c438] : memref<712xf32, #tpu.memory_space<smem>>
    %1908 = vector.broadcast %1907 : f32 to vector<8x128xf32>
    %1909 = arith.mulf %1908, %1537 : vector<8x128xf32>
    %1910 = arith.addf %1906, %1909 : vector<8x128xf32>
    %c440 = arith.constant 440 : index
    %1911 = memref.load %arg1[%c440] : memref<712xf32, #tpu.memory_space<smem>>
    %1912 = vector.broadcast %1911 : f32 to vector<8x128xf32>
    %1913 = arith.mulf %1912, %1549 : vector<8x128xf32>
    %1914 = arith.addf %1910, %1913 : vector<8x128xf32>
    %c442 = arith.constant 442 : index
    %1915 = memref.load %arg1[%c442] : memref<712xf32, #tpu.memory_space<smem>>
    %1916 = vector.broadcast %1915 : f32 to vector<8x128xf32>
    %1917 = arith.mulf %1916, %1561 : vector<8x128xf32>
    %1918 = arith.addf %1914, %1917 : vector<8x128xf32>
    %c444 = arith.constant 444 : index
    %1919 = memref.load %arg1[%c444] : memref<712xf32, #tpu.memory_space<smem>>
    %1920 = vector.broadcast %1919 : f32 to vector<8x128xf32>
    %1921 = arith.mulf %1920, %1573 : vector<8x128xf32>
    %1922 = arith.addf %1918, %1921 : vector<8x128xf32>
    %c446 = arith.constant 446 : index
    %1923 = memref.load %arg1[%c446] : memref<712xf32, #tpu.memory_space<smem>>
    %1924 = vector.broadcast %1923 : f32 to vector<8x128xf32>
    %1925 = arith.mulf %1924, %1585 : vector<8x128xf32>
    %1926 = arith.addf %1922, %1925 : vector<8x128xf32>
    %c448 = arith.constant 448 : index
    %1927 = memref.load %arg1[%c448] : memref<712xf32, #tpu.memory_space<smem>>
    %1928 = vector.broadcast %1927 : f32 to vector<8x128xf32>
    %1929 = arith.mulf %1928, %1597 : vector<8x128xf32>
    %1930 = arith.addf %1926, %1929 : vector<8x128xf32>
    %c450 = arith.constant 450 : index
    %1931 = memref.load %arg1[%c450] : memref<712xf32, #tpu.memory_space<smem>>
    %1932 = vector.broadcast %1931 : f32 to vector<8x128xf32>
    %1933 = arith.mulf %1932, %1609 : vector<8x128xf32>
    %1934 = arith.addf %1930, %1933 : vector<8x128xf32>
    %c452 = arith.constant 452 : index
    %1935 = memref.load %arg1[%c452] : memref<712xf32, #tpu.memory_space<smem>>
    %1936 = vector.broadcast %1935 : f32 to vector<8x128xf32>
    %1937 = arith.mulf %1936, %1621 : vector<8x128xf32>
    %1938 = arith.addf %1934, %1937 : vector<8x128xf32>
    %c454 = arith.constant 454 : index
    %1939 = memref.load %arg1[%c454] : memref<712xf32, #tpu.memory_space<smem>>
    %1940 = vector.broadcast %1939 : f32 to vector<8x128xf32>
    %1941 = arith.mulf %1940, %1633 : vector<8x128xf32>
    %1942 = arith.addf %1938, %1941 : vector<8x128xf32>
    %c456 = arith.constant 456 : index
    %1943 = memref.load %arg1[%c456] : memref<712xf32, #tpu.memory_space<smem>>
    %1944 = vector.broadcast %1943 : f32 to vector<8x128xf32>
    %1945 = arith.mulf %1944, %1645 : vector<8x128xf32>
    %1946 = arith.addf %1942, %1945 : vector<8x128xf32>
    %c431 = arith.constant 431 : index
    %1947 = memref.load %arg1[%c431] : memref<712xf32, #tpu.memory_space<smem>>
    %1948 = vector.broadcast %1947 : f32 to vector<8x128xf32>
    %1949 = arith.mulf %1948, %1495 : vector<8x128xf32>
    %1950 = arith.addf %1890, %1949 : vector<8x128xf32>
    %c433 = arith.constant 433 : index
    %1951 = memref.load %arg1[%c433] : memref<712xf32, #tpu.memory_space<smem>>
    %1952 = vector.broadcast %1951 : f32 to vector<8x128xf32>
    %1953 = arith.mulf %1952, %1507 : vector<8x128xf32>
    %1954 = arith.addf %1950, %1953 : vector<8x128xf32>
    %c435 = arith.constant 435 : index
    %1955 = memref.load %arg1[%c435] : memref<712xf32, #tpu.memory_space<smem>>
    %1956 = vector.broadcast %1955 : f32 to vector<8x128xf32>
    %1957 = arith.mulf %1956, %1519 : vector<8x128xf32>
    %1958 = arith.addf %1954, %1957 : vector<8x128xf32>
    %c437 = arith.constant 437 : index
    %1959 = memref.load %arg1[%c437] : memref<712xf32, #tpu.memory_space<smem>>
    %1960 = vector.broadcast %1959 : f32 to vector<8x128xf32>
    %1961 = arith.mulf %1960, %1531 : vector<8x128xf32>
    %1962 = arith.addf %1958, %1961 : vector<8x128xf32>
    %c439 = arith.constant 439 : index
    %1963 = memref.load %arg1[%c439] : memref<712xf32, #tpu.memory_space<smem>>
    %1964 = vector.broadcast %1963 : f32 to vector<8x128xf32>
    %1965 = arith.mulf %1964, %1543 : vector<8x128xf32>
    %1966 = arith.addf %1962, %1965 : vector<8x128xf32>
    %c441 = arith.constant 441 : index
    %1967 = memref.load %arg1[%c441] : memref<712xf32, #tpu.memory_space<smem>>
    %1968 = vector.broadcast %1967 : f32 to vector<8x128xf32>
    %1969 = arith.mulf %1968, %1555 : vector<8x128xf32>
    %1970 = arith.addf %1966, %1969 : vector<8x128xf32>
    %c443 = arith.constant 443 : index
    %1971 = memref.load %arg1[%c443] : memref<712xf32, #tpu.memory_space<smem>>
    %1972 = vector.broadcast %1971 : f32 to vector<8x128xf32>
    %1973 = arith.mulf %1972, %1567 : vector<8x128xf32>
    %1974 = arith.addf %1970, %1973 : vector<8x128xf32>
    %c445 = arith.constant 445 : index
    %1975 = memref.load %arg1[%c445] : memref<712xf32, #tpu.memory_space<smem>>
    %1976 = vector.broadcast %1975 : f32 to vector<8x128xf32>
    %1977 = arith.mulf %1976, %1579 : vector<8x128xf32>
    %1978 = arith.addf %1974, %1977 : vector<8x128xf32>
    %c447 = arith.constant 447 : index
    %1979 = memref.load %arg1[%c447] : memref<712xf32, #tpu.memory_space<smem>>
    %1980 = vector.broadcast %1979 : f32 to vector<8x128xf32>
    %1981 = arith.mulf %1980, %1591 : vector<8x128xf32>
    %1982 = arith.addf %1978, %1981 : vector<8x128xf32>
    %c449 = arith.constant 449 : index
    %1983 = memref.load %arg1[%c449] : memref<712xf32, #tpu.memory_space<smem>>
    %1984 = vector.broadcast %1983 : f32 to vector<8x128xf32>
    %1985 = arith.mulf %1984, %1603 : vector<8x128xf32>
    %1986 = arith.addf %1982, %1985 : vector<8x128xf32>
    %c451 = arith.constant 451 : index
    %1987 = memref.load %arg1[%c451] : memref<712xf32, #tpu.memory_space<smem>>
    %1988 = vector.broadcast %1987 : f32 to vector<8x128xf32>
    %1989 = arith.mulf %1988, %1615 : vector<8x128xf32>
    %1990 = arith.addf %1986, %1989 : vector<8x128xf32>
    %c453 = arith.constant 453 : index
    %1991 = memref.load %arg1[%c453] : memref<712xf32, #tpu.memory_space<smem>>
    %1992 = vector.broadcast %1991 : f32 to vector<8x128xf32>
    %1993 = arith.mulf %1992, %1627 : vector<8x128xf32>
    %1994 = arith.addf %1990, %1993 : vector<8x128xf32>
    %c455 = arith.constant 455 : index
    %1995 = memref.load %arg1[%c455] : memref<712xf32, #tpu.memory_space<smem>>
    %1996 = vector.broadcast %1995 : f32 to vector<8x128xf32>
    %1997 = arith.mulf %1996, %1639 : vector<8x128xf32>
    %1998 = arith.addf %1994, %1997 : vector<8x128xf32>
    %1999 = arith.addf %1946, %1998 : vector<8x128xf32>
    %c692 = arith.constant 692 : index
    %2000 = memref.load %arg1[%c692] : memref<712xf32, #tpu.memory_space<smem>>
    %c457 = arith.constant 457 : index
    %2001 = memref.load %arg1[%c457] : memref<712xf32, #tpu.memory_space<smem>>
    %2002 = vector.broadcast %2001 : f32 to vector<8x128xf32>
    %2003 = arith.mulf %2002, %1477 : vector<8x128xf32>
    %2004 = vector.broadcast %2000 : f32 to vector<8x128xf32>
    %2005 = arith.addf %2004, %2003 : vector<8x128xf32>
    %c458 = arith.constant 458 : index
    %2006 = memref.load %arg1[%c458] : memref<712xf32, #tpu.memory_space<smem>>
    %2007 = vector.broadcast %2006 : f32 to vector<8x128xf32>
    %2008 = arith.mulf %2007, %1483 : vector<8x128xf32>
    %c459 = arith.constant 459 : index
    %2009 = memref.load %arg1[%c459] : memref<712xf32, #tpu.memory_space<smem>>
    %2010 = vector.broadcast %2009 : f32 to vector<8x128xf32>
    %2011 = arith.mulf %2010, %1489 : vector<8x128xf32>
    %2012 = arith.addf %2005, %2011 : vector<8x128xf32>
    %c461 = arith.constant 461 : index
    %2013 = memref.load %arg1[%c461] : memref<712xf32, #tpu.memory_space<smem>>
    %2014 = vector.broadcast %2013 : f32 to vector<8x128xf32>
    %2015 = arith.mulf %2014, %1501 : vector<8x128xf32>
    %2016 = arith.addf %2012, %2015 : vector<8x128xf32>
    %c463 = arith.constant 463 : index
    %2017 = memref.load %arg1[%c463] : memref<712xf32, #tpu.memory_space<smem>>
    %2018 = vector.broadcast %2017 : f32 to vector<8x128xf32>
    %2019 = arith.mulf %2018, %1513 : vector<8x128xf32>
    %2020 = arith.addf %2016, %2019 : vector<8x128xf32>
    %c465 = arith.constant 465 : index
    %2021 = memref.load %arg1[%c465] : memref<712xf32, #tpu.memory_space<smem>>
    %2022 = vector.broadcast %2021 : f32 to vector<8x128xf32>
    %2023 = arith.mulf %2022, %1525 : vector<8x128xf32>
    %2024 = arith.addf %2020, %2023 : vector<8x128xf32>
    %c467 = arith.constant 467 : index
    %2025 = memref.load %arg1[%c467] : memref<712xf32, #tpu.memory_space<smem>>
    %2026 = vector.broadcast %2025 : f32 to vector<8x128xf32>
    %2027 = arith.mulf %2026, %1537 : vector<8x128xf32>
    %2028 = arith.addf %2024, %2027 : vector<8x128xf32>
    %c469 = arith.constant 469 : index
    %2029 = memref.load %arg1[%c469] : memref<712xf32, #tpu.memory_space<smem>>
    %2030 = vector.broadcast %2029 : f32 to vector<8x128xf32>
    %2031 = arith.mulf %2030, %1549 : vector<8x128xf32>
    %2032 = arith.addf %2028, %2031 : vector<8x128xf32>
    %c471 = arith.constant 471 : index
    %2033 = memref.load %arg1[%c471] : memref<712xf32, #tpu.memory_space<smem>>
    %2034 = vector.broadcast %2033 : f32 to vector<8x128xf32>
    %2035 = arith.mulf %2034, %1561 : vector<8x128xf32>
    %2036 = arith.addf %2032, %2035 : vector<8x128xf32>
    %c473 = arith.constant 473 : index
    %2037 = memref.load %arg1[%c473] : memref<712xf32, #tpu.memory_space<smem>>
    %2038 = vector.broadcast %2037 : f32 to vector<8x128xf32>
    %2039 = arith.mulf %2038, %1573 : vector<8x128xf32>
    %2040 = arith.addf %2036, %2039 : vector<8x128xf32>
    %c475 = arith.constant 475 : index
    %2041 = memref.load %arg1[%c475] : memref<712xf32, #tpu.memory_space<smem>>
    %2042 = vector.broadcast %2041 : f32 to vector<8x128xf32>
    %2043 = arith.mulf %2042, %1585 : vector<8x128xf32>
    %2044 = arith.addf %2040, %2043 : vector<8x128xf32>
    %c477 = arith.constant 477 : index
    %2045 = memref.load %arg1[%c477] : memref<712xf32, #tpu.memory_space<smem>>
    %2046 = vector.broadcast %2045 : f32 to vector<8x128xf32>
    %2047 = arith.mulf %2046, %1597 : vector<8x128xf32>
    %2048 = arith.addf %2044, %2047 : vector<8x128xf32>
    %c479 = arith.constant 479 : index
    %2049 = memref.load %arg1[%c479] : memref<712xf32, #tpu.memory_space<smem>>
    %2050 = vector.broadcast %2049 : f32 to vector<8x128xf32>
    %2051 = arith.mulf %2050, %1609 : vector<8x128xf32>
    %2052 = arith.addf %2048, %2051 : vector<8x128xf32>
    %c481 = arith.constant 481 : index
    %2053 = memref.load %arg1[%c481] : memref<712xf32, #tpu.memory_space<smem>>
    %2054 = vector.broadcast %2053 : f32 to vector<8x128xf32>
    %2055 = arith.mulf %2054, %1621 : vector<8x128xf32>
    %2056 = arith.addf %2052, %2055 : vector<8x128xf32>
    %c483 = arith.constant 483 : index
    %2057 = memref.load %arg1[%c483] : memref<712xf32, #tpu.memory_space<smem>>
    %2058 = vector.broadcast %2057 : f32 to vector<8x128xf32>
    %2059 = arith.mulf %2058, %1633 : vector<8x128xf32>
    %2060 = arith.addf %2056, %2059 : vector<8x128xf32>
    %c485 = arith.constant 485 : index
    %2061 = memref.load %arg1[%c485] : memref<712xf32, #tpu.memory_space<smem>>
    %2062 = vector.broadcast %2061 : f32 to vector<8x128xf32>
    %2063 = arith.mulf %2062, %1645 : vector<8x128xf32>
    %2064 = arith.addf %2060, %2063 : vector<8x128xf32>
    %c460 = arith.constant 460 : index
    %2065 = memref.load %arg1[%c460] : memref<712xf32, #tpu.memory_space<smem>>
    %2066 = vector.broadcast %2065 : f32 to vector<8x128xf32>
    %2067 = arith.mulf %2066, %1495 : vector<8x128xf32>
    %2068 = arith.addf %2008, %2067 : vector<8x128xf32>
    %c462 = arith.constant 462 : index
    %2069 = memref.load %arg1[%c462] : memref<712xf32, #tpu.memory_space<smem>>
    %2070 = vector.broadcast %2069 : f32 to vector<8x128xf32>
    %2071 = arith.mulf %2070, %1507 : vector<8x128xf32>
    %2072 = arith.addf %2068, %2071 : vector<8x128xf32>
    %c464 = arith.constant 464 : index
    %2073 = memref.load %arg1[%c464] : memref<712xf32, #tpu.memory_space<smem>>
    %2074 = vector.broadcast %2073 : f32 to vector<8x128xf32>
    %2075 = arith.mulf %2074, %1519 : vector<8x128xf32>
    %2076 = arith.addf %2072, %2075 : vector<8x128xf32>
    %c466 = arith.constant 466 : index
    %2077 = memref.load %arg1[%c466] : memref<712xf32, #tpu.memory_space<smem>>
    %2078 = vector.broadcast %2077 : f32 to vector<8x128xf32>
    %2079 = arith.mulf %2078, %1531 : vector<8x128xf32>
    %2080 = arith.addf %2076, %2079 : vector<8x128xf32>
    %c468 = arith.constant 468 : index
    %2081 = memref.load %arg1[%c468] : memref<712xf32, #tpu.memory_space<smem>>
    %2082 = vector.broadcast %2081 : f32 to vector<8x128xf32>
    %2083 = arith.mulf %2082, %1543 : vector<8x128xf32>
    %2084 = arith.addf %2080, %2083 : vector<8x128xf32>
    %c470 = arith.constant 470 : index
    %2085 = memref.load %arg1[%c470] : memref<712xf32, #tpu.memory_space<smem>>
    %2086 = vector.broadcast %2085 : f32 to vector<8x128xf32>
    %2087 = arith.mulf %2086, %1555 : vector<8x128xf32>
    %2088 = arith.addf %2084, %2087 : vector<8x128xf32>
    %c472 = arith.constant 472 : index
    %2089 = memref.load %arg1[%c472] : memref<712xf32, #tpu.memory_space<smem>>
    %2090 = vector.broadcast %2089 : f32 to vector<8x128xf32>
    %2091 = arith.mulf %2090, %1567 : vector<8x128xf32>
    %2092 = arith.addf %2088, %2091 : vector<8x128xf32>
    %c474 = arith.constant 474 : index
    %2093 = memref.load %arg1[%c474] : memref<712xf32, #tpu.memory_space<smem>>
    %2094 = vector.broadcast %2093 : f32 to vector<8x128xf32>
    %2095 = arith.mulf %2094, %1579 : vector<8x128xf32>
    %2096 = arith.addf %2092, %2095 : vector<8x128xf32>
    %c476 = arith.constant 476 : index
    %2097 = memref.load %arg1[%c476] : memref<712xf32, #tpu.memory_space<smem>>
    %2098 = vector.broadcast %2097 : f32 to vector<8x128xf32>
    %2099 = arith.mulf %2098, %1591 : vector<8x128xf32>
    %2100 = arith.addf %2096, %2099 : vector<8x128xf32>
    %c478 = arith.constant 478 : index
    %2101 = memref.load %arg1[%c478] : memref<712xf32, #tpu.memory_space<smem>>
    %2102 = vector.broadcast %2101 : f32 to vector<8x128xf32>
    %2103 = arith.mulf %2102, %1603 : vector<8x128xf32>
    %2104 = arith.addf %2100, %2103 : vector<8x128xf32>
    %c480 = arith.constant 480 : index
    %2105 = memref.load %arg1[%c480] : memref<712xf32, #tpu.memory_space<smem>>
    %2106 = vector.broadcast %2105 : f32 to vector<8x128xf32>
    %2107 = arith.mulf %2106, %1615 : vector<8x128xf32>
    %2108 = arith.addf %2104, %2107 : vector<8x128xf32>
    %c482 = arith.constant 482 : index
    %2109 = memref.load %arg1[%c482] : memref<712xf32, #tpu.memory_space<smem>>
    %2110 = vector.broadcast %2109 : f32 to vector<8x128xf32>
    %2111 = arith.mulf %2110, %1627 : vector<8x128xf32>
    %2112 = arith.addf %2108, %2111 : vector<8x128xf32>
    %c484 = arith.constant 484 : index
    %2113 = memref.load %arg1[%c484] : memref<712xf32, #tpu.memory_space<smem>>
    %2114 = vector.broadcast %2113 : f32 to vector<8x128xf32>
    %2115 = arith.mulf %2114, %1639 : vector<8x128xf32>
    %2116 = arith.addf %2112, %2115 : vector<8x128xf32>
    %2117 = arith.addf %2064, %2116 : vector<8x128xf32>
    %c693 = arith.constant 693 : index
    %2118 = memref.load %arg1[%c693] : memref<712xf32, #tpu.memory_space<smem>>
    %c486 = arith.constant 486 : index
    %2119 = memref.load %arg1[%c486] : memref<712xf32, #tpu.memory_space<smem>>
    %2120 = vector.broadcast %2119 : f32 to vector<8x128xf32>
    %2121 = arith.mulf %2120, %1477 : vector<8x128xf32>
    %2122 = vector.broadcast %2118 : f32 to vector<8x128xf32>
    %2123 = arith.addf %2122, %2121 : vector<8x128xf32>
    %c487 = arith.constant 487 : index
    %2124 = memref.load %arg1[%c487] : memref<712xf32, #tpu.memory_space<smem>>
    %2125 = vector.broadcast %2124 : f32 to vector<8x128xf32>
    %2126 = arith.mulf %2125, %1483 : vector<8x128xf32>
    %c488 = arith.constant 488 : index
    %2127 = memref.load %arg1[%c488] : memref<712xf32, #tpu.memory_space<smem>>
    %2128 = vector.broadcast %2127 : f32 to vector<8x128xf32>
    %2129 = arith.mulf %2128, %1489 : vector<8x128xf32>
    %2130 = arith.addf %2123, %2129 : vector<8x128xf32>
    %c490 = arith.constant 490 : index
    %2131 = memref.load %arg1[%c490] : memref<712xf32, #tpu.memory_space<smem>>
    %2132 = vector.broadcast %2131 : f32 to vector<8x128xf32>
    %2133 = arith.mulf %2132, %1501 : vector<8x128xf32>
    %2134 = arith.addf %2130, %2133 : vector<8x128xf32>
    %c492 = arith.constant 492 : index
    %2135 = memref.load %arg1[%c492] : memref<712xf32, #tpu.memory_space<smem>>
    %2136 = vector.broadcast %2135 : f32 to vector<8x128xf32>
    %2137 = arith.mulf %2136, %1513 : vector<8x128xf32>
    %2138 = arith.addf %2134, %2137 : vector<8x128xf32>
    %c494 = arith.constant 494 : index
    %2139 = memref.load %arg1[%c494] : memref<712xf32, #tpu.memory_space<smem>>
    %2140 = vector.broadcast %2139 : f32 to vector<8x128xf32>
    %2141 = arith.mulf %2140, %1525 : vector<8x128xf32>
    %2142 = arith.addf %2138, %2141 : vector<8x128xf32>
    %c496 = arith.constant 496 : index
    %2143 = memref.load %arg1[%c496] : memref<712xf32, #tpu.memory_space<smem>>
    %2144 = vector.broadcast %2143 : f32 to vector<8x128xf32>
    %2145 = arith.mulf %2144, %1537 : vector<8x128xf32>
    %2146 = arith.addf %2142, %2145 : vector<8x128xf32>
    %c498 = arith.constant 498 : index
    %2147 = memref.load %arg1[%c498] : memref<712xf32, #tpu.memory_space<smem>>
    %2148 = vector.broadcast %2147 : f32 to vector<8x128xf32>
    %2149 = arith.mulf %2148, %1549 : vector<8x128xf32>
    %2150 = arith.addf %2146, %2149 : vector<8x128xf32>
    %c500 = arith.constant 500 : index
    %2151 = memref.load %arg1[%c500] : memref<712xf32, #tpu.memory_space<smem>>
    %2152 = vector.broadcast %2151 : f32 to vector<8x128xf32>
    %2153 = arith.mulf %2152, %1561 : vector<8x128xf32>
    %2154 = arith.addf %2150, %2153 : vector<8x128xf32>
    %c502 = arith.constant 502 : index
    %2155 = memref.load %arg1[%c502] : memref<712xf32, #tpu.memory_space<smem>>
    %2156 = vector.broadcast %2155 : f32 to vector<8x128xf32>
    %2157 = arith.mulf %2156, %1573 : vector<8x128xf32>
    %2158 = arith.addf %2154, %2157 : vector<8x128xf32>
    %c504 = arith.constant 504 : index
    %2159 = memref.load %arg1[%c504] : memref<712xf32, #tpu.memory_space<smem>>
    %2160 = vector.broadcast %2159 : f32 to vector<8x128xf32>
    %2161 = arith.mulf %2160, %1585 : vector<8x128xf32>
    %2162 = arith.addf %2158, %2161 : vector<8x128xf32>
    %c506 = arith.constant 506 : index
    %2163 = memref.load %arg1[%c506] : memref<712xf32, #tpu.memory_space<smem>>
    %2164 = vector.broadcast %2163 : f32 to vector<8x128xf32>
    %2165 = arith.mulf %2164, %1597 : vector<8x128xf32>
    %2166 = arith.addf %2162, %2165 : vector<8x128xf32>
    %c508 = arith.constant 508 : index
    %2167 = memref.load %arg1[%c508] : memref<712xf32, #tpu.memory_space<smem>>
    %2168 = vector.broadcast %2167 : f32 to vector<8x128xf32>
    %2169 = arith.mulf %2168, %1609 : vector<8x128xf32>
    %2170 = arith.addf %2166, %2169 : vector<8x128xf32>
    %c510 = arith.constant 510 : index
    %2171 = memref.load %arg1[%c510] : memref<712xf32, #tpu.memory_space<smem>>
    %2172 = vector.broadcast %2171 : f32 to vector<8x128xf32>
    %2173 = arith.mulf %2172, %1621 : vector<8x128xf32>
    %2174 = arith.addf %2170, %2173 : vector<8x128xf32>
    %c512 = arith.constant 512 : index
    %2175 = memref.load %arg1[%c512] : memref<712xf32, #tpu.memory_space<smem>>
    %2176 = vector.broadcast %2175 : f32 to vector<8x128xf32>
    %2177 = arith.mulf %2176, %1633 : vector<8x128xf32>
    %2178 = arith.addf %2174, %2177 : vector<8x128xf32>
    %c514 = arith.constant 514 : index
    %2179 = memref.load %arg1[%c514] : memref<712xf32, #tpu.memory_space<smem>>
    %2180 = vector.broadcast %2179 : f32 to vector<8x128xf32>
    %2181 = arith.mulf %2180, %1645 : vector<8x128xf32>
    %2182 = arith.addf %2178, %2181 : vector<8x128xf32>
    %c489 = arith.constant 489 : index
    %2183 = memref.load %arg1[%c489] : memref<712xf32, #tpu.memory_space<smem>>
    %2184 = vector.broadcast %2183 : f32 to vector<8x128xf32>
    %2185 = arith.mulf %2184, %1495 : vector<8x128xf32>
    %2186 = arith.addf %2126, %2185 : vector<8x128xf32>
    %c491 = arith.constant 491 : index
    %2187 = memref.load %arg1[%c491] : memref<712xf32, #tpu.memory_space<smem>>
    %2188 = vector.broadcast %2187 : f32 to vector<8x128xf32>
    %2189 = arith.mulf %2188, %1507 : vector<8x128xf32>
    %2190 = arith.addf %2186, %2189 : vector<8x128xf32>
    %c493 = arith.constant 493 : index
    %2191 = memref.load %arg1[%c493] : memref<712xf32, #tpu.memory_space<smem>>
    %2192 = vector.broadcast %2191 : f32 to vector<8x128xf32>
    %2193 = arith.mulf %2192, %1519 : vector<8x128xf32>
    %2194 = arith.addf %2190, %2193 : vector<8x128xf32>
    %c495 = arith.constant 495 : index
    %2195 = memref.load %arg1[%c495] : memref<712xf32, #tpu.memory_space<smem>>
    %2196 = vector.broadcast %2195 : f32 to vector<8x128xf32>
    %2197 = arith.mulf %2196, %1531 : vector<8x128xf32>
    %2198 = arith.addf %2194, %2197 : vector<8x128xf32>
    %c497 = arith.constant 497 : index
    %2199 = memref.load %arg1[%c497] : memref<712xf32, #tpu.memory_space<smem>>
    %2200 = vector.broadcast %2199 : f32 to vector<8x128xf32>
    %2201 = arith.mulf %2200, %1543 : vector<8x128xf32>
    %2202 = arith.addf %2198, %2201 : vector<8x128xf32>
    %c499 = arith.constant 499 : index
    %2203 = memref.load %arg1[%c499] : memref<712xf32, #tpu.memory_space<smem>>
    %2204 = vector.broadcast %2203 : f32 to vector<8x128xf32>
    %2205 = arith.mulf %2204, %1555 : vector<8x128xf32>
    %2206 = arith.addf %2202, %2205 : vector<8x128xf32>
    %c501 = arith.constant 501 : index
    %2207 = memref.load %arg1[%c501] : memref<712xf32, #tpu.memory_space<smem>>
    %2208 = vector.broadcast %2207 : f32 to vector<8x128xf32>
    %2209 = arith.mulf %2208, %1567 : vector<8x128xf32>
    %2210 = arith.addf %2206, %2209 : vector<8x128xf32>
    %c503 = arith.constant 503 : index
    %2211 = memref.load %arg1[%c503] : memref<712xf32, #tpu.memory_space<smem>>
    %2212 = vector.broadcast %2211 : f32 to vector<8x128xf32>
    %2213 = arith.mulf %2212, %1579 : vector<8x128xf32>
    %2214 = arith.addf %2210, %2213 : vector<8x128xf32>
    %c505 = arith.constant 505 : index
    %2215 = memref.load %arg1[%c505] : memref<712xf32, #tpu.memory_space<smem>>
    %2216 = vector.broadcast %2215 : f32 to vector<8x128xf32>
    %2217 = arith.mulf %2216, %1591 : vector<8x128xf32>
    %2218 = arith.addf %2214, %2217 : vector<8x128xf32>
    %c507 = arith.constant 507 : index
    %2219 = memref.load %arg1[%c507] : memref<712xf32, #tpu.memory_space<smem>>
    %2220 = vector.broadcast %2219 : f32 to vector<8x128xf32>
    %2221 = arith.mulf %2220, %1603 : vector<8x128xf32>
    %2222 = arith.addf %2218, %2221 : vector<8x128xf32>
    %c509 = arith.constant 509 : index
    %2223 = memref.load %arg1[%c509] : memref<712xf32, #tpu.memory_space<smem>>
    %2224 = vector.broadcast %2223 : f32 to vector<8x128xf32>
    %2225 = arith.mulf %2224, %1615 : vector<8x128xf32>
    %2226 = arith.addf %2222, %2225 : vector<8x128xf32>
    %c511 = arith.constant 511 : index
    %2227 = memref.load %arg1[%c511] : memref<712xf32, #tpu.memory_space<smem>>
    %2228 = vector.broadcast %2227 : f32 to vector<8x128xf32>
    %2229 = arith.mulf %2228, %1627 : vector<8x128xf32>
    %2230 = arith.addf %2226, %2229 : vector<8x128xf32>
    %c513 = arith.constant 513 : index
    %2231 = memref.load %arg1[%c513] : memref<712xf32, #tpu.memory_space<smem>>
    %2232 = vector.broadcast %2231 : f32 to vector<8x128xf32>
    %2233 = arith.mulf %2232, %1639 : vector<8x128xf32>
    %2234 = arith.addf %2230, %2233 : vector<8x128xf32>
    %2235 = arith.addf %2182, %2234 : vector<8x128xf32>
    %c694 = arith.constant 694 : index
    %2236 = memref.load %arg1[%c694] : memref<712xf32, #tpu.memory_space<smem>>
    %c515 = arith.constant 515 : index
    %2237 = memref.load %arg1[%c515] : memref<712xf32, #tpu.memory_space<smem>>
    %2238 = vector.broadcast %2237 : f32 to vector<8x128xf32>
    %2239 = arith.mulf %2238, %1477 : vector<8x128xf32>
    %2240 = vector.broadcast %2236 : f32 to vector<8x128xf32>
    %2241 = arith.addf %2240, %2239 : vector<8x128xf32>
    %c516 = arith.constant 516 : index
    %2242 = memref.load %arg1[%c516] : memref<712xf32, #tpu.memory_space<smem>>
    %2243 = vector.broadcast %2242 : f32 to vector<8x128xf32>
    %2244 = arith.mulf %2243, %1483 : vector<8x128xf32>
    %c517 = arith.constant 517 : index
    %2245 = memref.load %arg1[%c517] : memref<712xf32, #tpu.memory_space<smem>>
    %2246 = vector.broadcast %2245 : f32 to vector<8x128xf32>
    %2247 = arith.mulf %2246, %1489 : vector<8x128xf32>
    %2248 = arith.addf %2241, %2247 : vector<8x128xf32>
    %c519 = arith.constant 519 : index
    %2249 = memref.load %arg1[%c519] : memref<712xf32, #tpu.memory_space<smem>>
    %2250 = vector.broadcast %2249 : f32 to vector<8x128xf32>
    %2251 = arith.mulf %2250, %1501 : vector<8x128xf32>
    %2252 = arith.addf %2248, %2251 : vector<8x128xf32>
    %c521 = arith.constant 521 : index
    %2253 = memref.load %arg1[%c521] : memref<712xf32, #tpu.memory_space<smem>>
    %2254 = vector.broadcast %2253 : f32 to vector<8x128xf32>
    %2255 = arith.mulf %2254, %1513 : vector<8x128xf32>
    %2256 = arith.addf %2252, %2255 : vector<8x128xf32>
    %c523 = arith.constant 523 : index
    %2257 = memref.load %arg1[%c523] : memref<712xf32, #tpu.memory_space<smem>>
    %2258 = vector.broadcast %2257 : f32 to vector<8x128xf32>
    %2259 = arith.mulf %2258, %1525 : vector<8x128xf32>
    %2260 = arith.addf %2256, %2259 : vector<8x128xf32>
    %c525 = arith.constant 525 : index
    %2261 = memref.load %arg1[%c525] : memref<712xf32, #tpu.memory_space<smem>>
    %2262 = vector.broadcast %2261 : f32 to vector<8x128xf32>
    %2263 = arith.mulf %2262, %1537 : vector<8x128xf32>
    %2264 = arith.addf %2260, %2263 : vector<8x128xf32>
    %c527 = arith.constant 527 : index
    %2265 = memref.load %arg1[%c527] : memref<712xf32, #tpu.memory_space<smem>>
    %2266 = vector.broadcast %2265 : f32 to vector<8x128xf32>
    %2267 = arith.mulf %2266, %1549 : vector<8x128xf32>
    %2268 = arith.addf %2264, %2267 : vector<8x128xf32>
    %c529 = arith.constant 529 : index
    %2269 = memref.load %arg1[%c529] : memref<712xf32, #tpu.memory_space<smem>>
    %2270 = vector.broadcast %2269 : f32 to vector<8x128xf32>
    %2271 = arith.mulf %2270, %1561 : vector<8x128xf32>
    %2272 = arith.addf %2268, %2271 : vector<8x128xf32>
    %c531 = arith.constant 531 : index
    %2273 = memref.load %arg1[%c531] : memref<712xf32, #tpu.memory_space<smem>>
    %2274 = vector.broadcast %2273 : f32 to vector<8x128xf32>
    %2275 = arith.mulf %2274, %1573 : vector<8x128xf32>
    %2276 = arith.addf %2272, %2275 : vector<8x128xf32>
    %c533 = arith.constant 533 : index
    %2277 = memref.load %arg1[%c533] : memref<712xf32, #tpu.memory_space<smem>>
    %2278 = vector.broadcast %2277 : f32 to vector<8x128xf32>
    %2279 = arith.mulf %2278, %1585 : vector<8x128xf32>
    %2280 = arith.addf %2276, %2279 : vector<8x128xf32>
    %c535 = arith.constant 535 : index
    %2281 = memref.load %arg1[%c535] : memref<712xf32, #tpu.memory_space<smem>>
    %2282 = vector.broadcast %2281 : f32 to vector<8x128xf32>
    %2283 = arith.mulf %2282, %1597 : vector<8x128xf32>
    %2284 = arith.addf %2280, %2283 : vector<8x128xf32>
    %c537 = arith.constant 537 : index
    %2285 = memref.load %arg1[%c537] : memref<712xf32, #tpu.memory_space<smem>>
    %2286 = vector.broadcast %2285 : f32 to vector<8x128xf32>
    %2287 = arith.mulf %2286, %1609 : vector<8x128xf32>
    %2288 = arith.addf %2284, %2287 : vector<8x128xf32>
    %c539 = arith.constant 539 : index
    %2289 = memref.load %arg1[%c539] : memref<712xf32, #tpu.memory_space<smem>>
    %2290 = vector.broadcast %2289 : f32 to vector<8x128xf32>
    %2291 = arith.mulf %2290, %1621 : vector<8x128xf32>
    %2292 = arith.addf %2288, %2291 : vector<8x128xf32>
    %c541 = arith.constant 541 : index
    %2293 = memref.load %arg1[%c541] : memref<712xf32, #tpu.memory_space<smem>>
    %2294 = vector.broadcast %2293 : f32 to vector<8x128xf32>
    %2295 = arith.mulf %2294, %1633 : vector<8x128xf32>
    %2296 = arith.addf %2292, %2295 : vector<8x128xf32>
    %c543 = arith.constant 543 : index
    %2297 = memref.load %arg1[%c543] : memref<712xf32, #tpu.memory_space<smem>>
    %2298 = vector.broadcast %2297 : f32 to vector<8x128xf32>
    %2299 = arith.mulf %2298, %1645 : vector<8x128xf32>
    %2300 = arith.addf %2296, %2299 : vector<8x128xf32>
    %c518 = arith.constant 518 : index
    %2301 = memref.load %arg1[%c518] : memref<712xf32, #tpu.memory_space<smem>>
    %2302 = vector.broadcast %2301 : f32 to vector<8x128xf32>
    %2303 = arith.mulf %2302, %1495 : vector<8x128xf32>
    %2304 = arith.addf %2244, %2303 : vector<8x128xf32>
    %c520 = arith.constant 520 : index
    %2305 = memref.load %arg1[%c520] : memref<712xf32, #tpu.memory_space<smem>>
    %2306 = vector.broadcast %2305 : f32 to vector<8x128xf32>
    %2307 = arith.mulf %2306, %1507 : vector<8x128xf32>
    %2308 = arith.addf %2304, %2307 : vector<8x128xf32>
    %c522 = arith.constant 522 : index
    %2309 = memref.load %arg1[%c522] : memref<712xf32, #tpu.memory_space<smem>>
    %2310 = vector.broadcast %2309 : f32 to vector<8x128xf32>
    %2311 = arith.mulf %2310, %1519 : vector<8x128xf32>
    %2312 = arith.addf %2308, %2311 : vector<8x128xf32>
    %c524 = arith.constant 524 : index
    %2313 = memref.load %arg1[%c524] : memref<712xf32, #tpu.memory_space<smem>>
    %2314 = vector.broadcast %2313 : f32 to vector<8x128xf32>
    %2315 = arith.mulf %2314, %1531 : vector<8x128xf32>
    %2316 = arith.addf %2312, %2315 : vector<8x128xf32>
    %c526 = arith.constant 526 : index
    %2317 = memref.load %arg1[%c526] : memref<712xf32, #tpu.memory_space<smem>>
    %2318 = vector.broadcast %2317 : f32 to vector<8x128xf32>
    %2319 = arith.mulf %2318, %1543 : vector<8x128xf32>
    %2320 = arith.addf %2316, %2319 : vector<8x128xf32>
    %c528 = arith.constant 528 : index
    %2321 = memref.load %arg1[%c528] : memref<712xf32, #tpu.memory_space<smem>>
    %2322 = vector.broadcast %2321 : f32 to vector<8x128xf32>
    %2323 = arith.mulf %2322, %1555 : vector<8x128xf32>
    %2324 = arith.addf %2320, %2323 : vector<8x128xf32>
    %c530 = arith.constant 530 : index
    %2325 = memref.load %arg1[%c530] : memref<712xf32, #tpu.memory_space<smem>>
    %2326 = vector.broadcast %2325 : f32 to vector<8x128xf32>
    %2327 = arith.mulf %2326, %1567 : vector<8x128xf32>
    %2328 = arith.addf %2324, %2327 : vector<8x128xf32>
    %c532 = arith.constant 532 : index
    %2329 = memref.load %arg1[%c532] : memref<712xf32, #tpu.memory_space<smem>>
    %2330 = vector.broadcast %2329 : f32 to vector<8x128xf32>
    %2331 = arith.mulf %2330, %1579 : vector<8x128xf32>
    %2332 = arith.addf %2328, %2331 : vector<8x128xf32>
    %c534 = arith.constant 534 : index
    %2333 = memref.load %arg1[%c534] : memref<712xf32, #tpu.memory_space<smem>>
    %2334 = vector.broadcast %2333 : f32 to vector<8x128xf32>
    %2335 = arith.mulf %2334, %1591 : vector<8x128xf32>
    %2336 = arith.addf %2332, %2335 : vector<8x128xf32>
    %c536 = arith.constant 536 : index
    %2337 = memref.load %arg1[%c536] : memref<712xf32, #tpu.memory_space<smem>>
    %2338 = vector.broadcast %2337 : f32 to vector<8x128xf32>
    %2339 = arith.mulf %2338, %1603 : vector<8x128xf32>
    %2340 = arith.addf %2336, %2339 : vector<8x128xf32>
    %c538 = arith.constant 538 : index
    %2341 = memref.load %arg1[%c538] : memref<712xf32, #tpu.memory_space<smem>>
    %2342 = vector.broadcast %2341 : f32 to vector<8x128xf32>
    %2343 = arith.mulf %2342, %1615 : vector<8x128xf32>
    %2344 = arith.addf %2340, %2343 : vector<8x128xf32>
    %c540 = arith.constant 540 : index
    %2345 = memref.load %arg1[%c540] : memref<712xf32, #tpu.memory_space<smem>>
    %2346 = vector.broadcast %2345 : f32 to vector<8x128xf32>
    %2347 = arith.mulf %2346, %1627 : vector<8x128xf32>
    %2348 = arith.addf %2344, %2347 : vector<8x128xf32>
    %c542 = arith.constant 542 : index
    %2349 = memref.load %arg1[%c542] : memref<712xf32, #tpu.memory_space<smem>>
    %2350 = vector.broadcast %2349 : f32 to vector<8x128xf32>
    %2351 = arith.mulf %2350, %1639 : vector<8x128xf32>
    %2352 = arith.addf %2348, %2351 : vector<8x128xf32>
    %2353 = arith.addf %2300, %2352 : vector<8x128xf32>
    %c695 = arith.constant 695 : index
    %2354 = memref.load %arg1[%c695] : memref<712xf32, #tpu.memory_space<smem>>
    %c544 = arith.constant 544 : index
    %2355 = memref.load %arg1[%c544] : memref<712xf32, #tpu.memory_space<smem>>
    %2356 = vector.broadcast %2355 : f32 to vector<8x128xf32>
    %2357 = arith.mulf %2356, %1477 : vector<8x128xf32>
    %2358 = vector.broadcast %2354 : f32 to vector<8x128xf32>
    %2359 = arith.addf %2358, %2357 : vector<8x128xf32>
    %c545 = arith.constant 545 : index
    %2360 = memref.load %arg1[%c545] : memref<712xf32, #tpu.memory_space<smem>>
    %2361 = vector.broadcast %2360 : f32 to vector<8x128xf32>
    %2362 = arith.mulf %2361, %1483 : vector<8x128xf32>
    %c546 = arith.constant 546 : index
    %2363 = memref.load %arg1[%c546] : memref<712xf32, #tpu.memory_space<smem>>
    %2364 = vector.broadcast %2363 : f32 to vector<8x128xf32>
    %2365 = arith.mulf %2364, %1489 : vector<8x128xf32>
    %2366 = arith.addf %2359, %2365 : vector<8x128xf32>
    %c548 = arith.constant 548 : index
    %2367 = memref.load %arg1[%c548] : memref<712xf32, #tpu.memory_space<smem>>
    %2368 = vector.broadcast %2367 : f32 to vector<8x128xf32>
    %2369 = arith.mulf %2368, %1501 : vector<8x128xf32>
    %2370 = arith.addf %2366, %2369 : vector<8x128xf32>
    %c550 = arith.constant 550 : index
    %2371 = memref.load %arg1[%c550] : memref<712xf32, #tpu.memory_space<smem>>
    %2372 = vector.broadcast %2371 : f32 to vector<8x128xf32>
    %2373 = arith.mulf %2372, %1513 : vector<8x128xf32>
    %2374 = arith.addf %2370, %2373 : vector<8x128xf32>
    %c552 = arith.constant 552 : index
    %2375 = memref.load %arg1[%c552] : memref<712xf32, #tpu.memory_space<smem>>
    %2376 = vector.broadcast %2375 : f32 to vector<8x128xf32>
    %2377 = arith.mulf %2376, %1525 : vector<8x128xf32>
    %2378 = arith.addf %2374, %2377 : vector<8x128xf32>
    %c554 = arith.constant 554 : index
    %2379 = memref.load %arg1[%c554] : memref<712xf32, #tpu.memory_space<smem>>
    %2380 = vector.broadcast %2379 : f32 to vector<8x128xf32>
    %2381 = arith.mulf %2380, %1537 : vector<8x128xf32>
    %2382 = arith.addf %2378, %2381 : vector<8x128xf32>
    %c556 = arith.constant 556 : index
    %2383 = memref.load %arg1[%c556] : memref<712xf32, #tpu.memory_space<smem>>
    %2384 = vector.broadcast %2383 : f32 to vector<8x128xf32>
    %2385 = arith.mulf %2384, %1549 : vector<8x128xf32>
    %2386 = arith.addf %2382, %2385 : vector<8x128xf32>
    %c558 = arith.constant 558 : index
    %2387 = memref.load %arg1[%c558] : memref<712xf32, #tpu.memory_space<smem>>
    %2388 = vector.broadcast %2387 : f32 to vector<8x128xf32>
    %2389 = arith.mulf %2388, %1561 : vector<8x128xf32>
    %2390 = arith.addf %2386, %2389 : vector<8x128xf32>
    %c560 = arith.constant 560 : index
    %2391 = memref.load %arg1[%c560] : memref<712xf32, #tpu.memory_space<smem>>
    %2392 = vector.broadcast %2391 : f32 to vector<8x128xf32>
    %2393 = arith.mulf %2392, %1573 : vector<8x128xf32>
    %2394 = arith.addf %2390, %2393 : vector<8x128xf32>
    %c562 = arith.constant 562 : index
    %2395 = memref.load %arg1[%c562] : memref<712xf32, #tpu.memory_space<smem>>
    %2396 = vector.broadcast %2395 : f32 to vector<8x128xf32>
    %2397 = arith.mulf %2396, %1585 : vector<8x128xf32>
    %2398 = arith.addf %2394, %2397 : vector<8x128xf32>
    %c564 = arith.constant 564 : index
    %2399 = memref.load %arg1[%c564] : memref<712xf32, #tpu.memory_space<smem>>
    %2400 = vector.broadcast %2399 : f32 to vector<8x128xf32>
    %2401 = arith.mulf %2400, %1597 : vector<8x128xf32>
    %2402 = arith.addf %2398, %2401 : vector<8x128xf32>
    %c566 = arith.constant 566 : index
    %2403 = memref.load %arg1[%c566] : memref<712xf32, #tpu.memory_space<smem>>
    %2404 = vector.broadcast %2403 : f32 to vector<8x128xf32>
    %2405 = arith.mulf %2404, %1609 : vector<8x128xf32>
    %2406 = arith.addf %2402, %2405 : vector<8x128xf32>
    %c568 = arith.constant 568 : index
    %2407 = memref.load %arg1[%c568] : memref<712xf32, #tpu.memory_space<smem>>
    %2408 = vector.broadcast %2407 : f32 to vector<8x128xf32>
    %2409 = arith.mulf %2408, %1621 : vector<8x128xf32>
    %2410 = arith.addf %2406, %2409 : vector<8x128xf32>
    %c570 = arith.constant 570 : index
    %2411 = memref.load %arg1[%c570] : memref<712xf32, #tpu.memory_space<smem>>
    %2412 = vector.broadcast %2411 : f32 to vector<8x128xf32>
    %2413 = arith.mulf %2412, %1633 : vector<8x128xf32>
    %2414 = arith.addf %2410, %2413 : vector<8x128xf32>
    %c572 = arith.constant 572 : index
    %2415 = memref.load %arg1[%c572] : memref<712xf32, #tpu.memory_space<smem>>
    %2416 = vector.broadcast %2415 : f32 to vector<8x128xf32>
    %2417 = arith.mulf %2416, %1645 : vector<8x128xf32>
    %2418 = arith.addf %2414, %2417 : vector<8x128xf32>
    %c547 = arith.constant 547 : index
    %2419 = memref.load %arg1[%c547] : memref<712xf32, #tpu.memory_space<smem>>
    %2420 = vector.broadcast %2419 : f32 to vector<8x128xf32>
    %2421 = arith.mulf %2420, %1495 : vector<8x128xf32>
    %2422 = arith.addf %2362, %2421 : vector<8x128xf32>
    %c549 = arith.constant 549 : index
    %2423 = memref.load %arg1[%c549] : memref<712xf32, #tpu.memory_space<smem>>
    %2424 = vector.broadcast %2423 : f32 to vector<8x128xf32>
    %2425 = arith.mulf %2424, %1507 : vector<8x128xf32>
    %2426 = arith.addf %2422, %2425 : vector<8x128xf32>
    %c551 = arith.constant 551 : index
    %2427 = memref.load %arg1[%c551] : memref<712xf32, #tpu.memory_space<smem>>
    %2428 = vector.broadcast %2427 : f32 to vector<8x128xf32>
    %2429 = arith.mulf %2428, %1519 : vector<8x128xf32>
    %2430 = arith.addf %2426, %2429 : vector<8x128xf32>
    %c553 = arith.constant 553 : index
    %2431 = memref.load %arg1[%c553] : memref<712xf32, #tpu.memory_space<smem>>
    %2432 = vector.broadcast %2431 : f32 to vector<8x128xf32>
    %2433 = arith.mulf %2432, %1531 : vector<8x128xf32>
    %2434 = arith.addf %2430, %2433 : vector<8x128xf32>
    %c555 = arith.constant 555 : index
    %2435 = memref.load %arg1[%c555] : memref<712xf32, #tpu.memory_space<smem>>
    %2436 = vector.broadcast %2435 : f32 to vector<8x128xf32>
    %2437 = arith.mulf %2436, %1543 : vector<8x128xf32>
    %2438 = arith.addf %2434, %2437 : vector<8x128xf32>
    %c557 = arith.constant 557 : index
    %2439 = memref.load %arg1[%c557] : memref<712xf32, #tpu.memory_space<smem>>
    %2440 = vector.broadcast %2439 : f32 to vector<8x128xf32>
    %2441 = arith.mulf %2440, %1555 : vector<8x128xf32>
    %2442 = arith.addf %2438, %2441 : vector<8x128xf32>
    %c559 = arith.constant 559 : index
    %2443 = memref.load %arg1[%c559] : memref<712xf32, #tpu.memory_space<smem>>
    %2444 = vector.broadcast %2443 : f32 to vector<8x128xf32>
    %2445 = arith.mulf %2444, %1567 : vector<8x128xf32>
    %2446 = arith.addf %2442, %2445 : vector<8x128xf32>
    %c561 = arith.constant 561 : index
    %2447 = memref.load %arg1[%c561] : memref<712xf32, #tpu.memory_space<smem>>
    %2448 = vector.broadcast %2447 : f32 to vector<8x128xf32>
    %2449 = arith.mulf %2448, %1579 : vector<8x128xf32>
    %2450 = arith.addf %2446, %2449 : vector<8x128xf32>
    %c563 = arith.constant 563 : index
    %2451 = memref.load %arg1[%c563] : memref<712xf32, #tpu.memory_space<smem>>
    %2452 = vector.broadcast %2451 : f32 to vector<8x128xf32>
    %2453 = arith.mulf %2452, %1591 : vector<8x128xf32>
    %2454 = arith.addf %2450, %2453 : vector<8x128xf32>
    %c565 = arith.constant 565 : index
    %2455 = memref.load %arg1[%c565] : memref<712xf32, #tpu.memory_space<smem>>
    %2456 = vector.broadcast %2455 : f32 to vector<8x128xf32>
    %2457 = arith.mulf %2456, %1603 : vector<8x128xf32>
    %2458 = arith.addf %2454, %2457 : vector<8x128xf32>
    %c567 = arith.constant 567 : index
    %2459 = memref.load %arg1[%c567] : memref<712xf32, #tpu.memory_space<smem>>
    %2460 = vector.broadcast %2459 : f32 to vector<8x128xf32>
    %2461 = arith.mulf %2460, %1615 : vector<8x128xf32>
    %2462 = arith.addf %2458, %2461 : vector<8x128xf32>
    %c569 = arith.constant 569 : index
    %2463 = memref.load %arg1[%c569] : memref<712xf32, #tpu.memory_space<smem>>
    %2464 = vector.broadcast %2463 : f32 to vector<8x128xf32>
    %2465 = arith.mulf %2464, %1627 : vector<8x128xf32>
    %2466 = arith.addf %2462, %2465 : vector<8x128xf32>
    %c571 = arith.constant 571 : index
    %2467 = memref.load %arg1[%c571] : memref<712xf32, #tpu.memory_space<smem>>
    %2468 = vector.broadcast %2467 : f32 to vector<8x128xf32>
    %2469 = arith.mulf %2468, %1639 : vector<8x128xf32>
    %2470 = arith.addf %2466, %2469 : vector<8x128xf32>
    %2471 = arith.addf %2418, %2470 : vector<8x128xf32>
    %c696 = arith.constant 696 : index
    %2472 = memref.load %arg1[%c696] : memref<712xf32, #tpu.memory_space<smem>>
    %c573 = arith.constant 573 : index
    %2473 = memref.load %arg1[%c573] : memref<712xf32, #tpu.memory_space<smem>>
    %2474 = vector.broadcast %2473 : f32 to vector<8x128xf32>
    %2475 = arith.mulf %2474, %1477 : vector<8x128xf32>
    %2476 = vector.broadcast %2472 : f32 to vector<8x128xf32>
    %2477 = arith.addf %2476, %2475 : vector<8x128xf32>
    %c574 = arith.constant 574 : index
    %2478 = memref.load %arg1[%c574] : memref<712xf32, #tpu.memory_space<smem>>
    %2479 = vector.broadcast %2478 : f32 to vector<8x128xf32>
    %2480 = arith.mulf %2479, %1483 : vector<8x128xf32>
    %c575 = arith.constant 575 : index
    %2481 = memref.load %arg1[%c575] : memref<712xf32, #tpu.memory_space<smem>>
    %2482 = vector.broadcast %2481 : f32 to vector<8x128xf32>
    %2483 = arith.mulf %2482, %1489 : vector<8x128xf32>
    %2484 = arith.addf %2477, %2483 : vector<8x128xf32>
    %c577 = arith.constant 577 : index
    %2485 = memref.load %arg1[%c577] : memref<712xf32, #tpu.memory_space<smem>>
    %2486 = vector.broadcast %2485 : f32 to vector<8x128xf32>
    %2487 = arith.mulf %2486, %1501 : vector<8x128xf32>
    %2488 = arith.addf %2484, %2487 : vector<8x128xf32>
    %c579 = arith.constant 579 : index
    %2489 = memref.load %arg1[%c579] : memref<712xf32, #tpu.memory_space<smem>>
    %2490 = vector.broadcast %2489 : f32 to vector<8x128xf32>
    %2491 = arith.mulf %2490, %1513 : vector<8x128xf32>
    %2492 = arith.addf %2488, %2491 : vector<8x128xf32>
    %c581 = arith.constant 581 : index
    %2493 = memref.load %arg1[%c581] : memref<712xf32, #tpu.memory_space<smem>>
    %2494 = vector.broadcast %2493 : f32 to vector<8x128xf32>
    %2495 = arith.mulf %2494, %1525 : vector<8x128xf32>
    %2496 = arith.addf %2492, %2495 : vector<8x128xf32>
    %c583 = arith.constant 583 : index
    %2497 = memref.load %arg1[%c583] : memref<712xf32, #tpu.memory_space<smem>>
    %2498 = vector.broadcast %2497 : f32 to vector<8x128xf32>
    %2499 = arith.mulf %2498, %1537 : vector<8x128xf32>
    %2500 = arith.addf %2496, %2499 : vector<8x128xf32>
    %c585 = arith.constant 585 : index
    %2501 = memref.load %arg1[%c585] : memref<712xf32, #tpu.memory_space<smem>>
    %2502 = vector.broadcast %2501 : f32 to vector<8x128xf32>
    %2503 = arith.mulf %2502, %1549 : vector<8x128xf32>
    %2504 = arith.addf %2500, %2503 : vector<8x128xf32>
    %c587 = arith.constant 587 : index
    %2505 = memref.load %arg1[%c587] : memref<712xf32, #tpu.memory_space<smem>>
    %2506 = vector.broadcast %2505 : f32 to vector<8x128xf32>
    %2507 = arith.mulf %2506, %1561 : vector<8x128xf32>
    %2508 = arith.addf %2504, %2507 : vector<8x128xf32>
    %c589 = arith.constant 589 : index
    %2509 = memref.load %arg1[%c589] : memref<712xf32, #tpu.memory_space<smem>>
    %2510 = vector.broadcast %2509 : f32 to vector<8x128xf32>
    %2511 = arith.mulf %2510, %1573 : vector<8x128xf32>
    %2512 = arith.addf %2508, %2511 : vector<8x128xf32>
    %c591 = arith.constant 591 : index
    %2513 = memref.load %arg1[%c591] : memref<712xf32, #tpu.memory_space<smem>>
    %2514 = vector.broadcast %2513 : f32 to vector<8x128xf32>
    %2515 = arith.mulf %2514, %1585 : vector<8x128xf32>
    %2516 = arith.addf %2512, %2515 : vector<8x128xf32>
    %c593 = arith.constant 593 : index
    %2517 = memref.load %arg1[%c593] : memref<712xf32, #tpu.memory_space<smem>>
    %2518 = vector.broadcast %2517 : f32 to vector<8x128xf32>
    %2519 = arith.mulf %2518, %1597 : vector<8x128xf32>
    %2520 = arith.addf %2516, %2519 : vector<8x128xf32>
    %c595 = arith.constant 595 : index
    %2521 = memref.load %arg1[%c595] : memref<712xf32, #tpu.memory_space<smem>>
    %2522 = vector.broadcast %2521 : f32 to vector<8x128xf32>
    %2523 = arith.mulf %2522, %1609 : vector<8x128xf32>
    %2524 = arith.addf %2520, %2523 : vector<8x128xf32>
    %c597 = arith.constant 597 : index
    %2525 = memref.load %arg1[%c597] : memref<712xf32, #tpu.memory_space<smem>>
    %2526 = vector.broadcast %2525 : f32 to vector<8x128xf32>
    %2527 = arith.mulf %2526, %1621 : vector<8x128xf32>
    %2528 = arith.addf %2524, %2527 : vector<8x128xf32>
    %c599 = arith.constant 599 : index
    %2529 = memref.load %arg1[%c599] : memref<712xf32, #tpu.memory_space<smem>>
    %2530 = vector.broadcast %2529 : f32 to vector<8x128xf32>
    %2531 = arith.mulf %2530, %1633 : vector<8x128xf32>
    %2532 = arith.addf %2528, %2531 : vector<8x128xf32>
    %c601 = arith.constant 601 : index
    %2533 = memref.load %arg1[%c601] : memref<712xf32, #tpu.memory_space<smem>>
    %2534 = vector.broadcast %2533 : f32 to vector<8x128xf32>
    %2535 = arith.mulf %2534, %1645 : vector<8x128xf32>
    %2536 = arith.addf %2532, %2535 : vector<8x128xf32>
    %c576 = arith.constant 576 : index
    %2537 = memref.load %arg1[%c576] : memref<712xf32, #tpu.memory_space<smem>>
    %2538 = vector.broadcast %2537 : f32 to vector<8x128xf32>
    %2539 = arith.mulf %2538, %1495 : vector<8x128xf32>
    %2540 = arith.addf %2480, %2539 : vector<8x128xf32>
    %c578 = arith.constant 578 : index
    %2541 = memref.load %arg1[%c578] : memref<712xf32, #tpu.memory_space<smem>>
    %2542 = vector.broadcast %2541 : f32 to vector<8x128xf32>
    %2543 = arith.mulf %2542, %1507 : vector<8x128xf32>
    %2544 = arith.addf %2540, %2543 : vector<8x128xf32>
    %c580 = arith.constant 580 : index
    %2545 = memref.load %arg1[%c580] : memref<712xf32, #tpu.memory_space<smem>>
    %2546 = vector.broadcast %2545 : f32 to vector<8x128xf32>
    %2547 = arith.mulf %2546, %1519 : vector<8x128xf32>
    %2548 = arith.addf %2544, %2547 : vector<8x128xf32>
    %c582 = arith.constant 582 : index
    %2549 = memref.load %arg1[%c582] : memref<712xf32, #tpu.memory_space<smem>>
    %2550 = vector.broadcast %2549 : f32 to vector<8x128xf32>
    %2551 = arith.mulf %2550, %1531 : vector<8x128xf32>
    %2552 = arith.addf %2548, %2551 : vector<8x128xf32>
    %c584 = arith.constant 584 : index
    %2553 = memref.load %arg1[%c584] : memref<712xf32, #tpu.memory_space<smem>>
    %2554 = vector.broadcast %2553 : f32 to vector<8x128xf32>
    %2555 = arith.mulf %2554, %1543 : vector<8x128xf32>
    %2556 = arith.addf %2552, %2555 : vector<8x128xf32>
    %c586 = arith.constant 586 : index
    %2557 = memref.load %arg1[%c586] : memref<712xf32, #tpu.memory_space<smem>>
    %2558 = vector.broadcast %2557 : f32 to vector<8x128xf32>
    %2559 = arith.mulf %2558, %1555 : vector<8x128xf32>
    %2560 = arith.addf %2556, %2559 : vector<8x128xf32>
    %c588 = arith.constant 588 : index
    %2561 = memref.load %arg1[%c588] : memref<712xf32, #tpu.memory_space<smem>>
    %2562 = vector.broadcast %2561 : f32 to vector<8x128xf32>
    %2563 = arith.mulf %2562, %1567 : vector<8x128xf32>
    %2564 = arith.addf %2560, %2563 : vector<8x128xf32>
    %c590 = arith.constant 590 : index
    %2565 = memref.load %arg1[%c590] : memref<712xf32, #tpu.memory_space<smem>>
    %2566 = vector.broadcast %2565 : f32 to vector<8x128xf32>
    %2567 = arith.mulf %2566, %1579 : vector<8x128xf32>
    %2568 = arith.addf %2564, %2567 : vector<8x128xf32>
    %c592 = arith.constant 592 : index
    %2569 = memref.load %arg1[%c592] : memref<712xf32, #tpu.memory_space<smem>>
    %2570 = vector.broadcast %2569 : f32 to vector<8x128xf32>
    %2571 = arith.mulf %2570, %1591 : vector<8x128xf32>
    %2572 = arith.addf %2568, %2571 : vector<8x128xf32>
    %c594 = arith.constant 594 : index
    %2573 = memref.load %arg1[%c594] : memref<712xf32, #tpu.memory_space<smem>>
    %2574 = vector.broadcast %2573 : f32 to vector<8x128xf32>
    %2575 = arith.mulf %2574, %1603 : vector<8x128xf32>
    %2576 = arith.addf %2572, %2575 : vector<8x128xf32>
    %c596 = arith.constant 596 : index
    %2577 = memref.load %arg1[%c596] : memref<712xf32, #tpu.memory_space<smem>>
    %2578 = vector.broadcast %2577 : f32 to vector<8x128xf32>
    %2579 = arith.mulf %2578, %1615 : vector<8x128xf32>
    %2580 = arith.addf %2576, %2579 : vector<8x128xf32>
    %c598 = arith.constant 598 : index
    %2581 = memref.load %arg1[%c598] : memref<712xf32, #tpu.memory_space<smem>>
    %2582 = vector.broadcast %2581 : f32 to vector<8x128xf32>
    %2583 = arith.mulf %2582, %1627 : vector<8x128xf32>
    %2584 = arith.addf %2580, %2583 : vector<8x128xf32>
    %c600 = arith.constant 600 : index
    %2585 = memref.load %arg1[%c600] : memref<712xf32, #tpu.memory_space<smem>>
    %2586 = vector.broadcast %2585 : f32 to vector<8x128xf32>
    %2587 = arith.mulf %2586, %1639 : vector<8x128xf32>
    %2588 = arith.addf %2584, %2587 : vector<8x128xf32>
    %2589 = arith.addf %2536, %2588 : vector<8x128xf32>
    %c697 = arith.constant 697 : index
    %2590 = memref.load %arg1[%c697] : memref<712xf32, #tpu.memory_space<smem>>
    %c602 = arith.constant 602 : index
    %2591 = memref.load %arg1[%c602] : memref<712xf32, #tpu.memory_space<smem>>
    %2592 = vector.broadcast %2591 : f32 to vector<8x128xf32>
    %2593 = arith.mulf %2592, %1477 : vector<8x128xf32>
    %2594 = vector.broadcast %2590 : f32 to vector<8x128xf32>
    %2595 = arith.addf %2594, %2593 : vector<8x128xf32>
    %c603 = arith.constant 603 : index
    %2596 = memref.load %arg1[%c603] : memref<712xf32, #tpu.memory_space<smem>>
    %2597 = vector.broadcast %2596 : f32 to vector<8x128xf32>
    %2598 = arith.mulf %2597, %1483 : vector<8x128xf32>
    %c604 = arith.constant 604 : index
    %2599 = memref.load %arg1[%c604] : memref<712xf32, #tpu.memory_space<smem>>
    %2600 = vector.broadcast %2599 : f32 to vector<8x128xf32>
    %2601 = arith.mulf %2600, %1489 : vector<8x128xf32>
    %2602 = arith.addf %2595, %2601 : vector<8x128xf32>
    %c606 = arith.constant 606 : index
    %2603 = memref.load %arg1[%c606] : memref<712xf32, #tpu.memory_space<smem>>
    %2604 = vector.broadcast %2603 : f32 to vector<8x128xf32>
    %2605 = arith.mulf %2604, %1501 : vector<8x128xf32>
    %2606 = arith.addf %2602, %2605 : vector<8x128xf32>
    %c608 = arith.constant 608 : index
    %2607 = memref.load %arg1[%c608] : memref<712xf32, #tpu.memory_space<smem>>
    %2608 = vector.broadcast %2607 : f32 to vector<8x128xf32>
    %2609 = arith.mulf %2608, %1513 : vector<8x128xf32>
    %2610 = arith.addf %2606, %2609 : vector<8x128xf32>
    %c610 = arith.constant 610 : index
    %2611 = memref.load %arg1[%c610] : memref<712xf32, #tpu.memory_space<smem>>
    %2612 = vector.broadcast %2611 : f32 to vector<8x128xf32>
    %2613 = arith.mulf %2612, %1525 : vector<8x128xf32>
    %2614 = arith.addf %2610, %2613 : vector<8x128xf32>
    %c612 = arith.constant 612 : index
    %2615 = memref.load %arg1[%c612] : memref<712xf32, #tpu.memory_space<smem>>
    %2616 = vector.broadcast %2615 : f32 to vector<8x128xf32>
    %2617 = arith.mulf %2616, %1537 : vector<8x128xf32>
    %2618 = arith.addf %2614, %2617 : vector<8x128xf32>
    %c614 = arith.constant 614 : index
    %2619 = memref.load %arg1[%c614] : memref<712xf32, #tpu.memory_space<smem>>
    %2620 = vector.broadcast %2619 : f32 to vector<8x128xf32>
    %2621 = arith.mulf %2620, %1549 : vector<8x128xf32>
    %2622 = arith.addf %2618, %2621 : vector<8x128xf32>
    %c616 = arith.constant 616 : index
    %2623 = memref.load %arg1[%c616] : memref<712xf32, #tpu.memory_space<smem>>
    %2624 = vector.broadcast %2623 : f32 to vector<8x128xf32>
    %2625 = arith.mulf %2624, %1561 : vector<8x128xf32>
    %2626 = arith.addf %2622, %2625 : vector<8x128xf32>
    %c618 = arith.constant 618 : index
    %2627 = memref.load %arg1[%c618] : memref<712xf32, #tpu.memory_space<smem>>
    %2628 = vector.broadcast %2627 : f32 to vector<8x128xf32>
    %2629 = arith.mulf %2628, %1573 : vector<8x128xf32>
    %2630 = arith.addf %2626, %2629 : vector<8x128xf32>
    %c620 = arith.constant 620 : index
    %2631 = memref.load %arg1[%c620] : memref<712xf32, #tpu.memory_space<smem>>
    %2632 = vector.broadcast %2631 : f32 to vector<8x128xf32>
    %2633 = arith.mulf %2632, %1585 : vector<8x128xf32>
    %2634 = arith.addf %2630, %2633 : vector<8x128xf32>
    %c622 = arith.constant 622 : index
    %2635 = memref.load %arg1[%c622] : memref<712xf32, #tpu.memory_space<smem>>
    %2636 = vector.broadcast %2635 : f32 to vector<8x128xf32>
    %2637 = arith.mulf %2636, %1597 : vector<8x128xf32>
    %2638 = arith.addf %2634, %2637 : vector<8x128xf32>
    %c624 = arith.constant 624 : index
    %2639 = memref.load %arg1[%c624] : memref<712xf32, #tpu.memory_space<smem>>
    %2640 = vector.broadcast %2639 : f32 to vector<8x128xf32>
    %2641 = arith.mulf %2640, %1609 : vector<8x128xf32>
    %2642 = arith.addf %2638, %2641 : vector<8x128xf32>
    %c626 = arith.constant 626 : index
    %2643 = memref.load %arg1[%c626] : memref<712xf32, #tpu.memory_space<smem>>
    %2644 = vector.broadcast %2643 : f32 to vector<8x128xf32>
    %2645 = arith.mulf %2644, %1621 : vector<8x128xf32>
    %2646 = arith.addf %2642, %2645 : vector<8x128xf32>
    %c628 = arith.constant 628 : index
    %2647 = memref.load %arg1[%c628] : memref<712xf32, #tpu.memory_space<smem>>
    %2648 = vector.broadcast %2647 : f32 to vector<8x128xf32>
    %2649 = arith.mulf %2648, %1633 : vector<8x128xf32>
    %2650 = arith.addf %2646, %2649 : vector<8x128xf32>
    %c630 = arith.constant 630 : index
    %2651 = memref.load %arg1[%c630] : memref<712xf32, #tpu.memory_space<smem>>
    %2652 = vector.broadcast %2651 : f32 to vector<8x128xf32>
    %2653 = arith.mulf %2652, %1645 : vector<8x128xf32>
    %2654 = arith.addf %2650, %2653 : vector<8x128xf32>
    %c605 = arith.constant 605 : index
    %2655 = memref.load %arg1[%c605] : memref<712xf32, #tpu.memory_space<smem>>
    %2656 = vector.broadcast %2655 : f32 to vector<8x128xf32>
    %2657 = arith.mulf %2656, %1495 : vector<8x128xf32>
    %2658 = arith.addf %2598, %2657 : vector<8x128xf32>
    %c607 = arith.constant 607 : index
    %2659 = memref.load %arg1[%c607] : memref<712xf32, #tpu.memory_space<smem>>
    %2660 = vector.broadcast %2659 : f32 to vector<8x128xf32>
    %2661 = arith.mulf %2660, %1507 : vector<8x128xf32>
    %2662 = arith.addf %2658, %2661 : vector<8x128xf32>
    %c609 = arith.constant 609 : index
    %2663 = memref.load %arg1[%c609] : memref<712xf32, #tpu.memory_space<smem>>
    %2664 = vector.broadcast %2663 : f32 to vector<8x128xf32>
    %2665 = arith.mulf %2664, %1519 : vector<8x128xf32>
    %2666 = arith.addf %2662, %2665 : vector<8x128xf32>
    %c611 = arith.constant 611 : index
    %2667 = memref.load %arg1[%c611] : memref<712xf32, #tpu.memory_space<smem>>
    %2668 = vector.broadcast %2667 : f32 to vector<8x128xf32>
    %2669 = arith.mulf %2668, %1531 : vector<8x128xf32>
    %2670 = arith.addf %2666, %2669 : vector<8x128xf32>
    %c613 = arith.constant 613 : index
    %2671 = memref.load %arg1[%c613] : memref<712xf32, #tpu.memory_space<smem>>
    %2672 = vector.broadcast %2671 : f32 to vector<8x128xf32>
    %2673 = arith.mulf %2672, %1543 : vector<8x128xf32>
    %2674 = arith.addf %2670, %2673 : vector<8x128xf32>
    %c615 = arith.constant 615 : index
    %2675 = memref.load %arg1[%c615] : memref<712xf32, #tpu.memory_space<smem>>
    %2676 = vector.broadcast %2675 : f32 to vector<8x128xf32>
    %2677 = arith.mulf %2676, %1555 : vector<8x128xf32>
    %2678 = arith.addf %2674, %2677 : vector<8x128xf32>
    %c617 = arith.constant 617 : index
    %2679 = memref.load %arg1[%c617] : memref<712xf32, #tpu.memory_space<smem>>
    %2680 = vector.broadcast %2679 : f32 to vector<8x128xf32>
    %2681 = arith.mulf %2680, %1567 : vector<8x128xf32>
    %2682 = arith.addf %2678, %2681 : vector<8x128xf32>
    %c619 = arith.constant 619 : index
    %2683 = memref.load %arg1[%c619] : memref<712xf32, #tpu.memory_space<smem>>
    %2684 = vector.broadcast %2683 : f32 to vector<8x128xf32>
    %2685 = arith.mulf %2684, %1579 : vector<8x128xf32>
    %2686 = arith.addf %2682, %2685 : vector<8x128xf32>
    %c621 = arith.constant 621 : index
    %2687 = memref.load %arg1[%c621] : memref<712xf32, #tpu.memory_space<smem>>
    %2688 = vector.broadcast %2687 : f32 to vector<8x128xf32>
    %2689 = arith.mulf %2688, %1591 : vector<8x128xf32>
    %2690 = arith.addf %2686, %2689 : vector<8x128xf32>
    %c623 = arith.constant 623 : index
    %2691 = memref.load %arg1[%c623] : memref<712xf32, #tpu.memory_space<smem>>
    %2692 = vector.broadcast %2691 : f32 to vector<8x128xf32>
    %2693 = arith.mulf %2692, %1603 : vector<8x128xf32>
    %2694 = arith.addf %2690, %2693 : vector<8x128xf32>
    %c625 = arith.constant 625 : index
    %2695 = memref.load %arg1[%c625] : memref<712xf32, #tpu.memory_space<smem>>
    %2696 = vector.broadcast %2695 : f32 to vector<8x128xf32>
    %2697 = arith.mulf %2696, %1615 : vector<8x128xf32>
    %2698 = arith.addf %2694, %2697 : vector<8x128xf32>
    %c627 = arith.constant 627 : index
    %2699 = memref.load %arg1[%c627] : memref<712xf32, #tpu.memory_space<smem>>
    %2700 = vector.broadcast %2699 : f32 to vector<8x128xf32>
    %2701 = arith.mulf %2700, %1627 : vector<8x128xf32>
    %2702 = arith.addf %2698, %2701 : vector<8x128xf32>
    %c629 = arith.constant 629 : index
    %2703 = memref.load %arg1[%c629] : memref<712xf32, #tpu.memory_space<smem>>
    %2704 = vector.broadcast %2703 : f32 to vector<8x128xf32>
    %2705 = arith.mulf %2704, %1639 : vector<8x128xf32>
    %2706 = arith.addf %2702, %2705 : vector<8x128xf32>
    %2707 = arith.addf %2654, %2706 : vector<8x128xf32>
    %c698 = arith.constant 698 : index
    %2708 = memref.load %arg1[%c698] : memref<712xf32, #tpu.memory_space<smem>>
    %c631 = arith.constant 631 : index
    %2709 = memref.load %arg1[%c631] : memref<712xf32, #tpu.memory_space<smem>>
    %2710 = vector.broadcast %2709 : f32 to vector<8x128xf32>
    %2711 = arith.mulf %2710, %1477 : vector<8x128xf32>
    %2712 = vector.broadcast %2708 : f32 to vector<8x128xf32>
    %2713 = arith.addf %2712, %2711 : vector<8x128xf32>
    %c632 = arith.constant 632 : index
    %2714 = memref.load %arg1[%c632] : memref<712xf32, #tpu.memory_space<smem>>
    %2715 = vector.broadcast %2714 : f32 to vector<8x128xf32>
    %2716 = arith.mulf %2715, %1483 : vector<8x128xf32>
    %c633 = arith.constant 633 : index
    %2717 = memref.load %arg1[%c633] : memref<712xf32, #tpu.memory_space<smem>>
    %2718 = vector.broadcast %2717 : f32 to vector<8x128xf32>
    %2719 = arith.mulf %2718, %1489 : vector<8x128xf32>
    %2720 = arith.addf %2713, %2719 : vector<8x128xf32>
    %c635 = arith.constant 635 : index
    %2721 = memref.load %arg1[%c635] : memref<712xf32, #tpu.memory_space<smem>>
    %2722 = vector.broadcast %2721 : f32 to vector<8x128xf32>
    %2723 = arith.mulf %2722, %1501 : vector<8x128xf32>
    %2724 = arith.addf %2720, %2723 : vector<8x128xf32>
    %c637 = arith.constant 637 : index
    %2725 = memref.load %arg1[%c637] : memref<712xf32, #tpu.memory_space<smem>>
    %2726 = vector.broadcast %2725 : f32 to vector<8x128xf32>
    %2727 = arith.mulf %2726, %1513 : vector<8x128xf32>
    %2728 = arith.addf %2724, %2727 : vector<8x128xf32>
    %c639 = arith.constant 639 : index
    %2729 = memref.load %arg1[%c639] : memref<712xf32, #tpu.memory_space<smem>>
    %2730 = vector.broadcast %2729 : f32 to vector<8x128xf32>
    %2731 = arith.mulf %2730, %1525 : vector<8x128xf32>
    %2732 = arith.addf %2728, %2731 : vector<8x128xf32>
    %c641 = arith.constant 641 : index
    %2733 = memref.load %arg1[%c641] : memref<712xf32, #tpu.memory_space<smem>>
    %2734 = vector.broadcast %2733 : f32 to vector<8x128xf32>
    %2735 = arith.mulf %2734, %1537 : vector<8x128xf32>
    %2736 = arith.addf %2732, %2735 : vector<8x128xf32>
    %c643 = arith.constant 643 : index
    %2737 = memref.load %arg1[%c643] : memref<712xf32, #tpu.memory_space<smem>>
    %2738 = vector.broadcast %2737 : f32 to vector<8x128xf32>
    %2739 = arith.mulf %2738, %1549 : vector<8x128xf32>
    %2740 = arith.addf %2736, %2739 : vector<8x128xf32>
    %c645 = arith.constant 645 : index
    %2741 = memref.load %arg1[%c645] : memref<712xf32, #tpu.memory_space<smem>>
    %2742 = vector.broadcast %2741 : f32 to vector<8x128xf32>
    %2743 = arith.mulf %2742, %1561 : vector<8x128xf32>
    %2744 = arith.addf %2740, %2743 : vector<8x128xf32>
    %c647 = arith.constant 647 : index
    %2745 = memref.load %arg1[%c647] : memref<712xf32, #tpu.memory_space<smem>>
    %2746 = vector.broadcast %2745 : f32 to vector<8x128xf32>
    %2747 = arith.mulf %2746, %1573 : vector<8x128xf32>
    %2748 = arith.addf %2744, %2747 : vector<8x128xf32>
    %c649 = arith.constant 649 : index
    %2749 = memref.load %arg1[%c649] : memref<712xf32, #tpu.memory_space<smem>>
    %2750 = vector.broadcast %2749 : f32 to vector<8x128xf32>
    %2751 = arith.mulf %2750, %1585 : vector<8x128xf32>
    %2752 = arith.addf %2748, %2751 : vector<8x128xf32>
    %c651 = arith.constant 651 : index
    %2753 = memref.load %arg1[%c651] : memref<712xf32, #tpu.memory_space<smem>>
    %2754 = vector.broadcast %2753 : f32 to vector<8x128xf32>
    %2755 = arith.mulf %2754, %1597 : vector<8x128xf32>
    %2756 = arith.addf %2752, %2755 : vector<8x128xf32>
    %c653 = arith.constant 653 : index
    %2757 = memref.load %arg1[%c653] : memref<712xf32, #tpu.memory_space<smem>>
    %2758 = vector.broadcast %2757 : f32 to vector<8x128xf32>
    %2759 = arith.mulf %2758, %1609 : vector<8x128xf32>
    %2760 = arith.addf %2756, %2759 : vector<8x128xf32>
    %c655 = arith.constant 655 : index
    %2761 = memref.load %arg1[%c655] : memref<712xf32, #tpu.memory_space<smem>>
    %2762 = vector.broadcast %2761 : f32 to vector<8x128xf32>
    %2763 = arith.mulf %2762, %1621 : vector<8x128xf32>
    %2764 = arith.addf %2760, %2763 : vector<8x128xf32>
    %c657 = arith.constant 657 : index
    %2765 = memref.load %arg1[%c657] : memref<712xf32, #tpu.memory_space<smem>>
    %2766 = vector.broadcast %2765 : f32 to vector<8x128xf32>
    %2767 = arith.mulf %2766, %1633 : vector<8x128xf32>
    %2768 = arith.addf %2764, %2767 : vector<8x128xf32>
    %c659 = arith.constant 659 : index
    %2769 = memref.load %arg1[%c659] : memref<712xf32, #tpu.memory_space<smem>>
    %2770 = vector.broadcast %2769 : f32 to vector<8x128xf32>
    %2771 = arith.mulf %2770, %1645 : vector<8x128xf32>
    %2772 = arith.addf %2768, %2771 : vector<8x128xf32>
    %c634 = arith.constant 634 : index
    %2773 = memref.load %arg1[%c634] : memref<712xf32, #tpu.memory_space<smem>>
    %2774 = vector.broadcast %2773 : f32 to vector<8x128xf32>
    %2775 = arith.mulf %2774, %1495 : vector<8x128xf32>
    %2776 = arith.addf %2716, %2775 : vector<8x128xf32>
    %c636 = arith.constant 636 : index
    %2777 = memref.load %arg1[%c636] : memref<712xf32, #tpu.memory_space<smem>>
    %2778 = vector.broadcast %2777 : f32 to vector<8x128xf32>
    %2779 = arith.mulf %2778, %1507 : vector<8x128xf32>
    %2780 = arith.addf %2776, %2779 : vector<8x128xf32>
    %c638 = arith.constant 638 : index
    %2781 = memref.load %arg1[%c638] : memref<712xf32, #tpu.memory_space<smem>>
    %2782 = vector.broadcast %2781 : f32 to vector<8x128xf32>
    %2783 = arith.mulf %2782, %1519 : vector<8x128xf32>
    %2784 = arith.addf %2780, %2783 : vector<8x128xf32>
    %c640 = arith.constant 640 : index
    %2785 = memref.load %arg1[%c640] : memref<712xf32, #tpu.memory_space<smem>>
    %2786 = vector.broadcast %2785 : f32 to vector<8x128xf32>
    %2787 = arith.mulf %2786, %1531 : vector<8x128xf32>
    %2788 = arith.addf %2784, %2787 : vector<8x128xf32>
    %c642 = arith.constant 642 : index
    %2789 = memref.load %arg1[%c642] : memref<712xf32, #tpu.memory_space<smem>>
    %2790 = vector.broadcast %2789 : f32 to vector<8x128xf32>
    %2791 = arith.mulf %2790, %1543 : vector<8x128xf32>
    %2792 = arith.addf %2788, %2791 : vector<8x128xf32>
    %c644 = arith.constant 644 : index
    %2793 = memref.load %arg1[%c644] : memref<712xf32, #tpu.memory_space<smem>>
    %2794 = vector.broadcast %2793 : f32 to vector<8x128xf32>
    %2795 = arith.mulf %2794, %1555 : vector<8x128xf32>
    %2796 = arith.addf %2792, %2795 : vector<8x128xf32>
    %c646 = arith.constant 646 : index
    %2797 = memref.load %arg1[%c646] : memref<712xf32, #tpu.memory_space<smem>>
    %2798 = vector.broadcast %2797 : f32 to vector<8x128xf32>
    %2799 = arith.mulf %2798, %1567 : vector<8x128xf32>
    %2800 = arith.addf %2796, %2799 : vector<8x128xf32>
    %c648 = arith.constant 648 : index
    %2801 = memref.load %arg1[%c648] : memref<712xf32, #tpu.memory_space<smem>>
    %2802 = vector.broadcast %2801 : f32 to vector<8x128xf32>
    %2803 = arith.mulf %2802, %1579 : vector<8x128xf32>
    %2804 = arith.addf %2800, %2803 : vector<8x128xf32>
    %c650 = arith.constant 650 : index
    %2805 = memref.load %arg1[%c650] : memref<712xf32, #tpu.memory_space<smem>>
    %2806 = vector.broadcast %2805 : f32 to vector<8x128xf32>
    %2807 = arith.mulf %2806, %1591 : vector<8x128xf32>
    %2808 = arith.addf %2804, %2807 : vector<8x128xf32>
    %c652 = arith.constant 652 : index
    %2809 = memref.load %arg1[%c652] : memref<712xf32, #tpu.memory_space<smem>>
    %2810 = vector.broadcast %2809 : f32 to vector<8x128xf32>
    %2811 = arith.mulf %2810, %1603 : vector<8x128xf32>
    %2812 = arith.addf %2808, %2811 : vector<8x128xf32>
    %c654 = arith.constant 654 : index
    %2813 = memref.load %arg1[%c654] : memref<712xf32, #tpu.memory_space<smem>>
    %2814 = vector.broadcast %2813 : f32 to vector<8x128xf32>
    %2815 = arith.mulf %2814, %1615 : vector<8x128xf32>
    %2816 = arith.addf %2812, %2815 : vector<8x128xf32>
    %c656 = arith.constant 656 : index
    %2817 = memref.load %arg1[%c656] : memref<712xf32, #tpu.memory_space<smem>>
    %2818 = vector.broadcast %2817 : f32 to vector<8x128xf32>
    %2819 = arith.mulf %2818, %1627 : vector<8x128xf32>
    %2820 = arith.addf %2816, %2819 : vector<8x128xf32>
    %c658 = arith.constant 658 : index
    %2821 = memref.load %arg1[%c658] : memref<712xf32, #tpu.memory_space<smem>>
    %2822 = vector.broadcast %2821 : f32 to vector<8x128xf32>
    %2823 = arith.mulf %2822, %1639 : vector<8x128xf32>
    %2824 = arith.addf %2820, %2823 : vector<8x128xf32>
    %2825 = arith.addf %2772, %2824 : vector<8x128xf32>
    %c699 = arith.constant 699 : index
    %2826 = memref.load %arg1[%c699] : memref<712xf32, #tpu.memory_space<smem>>
    %c660 = arith.constant 660 : index
    %2827 = memref.load %arg1[%c660] : memref<712xf32, #tpu.memory_space<smem>>
    %2828 = vector.broadcast %2827 : f32 to vector<8x128xf32>
    %2829 = arith.mulf %2828, %1477 : vector<8x128xf32>
    %2830 = vector.broadcast %2826 : f32 to vector<8x128xf32>
    %2831 = arith.addf %2830, %2829 : vector<8x128xf32>
    %c661 = arith.constant 661 : index
    %2832 = memref.load %arg1[%c661] : memref<712xf32, #tpu.memory_space<smem>>
    %2833 = vector.broadcast %2832 : f32 to vector<8x128xf32>
    %2834 = arith.mulf %2833, %1483 : vector<8x128xf32>
    %c662 = arith.constant 662 : index
    %2835 = memref.load %arg1[%c662] : memref<712xf32, #tpu.memory_space<smem>>
    %2836 = vector.broadcast %2835 : f32 to vector<8x128xf32>
    %2837 = arith.mulf %2836, %1489 : vector<8x128xf32>
    %2838 = arith.addf %2831, %2837 : vector<8x128xf32>
    %c664 = arith.constant 664 : index
    %2839 = memref.load %arg1[%c664] : memref<712xf32, #tpu.memory_space<smem>>
    %2840 = vector.broadcast %2839 : f32 to vector<8x128xf32>
    %2841 = arith.mulf %2840, %1501 : vector<8x128xf32>
    %2842 = arith.addf %2838, %2841 : vector<8x128xf32>
    %c666 = arith.constant 666 : index
    %2843 = memref.load %arg1[%c666] : memref<712xf32, #tpu.memory_space<smem>>
    %2844 = vector.broadcast %2843 : f32 to vector<8x128xf32>
    %2845 = arith.mulf %2844, %1513 : vector<8x128xf32>
    %2846 = arith.addf %2842, %2845 : vector<8x128xf32>
    %c668 = arith.constant 668 : index
    %2847 = memref.load %arg1[%c668] : memref<712xf32, #tpu.memory_space<smem>>
    %2848 = vector.broadcast %2847 : f32 to vector<8x128xf32>
    %2849 = arith.mulf %2848, %1525 : vector<8x128xf32>
    %2850 = arith.addf %2846, %2849 : vector<8x128xf32>
    %c670 = arith.constant 670 : index
    %2851 = memref.load %arg1[%c670] : memref<712xf32, #tpu.memory_space<smem>>
    %2852 = vector.broadcast %2851 : f32 to vector<8x128xf32>
    %2853 = arith.mulf %2852, %1537 : vector<8x128xf32>
    %2854 = arith.addf %2850, %2853 : vector<8x128xf32>
    %c672 = arith.constant 672 : index
    %2855 = memref.load %arg1[%c672] : memref<712xf32, #tpu.memory_space<smem>>
    %2856 = vector.broadcast %2855 : f32 to vector<8x128xf32>
    %2857 = arith.mulf %2856, %1549 : vector<8x128xf32>
    %2858 = arith.addf %2854, %2857 : vector<8x128xf32>
    %c674 = arith.constant 674 : index
    %2859 = memref.load %arg1[%c674] : memref<712xf32, #tpu.memory_space<smem>>
    %2860 = vector.broadcast %2859 : f32 to vector<8x128xf32>
    %2861 = arith.mulf %2860, %1561 : vector<8x128xf32>
    %2862 = arith.addf %2858, %2861 : vector<8x128xf32>
    %c676 = arith.constant 676 : index
    %2863 = memref.load %arg1[%c676] : memref<712xf32, #tpu.memory_space<smem>>
    %2864 = vector.broadcast %2863 : f32 to vector<8x128xf32>
    %2865 = arith.mulf %2864, %1573 : vector<8x128xf32>
    %2866 = arith.addf %2862, %2865 : vector<8x128xf32>
    %c678 = arith.constant 678 : index
    %2867 = memref.load %arg1[%c678] : memref<712xf32, #tpu.memory_space<smem>>
    %2868 = vector.broadcast %2867 : f32 to vector<8x128xf32>
    %2869 = arith.mulf %2868, %1585 : vector<8x128xf32>
    %2870 = arith.addf %2866, %2869 : vector<8x128xf32>
    %c680 = arith.constant 680 : index
    %2871 = memref.load %arg1[%c680] : memref<712xf32, #tpu.memory_space<smem>>
    %2872 = vector.broadcast %2871 : f32 to vector<8x128xf32>
    %2873 = arith.mulf %2872, %1597 : vector<8x128xf32>
    %2874 = arith.addf %2870, %2873 : vector<8x128xf32>
    %c682 = arith.constant 682 : index
    %2875 = memref.load %arg1[%c682] : memref<712xf32, #tpu.memory_space<smem>>
    %2876 = vector.broadcast %2875 : f32 to vector<8x128xf32>
    %2877 = arith.mulf %2876, %1609 : vector<8x128xf32>
    %2878 = arith.addf %2874, %2877 : vector<8x128xf32>
    %c684 = arith.constant 684 : index
    %2879 = memref.load %arg1[%c684] : memref<712xf32, #tpu.memory_space<smem>>
    %2880 = vector.broadcast %2879 : f32 to vector<8x128xf32>
    %2881 = arith.mulf %2880, %1621 : vector<8x128xf32>
    %2882 = arith.addf %2878, %2881 : vector<8x128xf32>
    %c686 = arith.constant 686 : index
    %2883 = memref.load %arg1[%c686] : memref<712xf32, #tpu.memory_space<smem>>
    %2884 = vector.broadcast %2883 : f32 to vector<8x128xf32>
    %2885 = arith.mulf %2884, %1633 : vector<8x128xf32>
    %2886 = arith.addf %2882, %2885 : vector<8x128xf32>
    %c688 = arith.constant 688 : index
    %2887 = memref.load %arg1[%c688] : memref<712xf32, #tpu.memory_space<smem>>
    %2888 = vector.broadcast %2887 : f32 to vector<8x128xf32>
    %2889 = arith.mulf %2888, %1645 : vector<8x128xf32>
    %2890 = arith.addf %2886, %2889 : vector<8x128xf32>
    %c663 = arith.constant 663 : index
    %2891 = memref.load %arg1[%c663] : memref<712xf32, #tpu.memory_space<smem>>
    %2892 = vector.broadcast %2891 : f32 to vector<8x128xf32>
    %2893 = arith.mulf %2892, %1495 : vector<8x128xf32>
    %2894 = arith.addf %2834, %2893 : vector<8x128xf32>
    %c665 = arith.constant 665 : index
    %2895 = memref.load %arg1[%c665] : memref<712xf32, #tpu.memory_space<smem>>
    %2896 = vector.broadcast %2895 : f32 to vector<8x128xf32>
    %2897 = arith.mulf %2896, %1507 : vector<8x128xf32>
    %2898 = arith.addf %2894, %2897 : vector<8x128xf32>
    %c667 = arith.constant 667 : index
    %2899 = memref.load %arg1[%c667] : memref<712xf32, #tpu.memory_space<smem>>
    %2900 = vector.broadcast %2899 : f32 to vector<8x128xf32>
    %2901 = arith.mulf %2900, %1519 : vector<8x128xf32>
    %2902 = arith.addf %2898, %2901 : vector<8x128xf32>
    %c669 = arith.constant 669 : index
    %2903 = memref.load %arg1[%c669] : memref<712xf32, #tpu.memory_space<smem>>
    %2904 = vector.broadcast %2903 : f32 to vector<8x128xf32>
    %2905 = arith.mulf %2904, %1531 : vector<8x128xf32>
    %2906 = arith.addf %2902, %2905 : vector<8x128xf32>
    %c671 = arith.constant 671 : index
    %2907 = memref.load %arg1[%c671] : memref<712xf32, #tpu.memory_space<smem>>
    %2908 = vector.broadcast %2907 : f32 to vector<8x128xf32>
    %2909 = arith.mulf %2908, %1543 : vector<8x128xf32>
    %2910 = arith.addf %2906, %2909 : vector<8x128xf32>
    %c673 = arith.constant 673 : index
    %2911 = memref.load %arg1[%c673] : memref<712xf32, #tpu.memory_space<smem>>
    %2912 = vector.broadcast %2911 : f32 to vector<8x128xf32>
    %2913 = arith.mulf %2912, %1555 : vector<8x128xf32>
    %2914 = arith.addf %2910, %2913 : vector<8x128xf32>
    %c675 = arith.constant 675 : index
    %2915 = memref.load %arg1[%c675] : memref<712xf32, #tpu.memory_space<smem>>
    %2916 = vector.broadcast %2915 : f32 to vector<8x128xf32>
    %2917 = arith.mulf %2916, %1567 : vector<8x128xf32>
    %2918 = arith.addf %2914, %2917 : vector<8x128xf32>
    %c677 = arith.constant 677 : index
    %2919 = memref.load %arg1[%c677] : memref<712xf32, #tpu.memory_space<smem>>
    %2920 = vector.broadcast %2919 : f32 to vector<8x128xf32>
    %2921 = arith.mulf %2920, %1579 : vector<8x128xf32>
    %2922 = arith.addf %2918, %2921 : vector<8x128xf32>
    %c679 = arith.constant 679 : index
    %2923 = memref.load %arg1[%c679] : memref<712xf32, #tpu.memory_space<smem>>
    %2924 = vector.broadcast %2923 : f32 to vector<8x128xf32>
    %2925 = arith.mulf %2924, %1591 : vector<8x128xf32>
    %2926 = arith.addf %2922, %2925 : vector<8x128xf32>
    %c681 = arith.constant 681 : index
    %2927 = memref.load %arg1[%c681] : memref<712xf32, #tpu.memory_space<smem>>
    %2928 = vector.broadcast %2927 : f32 to vector<8x128xf32>
    %2929 = arith.mulf %2928, %1603 : vector<8x128xf32>
    %2930 = arith.addf %2926, %2929 : vector<8x128xf32>
    %c683 = arith.constant 683 : index
    %2931 = memref.load %arg1[%c683] : memref<712xf32, #tpu.memory_space<smem>>
    %2932 = vector.broadcast %2931 : f32 to vector<8x128xf32>
    %2933 = arith.mulf %2932, %1615 : vector<8x128xf32>
    %2934 = arith.addf %2930, %2933 : vector<8x128xf32>
    %c685 = arith.constant 685 : index
    %2935 = memref.load %arg1[%c685] : memref<712xf32, #tpu.memory_space<smem>>
    %2936 = vector.broadcast %2935 : f32 to vector<8x128xf32>
    %2937 = arith.mulf %2936, %1627 : vector<8x128xf32>
    %2938 = arith.addf %2934, %2937 : vector<8x128xf32>
    %c687 = arith.constant 687 : index
    %2939 = memref.load %arg1[%c687] : memref<712xf32, #tpu.memory_space<smem>>
    %2940 = vector.broadcast %2939 : f32 to vector<8x128xf32>
    %2941 = arith.mulf %2940, %1639 : vector<8x128xf32>
    %2942 = arith.addf %2938, %2941 : vector<8x128xf32>
    %2943 = arith.addf %2890, %2942 : vector<8x128xf32>
    %cst_81 = arith.constant 0.000000e+00 : f32
    %2944 = vector.broadcast %cst_81 : f32 to vector<8x128xf32>
    %2945 = arith.cmpf ogt, %1763, %2944 : vector<8x128xf32>
    %2946 = math.exp %1763 : vector<8x128xf32>
    %cst_82 = arith.constant 1.000000e+00 : f32
    %2947 = vector.broadcast %cst_82 : f32 to vector<8x128xf32>
    %2948 = arith.subf %2946, %2947 : vector<8x128xf32>
    %2949 = arith.select %2945, %1763, %2948 : vector<8x128xi1>, vector<8x128xf32>
    %cst_83 = arith.constant 0.000000e+00 : f32
    %2950 = vector.broadcast %cst_83 : f32 to vector<8x128xf32>
    %2951 = arith.cmpf ogt, %1881, %2950 : vector<8x128xf32>
    %2952 = math.exp %1881 : vector<8x128xf32>
    %cst_84 = arith.constant 1.000000e+00 : f32
    %2953 = vector.broadcast %cst_84 : f32 to vector<8x128xf32>
    %2954 = arith.subf %2952, %2953 : vector<8x128xf32>
    %2955 = arith.select %2951, %1881, %2954 : vector<8x128xi1>, vector<8x128xf32>
    %cst_85 = arith.constant 0.000000e+00 : f32
    %2956 = vector.broadcast %cst_85 : f32 to vector<8x128xf32>
    %2957 = arith.cmpf ogt, %1999, %2956 : vector<8x128xf32>
    %2958 = math.exp %1999 : vector<8x128xf32>
    %cst_86 = arith.constant 1.000000e+00 : f32
    %2959 = vector.broadcast %cst_86 : f32 to vector<8x128xf32>
    %2960 = arith.subf %2958, %2959 : vector<8x128xf32>
    %2961 = arith.select %2957, %1999, %2960 : vector<8x128xi1>, vector<8x128xf32>
    %cst_87 = arith.constant 0.000000e+00 : f32
    %2962 = vector.broadcast %cst_87 : f32 to vector<8x128xf32>
    %2963 = arith.cmpf ogt, %2117, %2962 : vector<8x128xf32>
    %2964 = math.exp %2117 : vector<8x128xf32>
    %cst_88 = arith.constant 1.000000e+00 : f32
    %2965 = vector.broadcast %cst_88 : f32 to vector<8x128xf32>
    %2966 = arith.subf %2964, %2965 : vector<8x128xf32>
    %2967 = arith.select %2963, %2117, %2966 : vector<8x128xi1>, vector<8x128xf32>
    %cst_89 = arith.constant 0.000000e+00 : f32
    %2968 = vector.broadcast %cst_89 : f32 to vector<8x128xf32>
    %2969 = arith.cmpf ogt, %2235, %2968 : vector<8x128xf32>
    %2970 = math.exp %2235 : vector<8x128xf32>
    %cst_90 = arith.constant 1.000000e+00 : f32
    %2971 = vector.broadcast %cst_90 : f32 to vector<8x128xf32>
    %2972 = arith.subf %2970, %2971 : vector<8x128xf32>
    %2973 = arith.select %2969, %2235, %2972 : vector<8x128xi1>, vector<8x128xf32>
    %cst_91 = arith.constant 0.000000e+00 : f32
    %2974 = vector.broadcast %cst_91 : f32 to vector<8x128xf32>
    %2975 = arith.cmpf ogt, %2353, %2974 : vector<8x128xf32>
    %2976 = math.exp %2353 : vector<8x128xf32>
    %cst_92 = arith.constant 1.000000e+00 : f32
    %2977 = vector.broadcast %cst_92 : f32 to vector<8x128xf32>
    %2978 = arith.subf %2976, %2977 : vector<8x128xf32>
    %2979 = arith.select %2975, %2353, %2978 : vector<8x128xi1>, vector<8x128xf32>
    %cst_93 = arith.constant 0.000000e+00 : f32
    %2980 = vector.broadcast %cst_93 : f32 to vector<8x128xf32>
    %2981 = arith.cmpf ogt, %2471, %2980 : vector<8x128xf32>
    %2982 = math.exp %2471 : vector<8x128xf32>
    %cst_94 = arith.constant 1.000000e+00 : f32
    %2983 = vector.broadcast %cst_94 : f32 to vector<8x128xf32>
    %2984 = arith.subf %2982, %2983 : vector<8x128xf32>
    %2985 = arith.select %2981, %2471, %2984 : vector<8x128xi1>, vector<8x128xf32>
    %cst_95 = arith.constant 0.000000e+00 : f32
    %2986 = vector.broadcast %cst_95 : f32 to vector<8x128xf32>
    %2987 = arith.cmpf ogt, %2589, %2986 : vector<8x128xf32>
    %2988 = math.exp %2589 : vector<8x128xf32>
    %cst_96 = arith.constant 1.000000e+00 : f32
    %2989 = vector.broadcast %cst_96 : f32 to vector<8x128xf32>
    %2990 = arith.subf %2988, %2989 : vector<8x128xf32>
    %2991 = arith.select %2987, %2589, %2990 : vector<8x128xi1>, vector<8x128xf32>
    %cst_97 = arith.constant 0.000000e+00 : f32
    %2992 = vector.broadcast %cst_97 : f32 to vector<8x128xf32>
    %2993 = arith.cmpf ogt, %2707, %2992 : vector<8x128xf32>
    %2994 = math.exp %2707 : vector<8x128xf32>
    %cst_98 = arith.constant 1.000000e+00 : f32
    %2995 = vector.broadcast %cst_98 : f32 to vector<8x128xf32>
    %2996 = arith.subf %2994, %2995 : vector<8x128xf32>
    %2997 = arith.select %2993, %2707, %2996 : vector<8x128xi1>, vector<8x128xf32>
    %cst_99 = arith.constant 0.000000e+00 : f32
    %2998 = vector.broadcast %cst_99 : f32 to vector<8x128xf32>
    %2999 = arith.cmpf ogt, %2825, %2998 : vector<8x128xf32>
    %3000 = math.exp %2825 : vector<8x128xf32>
    %cst_100 = arith.constant 1.000000e+00 : f32
    %3001 = vector.broadcast %cst_100 : f32 to vector<8x128xf32>
    %3002 = arith.subf %3000, %3001 : vector<8x128xf32>
    %3003 = arith.select %2999, %2825, %3002 : vector<8x128xi1>, vector<8x128xf32>
    %cst_101 = arith.constant 0.000000e+00 : f32
    %3004 = vector.broadcast %cst_101 : f32 to vector<8x128xf32>
    %3005 = arith.cmpf ogt, %2943, %3004 : vector<8x128xf32>
    %3006 = math.exp %2943 : vector<8x128xf32>
    %cst_102 = arith.constant 1.000000e+00 : f32
    %3007 = vector.broadcast %cst_102 : f32 to vector<8x128xf32>
    %3008 = arith.subf %3006, %3007 : vector<8x128xf32>
    %3009 = arith.select %3005, %2943, %3008 : vector<8x128xi1>, vector<8x128xf32>
    %c711 = arith.constant 711 : index
    %3010 = memref.load %arg1[%c711] : memref<712xf32, #tpu.memory_space<smem>>
    %c700 = arith.constant 700 : index
    %3011 = memref.load %arg1[%c700] : memref<712xf32, #tpu.memory_space<smem>>
    %3012 = vector.broadcast %3011 : f32 to vector<8x128xf32>
    %3013 = arith.mulf %3012, %2949 : vector<8x128xf32>
    %3014 = vector.broadcast %3010 : f32 to vector<8x128xf32>
    %3015 = arith.addf %3014, %3013 : vector<8x128xf32>
    %c701 = arith.constant 701 : index
    %3016 = memref.load %arg1[%c701] : memref<712xf32, #tpu.memory_space<smem>>
    %3017 = vector.broadcast %3016 : f32 to vector<8x128xf32>
    %3018 = arith.mulf %3017, %2955 : vector<8x128xf32>
    %c702 = arith.constant 702 : index
    %3019 = memref.load %arg1[%c702] : memref<712xf32, #tpu.memory_space<smem>>
    %3020 = vector.broadcast %3019 : f32 to vector<8x128xf32>
    %3021 = arith.mulf %3020, %2961 : vector<8x128xf32>
    %3022 = arith.addf %3015, %3021 : vector<8x128xf32>
    %c704 = arith.constant 704 : index
    %3023 = memref.load %arg1[%c704] : memref<712xf32, #tpu.memory_space<smem>>
    %3024 = vector.broadcast %3023 : f32 to vector<8x128xf32>
    %3025 = arith.mulf %3024, %2973 : vector<8x128xf32>
    %3026 = arith.addf %3022, %3025 : vector<8x128xf32>
    %c706 = arith.constant 706 : index
    %3027 = memref.load %arg1[%c706] : memref<712xf32, #tpu.memory_space<smem>>
    %3028 = vector.broadcast %3027 : f32 to vector<8x128xf32>
    %3029 = arith.mulf %3028, %2985 : vector<8x128xf32>
    %3030 = arith.addf %3026, %3029 : vector<8x128xf32>
    %c708 = arith.constant 708 : index
    %3031 = memref.load %arg1[%c708] : memref<712xf32, #tpu.memory_space<smem>>
    %3032 = vector.broadcast %3031 : f32 to vector<8x128xf32>
    %3033 = arith.mulf %3032, %2997 : vector<8x128xf32>
    %3034 = arith.addf %3030, %3033 : vector<8x128xf32>
    %c710 = arith.constant 710 : index
    %3035 = memref.load %arg1[%c710] : memref<712xf32, #tpu.memory_space<smem>>
    %3036 = vector.broadcast %3035 : f32 to vector<8x128xf32>
    %3037 = arith.mulf %3036, %3009 : vector<8x128xf32>
    %3038 = arith.addf %3034, %3037 : vector<8x128xf32>
    %c703 = arith.constant 703 : index
    %3039 = memref.load %arg1[%c703] : memref<712xf32, #tpu.memory_space<smem>>
    %3040 = vector.broadcast %3039 : f32 to vector<8x128xf32>
    %3041 = arith.mulf %3040, %2967 : vector<8x128xf32>
    %3042 = arith.addf %3018, %3041 : vector<8x128xf32>
    %c705 = arith.constant 705 : index
    %3043 = memref.load %arg1[%c705] : memref<712xf32, #tpu.memory_space<smem>>
    %3044 = vector.broadcast %3043 : f32 to vector<8x128xf32>
    %3045 = arith.mulf %3044, %2979 : vector<8x128xf32>
    %3046 = arith.addf %3042, %3045 : vector<8x128xf32>
    %c707 = arith.constant 707 : index
    %3047 = memref.load %arg1[%c707] : memref<712xf32, #tpu.memory_space<smem>>
    %3048 = vector.broadcast %3047 : f32 to vector<8x128xf32>
    %3049 = arith.mulf %3048, %2991 : vector<8x128xf32>
    %3050 = arith.addf %3046, %3049 : vector<8x128xf32>
    %c709 = arith.constant 709 : index
    %3051 = memref.load %arg1[%c709] : memref<712xf32, #tpu.memory_space<smem>>
    %3052 = vector.broadcast %3051 : f32 to vector<8x128xf32>
    %3053 = arith.mulf %3052, %3003 : vector<8x128xf32>
    %3054 = arith.addf %3050, %3053 : vector<8x128xf32>
    %3055 = arith.addf %3038, %3054 : vector<8x128xf32>
    %cst_103 = arith.constant 0.000000e+00 : f32
    %3056 = vector.broadcast %cst_103 : f32 to vector<8x128xf32>
    %3057 = arith.subf %3056, %3055 : vector<8x128xf32>
    %3058 = math.exp %3057 : vector<8x128xf32>
    %cst_104 = arith.constant 1.000000e+00 : f32
    %3059 = vector.broadcast %cst_104 : f32 to vector<8x128xf32>
    %3060 = arith.addf %3059, %3058 : vector<8x128xf32>
    %cst_105 = arith.constant 1.000000e+00 : f32
    %3061 = vector.broadcast %cst_105 : f32 to vector<8x128xf32>
    %3062 = arith.divf %3061, %3060 : vector<8x128xf32>
    %3063 = arith.index_cast %3 : i32 to index
    %c0_106 = arith.constant 0 : index
    %3064 = vector.load %arg3[%3063, %c0_106] : memref<8x128xf32, #tpu.memory_space<vmem>>, vector<8x128xf32>
    tpu.vector_store %arg3[%3063, %c0_106], %3062 {strides = array<i32>} : memref<8x128xf32, #tpu.memory_space<vmem>>, vector<8x128xf32>,
    %c1_i32_107 = arith.constant 1 : i32
    return
  }
  func.func @transform_0(%arg0: i32) -> i32 {
    %c0_i32 = arith.constant 0 : i32
    %c0_i32_0 = arith.constant 0 : i32
    return %c0_i32 : i32
  }
  func.func @transform_1(%arg0: i32) -> (i32, i32) {
    %c0_i32 = arith.constant 0 : i32
    %c0_i32_0 = arith.constant 0 : i32
    return %arg0, %c0_i32 : i32, i32
  }
  func.func @transform_2(%arg0: i32) -> (i32, i32) {
    %c0_i32 = arith.constant 0 : i32
    %c0_i32_0 = arith.constant 0 : i32
    return %arg0, %c0_i32 : i32, i32
  }
}

</mosaic_0001>

<bundles_post_ra>
// kernel: tpu_custom_call.1
= control target key start
LH: loop header
LB: loop body
LE: loop exit
PB: predicated region body
PF: predicated region fallthrough
CT: control target
= control target key end

     0   :  { %s7355_s0 = inlined_call_operand.hbm [shape: f32[712], index: 0, kind: input, shape index: {}]   ;;  %s7356_s1 = inlined_call_operand.hbm [shape: f32[8,128], index: 1, kind: input, shape index: {}]   ;;  %s7357_s2 = inlined_call_operand.hbm [shape: f32[8,128], index: 2, kind: output, shape index: {}]  }
   0x1   :  { %7371 = sst [smem:[#allocation152_spill]] %s7357_s2 }
   0x2   :  { %7 = vsyncpa [#allocation5], 0 }
   0x3   :  { %8 = vsyncpa [#allocation3], 0 }
   0x4   :  { %9 = vsyncpa [#allocation4], 0  ;;  %s3983_s9 = smov [#allocation2]   ;;  %s3984_s12 = smov [#allocation6]  }
   0x5   :  { %17 = dma.hbm_to_smem %s7355_s0, 96, %s3983_s9, [#allocation5]  }
   0x6   :  { %s24_s13 = sshll.u32 %s3984_s12, 4  ;;  %s25_s13 = int_to_ptr.vmem [resolvable:$true] %s24_s13 }
   0x7   :  { %s3945_s14 = scalar_lea.vmem %s25_s13, 128  ;;  %p3950_p1 = scmp.lt.s32.totalorder %s25_s13, %s25_s13 }
   0x8   :  { %p3946_p0 = scmp.ne.s32.totalorder %s25_s13, %s3945_s14  ;;  %p3951_p2 = scmp.lt.s32.totalorder %s3945_s14, %s3945_s14 }
   0xa   :  { %p3952_p3 = por %p3951_p2, %p3950_p1 }
   0xc   :  { %p3953_p4 = pnand %p3952_p3, %p3946_p0 }
   0xe   :  { %3956 = shalt.err (!%p3953_p4)
}
   0xf   :  { %27 = dma.hbm_to_vmem [thread:$0]  %s7356_s1, 128, %s25_s13, [#allocation3]  }
  0x10   :  { %3977 = dma.done.wait [#allocation5], 96  }
  0x11   :  { %3978 = vsyncadd [#allocation5], 4294967200 }
  0x12   :  { %3979 = dma.done.wait [#allocation3], 128  }
  0x13   :  { %3980 = vsyncadd [#allocation3], 4294967168 }
  0x14   :  { %34 = sfence }
  0x15   :  { %s4007_s0 = sld [smem:[#allocation2 + $0xb]]  ;;  %v4283_v0 = vld [vmem:[#allocation6] sm:$0xff] }
  0x16   :  { %s4009_s17 = sld [smem:[#allocation2]] }
  0x17   :  { %s4011_s18 = sld [smem:[#allocation2 + $0xc]] }
  0x18   :  { %s4013_s19 = sld [smem:[#allocation2 + $0x1]] }
  0x19   :  { %s4015_s20 = sld [smem:[#allocation2 + $0xd]] }
  0x1a   :  { %s4017_s21 = sld [smem:[#allocation2 + $0x2]] }
  0x1b   :  { %s4019_s22 = sld [smem:[#allocation2 + $0xe]]  ;;  %v40_v5 = vstv %s4007_s0 }
  0x1c   :  { %s4021_s1 = sld [smem:[#allocation2 + $0x3]]  ;;  %v38_v1 = vstv %s4009_s17 }
  0x1d   :  { %s4023_s23 = sld [smem:[#allocation2 + $0xf]]  ;;  %v39_v3 = vmul.f32 %v38_v1, %v4283_v0  ;;  %v46_v8 = vstv %s4011_s18 }
  0x1e   :  { %s4025_s24 = sld [smem:[#allocation2 + $0x4]]  ;;  %v44_v2 = vstv %s4013_s19 }
  0x1f   :  { %s4027_s25 = sld [smem:[#allocation2 + $0x10]]  ;;  %v45_v7 = vmul.f32 %v44_v2, %v4283_v0  ;;  %v4308_v10 = vadd.f32 %v40_v5, %v39_v3  ;;  %v52_v11 = vstv %s4015_s20 }
  0x20   :  { %s4029_s26 = sld [smem:[#allocation2 + $0x5]]  ;;  %v50_v4 = vstv %s4017_s21 }
  0x21   :  { %s4031_s27 = sld [smem:[#allocation2 + $0x11]]  ;;  %v51_v9 = vmul.f32 %v50_v4, %v4283_v0  ;;  %v58_v13 = vstv %s4019_s22  ;;  %v4318_v15 = vadd.f32 %v46_v8, %v45_v7  ;;  %v103_v20 = vmul.f32 1.442695, %v4308_v10 }
  0x22   :  { %s4033_s28 = sld [smem:[#allocation2 + $0x6]]  ;;  %v56_v6 = vstv %s4021_s1  ;;  %vm102_vm0 = vcmp.gt.f32.partialorder %v4308_v10, 0.0 }
  0x23   :  { %s4035_s29 = sld [smem:[#allocation2 + $0x12]]  ;;  %v57_v12 = vmul.f32 %v56_v6, %v4283_v0  ;;  %v4323_v17 = vadd.f32 %v52_v11, %v51_v9  ;;  %v64_v21 = vstv %s4023_s23  ;;  %v108_v25 = vmul.f32 1.442695, %v4318_v15 }
  0x24   :  { %s4037_s30 = sld [smem:[#allocation2 + $0x7]]  ;;  %v62_v14 = vstv %s4025_s24  ;;  %3823 = vpow2.f32 %v103_v20  ;;  %vm107_vm1 = vcmp.gt.f32.partialorder %v4318_v15, 0.0 }
  0x25   :  { %s4039_s3 = sld [smem:[#allocation2 + $0x13]]  ;;  %v4327_v18 = vadd.f32 %v58_v13, %v57_v12  ;;  %v63_v19 = vmul.f32 %v62_v14, %v4283_v0  ;;  %v70_v24 = vstv %s4027_s25  ;;  %v113_v27 = vmul.f32 1.442695, %v4323_v17 }
  0x26   :  { %s4041_s4 = sld [smem:[#allocation2 + $0x8]]  ;;  %v68_v16 = vstv %s4029_s26  ;;  %3825 = vpow2.f32 %v108_v25  ;;  %vm112_vm2 = vcmp.gt.f32.partialorder %v4323_v17, 0.0 }
  0x27   :  { %s4043_s5 = sld [smem:[#allocation2 + $0x14]]  ;;  %v69_v22 = vmul.f32 %v68_v16, %v4283_v0  ;;  %v4346_v28 = vadd.f32 %v64_v21, %v63_v19  ;;  %v118_v30 = vmul.f32 1.442695, %v4327_v18  ;;  %v76_v32 = vstv %s4031_s27 }
  0x28   :  { %s4045_s6 = sld [smem:[#allocation2 + $0x9]]  ;;  %v74_v23 = vstv %s4033_s28  ;;  %3827 = vpow2.f32 %v113_v27  ;;  %vm117_vm3 = vcmp.gt.f32.partialorder %v4327_v18, 0.0 }
  0x29   :  { %s4047_s7 = sld [smem:[#allocation2 + $0x15]]  ;;  %v75_v29 = vmul.f32 %v74_v23, %v4283_v0  ;;  %v4352_v31 = vadd.f32 %v70_v24, %v69_v22  ;;  %v82_v35 = vstv %s4035_s29  ;;  %3829 = vpow2.f32 %v118_v30 }
  0x2a   :  { %s4049_s8 = sld [smem:[#allocation2 + $0xa]]  ;;  %v80_v26 = vstv %s4037_s30  ;;  %v123_v38 = vmul.f32 1.442695, %v4346_v28  ;;  %vm122_vm4 = vcmp.gt.f32.partialorder %v4346_v28, 0.0 }
  0x2b   :  { %s4051_s9 = sld [smem:[#allocation2 + $0x155]]  ;;  %v81_v34 = vmul.f32 %v80_v26, %v4283_v0  ;;  %v4364_v36 = vadd.f32 %v76_v32, %v75_v29  ;;  %v88_v39 = vstv %s4039_s3  ;;  %v128_v40 = vmul.f32 1.442695, %v4352_v31 }
  0x2c   :  { %s4053_s10 = sld [smem:[#allocation2 + $0x16]]  ;;  %v86_v33 = vstv %s4041_s4  ;;  %3831 = vpow2.f32 %v123_v38  ;;  %vm127_vm5 = vcmp.gt.f32.partialorder %v4352_v31, 0.0 }
  0x2d   :  { %s4055_s11 = sld [smem:[#allocation2 + $0x17]]  ;;  %v87_v37 = vmul.f32 %v86_v33, %v4283_v0  ;;  %v4374_v41 = vadd.f32 %v82_v35, %v81_v34  ;;  %v133_v44 = vmul.f32 1.442695, %v4364_v36  ;;  %3833 = vpow2.f32 %v128_v40 }
  0x2e   :  { %s4057_s12 = sld [smem:[#allocation2 + $0x18]]  ;;  %v92_v42 = vstv %s4045_s6  ;;  %v94_v46 = vstv %s4043_s5  ;;  %vm132_vm6 = vcmp.gt.f32.partialorder %v4364_v36, 0.0 }
  0x2f   :  { %7372 = sst [smem:[#allocation11_spill]] %s4047_s7  ;;  %v4381_v43 = vadd.f32 %v88_v39, %v87_v37  ;;  %v93_v45 = vmul.f32 %v92_v42, %v4283_v0  ;;  %v138_v48 = vmul.f32 1.442695, %v4374_v41  ;;  %3835 = vpow2.f32 %v133_v44 }
  0x30   :  { %7373 = sst [smem:[#allocation12_spill]] %s4049_s8  ;;  %vm137_vm7 = vcmp.gt.f32.partialorder %v4374_v41, 0.0 }
  0x31   :  { %7374 = sst [smem:[#allocation13_spill]] %s4051_s9  ;;  %v143_v49 = vmul.f32 1.442695, %v4381_v43  ;;  %v3824_v50 = vpop.eup %3823  ;;  %v4399_v51 = vadd.f32 %v94_v46, %v93_v45  ;;  %3837 = vpow2.f32 %v138_v48  ;;  %vm142_vm8 = vcmp.gt.f32.partialorder %v4381_v43, 0.0 }
  0x32   :  { %7375 = sst [smem:[#allocation14_spill]] %s4053_s10  ;;  %v3079_v56 = vadd.f32 -1.0, %v3824_v50 }
  0x33   :  { %7376 = sst [smem:[#allocation15_spill]] %s4055_s11  ;;  %v3826_v54 = vpop.eup %3825  ;;  %3839 = vpow2.f32 %v143_v49  ;;  %v148_v59 = vmul.f32 1.442695, %v4399_v51  ;;  %vm147_vm9 = vcmp.gt.f32.partialorder %v4399_v51, 0.0 }
  0x34   :  { %7377 = sst [smem:[#allocation16_spill]] %s4057_s12  ;;  %v3080_v60 = vadd.f32 -1.0, %v3826_v54  ;;  %v4423_v61 = vsel %vm102_vm0, %v4308_v10, %v3079_v56 }
  0x35   :  { %s4059_s13 = sld [smem:[#allocation2 + $0x1a]]  ;;  %v3828_v55 = vpop.eup %3827  ;;  %3841 = vpow2.f32 %v148_v59 }
  0x36   :  { %s4061_s14 = sld [smem:[#allocation2 + $0x1c]]  ;;  %v3830_v57 = vpop.eup %3829  ;;  %v3081_v62 = vadd.f32 -1.0, %v3828_v55  ;;  %v4439_v5 = vsel %vm107_vm1, %v4318_v15, %v3080_v60 }
  0x37   :  { %s4063_s15 = sld [smem:[#allocation2 + $0x1e]]  ;;  %v3082_v63 = vadd.f32 -1.0, %v3830_v57 }
  0x38   :  { %s4065_s16 = sld [smem:[#allocation2 + $0x20]]  ;;  %v4447_v9 = vsel %vm112_vm2, %v4323_v17, %v3081_v62 }
  0x39   :  { %s4067_s2 = sld [smem:[#allocation2 + $0x19]]  ;;  %v3832_v1 = vpop.eup %3831  ;;  %v4450_v10 = vsel %vm117_vm3, %v4327_v18, %v3082_v63 }
  0x3a   :  { %s4069_s7 = sld [smem:[#allocation2 + $0x1b]]  ;;  %v3834_v3 = vpop.eup %3833  ;;  %v3083_v11 = vadd.f32 -1.0, %v3832_v1 }
  0x3b   :  { %7378 = sst [smem:[#allocation17_spill]] %s4059_s13  ;;  %v3084_v14 = vadd.f32 -1.0, %v3834_v3 }
  0x3c   :  { %7379 = sst [smem:[#allocation18_spill]] %s4061_s14  ;;  %v3836_v13 = vpop.eup %3835  ;;  %v4467_v20 = vsel %vm122_vm4, %v4346_v28, %v3083_v11 }
  0x3d   :  { %7380 = sst [smem:[#allocation19_spill]] %s4063_s15  ;;  %v3085_v21 = vadd.f32 -1.0, %v3836_v13  ;;  %v4473_v24 = vsel %vm127_vm5, %v4352_v31, %v3084_v14 }
  0x3e   :  { %7381 = sst [smem:[#allocation20_spill]] %s4065_s16  ;;  %v3838_v15 = vpop.eup %3837 }
  0x3f   :  { %7382 = sst [smem:[#allocation21_spill]] %s4067_s2  ;;  %v3086_v27 = vadd.f32 -1.0, %v3838_v15  ;;  %v4488_v32 = vsel %vm132_vm6, %v4364_v36, %v3085_v21 }
  0x40   :  { %7383 = sst [smem:[#allocation22_spill]] %s4069_s7  ;;  %v3840_v23 = vpop.eup %3839 }
  0x41   :  { %s4071_s8 = sld [smem:[#allocation2 + $0x1d]]  ;;  %v3087_v33 = vadd.f32 -1.0, %v3840_v23  ;;  %v4503_v36 = vsel %vm137_vm7, %v4374_v41, %v3086_v27 }
  0x42   :  { %s4073_s9 = sld [smem:[#allocation2 + $0x1f]]  ;;  %v3842_v39 = vpop.eup %3841 }
  0x43   :  { %s4075_s10 = sld [smem:[#allocation2 + $0x156]]  ;;  %v4518_v41 = vsel %vm142_vm8, %v4381_v43, %v3087_v33 }
  0x44   :  { %s4077_s11 = sld [smem:[#allocation2 + $0x21]] }
  0x45   :  { %s4079_s12 = sld [smem:[#allocation2 + $0x22]] }
  0x46   :  { %s4081_s13 = sld [smem:[#allocation2 + $0x23]] }
  0x47   :  { %7384 = sst [smem:[#allocation23_spill]] %s4071_s8 }
  0x48   :  { %7385 = sst [smem:[#allocation24_spill]] %s4073_s9 }
  0x49   :  { %7386 = sst [smem:[#allocation25_spill]] %s4075_s10 }
  0x4a   :  { %7387 = sst [smem:[#allocation26_spill]] %s4077_s11 }
  0x4b   :  { %7388 = sst [smem:[#allocation27_spill]] %s4079_s12 }
  0x4c   :  { %7389 = sst [smem:[#allocation28_spill]] %s4081_s13 }
  0x4d   :  { %s4083_s14 = sld [smem:[#allocation2 + $0x25]] }
  0x4e   :  { %s4085_s15 = sld [smem:[#allocation2 + $0x27]] }
  0x4f   :  { %s4087_s16 = sld [smem:[#allocation2 + $0x29]] }
  0x50   :  { %s4089_s2 = sld [smem:[#allocation2 + $0x2b]] }
  0x51   :  { %s4091_s7 = sld [smem:[#allocation2 + $0x24]] }
  0x52   :  { %s4093_s8 = sld [smem:[#allocation2 + $0x26]] }
  0x53   :  { %7390 = sst [smem:[#allocation29_spill]] %s4083_s14 }
  0x54   :  { %7391 = sst [smem:[#allocation30_spill]] %s4085_s15 }
  0x55   :  { %7392 = sst [smem:[#allocation31_spill]] %s4087_s16 }
  0x56   :  { %7393 = sst [smem:[#allocation32_spill]] %s4089_s2 }
  0x57   :  { %7394 = sst [smem:[#allocation33_spill]] %s4091_s7 }
  0x58   :  { %7395 = sst [smem:[#allocation34_spill]] %s4093_s8 }
  0x59   :  { %s4095_s9 = sld [smem:[#allocation2 + $0x28]] }
  0x5a   :  { %s4097_s10 = sld [smem:[#allocation2 + $0x2a]] }
  0x5b   :  { %s4099_s11 = sld [smem:[#allocation2 + $0x157]] }
  0x5c   :  { %s4101_s12 = sld [smem:[#allocation2 + $0x2c]] }
  0x5d   :  { %s4103_s13 = sld [smem:[#allocation2 + $0x2d]] }
  0x5e   :  { %s4105_s14 = sld [smem:[#allocation2 + $0x2e]] }
  0x5f   :  { %7396 = sst [smem:[#allocation35_spill]] %s4095_s9 }
  0x60   :  { %7397 = sst [smem:[#allocation36_spill]] %s4097_s10 }
  0x61   :  { %7398 = sst [smem:[#allocation37_spill]] %s4099_s11 }
  0x62   :  { %7399 = sst [smem:[#allocation38_spill]] %s4101_s12 }
  0x63   :  { %7400 = sst [smem:[#allocation39_spill]] %s4103_s13 }
  0x64   :  { %7401 = sst [smem:[#allocation40_spill]] %s4105_s14 }
  0x65   :  { %s4107_s15 = sld [smem:[#allocation2 + $0x30]] }
  0x66   :  { %s4109_s16 = sld [smem:[#allocation2 + $0x32]] }
  0x67   :  { %s4111_s2 = sld [smem:[#allocation2 + $0x34]] }
  0x68   :  { %s4113_s7 = sld [smem:[#allocation2 + $0x36]] }
  0x69   :  { %s4115_s8 = sld [smem:[#allocation2 + $0x2f]] }
  0x6a   :  { %s4117_s9 = sld [smem:[#allocation2 + $0x31]] }
  0x6b   :  { %7402 = sst [smem:[#allocation41_spill]] %s4107_s15 }
  0x6c   :  { %7403 = sst [smem:[#allocation42_spill]] %s4109_s16 }
  0x6d   :  { %7404 = sst [smem:[#allocation43_spill]] %s4111_s2 }
  0x6e   :  { %7405 = sst [smem:[#allocation44_spill]] %s4113_s7 }
  0x6f   :  { %7406 = sst [smem:[#allocation45_spill]] %s4115_s8 }
  0x70   :  { %7407 = sst [smem:[#allocation46_spill]] %s4117_s9 }
  0x71   :  { %s4119_s10 = sld [smem:[#allocation2 + $0x33]] }
  0x72   :  { %s4121_s11 = sld [smem:[#allocation2 + $0x35]] }
  0x73   :  { %s4123_s12 = sld [smem:[#allocation2 + $0x158]] }
  0x74   :  { %s4125_s13 = sld [smem:[#allocation2 + $0x37]] }
  0x75   :  { %s4127_s14 = sld [smem:[#allocation2 + $0x38]] }
  0x76   :  { %s4129_s15 = sld [smem:[#allocation2 + $0x39]] }
  0x77   :  { %7408 = sst [smem:[#allocation47_spill]] %s4119_s10 }
  0x78   :  { %7409 = sst [smem:[#allocation48_spill]] %s4121_s11 }
  0x79   :  { %7410 = sst [smem:[#allocation49_spill]] %s4123_s12 }
  0x7a   :  { %7411 = sst [smem:[#allocation50_spill]] %s4125_s13 }
  0x7b   :  { %7412 = sst [smem:[#allocation51_spill]] %s4127_s14 }
  0x7c   :  { %7413 = sst [smem:[#allocation52_spill]] %s4129_s15 }
  0x7d   :  { %s4131_s16 = sld [smem:[#allocation2 + $0x3b]] }
  0x7e   :  { %s4133_s2 = sld [smem:[#allocation2 + $0x3d]] }
  0x7f   :  { %s4135_s7 = sld [smem:[#allocation2 + $0x3f]] }
  0x80   :  { %s4137_s8 = sld [smem:[#allocation2 + $0x41]] }
  0x81   :  { %s4139_s9 = sld [smem:[#allocation2 + $0x3a]] }
  0x82   :  { %s4141_s10 = sld [smem:[#allocation2 + $0x3c]] }
  0x83   :  { %7414 = sst [smem:[#allocation53_spill]] %s4131_s16 }
  0x84   :  { %7415 = sst [smem:[#allocation54_spill]] %s4133_s2 }
  0x85   :  { %7416 = sst [smem:[#allocation55_spill]] %s4135_s7 }
  0x86   :  { %7417 = sst [smem:[#allocation56_spill]] %s4137_s8 }
  0x87   :  { %7418 = sst [smem:[#allocation57_spill]] %s4139_s9 }
  0x88   :  { %7419 = sst [smem:[#allocation58_spill]] %s4141_s10 }
  0x89   :  { %s4143_s11 = sld [smem:[#allocation2 + $0x3e]] }
  0x8a   :  { %s4145_s12 = sld [smem:[#allocation2 + $0x40]] }
  0x8b   :  { %s4147_s13 = sld [smem:[#allocation2 + $0x159]] }
  0x8c   :  { %s4149_s14 = sld [smem:[#allocation2 + $0x42]] }
  0x8d   :  { %s4151_s15 = sld [smem:[#allocation2 + $0x43]] }
  0x8e   :  { %s4153_s16 = sld [smem:[#allocation2 + $0x44]] }
  0x8f   :  { %7420 = sst [smem:[#allocation59_spill]] %s4143_s11 }
  0x90   :  { %7421 = sst [smem:[#allocation60_spill]] %s4145_s12 }
  0x91   :  { %7422 = sst [smem:[#allocation61_spill]] %s4147_s13 }
  0x92   :  { %7423 = sst [smem:[#allocation62_spill]] %s4149_s14 }
  0x93   :  { %7424 = sst [smem:[#allocation63_spill]] %s4151_s15 }
  0x94   :  { %7425 = sst [smem:[#allocation64_spill]] %s4153_s16 }
  0x95   :  { %s4155_s2 = sld [smem:[#allocation2 + $0x46]] }
  0x96   :  { %s4157_s7 = sld [smem:[#allocation2 + $0x48]] }
  0x97   :  { %s4159_s8 = sld [smem:[#allocation2 + $0x4a]] }
  0x98   :  { %s4161_s9 = sld [smem:[#allocation2 + $0x4c]] }
  0x99   :  { %s4163_s10 = sld [smem:[#allocation2 + $0x45]] }
  0x9a   :  { %s4165_s11 = sld [smem:[#allocation2 + $0x47]] }
  0x9b   :  { %7426 = sst [smem:[#allocation65_spill]] %s4155_s2 }
  0x9c   :  { %7427 = sst [smem:[#allocation66_spill]] %s4157_s7 }
  0x9d   :  { %7428 = sst [smem:[#allocation67_spill]] %s4159_s8 }
  0x9e   :  { %7429 = sst [smem:[#allocation68_spill]] %s4161_s9 }
  0x9f   :  { %7430 = sst [smem:[#allocation69_spill]] %s4163_s10 }
  0xa0   :  { %7431 = sst [smem:[#allocation70_spill]] %s4165_s11 }
  0xa1   :  { %s4167_s12 = sld [smem:[#allocation2 + $0x49]] }
  0xa2   :  { %s4169_s13 = sld [smem:[#allocation2 + $0x4b]] }
  0xa3   :  { %s4171_s14 = sld [smem:[#allocation2 + $0x15a]] }
  0xa4   :  { %s4173_s15 = sld [smem:[#allocation2 + $0x4d]] }
  0xa5   :  { %s4175_s16 = sld [smem:[#allocation2 + $0x4e]] }
  0xa6   :  { %s4177_s2 = sld [smem:[#allocation2 + $0x4f]] }
  0xa7   :  { %7432 = sst [smem:[#allocation71_spill]] %s4167_s12 }
  0xa8   :  { %7433 = sst [smem:[#allocation72_spill]] %s4169_s13 }
  0xa9   :  { %7434 = sst [smem:[#allocation73_spill]] %s4171_s14 }
  0xaa   :  { %7435 = sst [smem:[#allocation74_spill]] %s4173_s15 }
  0xab   :  { %7436 = sst [smem:[#allocation75_spill]] %s4175_s16 }
  0xac   :  { %7437 = sst [smem:[#allocation76_spill]] %s4177_s2 }
  0xad   :  { %s4179_s7 = sld [smem:[#allocation2 + $0x51]] }
  0xae   :  { %s4181_s8 = sld [smem:[#allocation2 + $0x53]] }
  0xaf   :  { %s4183_s9 = sld [smem:[#allocation2 + $0x55]] }
  0xb0   :  { %s4185_s10 = sld [smem:[#allocation2 + $0x57]] }
  0xb1   :  { %s4187_s11 = sld [smem:[#allocation2 + $0x50]] }
  0xb2   :  { %s4189_s12 = sld [smem:[#allocation2 + $0x52]] }
  0xb3   :  { %7438 = sst [smem:[#allocation77_spill]] %s4179_s7 }
  0xb4   :  { %7439 = sst [smem:[#allocation78_spill]] %s4181_s8 }
  0xb5   :  { %7440 = sst [smem:[#allocation79_spill]] %s4183_s9 }
  0xb6   :  { %7441 = sst [smem:[#allocation80_spill]] %s4185_s10 }
  0xb7   :  { %7442 = sst [smem:[#allocation81_spill]] %s4187_s11 }
  0xb8   :  { %7443 = sst [smem:[#allocation82_spill]] %s4189_s12 }
  0xb9   :  { %s4191_s13 = sld [smem:[#allocation2 + $0x54]] }
  0xba   :  { %s4193_s14 = sld [smem:[#allocation2 + $0x56]] }
  0xbb   :  { %s4195_s15 = sld [smem:[#allocation2 + $0x15b]] }
  0xbc   :  { %s4197_s16 = sld [smem:[#allocation2 + $0x58]] }
  0xbd   :  { %s4199_s2 = sld [smem:[#allocation2 + $0x59]] }
  0xbe   :  { %s4201_s7 = sld [smem:[#allocation2 + $0x5a]] }
  0xbf   :  { %7444 = sst [smem:[#allocation83_spill]] %s4191_s13 }
  0xc0   :  { %7445 = sst [smem:[#allocation84_spill]] %s4193_s14 }
  0xc1   :  { %7446 = sst [smem:[#allocation85_spill]] %s4195_s15 }
  0xc2   :  { %7447 = sst [smem:[#allocation86_spill]] %s4197_s16 }
  0xc3   :  { %7448 = sst [smem:[#allocation87_spill]] %s4199_s2 }
  0xc4   :  { %7449 = sst [smem:[#allocation88_spill]] %s4201_s7 }
  0xc5   :  { %s4203_s8 = sld [smem:[#allocation2 + $0x5c]] }
  0xc6   :  { %s4205_s9 = sld [smem:[#allocation2 + $0x5e]] }
  0xc7   :  { %s4207_s10 = sld [smem:[#allocation2 + $0x60]] }
  0xc8   :  { %s4209_s11 = sld [smem:[#allocation2 + $0x62]] }
  0xc9   :  { %s4211_s12 = sld [smem:[#allocation2 + $0x5b]] }
  0xca   :  { %s4213_s13 = sld [smem:[#allocation2 + $0x5d]] }
  0xcb   :  { %7450 = sst [smem:[#allocation89_spill]] %s4203_s8 }
  0xcc   :  { %7451 = sst [smem:[#allocation90_spill]] %s4205_s9 }
  0xcd   :  { %7452 = sst [smem:[#allocation91_spill]] %s4207_s10 }
  0xce   :  { %7453 = sst [smem:[#allocation92_spill]] %s4209_s11 }
  0xcf   :  { %7454 = sst [smem:[#allocation93_spill]] %s4211_s12 }
  0xd0   :  { %7455 = sst [smem:[#allocation94_spill]] %s4213_s13 }
  0xd1   :  { %s4215_s14 = sld [smem:[#allocation2 + $0x5f]] }
  0xd2   :  { %s4217_s15 = sld [smem:[#allocation2 + $0x61]] }
  0xd3   :  { %s4219_s16 = sld [smem:[#allocation2 + $0x15c]] }
  0xd4   :  { %s4221_s2 = sld [smem:[#allocation2 + $0x63]] }
  0xd5   :  { %s4223_s7 = sld [smem:[#allocation2 + $0x64]] }
  0xd6   :  { %s4225_s8 = sld [smem:[#allocation2 + $0x65]] }
  0xd7   :  { %7456 = sst [smem:[#allocation95_spill]] %s4215_s14 }
  0xd8   :  { %7457 = sst [smem:[#allocation96_spill]] %s4217_s15 }
  0xd9   :  { %7458 = sst [smem:[#allocation97_spill]] %s4219_s16 }
  0xda   :  { %7459 = sst [smem:[#allocation98_spill]] %s4221_s2 }
  0xdb   :  { %7460 = sst [smem:[#allocation99_spill]] %s4223_s7 }
  0xdc   :  { %7461 = sst [smem:[#allocation100_spill]] %s4225_s8 }
  0xdd   :  { %s4227_s9 = sld [smem:[#allocation2 + $0x67]] }
  0xde   :  { %s4229_s10 = sld [smem:[#allocation2 + $0x69]] }
  0xdf   :  { %s4231_s11 = sld [smem:[#allocation2 + $0x6b]] }
  0xe0   :  { %s4233_s12 = sld [smem:[#allocation2 + $0x6d]] }
  0xe1   :  { %s4235_s13 = sld [smem:[#allocation2 + $0x66]] }
  0xe2   :  { %s4237_s14 = sld [smem:[#allocation2 + $0x68]] }
  0xe3   :  { %7462 = sst [smem:[#allocation101_spill]] %s4227_s9 }
  0xe4   :  { %7463 = sst [smem:[#allocation102_spill]] %s4229_s10 }
  0xe5   :  { %7464 = sst [smem:[#allocation103_spill]] %s4231_s11 }
  0xe6   :  { %7465 = sst [smem:[#allocation104_spill]] %s4233_s12 }
  0xe7   :  { %7466 = sst [smem:[#allocation105_spill]] %s4235_s13 }
  0xe8   :  { %7467 = sst [smem:[#allocation106_spill]] %s4237_s14 }
  0xe9   :  { %s4239_s15 = sld [smem:[#allocation2 + $0x6a]] }
  0xea   :  { %s4241_s16 = sld [smem:[#allocation2 + $0x6c]] }
  0xeb   :  { %s4243_s2 = sld [smem:[#allocation2 + $0x15d]] }
  0xec   :  { %s4245_s7 = sld [smem:[#allocation2 + $0x6e]] }
  0xed   :  { %s4247_s8 = sld [smem:[#allocation2 + $0x6f]] }
  0xee   :  { %s4249_s9 = sld [smem:[#allocation2 + $0x70]] }
  0xef   :  { %7468 = sst [smem:[#allocation107_spill]] %s4239_s15 }
  0xf0   :  { %7469 = sst [smem:[#allocation108_spill]] %s4241_s16 }
  0xf1   :  { %7470 = sst [smem:[#allocation109_spill]] %s4243_s2 }
  0xf2   :  { %s4251_s10 = sld [smem:[#allocation2 + $0x72]] }
  0xf3   :  { %7471 = sst [smem:[#allocation110_spill]] %s4247_s8 }
  0xf4   :  { %s4253_s11 = sld [smem:[#allocation2 + $0x74]] }
  0xf5   :  { %s4255_s12 = sld [smem:[#allocation2 + $0x76]] }
  0xf6   :  { %s4257_s14 = sld [smem:[#allocation2 + $0x78]] }
  0xf7   :  { %s4259_s15 = sld [smem:[#allocation2 + $0x71]] }
  0xf8   :  { %7472 = sst [smem:[#allocation111_spill]] %s4251_s10 }
  0xf9   :  { %s4261_s16 = sld [smem:[#allocation2 + $0x73]] }
  0xfa   :  { %7473 = sst [smem:[#allocation112_spill]] %s4253_s11 }
  0xfb   :  { %7474 = sst [smem:[#allocation113_spill]] %s4255_s12 }
  0xfc   :  { %7475 = sst [smem:[#allocation114_spill]] %s4257_s14 }
  0xfd   :  { %7476 = sst [smem:[#allocation115_spill]] %s4259_s15 }
  0xfe   :  { %s4263_s13 = sld [smem:[#allocation2 + $0x75]] }
  0xff   :  { %7477 = sst [smem:[#allocation116_spill]] %s4261_s16 }
 0x100   :  { %s4265_s2 = sld [smem:[#allocation2 + $0x77]] }
 0x101   :  { %s4267_s8 = sld [smem:[#allocation2 + $0x15e]] }
 0x102   :  { %s4269_s10 = sld [smem:[#allocation2 + $0x79]] }
 0x103   :  { %s4271_s11 = sld [smem:[#allocation2 + $0x7a]] }
 0x104   :  { %7478 = sst [smem:[#allocation117_spill]] %s4263_s13 }
 0x105   :  { %s4273_s12 = sld [smem:[#allocation2 + $0x7b]] }
 0x106   :  { %7479 = sst [smem:[#allocation118_spill]] %s4265_s2 }
 0x107   :  { %7480 = sst [smem:[#allocation119_spill]] %s4267_s8 }
 0x108   :  { %s4275_s14 = sld [smem:[#allocation2 + $0x7d]] }
 0x109   :  { %7481 = sst [smem:[#allocation120_spill]] %s4271_s11 }
 0x10a   :  { %s4277_s15 = sld [smem:[#allocation2 + $0x7f]] }
 0x10b   :  { %s4279_s16 = sld [smem:[#allocation2 + $0x81]] }
 0x10c   :  { %s4281_s13 = sld [smem:[#allocation2 + $0x83]] }
 0x10d   :  { %s4286_s2 = sld [smem:[#allocation2 + $0x7c]] }
 0x10e   :  { %s4288_s8 = sld [smem:[#allocation2 + $0x7e]] }
 0x10f   :  { %s4291_s11 = sld [smem:[#allocation2 + $0x80]] }
 0x110   :  { %s4302_s17 = sld [smem:[#allocation2 + $0x84]] }
 0x111   :  { %7482 = sst [smem:[#allocation121_spill]] %s4279_s16 }
 0x112   :  { %7483 = sst [smem:[#allocation122_spill]] %s4281_s13 }
 0x113   :  { %s4295_s16 = sld [smem:[#allocation2 + $0x82]] }
 0x114   :  { %s4299_s13 = sld [smem:[#allocation2 + $0x15f]] }
 0x115   :  { %s4306_s19 = sld [smem:[#allocation2 + $0x85]] }
 0x116   :  { %s4312_s0 = sld [smem:[#allocation2 + $0x86]] }
 0x117   :  { %s4316_s21 = sld [smem:[#allocation2 + $0x88]] }
 0x118   :  { %s4321_s18 = sld [smem:[#allocation2 + $0x8a]] }
 0x119   :  { %s4325_s1 = sld [smem:[#allocation2 + $0x8c]] }
 0x11a   :  { %s4331_s20 = sld [smem:[#allocation2 + $0x8e]] }
 0x11b   :  { %s4336_s22 = sld [smem:[#allocation2 + $0x87]] }
 0x11c   :  { %s4340_s24 = sld [smem:[#allocation2 + $0x89]] }
 0x11d   :  { %s4344_s26 = sld [smem:[#allocation2 + $0x8b]] }
 0x11e   :  { %s4350_s23 = sld [smem:[#allocation2 + $0x8d]] }
 0x11f   :  { %7484 = sst [smem:[#allocation123_spill]] %s4325_s1 }
 0x120   :  { %7485 = sst [smem:[#allocation124_spill]] %s4331_s20 }
 0x121   :  { %7486 = sst [smem:[#allocation125_spill]] %s4336_s22 }
 0x122   :  { %7487 = sst [smem:[#allocation126_spill]] %s4340_s24 }
 0x123   :  { %7488 = sst [smem:[#allocation127_spill]] %s4344_s26 }
 0x124   :  { %7489 = sst [smem:[#allocation128_spill]] %s4350_s23 }
 0x125   :  { %s4356_s25 = sld [smem:[#allocation2 + $0x160]] }
 0x126   :  { %s4359_s28 = sld [smem:[#allocation2 + $0x8f]] }
 0x127   :  { %s4362_s30 = sld [smem:[#allocation2 + $0x90]] }
 0x128   :  { %s4368_s27 = sld [smem:[#allocation2 + $0x91]] }
 0x129   :  { %s7493_s4 = sld [smem:[#allocation12_spill]] }
 0x12a   :  { %s4372_s23 = sld [smem:[#allocation2 + $0x93]] }
 0x12b   :  { %7490 = sst [smem:[#allocation129_spill]] %s4356_s25 }
 0x12c   :  { %s4377_s29 = sld [smem:[#allocation2 + $0x95]] }
 0x12d   :  { %7491 = sst [smem:[#allocation130_spill]] %s4362_s30 }
 0x12e   :  { %7492 = sst [smem:[#allocation131_spill]] %s4368_s27 }
 0x12f   :  { %s4379_s26 = sld [smem:[#allocation2 + $0x97]]  ;;  %v98_v47 = vstv %s7493_s4 }
 0x130   :  { %7494 = sst [smem:[#allocation12_spill]] %s4372_s23  ;;  %v99_v52 = vmul.f32 %v98_v47, %v4283_v0 }
 0x131   :  { %s4384_s30 = sld [smem:[#allocation2 + $0x99]] }
 0x132   :  { %7495 = sst [smem:[#allocation132_spill]] %s4377_s29 }
 0x133   :  { %s7498_s3 = sld [smem:[#allocation11_spill]] }
 0x134   :  { %s4387_s24 = sld [smem:[#allocation2 + $0x92]] }
 0x135   :  { %7496 = sst [smem:[#allocation133_spill]] %s4379_s26 }
 0x136   :  { %s4392_s6 = sld [smem:[#allocation2 + $0x94]] }
 0x137   :  { %7497 = sst [smem:[#allocation134_spill]] %s4384_s30 }
 0x138   :  { %s4394_s26 = sld [smem:[#allocation2 + $0x96]] }
 0x139   :  { %s4397_s29 = sld [smem:[#allocation2 + $0x98]]  ;;  %v100_v53 = vstv %s7498_s3 }
 0x13a   :  { %7499 = sst [smem:[#allocation11_spill]] %s4387_s24  ;;  %v4411_v58 = vadd.f32 %v100_v53, %v99_v52  ;;  %v3088_v52 = vadd.f32 -1.0, %v3842_v39 }
 0x13b   :  { %s4402_s30 = sld [smem:[#allocation2 + $0x161]] }
 0x13c   :  { %7500 = sst [smem:[#allocation135_spill]] %s4392_s6  ;;  %v153_v2 = vmul.f32 1.442695, %v4411_v58  ;;  %vm152_vm10 = vcmp.gt.f32.partialorder %v4411_v58, 0.0 }
 0x13d   :  { %s4405_s5 = sld [smem:[#allocation2 + $0x9a]] }
 0x13e   :  { %7501 = sst [smem:[#allocation136_spill]] %s4394_s26  ;;  %3843 = vpow2.f32 %v153_v2 }
 0x13f   :  { %7502 = sst [smem:[#allocation137_spill]] %s4397_s29 }
 0x140   :  { %s4407_s4 = sld [smem:[#allocation2 + $0x9b]] }
 0x141   :  { %7503 = sst [smem:[#allocation138_spill]] %s4402_s30 }
 0x142   :  { %s7506_s26 = sld [smem:[#allocation14_spill]] }
 0x143   :  { %7504 = sst [smem:[#allocation139_spill]] %s4405_s5 }
 0x144   :  { %s4409_s6 = sld [smem:[#allocation2 + $0x9c]] }
 0x145   :  { %s4415_s3 = sld [smem:[#allocation2 + $0x9e]] }
 0x146   :  { %7505 = sst [smem:[#allocation140_spill]] %s4407_s4 }
 0x147   :  { %s4417_s29 = sld [smem:[#allocation2 + $0xa0]] }
 0x148   :  { %s7510_s24 = sld [smem:[#allocation13_spill]]  ;;  %v159_v0 = vstv %s7506_s26 }
 0x149   :  { %s4420_s4 = sld [smem:[#allocation2 + $0xa2]]  ;;  %v160_v6 = vmul.f32 %v159_v0, %v4423_v61 }
 0x14a   :  { %7507 = sst [smem:[#allocation14_spill]] %s4409_s6 }
 0x14b   :  { %7508 = sst [smem:[#allocation141_spill]] %s4415_s3  ;;  %v3844_v56 = vpop.eup %3843 }
 0x14c   :  { %s7512_s23 = sld [smem:[#allocation15_spill]] }
 0x14d   :  { %7509 = sst [smem:[#allocation142_spill]] %s4417_s29 }
 0x14e   :  { %s7513_s6 = sld [smem:[#allocation16_spill]]  ;;  %v161_v4 = vstv %s7510_s24 }
 0x14f   :  { %7511 = sst [smem:[#allocation13_spill]] %s4420_s4  ;;  %v162_v16 = vadd.f32 %v161_v4, %v160_v6 }
 0x150   :  { %s4426_s30 = sld [smem:[#allocation2 + $0xa4]] }
 0x151   :  { %s7515_s29 = sld [smem:[#allocation21_spill]] }
 0x152   :  { %s4431_s4 = sld [smem:[#allocation2 + $0x9d]]  ;;  %v164_v7 = vstv %s7512_s23 }
 0x153   :  { %s4434_s3 = sld [smem:[#allocation2 + $0x9f]]  ;;  %v165_v17 = vmul.f32 %v164_v7, %v4439_v5  ;;  %v4547_v7 = vsel %vm147_vm9, %v4399_v51, %v3088_v52 }
 0x154   :  { %v167_v8 = vstv %s7513_s6  ;;  %s4444_s26 = sld [smem:[#allocation2 + $0xa1]] }
 0x155   :  { %s4453_s24 = sld [smem:[#allocation2 + $0xa3]]  ;;  %v168_v18 = vmul.f32 %v167_v8, %v4447_v9  ;;  %v3089_v8 = vadd.f32 -1.0, %v3844_v56 }
 0x156   :  { %7514 = sst [smem:[#allocation15_spill]] %s4426_s30 }
 0x157   :  { %v187_v12 = vstv %s7515_s29  ;;  %s7520_s30 = sld [smem:[#allocation17_spill]]  ;;  %v169_v28 = vadd.f32 %v168_v18, %v162_v16 }
 0x158   :  { %7516 = sst [smem:[#allocation16_spill]] %s4431_s4  ;;  %v188_v19 = vmul.f32 %v187_v12, %v4450_v10 }
 0x159   :  { %7517 = sst [smem:[#allocation21_spill]] %s4434_s3 }
 0x15a   :  { %7518 = sst [smem:[#allocation143_spill]] %s4444_s26  ;;  %v189_v31 = vadd.f32 %v188_v19, %v165_v17 }
 0x15b   :  { %7519 = sst [smem:[#allocation144_spill]] %s4453_s24 }
 0x15c   :  { %s4456_s23 = sld [smem:[#allocation2 + $0x162]] }
 0x15d   :  { %s7522_s6 = sld [smem:[#allocation22_spill]]  ;;  %v171_v22 = vstv %s7520_s30 }
 0x15e   :  { %s7523_s26 = sld [smem:[#allocation26_spill]]  ;;  %v172_v29 = vmul.f32 %v171_v22, %v4467_v20 }
 0x15f   :  { %s4459_s3 = sld [smem:[#allocation2 + $0xa5]] }
 0x160   :  { %s4464_s29 = sld [smem:[#allocation2 + $0xa6]]  ;;  %v173_v44 = vadd.f32 %v172_v29, %v169_v28 }
 0x161   :  { %s7526_s24 = sld [smem:[#allocation18_spill]] }
 0x162   :  { %7521 = sst [smem:[#allocation17_spill]] %s4456_s23 }
 0x163   :  { %s4470_s23 = sld [smem:[#allocation2 + $0xa7]]  ;;  %v191_v25 = vstv %s7522_s6 }
 0x164   :  { %v205_v26 = vstv %s7523_s26  ;;  %s7530_s4 = sld [smem:[#allocation28_spill]]  ;;  %v192_v34 = vmul.f32 %v191_v25, %v4473_v24 }
 0x165   :  { %7524 = sst [smem:[#allocation22_spill]] %s4459_s3  ;;  %v206_v35 = vmul.f32 %v205_v26, %v4423_v61  ;;  %v4572_v26 = vsel %vm152_vm10, %v4411_v58, %v3089_v8 }
 0x166   :  { %7525 = sst [smem:[#allocation26_spill]] %s4464_s29  ;;  %v193_v48 = vadd.f32 %v192_v34, %v189_v31 }
 0x167   :  { %s4478_s3 = sld [smem:[#allocation2 + $0xa9]]  ;;  %v175_v30 = vstv %s7526_s24 }
 0x168   :  { %s7529_s29 = sld [smem:[#allocation25_spill]]  ;;  %v176_v45 = vmul.f32 %v175_v30, %v4488_v32 }
 0x169   :  { %7527 = sst [smem:[#allocation18_spill]] %s4470_s23 }
 0x16a   :  { %s4481_s22 = sld [smem:[#allocation2 + $0xab]]  ;;  %v213_v38 = vstv %s7530_s4  ;;  %v177_v62 = vadd.f32 %v176_v45, %v173_v44 }
 0x16b   :  { %s7532_s30 = sld [smem:[#allocation19_spill]]  ;;  %v214_v50 = vmul.f32 %v213_v38, %v4447_v9 }
 0x16c   :  { %s7533_s23 = sld [smem:[#allocation23_spill]] }
 0x16d   :  { %7528 = sst [smem:[#allocation145_spill]] %s4478_s3 }
 0x16e   :  { %s4485_s20 = sld [smem:[#allocation2 + $0xad]]  ;;  %v207_v37 = vstv %s7529_s29 }
 0x16f   :  { %s7535_s26 = sld [smem:[#allocation27_spill]]  ;;  %v208_v49 = vadd.f32 %v207_v37, %v206_v35 }
 0x170   :  { %7531 = sst [smem:[#allocation25_spill]] %s4481_s22 }
 0x171   :  { %s7536_s6 = sld [smem:[#allocation38_spill]]  ;;  %v179_v40 = vstv %s7532_s30  ;;  %v215_v2 = vadd.f32 %v214_v50, %v208_v49 }
 0x172   :  { %s4492_s22 = sld [smem:[#allocation2 + $0xaf]]  ;;  %v195_v42 = vstv %s7533_s23  ;;  %v180_v63 = vmul.f32 %v179_v40, %v4518_v41 }
 0x173   :  { %s4498_s24 = sld [smem:[#allocation2 + $0xa8]]  ;;  %v196_v53 = vmul.f32 %v195_v42, %v4503_v36 }
 0x174   :  { %7534 = sst [smem:[#allocation28_spill]] %s4485_s20  ;;  %v4557_v17 = vadd.f32 %v180_v63, %v177_v62 }
 0x175   :  { %s7539_s20 = sld [smem:[#allocation29_spill]]  ;;  %v210_v46 = vstv %s7535_s26  ;;  %v197_v11 = vadd.f32 %v196_v53, %v193_v48 }
 0x176   :  { %s7540_s3 = sld [smem:[#allocation30_spill]]  ;;  %v211_v59 = vmul.f32 %v210_v46, %v4439_v5 }
 0x177   :  { %s7542_s29 = sld [smem:[#allocation20_spill]]  ;;  %v251_v47 = vstv %s7536_s6 }
 0x178   :  { %7537 = sst [smem:[#allocation19_spill]] %s4492_s22  ;;  %v252_v60 = vmul.f32 %v251_v47, %v4423_v61 }
 0x179   :  { %7538 = sst [smem:[#allocation23_spill]] %s4498_s24 }
 0x17a   :  { %s4508_s22 = sld [smem:[#allocation2 + $0xaa]] }
 0x17b   :  { %s7543_s4 = sld [smem:[#allocation24_spill]]  ;;  %v217_v54 = vstv %s7539_s20 }
 0x17c   :  { %s4513_s24 = sld [smem:[#allocation2 + $0xac]]  ;;  %v221_v55 = vstv %s7540_s3  ;;  %v218_v3 = vmul.f32 %v217_v54, %v4467_v20 }
 0x17d   :  { %s7545_s23 = sld [smem:[#allocation37_spill]]  ;;  %v183_v57 = vstv %s7542_s29  ;;  %v222_v4 = vmul.f32 %v221_v55, %v4488_v32 }
 0x17e   :  { %s7546_s30 = sld [smem:[#allocation40_spill]]  ;;  %v219_v22 = vadd.f32 %v218_v3, %v215_v2  ;;  %v184_v39 = vmul.f32 %v183_v57, %v4572_v26 }
 0x17f   :  { %s7548_s26 = sld [smem:[#allocation50_spill]] }
 0x180   :  { %7541 = sst [smem:[#allocation27_spill]] %s4508_s22  ;;  %v223_v54 = vadd.f32 %v222_v4, %v219_v22 }
 0x181   :  { %s4521_s22 = sld [smem:[#allocation2 + $0xae]]  ;;  %v199_v43 = vstv %s7543_s4 }
 0x182   :  { %7544 = sst [smem:[#allocation38_spill]] %s4513_s24  ;;  %v200_v21 = vmul.f32 %v199_v43, %v4547_v7 }
 0x183   :  { %s4526_s6 = sld [smem:[#allocation2 + $0x163]]  ;;  %v253_v0 = vstv %s7545_s23 }
 0x184   :  { %s7550_s24 = sld [smem:[#allocation31_spill]]  ;;  %v259_v1 = vstv %s7546_s30  ;;  %v254_v14 = vadd.f32 %v253_v0, %v252_v60  ;;  %v4590_v40 = vadd.f32 %v200_v21, %v197_v11 }
 0x185   :  { %s4532_s1 = sld [smem:[#allocation2 + $0xb0]]  ;;  %v297_v6 = vstv %s7548_s26  ;;  %v260_v16 = vmul.f32 %v259_v1, %v4447_v9 }
 0x186   :  { %s7552_s27 = sld [smem:[#allocation33_spill]]  ;;  %v298_v19 = vmul.f32 %v297_v6, %v4423_v61 }
 0x187   :  { %7547 = sst [smem:[#allocation29_spill]] %s4521_s22  ;;  %v261_v30 = vadd.f32 %v260_v16, %v254_v14 }
 0x188   :  { %s7553_s22 = sld [smem:[#allocation39_spill]] }
 0x189   :  { %7549 = sst [smem:[#allocation30_spill]] %s4526_s6 }
 0x18a   :  { %s4537_s20 = sld [smem:[#allocation2 + $0xb1]]  ;;  %v225_v12 = vstv %s7550_s24 }
 0x18b   :  { %7551 = sst [smem:[#allocation20_spill]] %s4532_s1  ;;  %v226_v58 = vmul.f32 %v225_v12, %v4518_v41 }
 0x18c   :  { %s7555_s3 = sld [smem:[#allocation41_spill]]  ;;  %v233_v13 = vstv %s7552_s27 }
 0x18d   :  { %s7556_s29 = sld [smem:[#allocation45_spill]]  ;;  %v234_v27 = vmul.f32 %v233_v13, %v4450_v10 }
 0x18e   :  { %s4542_s4 = sld [smem:[#allocation2 + $0xb2]]  ;;  %v256_v15 = vstv %s7553_s22 }
 0x18f   :  { %s7558_s23 = sld [smem:[#allocation49_spill]]  ;;  %v257_v29 = vmul.f32 %v256_v15, %v4439_v5  ;;  %v235_v45 = vadd.f32 %v234_v27, %v211_v59  ;;  %v227_v15 = vadd.f32 %v226_v58, %v223_v54  ;;  %v185_v58 = vadd.f32 %v184_v39, %v4557_v17 }
 0x190   :  { %7554 = sst [smem:[#allocation24_spill]] %s4537_s20 }
 0x191   :  { %s7559_s30 = sld [smem:[#allocation52_spill]] }
 0x192   :  { %s4550_s20 = sld [smem:[#allocation2 + $0xb4]]  ;;  %v263_v18 = vstv %s7555_s3 }
 0x193   :  { %s7561_s6 = sld [smem:[#allocation34_spill]]  ;;  %v279_v51 = vstv %s7556_s29  ;;  %v264_v31 = vmul.f32 %v263_v18, %v4467_v20 }
 0x194   :  { %7557 = sst [smem:[#allocation37_spill]] %s4542_s4  ;;  %v280_v34 = vmul.f32 %v279_v51, %v4450_v10 }
 0x195   :  { %s4555_s26 = sld [smem:[#allocation2 + $0xb6]]  ;;  %v299_v23 = vstv %s7558_s23  ;;  %v265_v49 = vadd.f32 %v264_v31, %v261_v30 }
 0x196   :  { %s7563_s4 = sld [smem:[#allocation42_spill]]  ;;  %v300_v37 = vadd.f32 %v299_v23, %v298_v19  ;;  %v281_v52 = vadd.f32 %v280_v34, %v257_v29 }
 0x197   :  { %s4562_s1 = sld [smem:[#allocation2 + $0xb8]]  ;;  %v305_v25 = vstv %s7559_s30 }
 0x198   :  { %7560 = sst [smem:[#allocation40_spill]] %s4550_s20  ;;  %v306_v38 = vmul.f32 %v305_v25, %v4447_v9 }
 0x199   :  { %s7565_s24 = sld [smem:[#allocation46_spill]]  ;;  %v237_v28 = vstv %s7561_s6 }
 0x19a   :  { %s4567_s22 = sld [smem:[#allocation2 + $0xba]]  ;;  %v238_v46 = vmul.f32 %v237_v28, %v4473_v24  ;;  %v307_v56 = vadd.f32 %v306_v38, %v300_v37 }
 0x19b   :  { %7562 = sst [smem:[#allocation50_spill]] %s4555_s26 }
 0x19c   :  { %s7567_s27 = sld [smem:[#allocation32_spill]]  ;;  %v267_v33 = vstv %s7563_s4  ;;  %v239_v63 = vadd.f32 %v238_v46, %v235_v45 }
 0x19d   :  { %7564 = sst [smem:[#allocation31_spill]] %s4562_s1  ;;  %v268_v48 = vmul.f32 %v267_v33, %v4488_v32 }
 0x19e   :  { %s7568_s3 = sld [smem:[#allocation53_spill]] }
 0x19f   :  { %s4577_s29 = sld [smem:[#allocation2 + $0xb3]]  ;;  %v283_v35 = vstv %s7565_s24  ;;  %v269_v3 = vadd.f32 %v268_v48, %v265_v49 }
 0x1a0   :  { %7566 = sst [smem:[#allocation33_spill]] %s4567_s22  ;;  %v284_v53 = vmul.f32 %v283_v35, %v4473_v24 }
 0x1a1   :  { %s7570_s23 = sld [smem:[#allocation35_spill]] }
 0x1a2   :  { %s4582_s30 = sld [smem:[#allocation2 + $0xb5]]  ;;  %v229_v42 = vstv %s7567_s27  ;;  %v285_v6 = vadd.f32 %v284_v53, %v281_v52 }
 0x1a3   :  { %s7572_s22 = sld [smem:[#allocation43_spill]]  ;;  %v230_v43 = vmul.f32 %v229_v42, %v4572_v26 }
 0x1a4   :  { %s4587_s6 = sld [smem:[#allocation2 + $0xb7]]  ;;  %v309_v44 = vstv %s7568_s3 }
 0x1a5   :  { %7569 = sst [smem:[#allocation39_spill]] %s4577_s29  ;;  %v310_v57 = vmul.f32 %v309_v44, %v4467_v20  ;;  %v231_v42 = vadd.f32 %v230_v43, %v227_v15 }
 0x1a6   :  { %s7574_s1 = sld [smem:[#allocation47_spill]] }
 0x1a7   :  { %s4594_s4 = sld [smem:[#allocation2 + $0xb9]]  ;;  %v241_v47 = vstv %s7570_s23  ;;  %v311_v12 = vadd.f32 %v310_v57, %v307_v56  ;;  %v4670_v57 = vadd.f32 %v4590_v40, %v185_v58 }
 0x1a8   :  { %7571 = sst [smem:[#allocation41_spill]] %s4582_s30  ;;  %v242_v59 = vmul.f32 %v241_v47, %v4503_v36 }
 0x1a9   :  { %s7576_s30 = sld [smem:[#allocation36_spill]]  ;;  %v271_v50 = vstv %s7572_s22  ;;  %vm1491_vm11 = vcmp.gt.f32.partialorder %v4670_v57, 0.0 }
 0x1aa   :  { %7573 = sst [smem:[#allocation45_spill]] %s4587_s6  ;;  %v272_v0 = vmul.f32 %v271_v50, %v4518_v41  ;;  %v243_v19 = vadd.f32 %v242_v59, %v239_v63 }
 0x1ab   :  { %s7577_s24 = sld [smem:[#allocation54_spill]] }
 0x1ac   :  { %s4599_s26 = sld [smem:[#allocation2 + $0x164]]  ;;  %v287_v55 = vstv %s7574_s1  ;;  %v273_v25 = vadd.f32 %v272_v0, %v269_v3 }
 0x1ad   :  { %7575 = sst [smem:[#allocation49_spill]] %s4594_s4  ;;  %v288_v8 = vmul.f32 %v287_v55, %v4503_v36 }
 0x1ae   :  { %s7579_s6 = sld [smem:[#allocation51_spill]] }
 0x1af   :  { %s7580_s29 = sld [smem:[#allocation57_spill]]  ;;  %v245_v60 = vstv %s7576_s30  ;;  %v289_v27 = vadd.f32 %v288_v8, %v285_v6 }
 0x1b0   :  { %s4603_s27 = sld [smem:[#allocation2 + $0xbb]]  ;;  %v246_v21 = vmul.f32 %v245_v60, %v4547_v7 }
 0x1b1   :  { %s7582_s3 = sld [smem:[#allocation44_spill]]  ;;  %v313_v62 = vstv %s7577_s24 }
 0x1b2   :  { %7578 = sst [smem:[#allocation52_spill]] %s4599_s26  ;;  %v314_v13 = vmul.f32 %v313_v62, %v4488_v32  ;;  %v247_v44 = vadd.f32 %v246_v21, %v243_v19 }
 0x1b3   :  { %s4607_s23 = sld [smem:[#allocation2 + $0xbc]] }
 0x1b4   :  { %s7584_s4 = sld [smem:[#allocation48_spill]]  ;;  %v302_v1 = vstv %s7579_s6  ;;  %v315_v30 = vadd.f32 %v314_v13, %v311_v12  ;;  %v4672_v43 = vadd.f32 %v247_v44, %v231_v42 }
 0x1b5   :  { %s7585_s22 = sld [smem:[#allocation62_spill]]  ;;  %v325_v2 = vstv %s7580_s29  ;;  %v303_v16 = vmul.f32 %v302_v1, %v4439_v5 }
 0x1b6   :  { %7581 = sst [smem:[#allocation34_spill]] %s4603_s27  ;;  %v326_v51 = vmul.f32 %v325_v2, %v4450_v10  ;;  %vm1496_vm13 = vcmp.gt.f32.partialorder %v4672_v43, 0.0 }
 0x1b7   :  { %s4613_s26 = sld [smem:[#allocation2 + $0xbd]]  ;;  %v275_v4 = vstv %s7582_s3 }
 0x1b8   :  { %s7587_s20 = sld [smem:[#allocation55_spill]]  ;;  %v276_v22 = vmul.f32 %v275_v4, %v4572_v26  ;;  %v327_v37 = vadd.f32 %v326_v51, %v303_v16 }
 0x1b9   :  { %7583 = sst [smem:[#allocation42_spill]] %s4607_s23 }
 0x1ba   :  { %s4618_s1 = sld [smem:[#allocation2 + $0xbf]]  ;;  %v291_v11 = vstv %s7584_s4  ;;  %v277_v47 = vadd.f32 %v276_v22, %v273_v25 }
 0x1bb   :  { %s7589_s23 = sld [smem:[#allocation58_spill]]  ;;  %v343_v14 = vstv %s7585_s22  ;;  %v292_v28 = vmul.f32 %v291_v11, %v4547_v7 }
 0x1bc   :  { %s4622_s27 = sld [smem:[#allocation2 + $0xc1]]  ;;  %v344_v29 = vmul.f32 %v343_v14, %v4423_v61 }
 0x1bd   :  { %7586 = sst [smem:[#allocation46_spill]] %s4613_s26  ;;  %v293_v39 = vadd.f32 %v292_v28, %v289_v27 }
 0x1be   :  { %s4627_s30 = sld [smem:[#allocation2 + $0xc3]]  ;;  %v317_v18 = vstv %s7587_s20 }
 0x1bf   :  { %s7592_s29 = sld [smem:[#allocation61_spill]]  ;;  %v318_v31 = vmul.f32 %v317_v18, %v4518_v41  ;;  %v4683_v2 = vadd.f32 %v293_v39, %v277_v47 }
 0x1c0   :  { %7588 = sst [smem:[#allocation32_spill]] %s4618_s1 }
 0x1c1   :  { %s7593_s6 = sld [smem:[#allocation64_spill]]  ;;  %v329_v23 = vstv %s7589_s23  ;;  %v319_v49 = vadd.f32 %v318_v31, %v315_v30  ;;  %vm1501_vm12 = vcmp.gt.f32.partialorder %v4683_v2, 0.0 }
 0x1c2   :  { %7590 = sst [smem:[#allocation53_spill]] %s4622_s27  ;;  %v330_v38 = vmul.f32 %v329_v23, %v4473_v24 }
 0x1c3   :  { %s4632_s24 = sld [smem:[#allocation2 + $0xc5]] }
 0x1c4   :  { %7591 = sst [smem:[#allocation35_spill]] %s4627_s30  ;;  %v331_v53 = vadd.f32 %v330_v38, %v327_v37 }
 0x1c5   :  { %s7595_s3 = sld [smem:[#allocation56_spill]]  ;;  %v345_v33 = vstv %s7592_s29 }
 0x1c6   :  { %s4637_s4 = sld [smem:[#allocation2 + $0xbe]]  ;;  %v346_v48 = vadd.f32 %v345_v33, %v344_v29 }
 0x1c7   :  { %s7597_s22 = sld [smem:[#allocation59_spill]]  ;;  %v351_v34 = vstv %s7593_s6 }
 0x1c8   :  { %s7598_s20 = sld [smem:[#allocation74_spill]]  ;;  %v352_v17 = vmul.f32 %v351_v34, %v4447_v9 }
 0x1c9   :  { %7594 = sst [smem:[#allocation43_spill]] %s4632_s24 }
 0x1ca   :  { %s4641_s30 = sld [smem:[#allocation2 + $0xc0]]  ;;  %v353_v63 = vadd.f32 %v352_v17, %v346_v48 }
 0x1cb   :  { %s4646_s24 = sld [smem:[#allocation2 + $0xc2]]  ;;  %v321_v35 = vstv %s7595_s3 }
 0x1cc   :  { %7596 = sst [smem:[#allocation47_spill]] %s4637_s4  ;;  %v322_v50 = vmul.f32 %v321_v35, %v4572_v26 }
 0x1cd   :  { %s7601_s23 = sld [smem:[#allocation65_spill]]  ;;  %v333_v45 = vstv %s7597_s22 }
 0x1ce   :  { %s4651_s27 = sld [smem:[#allocation2 + $0xc4]]  ;;  %v389_v46 = vstv %s7598_s20  ;;  %v334_v54 = vmul.f32 %v333_v45, %v4503_v36  ;;  %v4685_v40 = vadd.f32 %v322_v50, %v319_v49 }
 0x1cf   :  { %s7603_s4 = sld [smem:[#allocation60_spill]]  ;;  %v390_v56 = vmul.f32 %v389_v46, %v4423_v61 }
 0x1d0   :  { %7599 = sst [smem:[#allocation36_spill]] %s4641_s30  ;;  %v4693_v6 = vadd.f32 %v334_v54, %v331_v53 }
 0x1d1   :  { %7600 = sst [smem:[#allocation54_spill]] %s4646_s24 }
 0x1d2   :  { %s4655_s30 = sld [smem:[#allocation2 + $0x165]] }
 0x1d3   :  { %s7605_s29 = sld [smem:[#allocation73_spill]]  ;;  %v355_v52 = vstv %s7601_s23 }
 0x1d4   :  { %7602 = sst [smem:[#allocation51_spill]] %s4651_s27  ;;  %v356_v0 = vmul.f32 %v355_v52, %v4467_v20 }
 0x1d5   :  { %s7606_s6 = sld [smem:[#allocation76_spill]]  ;;  %v337_v55 = vstv %s7603_s4 }
 0x1d6   :  { %s4658_s3 = sld [smem:[#allocation2 + $0xc6]]  ;;  %v4688_v3 = vmul.f32 %v337_v55, %v4547_v7  ;;  %v357_v18 = vadd.f32 %v356_v0, %v353_v63 }
 0x1d7   :  { %s7608_s24 = sld [smem:[#allocation63_spill]] }
 0x1d8   :  { %7604 = sst [smem:[#allocation57_spill]] %s4655_s30 }
 0x1d9   :  { %s7609_s27 = sld [smem:[#allocation66_spill]]  ;;  %v391_v59 = vstv %s7605_s29 }
 0x1da   :  { %s4662_s1 = sld [smem:[#allocation2 + $0xc7]]  ;;  %v392_v8 = vadd.f32 %v391_v59, %v390_v56 }
 0x1db   :  { %s7611_s22 = sld [smem:[#allocation69_spill]]  ;;  %v397_v60 = vstv %s7606_s6 }
 0x1dc   :  { %7607 = sst [smem:[#allocation44_spill]] %s4658_s3  ;;  %v398_v11 = vmul.f32 %v397_v60, %v4447_v9 }
 0x1dd   :  { %s4667_s20 = sld [smem:[#allocation2 + $0xc8]]  ;;  %v348_v62 = vstv %s7608_s24 }
 0x1de   :  { %s7613_s30 = sld [smem:[#allocation86_spill]]  ;;  %v349_v13 = vmul.f32 %v348_v62, %v4439_v5  ;;  %v399_v28 = vadd.f32 %v398_v11, %v392_v8 }
 0x1df   :  { %s4676_s23 = sld [smem:[#allocation2 + $0xca]]  ;;  %v359_v1 = vstv %s7609_s27 }
 0x1e0   :  { %7610 = sst [smem:[#allocation48_spill]] %s4662_s1  ;;  %v360_v14 = vmul.f32 %v359_v1, %v4488_v32 }
 0x1e1   :  { %s7615_s1 = sld [smem:[#allocation67_spill]]  ;;  %v371_v4 = vstv %s7611_s22 }
 0x1e2   :  { %s7616_s4 = sld [smem:[#allocation77_spill]]  ;;  %v372_v51 = vmul.f32 %v371_v4, %v4450_v10  ;;  %v361_v37 = vadd.f32 %v360_v14, %v357_v18 }
 0x1e3   :  { %7612 = sst [smem:[#allocation62_spill]] %s4667_s20 }
 0x1e4   :  { %s4681_s3 = sld [smem:[#allocation2 + $0xcc]]  ;;  %v435_v12 = vstv %s7613_s30  ;;  %v373_v38 = vadd.f32 %v372_v51, %v349_v13 }
 0x1e5   :  { %7614 = sst [smem:[#allocation55_spill]] %s4676_s23  ;;  %v436_v27 = vmul.f32 %v435_v12, %v4423_v61 }
 0x1e6   :  { %s7618_s20 = sld [smem:[#allocation75_spill]] }
 0x1e7   :  { %s7619_s29 = sld [smem:[#allocation81_spill]]  ;;  %v363_v15 = vstv %s7615_s1 }
 0x1e8   :  { %s4691_s6 = sld [smem:[#allocation2 + $0xce]]  ;;  %v401_v16 = vstv %s7616_s4  ;;  %v364_v33 = vmul.f32 %v363_v15, %v4518_v41 }
 0x1e9   :  { %s7621_s24 = sld [smem:[#allocation68_spill]]  ;;  %v402_v29 = vmul.f32 %v401_v16, %v4467_v20 }
 0x1ea   :  { %7617 = sst [smem:[#allocation58_spill]] %s4681_s3  ;;  %v365_v56 = vadd.f32 %v364_v33, %v361_v37 }
 0x1eb   :  { %s7622_s23 = sld [smem:[#allocation70_spill]]  ;;  %v403_v17 = vadd.f32 %v402_v29, %v399_v28 }
 0x1ec   :  { %s7623_s27 = sld [smem:[#allocation71_spill]]  ;;  %v394_v19 = vstv %s7618_s20 }
 0x1ed   :  { %s4697_s3 = sld [smem:[#allocation2 + $0xd0]]  ;;  %v417_v21 = vstv %s7619_s29  ;;  %v395_v34 = vmul.f32 %v394_v19, %v4439_v5 }
 0x1ee   :  { %7620 = sst [smem:[#allocation61_spill]] %s4691_s6  ;;  %v418_v35 = vmul.f32 %v417_v21, %v4450_v10 }
 0x1ef   :  { %s7625_s26 = sld [smem:[#allocation85_spill]]  ;;  %v367_v22 = vstv %s7621_s24 }
 0x1f0   :  { %s7626_s22 = sld [smem:[#allocation88_spill]]  ;;  %v368_v45 = vmul.f32 %v367_v22, %v4572_v26  ;;  %v419_v52 = vadd.f32 %v418_v35, %v395_v34 }
 0x1f1   :  { %s4703_s6 = sld [smem:[#allocation2 + $0xc9]]  ;;  %v375_v23 = vstv %s7622_s23 }
 0x1f2   :  { %s7627_s25 = sld [smem:[#allocation78_spill]]  ;;  %v379_v25 = vstv %s7623_s27  ;;  %v376_v42 = vmul.f32 %v375_v23, %v4473_v24 }
 0x1f3   :  { %7624 = sst [smem:[#allocation64_spill]] %s4697_s3  ;;  %v380_v46 = vmul.f32 %v379_v25, %v4503_v36 }
 0x1f4   :  { %s4708_s5 = sld [smem:[#allocation2 + $0xcb]]  ;;  %v377_v59 = vadd.f32 %v376_v42, %v373_v38  ;;  %v339_v38 = vadd.f32 %v4688_v3, %v4693_v6 }
 0x1f5   :  { %s7629_s30 = sld [smem:[#allocation82_spill]]  ;;  %v437_v30 = vstv %s7625_s26 }
 0x1f6   :  { %s4714_s3 = sld [smem:[#allocation2 + $0xcd]]  ;;  %v443_v31 = vstv %s7626_s22  ;;  %v438_v47 = vadd.f32 %v437_v30, %v436_v27  ;;  %v381_v51 = vadd.f32 %v380_v46, %v377_v59  ;;  %v527_v46 = vstv %s4245_s7 }
 0x1f7   :  { %s4719_s1 = sld [smem:[#allocation2 + $0xcf]]  ;;  %v444_v48 = vmul.f32 %v443_v31, %v4447_v9 }
 0x1f8   :  { %s7632_s20 = sld [smem:[#allocation79_spill]]  ;;  %v405_v58 = vstv %s7627_s25 }
 0x1f9   :  { %s7633_s23 = sld [smem:[#allocation89_spill]]  ;;  %v406_v39 = vmul.f32 %v405_v58, %v4488_v32  ;;  %v445_v0 = vadd.f32 %v444_v48, %v438_v47  ;;  %v369_v47 = vadd.f32 %v368_v45, %v365_v56 }
 0x1fa   :  { %7628 = sst [smem:[#allocation56_spill]] %s4708_s5 }
 0x1fb   :  { %s4725_s4 = sld [smem:[#allocation2 + $0x166]]  ;;  %v421_v44 = vstv %s7629_s30  ;;  %v407_v14 = vadd.f32 %v406_v39, %v403_v17 }
 0x1fc   :  { %7630 = sst [smem:[#allocation59_spill]] %s4714_s3  ;;  %v422_v53 = vmul.f32 %v421_v44, %v4473_v24 }
 0x1fd   :  { %7631 = sst [smem:[#allocation74_spill]] %s4719_s1 }
 0x1fe   :  { %s7635_s29 = sld [smem:[#allocation87_spill]]  ;;  %v409_v49 = vstv %s7632_s20  ;;  %v423_v15 = vadd.f32 %v422_v53, %v419_v52 }
 0x1ff   :  { %s7636_s26 = sld [smem:[#allocation93_spill]]  ;;  %v447_v50 = vstv %s7633_s23  ;;  %v410_v63 = vmul.f32 %v409_v49, %v4518_v41 }
 0x200   :  { %s4729_s24 = sld [smem:[#allocation2 + $0xd1]]  ;;  %v448_v1 = vmul.f32 %v447_v50, %v4467_v20 }
 0x201   :  { %7634 = sst [smem:[#allocation65_spill]] %s4725_s4  ;;  %v411_v34 = vadd.f32 %v410_v63, %v407_v14 }
 0x202   :  { %s7638_s27 = sld [smem:[#allocation72_spill]]  ;;  %v449_v23 = vadd.f32 %v448_v1, %v445_v0 }
 0x203   :  { %s7639_s25 = sld [smem:[#allocation83_spill]] }
 0x204   :  { %s4734_s22 = sld [smem:[#allocation2 + $0xd2]]  ;;  %v440_v54 = vstv %s7635_s29 }
 0x205   :  { %s7641_s1 = sld [smem:[#allocation98_spill]]  ;;  %v463_v55 = vstv %s7636_s26  ;;  %v441_v11 = vmul.f32 %v440_v54, %v4439_v5  ;;  %v528_v54 = vmul.f32 %v527_v46, %v4423_v61 }
 0x206   :  { %7637 = sst [smem:[#allocation60_spill]] %s4729_s24  ;;  %v464_v13 = vmul.f32 %v463_v55, %v4450_v10 }
 0x207   :  { %s4739_s30 = sld [smem:[#allocation2 + $0xd3]] }
 0x208   :  { %s7642_s3 = sld [smem:[#allocation80_spill]]  ;;  %v383_v60 = vstv %s7638_s27  ;;  %v465_v31 = vadd.f32 %v464_v13, %v441_v11 }
 0x209   :  { %s7643_s4 = sld [smem:[#allocation90_spill]]  ;;  %v425_v62 = vstv %s7639_s25  ;;  %v384_v19 = vmul.f32 %v383_v60, %v4547_v7  ;;  %v535_v60 = vstv %s4249_s9 }
 0x20a   :  { %7640 = sst [smem:[#allocation73_spill]] %s4734_s22  ;;  %v426_v16 = vmul.f32 %v425_v62, %v4503_v36  ;;  %v4808_v62 = vadd.f32 %v339_v38, %v4685_v40  ;;  %v536_v14 = vmul.f32 %v535_v60, %v4447_v9 }
 0x20b   :  { %s4744_s5 = sld [smem:[#allocation2 + $0xd5]]  ;;  %v481_v4 = vstv %s7641_s1  ;;  %v385_v49 = vadd.f32 %v384_v19, %v381_v51 }
 0x20c   :  { %s7644_s22 = sld [smem:[#allocation94_spill]]  ;;  %v482_v22 = vmul.f32 %v481_v4, %v4423_v61  ;;  %v427_v58 = vadd.f32 %v426_v16, %v423_v15  ;;  %v573_v15 = vstv %s4269_s10  ;;  %vm1506_vm14 = vcmp.gt.f32.partialorder %v4808_v62, 0.0 }
 0x20d   :  { %s4748_s24 = sld [smem:[#allocation2 + $0xd7]]  ;;  %v4819_v13 = vadd.f32 %v385_v49, %v369_v47 }
 0x20e   :  { %s7646_s20 = sld [smem:[#allocation84_spill]]  ;;  %v413_v8 = vstv %s7642_s3 }
 0x20f   :  { %s4753_s23 = sld [smem:[#allocation2 + $0xd9]]  ;;  %v451_v12 = vstv %s7643_s4  ;;  %v414_v29 = vmul.f32 %v413_v8, %v4572_v26  ;;  %vm1511_vm15 = vcmp.gt.f32.partialorder %v4819_v13, 0.0 }
 0x210   :  { %s7648_s29 = sld [smem:[#allocation97_spill]]  ;;  %v452_v25 = vmul.f32 %v451_v12, %v4488_v32 }
 0x211   :  { %s7649_s26 = sld [smem:[#allocation100_spill]]  ;;  %v415_v6 = vadd.f32 %v414_v29, %v411_v34 }
 0x212   :  { %s4759_s27 = sld [smem:[#allocation2 + $0xdb]]  ;;  %v467_v18 = vstv %s7644_s22  ;;  %v453_v48 = vadd.f32 %v452_v25, %v449_v23 }
 0x213   :  { %7645 = sst [smem:[#allocation76_spill]] %s4748_s24  ;;  %v468_v33 = vmul.f32 %v467_v18, %v4473_v24 }
 0x214   :  { %s7651_s25 = sld [smem:[#allocation91_spill]]  ;;  %v429_v21 = vstv %s7646_s20 }
 0x215   :  { %7647 = sst [smem:[#allocation63_spill]] %s4753_s23  ;;  %v430_v35 = vmul.f32 %v429_v21, %v4547_v7  ;;  %v469_v52 = vadd.f32 %v468_v33, %v465_v31 }
 0x216   :  { %s4763_s24 = sld [smem:[#allocation2 + $0xd4]]  ;;  %v483_v27 = vstv %s7648_s29 }
 0x217   :  { %s7652_s3 = sld [smem:[#allocation95_spill]]  ;;  %v489_v28 = vstv %s7649_s26  ;;  %v484_v42 = vadd.f32 %v483_v27, %v482_v22  ;;  %v431_v53 = vadd.f32 %v430_v35, %v427_v58  ;;  %v581_v58 = vstv %s4273_s12 }
 0x218   :  { %7650 = sst [smem:[#allocation66_spill]] %s4759_s27  ;;  %v490_v44 = vmul.f32 %v489_v28, %v4447_v9 }
 0x219   :  { %s4768_s1 = sld [smem:[#allocation2 + $0xd6]]  ;;  %v4825_v16 = vadd.f32 %v431_v53, %v415_v6  ;;  %v585_v53 = vstv %s4275_s14 }
 0x21a   :  { %s4773_s4 = sld [smem:[#allocation2 + $0xd8]]  ;;  %v455_v30 = vstv %s7651_s25  ;;  %v491_v55 = vadd.f32 %v490_v44, %v484_v42 }
 0x21b   :  { %s7655_s22 = sld [smem:[#allocation101_spill]]  ;;  %v456_v17 = vmul.f32 %v455_v30, %v4518_v41  ;;  %v574_v30 = vmul.f32 %v573_v15, %v4423_v61  ;;  %v589_v15 = vstv %s4277_s15  ;;  %vm1516_vm0 = vcmp.gt.f32.partialorder %v4825_v16, 0.0 }
 0x21c   :  { %s4778_s20 = sld [smem:[#allocation2 + $0xda]] }
 0x21d   :  { %s7657_s27 = sld [smem:[#allocation92_spill]]  ;;  %v471_v37 = vstv %s7652_s3  ;;  %v457_v63 = vadd.f32 %v456_v17, %v453_v48 }
 0x21e   :  { %s4782_s29 = sld [smem:[#allocation2 + $0x167]]  ;;  %v472_v3 = vmul.f32 %v471_v37, %v4503_v36 }
 0x21f   :  { %7653 = sst [smem:[#allocation69_spill]] %s4768_s1 }
 0x220   :  { %7654 = sst [smem:[#allocation86_spill]] %s4773_s4  ;;  %v473_v4 = vadd.f32 %v472_v3, %v469_v52 }
 0x221   :  { %s7659_s26 = sld [smem:[#allocation96_spill]]  ;;  %v493_v39 = vstv %s7655_s22 }
 0x222   :  { %7656 = sst [smem:[#allocation67_spill]] %s4778_s20  ;;  %v494_v56 = vmul.f32 %v493_v39, %v4467_v20 }
 0x223   :  { %s4788_s25 = sld [smem:[#allocation2 + $0xdc]]  ;;  %v459_v50 = vstv %s7657_s27 }
 0x224   :  { %7658 = sst [smem:[#allocation77_spill]] %s4782_s29  ;;  %v460_v0 = vmul.f32 %v459_v50, %v4572_v26  ;;  %v495_v18 = vadd.f32 %v494_v56, %v491_v55  ;;  %v582_v50 = vmul.f32 %v581_v58, %v4447_v9 }
 0x225   :  { %s7660_s20 = sld [smem:[#allocation109_spill]] }
 0x226   :  { %s4792_s3 = sld [smem:[#allocation2 + $0xdd]]  ;;  %v4831_v21 = vadd.f32 %v460_v0, %v457_v63  ;;  %v619_v0 = vstv %s4302_s17 }
 0x227   :  { %s7662_s4 = sld [smem:[#allocation102_spill]]  ;;  %v475_v45 = vstv %s7659_s26 }
 0x228   :  { %s4796_s1 = sld [smem:[#allocation2 + $0xde]]  ;;  %v476_v8 = vmul.f32 %v475_v45, %v4547_v7 }
 0x229   :  { %s7663_s7 = sld [smem:[#allocation99_spill]] }
 0x22a   :  { %s7664_s29 = sld [smem:[#allocation105_spill]]  ;;  %v4838_v27 = vadd.f32 %v476_v8, %v473_v4  ;;  %v586_v8 = vmul.f32 %v585_v53, %v4467_v20 }
 0x22b   :  { %s4800_s23 = sld [smem:[#allocation2 + $0xe0]]  ;;  %v529_v59 = vstv %s7660_s20 }
 0x22c   :  { %7661 = sst [smem:[#allocation75_spill]] %s4792_s3  ;;  %v530_v40 = vadd.f32 %v529_v59, %v528_v54 }
 0x22d   :  { %s4805_s27 = sld [smem:[#allocation2 + $0xe2]]  ;;  %v497_v1 = vstv %s7662_s4 }
 0x22e   :  { %s7667_s22 = sld [smem:[#allocation111_spill]]  ;;  %v498_v51 = vmul.f32 %v497_v1, %v4488_v32  ;;  %v537_v31 = vadd.f32 %v536_v14, %v530_v40 }
 0x22f   :  { %s4812_s26 = sld [smem:[#allocation2 + $0xe4]]  ;;  %v486_v11 = vstv %s7663_s7 }
 0x230   :  { %s7669_s3 = sld [smem:[#allocation103_spill]]  ;;  %v509_v12 = vstv %s7664_s29  ;;  %v487_v22 = vmul.f32 %v486_v11, %v4439_v5  ;;  %v499_v35 = vadd.f32 %v498_v51, %v495_v18  ;;  %v601_v11 = vstv %s4286_s2 }
 0x231   :  { %7665 = sst [smem:[#allocation81_spill]] %s4800_s23  ;;  %v510_v25 = vmul.f32 %v509_v12, %v4450_v10 }
 0x232   :  { %s4817_s20 = sld [smem:[#allocation2 + $0xe6]] }
 0x233   :  { %7666 = sst [smem:[#allocation68_spill]] %s4805_s27  ;;  %v511_v44 = vadd.f32 %v510_v25, %v487_v22  ;;  %v620_v22 = vmul.f32 %v619_v0, %v4423_v61  ;;  %v602_v25 = vmul.f32 %v601_v11, %v4450_v10  ;;  %v635_v0 = vstv %s4321_s18 }
 0x234   :  { %s7671_s9 = sld [smem:[#allocation104_spill]]  ;;  %v539_v19 = vstv %s7667_s22 }
 0x235   :  { %7668 = sst [smem:[#allocation70_spill]] %s4812_s26  ;;  %v540_v33 = vmul.f32 %v539_v19, %v4467_v20 }
 0x236   :  { %s7672_s27 = sld [smem:[#allocation106_spill]]  ;;  %v501_v23 = vstv %s7669_s3 }
 0x237   :  { %s4823_s23 = sld [smem:[#allocation2 + $0xdf]]  ;;  %v502_v37 = vmul.f32 %v501_v23, %v4518_v41  ;;  %v541_v3 = vadd.f32 %v540_v33, %v537_v31  ;;  %v590_v33 = vmul.f32 %v589_v15, %v4488_v32 }
 0x238   :  { %7670 = sst [smem:[#allocation71_spill]] %s4817_s20 }
 0x239   :  { %s7674_s4 = sld [smem:[#allocation119_spill]]  ;;  %v503_v45 = vadd.f32 %v502_v37, %v499_v35 }
 0x23a   :  { %s4829_s29 = sld [smem:[#allocation2 + $0xe1]]  ;;  %v505_v28 = vstv %s7671_s9 }
 0x23b   :  { %s7676_s7 = sld [smem:[#allocation107_spill]]  ;;  %v506_v17 = vmul.f32 %v505_v28, %v4572_v26  ;;  %v621_v28 = vstv %s4299_s13 }
 0x23c   :  { %s7677_s10 = sld [smem:[#allocation112_spill]]  ;;  %v513_v29 = vstv %s7672_s27 }
 0x23d   :  { %7673 = sst [smem:[#allocation85_spill]] %s4823_s23  ;;  %v514_v46 = vmul.f32 %v513_v29, %v4473_v24  ;;  %v627_v29 = vstv %s4312_s0 }
 0x23e   :  { %s4836_s20 = sld [smem:[#allocation2 + $0xe3]] }
 0x23f   :  { %s7678_s26 = sld [smem:[#allocation110_spill]]  ;;  %v575_v34 = vstv %s7674_s4  ;;  %v515_v59 = vadd.f32 %v514_v46, %v511_v44  ;;  %v622_v46 = vadd.f32 %v621_v28, %v620_v22 }
 0x240   :  { %7675 = sst [smem:[#allocation88_spill]] %s4829_s29  ;;  %v576_v49 = vadd.f32 %v575_v34, %v574_v30  ;;  %v4901_v30 = vadd.f32 %v506_v17, %v503_v45  ;;  %v605_v34 = vstv %s4288_s8 }
 0x241   :  { %s7679_s22 = sld [smem:[#allocation115_spill]]  ;;  %v517_v38 = vstv %s7676_s7 }
 0x242   :  { %s4843_s29 = sld [smem:[#allocation2 + $0xe5]]  ;;  %v543_v42 = vstv %s7677_s10  ;;  %v518_v52 = vmul.f32 %v517_v38, %v4503_v36  ;;  %v583_v4 = vadd.f32 %v582_v50, %v576_v49  ;;  %v631_v49 = vstv %s4316_s21 }
 0x243   :  { %s7681_s23 = sld [smem:[#allocation108_spill]]  ;;  %v544_v6 = vmul.f32 %v543_v42, %v4488_v32 }
 0x244   :  { %s4848_s3 = sld [smem:[#allocation2 + $0x168]]  ;;  %v587_v31 = vadd.f32 %v586_v8, %v583_v4  ;;  %v519_v58 = vadd.f32 %v518_v52, %v515_v59 }
 0x245   :  { %s4853_s27 = sld [smem:[#allocation2 + $0xe7]]  ;;  %v532_v47 = vstv %s7678_s26  ;;  %v545_v12 = vadd.f32 %v544_v6, %v541_v3  ;;  %v609_v6 = vstv %s4291_s11 }
 0x246   :  { %s7682_s9 = sld [smem:[#allocation113_spill]]  ;;  %v533_v54 = vmul.f32 %v532_v47, %v4439_v5  ;;  %v628_v47 = vmul.f32 %v627_v29, %v4447_v9  ;;  %v591_v50 = vadd.f32 %v590_v33, %v587_v31  ;;  %v610_v8 = vmul.f32 %v609_v6, %v4503_v36 }
 0x247   :  { %v555_v48 = vstv %s7679_s22  ;;  %s7684_s12 = sld [smem:[#allocation116_spill]] }
 0x248   :  { %7680 = sst [smem:[#allocation78_spill]] %s4843_s29  ;;  %v556_v56 = vmul.f32 %v555_v48, %v4450_v10  ;;  %v629_v59 = vadd.f32 %v628_v47, %v622_v46 }
 0x249   :  { %s4858_s29 = sld [smem:[#allocation2 + $0xe8]]  ;;  %v521_v39 = vstv %s7681_s23 }
 0x24a   :  { %s4863_s4 = sld [smem:[#allocation2 + $0xe9]]  ;;  %v522_v60 = vmul.f32 %v521_v39, %v4547_v7  ;;  %v557_v18 = vadd.f32 %v556_v56, %v533_v54  ;;  %v606_v39 = vmul.f32 %v605_v34, %v4473_v24  ;;  %v613_v56 = vstv %s4295_s16 }
 0x24b   :  { %s7685_s7 = sld [smem:[#allocation120_spill]]  ;;  %v4956_v15 = vmul.f32 %v613_v56, %v4547_v7 }
 0x24c   :  { %s4868_s26 = sld [smem:[#allocation2 + $0xeb]]  ;;  %v547_v55 = vstv %s7682_s9  ;;  %v4925_v53 = vadd.f32 %v522_v60, %v519_v58 }
 0x24d   :  { %s7686_s23 = sld [smem:[#allocation114_spill]]  ;;  %v559_v63 = vstv %s7684_s12  ;;  %v548_v40 = vmul.f32 %v547_v55, %v4518_v41  ;;  %v665_v55 = vstv %s4359_s28 }
 0x24e   :  { %s4873_s10 = sld [smem:[#allocation2 + $0xed]]  ;;  %v560_v51 = vmul.f32 %v559_v63, %v4473_v24  ;;  %v632_v63 = vmul.f32 %v631_v49, %v4467_v20 }
 0x24f   :  { %7683 = sst [smem:[#allocation82_spill]] %s4858_s29  ;;  %v549_v35 = vadd.f32 %v548_v40, %v545_v12  ;;  %v624_v12 = vstv %s4306_s19  ;;  %v666_v40 = vmul.f32 %v665_v55, %v4423_v61 }
 0x250   :  { %s7687_s22 = sld [smem:[#allocation117_spill]]  ;;  %v561_v48 = vadd.f32 %v560_v51, %v557_v18  ;;  %v636_v18 = vmul.f32 %v635_v0, %v4488_v32  ;;  %v633_v22 = vadd.f32 %v632_v63, %v629_v59  ;;  %v625_v31 = vmul.f32 %v624_v12, %v4439_v5 }
 0x251   :  { %s4878_s29 = sld [smem:[#allocation2 + $0xef]]  ;;  %v578_v1 = vstv %s7685_s7 }
 0x252   :  { %s4883_s14 = sld [smem:[#allocation2 + $0xf1]]  ;;  %v579_v23 = vmul.f32 %v578_v1, %v4439_v5 }
 0x253   :  { %v551_v14 = vstv %s7686_s23  ;;  %s4888_s9 = sld [smem:[#allocation2 + $0xea]] }
 0x254   :  { %s7688_s17 = sld [smem:[#allocation121_spill]]  ;;  %v552_v37 = vmul.f32 %v551_v14, %v4572_v26  ;;  %v603_v17 = vadd.f32 %v602_v25, %v579_v23 }
 0x255   :  { %s4893_s12 = sld [smem:[#allocation2 + $0xec]] }
 0x256   :  { %v563_v19 = vstv %s7687_s22  ;;  %s7689_s2 = sld [smem:[#allocation118_spill]]  ;;  %v4927_v45 = vadd.f32 %v552_v37, %v549_v35  ;;  %v607_v4 = vadd.f32 %v606_v39, %v603_v17 }
 0x257   :  { %s4899_s7 = sld [smem:[#allocation2 + $0xee]]  ;;  %v564_v42 = vmul.f32 %v563_v19, %v4503_v36 }
 0x258   :  { %s4905_s15 = sld [smem:[#allocation2 + $0xf0]]  ;;  %v4968_v29 = vadd.f32 %v610_v8, %v607_v4 }
 0x259   :  { %s7692_s23 = sld [smem:[#allocation122_spill]]  ;;  %v4940_v60 = vadd.f32 %v564_v42, %v561_v48  ;;  %v637_v48 = vadd.f32 %v636_v18, %v633_v22 }
 0x25a   :  { %v593_v38 = vstv %s7688_s17  ;;  %s4909_s13 = sld [smem:[#allocation2 + $0x169]] }
 0x25b   :  { %s4914_s0 = sld [smem:[#allocation2 + $0xf2]]  ;;  %v594_v52 = vmul.f32 %v593_v38, %v4518_v41 }
 0x25c   :  { %v567_v44 = vstv %s7689_s2  ;;  %s4918_s8 = sld [smem:[#allocation2 + $0xf3]] }
 0x25d   :  { %7690 = sst [smem:[#allocation79_spill]] %s4899_s7  ;;  %v4930_v54 = vmul.f32 %v567_v44, %v4547_v7  ;;  %v4948_v11 = vadd.f32 %v594_v52, %v591_v50 }
 0x25e   :  { %7691 = sst [smem:[#allocation89_spill]] %s4905_s15 }
 0x25f   :  { %v597_v3 = vstv %s7692_s23  ;;  %s4923_s22 = sld [smem:[#allocation2 + $0xf4]] }
 0x260   :  { %s7695_s17 = sld [smem:[#allocation139_spill]]  ;;  %v4943_v1 = vmul.f32 %v597_v3, %v4572_v26 }
 0x261   :  { %s4933_s21 = sld [smem:[#allocation2 + $0xf6]] }
 0x262   :  { %7693 = sst [smem:[#allocation87_spill]] %s4918_s8 }
 0x263   :  { %s7697_s2 = sld [smem:[#allocation129_spill]] }
 0x264   :  { %s7698_s11 = sld [smem:[#allocation131_spill]] }
 0x265   :  { %7694 = sst [smem:[#allocation93_spill]] %s4923_s22 }
 0x266   :  { %s4938_s23 = sld [smem:[#allocation2 + $0xf8]]  ;;  %v711_v14 = vstv %s7695_s17 }
 0x267   :  { %7696 = sst [smem:[#allocation72_spill]] %s4933_s21  ;;  %v712_v34 = vmul.f32 %v711_v14, %v4423_v61 }
 0x268   :  { %s7700_s8 = sld [smem:[#allocation123_spill]] }
 0x269   :  { %s7701_s15 = sld [smem:[#allocation124_spill]]  ;;  %v667_v51 = vstv %s7697_s2 }
 0x26a   :  { %s7702_s28 = sld [smem:[#allocation125_spill]]  ;;  %v673_v19 = vstv %s7698_s11  ;;  %v668_v58 = vadd.f32 %v667_v51, %v666_v40 }
 0x26b   :  { %s4946_s16 = sld [smem:[#allocation2 + $0xfa]]  ;;  %v674_v35 = vmul.f32 %v673_v19, %v4447_v9 }
 0x26c   :  { %7699 = sst [smem:[#allocation83_spill]] %s4938_s23 }
 0x26d   :  { %s7704_s18 = sld [smem:[#allocation126_spill]]  ;;  %v675_v55 = vadd.f32 %v674_v35, %v668_v58 }
 0x26e   :  { %s4953_s23 = sld [smem:[#allocation2 + $0xfc]]  ;;  %v639_v23 = vstv %s7700_s8 }
 0x26f   :  { %s7706_s21 = sld [smem:[#allocation138_spill]]  ;;  %v643_v25 = vstv %s7701_s15  ;;  %v640_v42 = vmul.f32 %v639_v23, %v4518_v41 }
 0x270   :  { %s7707_s7 = sld [smem:[#allocation14_spill]]  ;;  %v647_v28 = vstv %s7702_s28  ;;  %v4982_v44 = vmul.f32 %v643_v25, %v4572_v26 }
 0x271   :  { %7703 = sst [smem:[#allocation98_spill]] %s4946_s16  ;;  %v648_v46 = vmul.f32 %v647_v28, %v4450_v10  ;;  %v641_v58 = vadd.f32 %v640_v42, %v637_v48 }
 0x272   :  { %s4961_s22 = sld [smem:[#allocation2 + $0xf5]] }
 0x273   :  { %s7709_s19 = sld [smem:[#allocation12_spill]]  ;;  %v651_v33 = vstv %s7704_s18  ;;  %v649_v0 = vadd.f32 %v648_v46, %v625_v31 }
 0x274   :  { %7705 = sst [smem:[#allocation80_spill]] %s4953_s23  ;;  %v652_v17 = vmul.f32 %v651_v33, %v4473_v24 }
 0x275   :  { %s4966_s16 = sld [smem:[#allocation2 + $0xf7]]  ;;  %v713_v37 = vstv %s7706_s21 }
 0x276   :  { %s7711_s17 = sld [smem:[#allocation130_spill]]  ;;  %v719_v38 = vstv %s7707_s7  ;;  %v714_v52 = vadd.f32 %v713_v37, %v712_v34  ;;  %v653_v46 = vadd.f32 %v652_v17, %v649_v0 }
 0x277   :  { %s7712_s23 = sld [smem:[#allocation11_spill]]  ;;  %v720_v6 = vmul.f32 %v719_v38, %v4447_v9 }
 0x278   :  { %7708 = sst [smem:[#allocation90_spill]] %s4961_s22 }
 0x279   :  { %s4973_s2 = sld [smem:[#allocation2 + $0xf9]]  ;;  %v677_v47 = vstv %s7709_s19  ;;  %v721_v19 = vadd.f32 %v720_v6, %v714_v52 }
 0x27a   :  { %s7714_s11 = sld [smem:[#allocation127_spill]]  ;;  %v678_v56 = vmul.f32 %v677_v47, %v4467_v20 }
 0x27b   :  { %7710 = sst [smem:[#allocation94_spill]] %s4966_s16 }
 0x27c   :  { %s7715_s15 = sld [smem:[#allocation140_spill]]  ;;  %v670_v39 = vstv %s7711_s17  ;;  %v679_v31 = vadd.f32 %v678_v56, %v675_v55 }
 0x27d   :  { %s4978_s8 = sld [smem:[#allocation2 + $0xfb]]  ;;  %v693_v49 = vstv %s7712_s23  ;;  %v671_v4 = vmul.f32 %v670_v39, %v4439_v5 }
 0x27e   :  { %s7717_s28 = sld [smem:[#allocation141_spill]]  ;;  %v694_v12 = vmul.f32 %v693_v49, %v4450_v10 }
 0x27f   :  { %7713 = sst [smem:[#allocation84_spill]] %s4973_s2 }
 0x280   :  { %s7718_s18 = sld [smem:[#allocation16_spill]]  ;;  %v655_v50 = vstv %s7714_s11  ;;  %v695_v35 = vadd.f32 %v694_v12, %v671_v4 }
 0x281   :  { %s4986_s2 = sld [smem:[#allocation2 + $0x16a]]  ;;  %v656_v40 = vmul.f32 %v655_v50, %v4503_v36 }
 0x282   :  { %s7720_s16 = sld [smem:[#allocation132_spill]]  ;;  %v716_v3 = vstv %s7715_s15 }
 0x283   :  { %7716 = sst [smem:[#allocation97_spill]] %s4978_s8  ;;  %v717_v51 = vmul.f32 %v716_v3, %v4439_v5  ;;  %v657_v4 = vadd.f32 %v656_v40, %v653_v46  ;;  %v615_v46 = vadd.f32 %v4956_v15, %v4968_v29 }
 0x284   :  { %s4991_s7 = sld [smem:[#allocation2 + $0xfd]]  ;;  %v723_v59 = vstv %s7717_s28 }
 0x285   :  { %s7722_s21 = sld [smem:[#allocation133_spill]]  ;;  %v724_v22 = vmul.f32 %v723_v59, %v4467_v20 }
 0x286   :  { %s7723_s8 = sld [smem:[#allocation135_spill]]  ;;  %v739_v63 = vstv %s7718_s18 }
 0x287   :  { %7719 = sst [smem:[#allocation100_spill]] %s4986_s2  ;;  %v740_v25 = vmul.f32 %v739_v63, %v4450_v10  ;;  %v725_v50 = vadd.f32 %v724_v22, %v721_v19 }
 0x288   :  { %s4996_s22 = sld [smem:[#allocation2 + $0xfe]]  ;;  %v681_v8 = vstv %s7720_s16 }
 0x289   :  { %s7725_s19 = sld [smem:[#allocation142_spill]]  ;;  %v682_v33 = vmul.f32 %v681_v8, %v4488_v32  ;;  %v741_v48 = vadd.f32 %v740_v25, %v717_v51 }
 0x28a   :  { %7721 = sst [smem:[#allocation91_spill]] %s4991_s7 }
 0x28b   :  { %s5001_s2 = sld [smem:[#allocation2 + $0xff]]  ;;  %v685_v14 = vstv %s7722_s21  ;;  %v683_v3 = vadd.f32 %v682_v33, %v679_v31 }
 0x28c   :  { %s7727_s23 = sld [smem:[#allocation128_spill]]  ;;  %v697_v18 = vstv %s7723_s8  ;;  %v686_v47 = vmul.f32 %v685_v14, %v4518_v41 }
 0x28d   :  { %s7728_s17 = sld [smem:[#allocation21_spill]]  ;;  %v698_v37 = vmul.f32 %v697_v18, %v4473_v24 }
 0x28e   :  { %7724 = sst [smem:[#allocation95_spill]] %s4996_s22 }
 0x28f   :  { %s5006_s11 = sld [smem:[#allocation2 + $0x101]]  ;;  %v727_v23 = vstv %s7725_s19  ;;  %v699_v56 = vadd.f32 %v698_v37, %v695_v35  ;;  %v569_v37 = vadd.f32 %v4930_v54, %v4940_v60  ;;  %v5080_v54 = vadd.f32 %v4838_v27, %v4831_v21 }
 0x290   :  { %s7730_s15 = sld [smem:[#allocation22_spill]]  ;;  %v728_v49 = vmul.f32 %v727_v23, %v4488_v32  ;;  %v645_v60 = vadd.f32 %v4982_v44, %v641_v58  ;;  %v5091_v21 = vadd.f32 %v4925_v53, %v4901_v30 }
 0x291   :  { %7726 = sst [smem:[#allocation101_spill]] %s5001_s2  ;;  %v5094_v27 = vadd.f32 %v569_v37, %v4927_v45  ;;  %vm1521_vm1 = vcmp.gt.f32.partialorder %v5080_v54, 0.0 }
 0x292   :  { %s5012_s28 = sld [smem:[#allocation2 + $0x103]]  ;;  %v659_v28 = vstv %s7727_s23  ;;  %v729_v18 = vadd.f32 %v728_v49, %v725_v50  ;;  %vm1526_vm2 = vcmp.gt.f32.partialorder %v5091_v21, 0.0 }
 0x293   :  { %s7732_s18 = sld [smem:[#allocation136_spill]]  ;;  %v743_v34 = vstv %s7728_s17  ;;  %v660_v8 = vmul.f32 %v659_v28, %v4547_v7  ;;  %v687_v28 = vadd.f32 %v686_v47, %v683_v3  ;;  %vm1531_vm3 = vcmp.gt.f32.partialorder %v5094_v27, 0.0 }
 0x294   :  { %s5017_s16 = sld [smem:[#allocation2 + $0x105]]  ;;  %v744_v52 = vmul.f32 %v743_v34, %v4473_v24 }
 0x295   :  { %7729 = sst [smem:[#allocation92_spill]] %s5006_s11  ;;  %v661_v15 = vadd.f32 %v660_v8, %v657_v4 }
 0x296   :  { %s7734_s22 = sld [smem:[#allocation13_spill]]  ;;  %v757_v38 = vstv %s7730_s15  ;;  %v745_v19 = vadd.f32 %v744_v52, %v741_v48 }
 0x297   :  { %s5022_s8 = sld [smem:[#allocation2 + $0x107]]  ;;  %v758_v55 = vmul.f32 %v757_v38, %v4423_v61  ;;  %v599_v38 = vadd.f32 %v4943_v1, %v4948_v11 }
 0x298   :  { %7731 = sst [smem:[#allocation96_spill]] %s5012_s28 }
 0x299   :  { %s7736_s21 = sld [smem:[#allocation134_spill]]  ;;  %v701_v39 = vstv %s7732_s18  ;;  %v5096_v44 = vadd.f32 %v615_v46, %v599_v38 }
 0x29a   :  { %7733 = sst [smem:[#allocation109_spill]] %s5017_s16  ;;  %v702_v59 = vmul.f32 %v701_v39, %v4503_v36 }
 0x29b   :  { %s7737_s28 = sld [smem:[#allocation143_spill]]  ;;  %vm1536_vm4 = vcmp.gt.f32.partialorder %v5096_v44, 0.0 }
 0x29c   :  { %s5026_s19 = sld [smem:[#allocation2 + $0x100]]  ;;  %v731_v42 = vstv %s7734_s22  ;;  %v703_v33 = vadd.f32 %v702_v59, %v699_v56  ;;  %v5110_v59 = vadd.f32 %v661_v15, %v645_v60 }
 0x29d   :  { %7735 = sst [smem:[#allocation102_spill]] %s5022_s8  ;;  %v732_v14 = vmul.f32 %v731_v42, %v4518_v41 }
 0x29e   :  { %s7739_s23 = sld [smem:[#allocation17_spill]]  ;;  %vm1541_vm5 = vcmp.gt.f32.partialorder %v5110_v59, 0.0 }
 0x29f   :  { %s7740_s16 = sld [smem:[#allocation18_spill]]  ;;  %v689_v17 = vstv %s7736_s21  ;;  %v733_v47 = vadd.f32 %v732_v14, %v729_v18 }
 0x2a0   :  { %s5031_s17 = sld [smem:[#allocation2 + $0x102]]  ;;  %v690_v23 = vmul.f32 %v689_v17, %v4572_v26 }
 0x2a1   :  { %s7742_s8 = sld [smem:[#allocation137_spill]]  ;;  %v747_v6 = vstv %s7737_s28 }
 0x2a2   :  { %7738 = sst [smem:[#allocation99_spill]] %s5026_s19  ;;  %v748_v22 = vmul.f32 %v747_v6, %v4503_v36  ;;  %v691_v29 = vadd.f32 %v690_v23, %v687_v28 }
 0x2a3   :  { %s5035_s11 = sld [smem:[#allocation2 + $0x104]] }
 0x2a4   :  { %s7744_s15 = sld [smem:[#allocation15_spill]]  ;;  %v759_v63 = vstv %s7739_s23  ;;  %v749_v49 = vadd.f32 %v748_v22, %v745_v19 }
 0x2a5   :  { %s5040_s18 = sld [smem:[#allocation2 + $0x106]]  ;;  %v765_v0 = vstv %s7740_s16  ;;  %v760_v31 = vadd.f32 %v759_v63, %v758_v55 }
 0x2a6   :  { %7741 = sst [smem:[#allocation105_spill]] %s5031_s17  ;;  %v766_v40 = vmul.f32 %v765_v0, %v4447_v9 }
 0x2a7   :  { %s7746_s19 = sld [smem:[#allocation144_spill]]  ;;  %v705_v12 = vstv %s7742_s8 }
 0x2a8   :  { %s5045_s22 = sld [smem:[#allocation2 + $0x16b]]  ;;  %v706_v34 = vmul.f32 %v705_v12, %v4547_v7  ;;  %v767_v1 = vadd.f32 %v766_v40, %v760_v31 }
 0x2a9   :  { %7743 = sst [smem:[#allocation111_spill]] %s5035_s11 }
 0x2aa   :  { %s7748_s11 = sld [smem:[#allocation145_spill]]  ;;  %v735_v51 = vstv %s7744_s15  ;;  %v707_v48 = vadd.f32 %v706_v34, %v703_v33 }
 0x2ab   :  { %7745 = sst [smem:[#allocation103_spill]] %s5040_s18  ;;  %v736_v39 = vmul.f32 %v735_v51, %v4572_v26 }
 0x2ac   :  { %s5050_s28 = sld [smem:[#allocation2 + $0x108]]  ;;  %v5112_v63 = vadd.f32 %v707_v48, %v691_v29 }
 0x2ad   :  { %s5054_s21 = sld [smem:[#allocation2 + $0x109]]  ;;  %v751_v25 = vstv %s7746_s19  ;;  %v737_v3 = vadd.f32 %v736_v39, %v733_v47 }
 0x2ae   :  { %7747 = sst [smem:[#allocation104_spill]] %s5045_s22  ;;  %v752_v50 = vmul.f32 %v751_v25, %v4547_v7  ;;  %vm1546_vm6 = vcmp.gt.f32.partialorder %v5112_v63, 0.0 }
 0x2af   :  { %s7751_s16 = sld [smem:[#allocation20_spill]] }
 0x2b0   :  { %s5059_s8 = sld [smem:[#allocation2 + $0x10a]]  ;;  %v769_v35 = vstv %s7748_s11  ;;  %v753_v17 = vadd.f32 %v752_v50, %v749_v49 }
 0x2b1   :  { %s5063_s23 = sld [smem:[#allocation2 + $0x10c]]  ;;  %v770_v11 = vmul.f32 %v769_v35, %v4467_v20 }
 0x2b2   :  { %7749 = sst [smem:[#allocation106_spill]] %s5050_s28  ;;  %v5123_v51 = vadd.f32 %v753_v17, %v737_v3 }
 0x2b3   :  { %7750 = sst [smem:[#allocation119_spill]] %s5054_s21  ;;  %v771_v53 = vadd.f32 %v770_v11, %v767_v1 }
 0x2b4   :  { %s7754_s19 = sld [smem:[#allocation25_spill]]  ;;  %vm1551_vm7 = vcmp.gt.f32.partialorder %v5123_v51, 0.0 }
 0x2b5   :  { %s5072_s15 = sld [smem:[#allocation2 + $0x10e]]  ;;  %v803_v42 = vstv %s7751_s16 }
 0x2b6   :  { %7752 = sst [smem:[#allocation107_spill]] %s5059_s8  ;;  %v804_v58 = vmul.f32 %v803_v42, %v4423_v61 }
 0x2b7   :  { %7753 = sst [smem:[#allocation112_spill]] %s5063_s23 }
 0x2b8   :  { %s5076_s11 = sld [smem:[#allocation2 + $0x110]] }
 0x2b9   :  { %s7757_s21 = sld [smem:[#allocation30_spill]] }
 0x2ba   :  { %s7758_s23 = sld [smem:[#allocation37_spill]]  ;;  %v773_v52 = vstv %s7754_s19 }
 0x2bb   :  { %7755 = sst [smem:[#allocation110_spill]] %s5072_s15  ;;  %v774_v45 = vmul.f32 %v773_v52, %v4488_v32 }
 0x2bc   :  { %s5084_s18 = sld [smem:[#allocation2 + $0x112]] }
 0x2bd   :  { %s7760_s15 = sld [smem:[#allocation26_spill]]  ;;  %v775_v25 = vadd.f32 %v774_v45, %v771_v53 }
 0x2be   :  { %7756 = sst [smem:[#allocation115_spill]] %s5076_s11 }
 0x2bf   :  { %s7761_s16 = sld [smem:[#allocation28_spill]]  ;;  %v805_v6 = vstv %s7757_s21 }
 0x2c0   :  { %s5087_s11 = sld [smem:[#allocation2 + $0x10b]]  ;;  %v811_v55 = vstv %s7758_s23  ;;  %v806_v12 = vadd.f32 %v805_v6, %v804_v58 }
 0x2c1   :  { %s7763_s8 = sld [smem:[#allocation19_spill]]  ;;  %v812_v14 = vmul.f32 %v811_v55, %v4447_v9 }
 0x2c2   :  { %7759 = sst [smem:[#allocation108_spill]] %s5084_s18 }
 0x2c3   :  { %s7764_s18 = sld [smem:[#allocation23_spill]]  ;;  %v762_v30 = vstv %s7760_s15  ;;  %v813_v38 = vadd.f32 %v812_v14, %v806_v12 }
 0x2c4   :  { %s5099_s22 = sld [smem:[#allocation2 + $0x10d]]  ;;  %v763_v19 = vmul.f32 %v762_v30, %v4439_v5 }
 0x2c5   :  { %s7766_s28 = sld [smem:[#allocation27_spill]]  ;;  %v777_v56 = vstv %s7761_s16 }
 0x2c6   :  { %7762 = sst [smem:[#allocation113_spill]] %s5087_s11  ;;  %v778_v22 = vmul.f32 %v777_v56, %v4518_v41 }
 0x2c7   :  { %s7767_s19 = sld [smem:[#allocation34_spill]]  ;;  %v781_v0 = vstv %s7763_s8 }
 0x2c8   :  { %s5103_s11 = sld [smem:[#allocation2 + $0x10f]]  ;;  %v782_v33 = vmul.f32 %v781_v0, %v4572_v26  ;;  %v779_v1 = vadd.f32 %v778_v22, %v775_v25 }
 0x2c9   :  { %s7769_s17 = sld [smem:[#allocation40_spill]]  ;;  %v785_v4 = vstv %s7764_s18 }
 0x2ca   :  { %7765 = sst [smem:[#allocation116_spill]] %s5099_s22  ;;  %v786_v31 = vmul.f32 %v785_v4, %v4450_v10 }
 0x2cb   :  { %s5108_s2 = sld [smem:[#allocation2 + $0x111]]  ;;  %v789_v8 = vstv %s7766_s28 }
 0x2cc   :  { %s7771_s22 = sld [smem:[#allocation24_spill]]  ;;  %v790_v34 = vmul.f32 %v789_v8, %v4473_v24  ;;  %v787_v11 = vadd.f32 %v786_v31, %v763_v19 }
 0x2cd   :  { %s7772_s7 = sld [smem:[#allocation39_spill]]  ;;  %v849_v18 = vstv %s7767_s19 }
 0x2ce   :  { %7768 = sst [smem:[#allocation120_spill]] %s5103_s11  ;;  %v850_v37 = vmul.f32 %v849_v18, %v4423_v61  ;;  %v791_v4 = vadd.f32 %v790_v34, %v787_v11 }
 0x2cf   :  { %s5116_s21 = sld [smem:[#allocation2 + $0x16c]]  ;;  %v815_v23 = vstv %s7769_s17 }
 0x2d0   :  { %s7774_s23 = sld [smem:[#allocation38_spill]]  ;;  %v816_v46 = vmul.f32 %v815_v23, %v4467_v20 }
 0x2d1   :  { %7770 = sst [smem:[#allocation114_spill]] %s5108_s2 }
 0x2d2   :  { %s5121_s15 = sld [smem:[#allocation2 + $0x113]]  ;;  %v808_v40 = vstv %s7771_s22  ;;  %v817_v6 = vadd.f32 %v816_v46, %v813_v38 }
 0x2d3   :  { %s7775_s16 = sld [smem:[#allocation52_spill]]  ;;  %v831_v28 = vstv %s7772_s7  ;;  %v809_v50 = vmul.f32 %v808_v40, %v4439_v5 }
 0x2d4   :  { %s7776_s8 = sld [smem:[#allocation46_spill]]  ;;  %v832_v60 = vmul.f32 %v831_v28, %v4450_v10 }
 0x2d5   :  { %7773 = sst [smem:[#allocation117_spill]] %s5116_s21 }
 0x2d6   :  { %s5128_s18 = sld [smem:[#allocation2 + $0x114]]  ;;  %v793_v35 = vstv %s7774_s23  ;;  %v833_v53 = vadd.f32 %v832_v60, %v809_v50  ;;  %v783_v50 = vadd.f32 %v782_v33, %v779_v1 }
 0x2d7   :  { %s7778_s2 = sld [smem:[#allocation29_spill]]  ;;  %v794_v15 = vmul.f32 %v793_v35, %v4503_v36 }
 0x2d8   :  { %s7779_s28 = sld [smem:[#allocation50_spill]] }
 0x2d9   :  { %s5133_s19 = sld [smem:[#allocation2 + $0x115]]  ;;  %v851_v39 = vstv %s7775_s16  ;;  %v795_v46 = vadd.f32 %v794_v15, %v791_v4  ;;  %v923_v4 = vstv %s4703_s6 }
 0x2da   :  { %s7781_s21 = sld [smem:[#allocation41_spill]]  ;;  %v857_v47 = vstv %s7776_s8  ;;  %v852_v52 = vadd.f32 %v851_v39, %v850_v37 }
 0x2db   :  { %s5139_s17 = sld [smem:[#allocation2 + $0x117]]  ;;  %v858_v58 = vmul.f32 %v857_v47, %v4447_v9 }
 0x2dc   :  { %7777 = sst [smem:[#allocation121_spill]] %s5128_s18 }
 0x2dd   :  { %s7783_s18 = sld [smem:[#allocation31_spill]]  ;;  %v797_v49 = vstv %s7778_s2  ;;  %v859_v18 = vadd.f32 %v858_v58, %v852_v52 }
 0x2de   :  { %s7784_s11 = sld [smem:[#allocation44_spill]]  ;;  %v819_v42 = vstv %s7779_s28  ;;  %v798_v17 = vmul.f32 %v797_v49, %v4547_v7 }
 0x2df   :  { %7780 = sst [smem:[#allocation118_spill]] %s5133_s19  ;;  %v820_v55 = vmul.f32 %v819_v42, %v4488_v32 }
 0x2e0   :  { %s5144_s7 = sld [smem:[#allocation2 + $0x119]]  ;;  %v835_v29 = vstv %s7781_s21 }
 0x2e1   :  { %7782 = sst [smem:[#allocation122_spill]] %s5139_s17  ;;  %v836_v45 = vmul.f32 %v835_v29, %v4473_v24  ;;  %v821_v34 = vadd.f32 %v820_v55, %v817_v6  ;;  %v799_v6 = vadd.f32 %v798_v17, %v795_v46 }
 0x2e2   :  { %s7786_s22 = sld [smem:[#allocation32_spill]] }
 0x2e3   :  { %s5150_s23 = sld [smem:[#allocation2 + $0x11b]]  ;;  %v823_v48 = vstv %s7783_s18  ;;  %v837_v35 = vadd.f32 %v836_v45, %v833_v53 }
 0x2e4   :  { %s7788_s17 = sld [smem:[#allocation42_spill]]  ;;  %v895_v3 = vstv %s7784_s11  ;;  %v824_v8 = vmul.f32 %v823_v48, %v4518_v41 }
 0x2e5   :  { %s7789_s19 = sld [smem:[#allocation47_spill]]  ;;  %v896_v14 = vmul.f32 %v895_v3, %v4423_v61 }
 0x2e6   :  { %7785 = sst [smem:[#allocation139_spill]] %s5144_s7  ;;  %v825_v58 = vadd.f32 %v824_v8, %v821_v34 }
 0x2e7   :  { %s5154_s16 = sld [smem:[#allocation2 + $0x11d]] }
 0x2e8   :  { %s7791_s2 = sld [smem:[#allocation45_spill]]  ;;  %v861_v30 = vstv %s7786_s22 }
 0x2e9   :  { %7787 = sst [smem:[#allocation129_spill]] %s5150_s23  ;;  %v862_v19 = vmul.f32 %v861_v30, %v4467_v20 }
 0x2ea   :  { %s5159_s8 = sld [smem:[#allocation2 + $0x116]]  ;;  %v854_v56 = vstv %s7788_s17 }
 0x2eb   :  { %s7793_s28 = sld [smem:[#allocation57_spill]]  ;;  %v877_v0 = vstv %s7789_s19  ;;  %v855_v31 = vmul.f32 %v854_v56, %v4439_v5  ;;  %v863_v42 = vadd.f32 %v862_v19, %v859_v18 }
 0x2ec   :  { %s7794_s23 = sld [smem:[#allocation62_spill]]  ;;  %v878_v28 = vmul.f32 %v877_v0, %v4450_v10 }
 0x2ed   :  { %7790 = sst [smem:[#allocation131_spill]] %s5154_s16 }
 0x2ee   :  { %s5164_s7 = sld [smem:[#allocation2 + $0x118]]  ;;  %v839_v12 = vstv %s7791_s2  ;;  %v879_v15 = vadd.f32 %v878_v28, %v855_v31  ;;  %v924_v28 = vmul.f32 %v923_v4, %v4450_v10 }
 0x2ef   :  { %s7796_s21 = sld [smem:[#allocation33_spill]]  ;;  %v840_v37 = vmul.f32 %v839_v12, %v4503_v36 }
 0x2f0   :  { %7792 = sst [smem:[#allocation123_spill]] %s5159_s8 }
 0x2f1   :  { %s7797_s18 = sld [smem:[#allocation53_spill]]  ;;  %v897_v22 = vstv %s7793_s28  ;;  %v841_v33 = vadd.f32 %v840_v37, %v837_v35 }
 0x2f2   :  { %s5169_s11 = sld [smem:[#allocation2 + $0x11a]]  ;;  %v903_v23 = vstv %s7794_s23  ;;  %v898_v47 = vadd.f32 %v897_v22, %v896_v14 }
 0x2f3   :  { %s7799_s16 = sld [smem:[#allocation36_spill]]  ;;  %v904_v49 = vmul.f32 %v903_v23, %v4447_v9 }
 0x2f4   :  { %7795 = sst [smem:[#allocation124_spill]] %s5164_s7 }
 0x2f5   :  { %s5174_s8 = sld [smem:[#allocation2 + $0x11c]]  ;;  %v827_v25 = vstv %s7796_s21  ;;  %v905_v30 = vadd.f32 %v904_v49, %v898_v47  ;;  %v949_v49 = vstv %s4739_s30 }
 0x2f6   :  { %s7801_s22 = sld [smem:[#allocation49_spill]]  ;;  %v828_v29 = vmul.f32 %v827_v25, %v4572_v26 }
 0x2f7   :  { %s5179_s7 = sld [smem:[#allocation2 + $0x16d]]  ;;  %v865_v40 = vstv %s7797_s18 }
 0x2f8   :  { %7798 = sst [smem:[#allocation125_spill]] %s5169_s11  ;;  %v866_v60 = vmul.f32 %v865_v40, %v4488_v32  ;;  %v829_v18 = vadd.f32 %v828_v29, %v825_v58  ;;  %v1492_v29 = vmul.f32 1.442695, %v4670_v57 }
 0x2f9   :  { %s7802_s19 = sld [smem:[#allocation55_spill]]  ;;  %v881_v38 = vstv %s7799_s16 }
 0x2fa   :  { %s5185_s17 = sld [smem:[#allocation2 + $0x11e]]  ;;  %v882_v52 = vmul.f32 %v881_v38, %v4473_v24  ;;  %v867_v45 = vadd.f32 %v866_v60, %v863_v42  ;;  %v5241_v42 = vadd.f32 %v799_v6, %v783_v50  ;;  %3845 = vpow2.f32 %v1492_v29 }
 0x2fb   :  { %7800 = sst [smem:[#allocation126_spill]] %s5174_s8 }
 0x2fc   :  { %s7803_s2 = sld [smem:[#allocation35_spill]]  ;;  %v843_v39 = vstv %s7801_s22  ;;  %v883_v12 = vadd.f32 %v882_v52, %v879_v15  ;;  %vm1556_vm8 = vcmp.gt.f32.partialorder %v5241_v42, 0.0 }
 0x2fd   :  { %s5189_s8 = sld [smem:[#allocation2 + $0x11f]]  ;;  %v844_v1 = vmul.f32 %v843_v39, %v4547_v7 }
 0x2fe   :  { %s7805_s23 = sld [smem:[#allocation54_spill]] }
 0x2ff   :  { %s5193_s28 = sld [smem:[#allocation2 + $0x120]]  ;;  %v907_v11 = vstv %s7802_s19  ;;  %v845_v19 = vadd.f32 %v844_v1, %v841_v33 }
 0x300   :  { %s7807_s21 = sld [smem:[#allocation48_spill]]  ;;  %v908_v53 = vmul.f32 %v907_v11, %v4467_v20 }
 0x301   :  { %s5197_s18 = sld [smem:[#allocation2 + $0x122]]  ;;  %v5252_v50 = vadd.f32 %v845_v19, %v829_v18 }
 0x302   :  { %v869_v48 = vstv %s7803_s2  ;;  %s7809_s16 = sld [smem:[#allocation58_spill]]  ;;  %v909_v25 = vadd.f32 %v908_v53, %v905_v30  ;;  %v953_v53 = vstv %s4744_s5 }
 0x303   :  { %7804 = sst [smem:[#allocation138_spill]] %s5189_s8  ;;  %v870_v56 = vmul.f32 %v869_v48, %v4518_v41  ;;  %v954_v19 = vmul.f32 %v953_v53, %v4467_v20  ;;  %vm1561_vm9 = vcmp.gt.f32.partialorder %v5252_v50, 0.0 }
 0x304   :  { %s5202_s22 = sld [smem:[#allocation2 + $0x124]]  ;;  %v885_v3 = vstv %s7805_s23 }
 0x305   :  { %7806 = sst [smem:[#allocation14_spill]] %s5193_s28  ;;  %v886_v17 = vmul.f32 %v885_v3, %v4503_v36  ;;  %v871_v34 = vadd.f32 %v870_v56, %v867_v45  ;;  %v950_v3 = vmul.f32 %v949_v49, %v4447_v9 }
 0x306   :  { %s7811_s11 = sld [smem:[#allocation43_spill]]  ;;  %v900_v55 = vstv %s7807_s21 }
 0x307   :  { %7808 = sst [smem:[#allocation12_spill]] %s5197_s18  ;;  %v901_v23 = vmul.f32 %v900_v55, %v4439_v5  ;;  %v887_v46 = vadd.f32 %v886_v17, %v883_v12  ;;  %v969_v12 = vstv %s4763_s24  ;;  %v1502_v17 = vmul.f32 1.442695, %v4683_v2 }
 0x308   :  { %s7812_s8 = sld [smem:[#allocation60_spill]]  ;;  %v911_v0 = vstv %s7809_s16 }
 0x309   :  { %s5206_s19 = sld [smem:[#allocation2 + $0x126]]  ;;  %v912_v31 = vmul.f32 %v911_v0, %v4488_v32  ;;  %v925_v15 = vadd.f32 %v924_v28, %v901_v23  ;;  %v987_v0 = vstv %s4788_s25  ;;  %3847 = vpow2.f32 %v1502_v17 }
 0x30a   :  { %7810 = sst [smem:[#allocation130_spill]] %s5202_s22 }
 0x30b   :  { %s7814_s18 = sld [smem:[#allocation51_spill]]  ;;  %v913_v48 = vadd.f32 %v912_v31, %v909_v25  ;;  %v988_v31 = vmul.f32 %v987_v0, %v4423_v61  ;;  %v1527_v0 = vmul.f32 1.442695, %v5091_v21 }
 0x30c   :  { %s5210_s2 = sld [smem:[#allocation2 + $0x128]]  ;;  %v873_v8 = vstv %s7811_s11 }
 0x30d   :  { %s7816_s22 = sld [smem:[#allocation61_spill]]  ;;  %v874_v35 = vmul.f32 %v873_v8, %v4572_v26 }
 0x30e   :  { %s5215_s28 = sld [smem:[#allocation2 + $0x121]]  ;;  %v941_v14 = vstv %s7812_s8 }
 0x30f   :  { %7813 = sst [smem:[#allocation11_spill]] %s5206_s19  ;;  %v942_v38 = vmul.f32 %v941_v14, %v4423_v61  ;;  %v5254_v33 = vadd.f32 %v874_v35, %v871_v34  ;;  %v970_v34 = vmul.f32 %v969_v12, %v4450_v10 }
 0x310   :  { %s7817_s23 = sld [smem:[#allocation56_spill]] }
 0x311   :  { %s5220_s21 = sld [smem:[#allocation2 + $0x123]]  ;;  %v889_v22 = vstv %s7814_s18 }
 0x312   :  { %7815 = sst [smem:[#allocation127_spill]] %s5210_s2  ;;  %v890_v39 = vmul.f32 %v889_v22, %v4547_v7  ;;  %v1497_v22 = vmul.f32 1.442695, %v4672_v43 }
 0x313   :  { %s7818_s19 = sld [smem:[#allocation65_spill]]  ;;  %v915_v40 = vstv %s7816_s22 }
 0x314   :  { %s5224_s2 = sld [smem:[#allocation2 + $0x125]]  ;;  %v916_v60 = vmul.f32 %v915_v40, %v4518_v41  ;;  %v5259_v6 = vadd.f32 %v890_v39, %v887_v46  ;;  %v1507_v40 = vmul.f32 1.442695, %v4808_v62  ;;  %v1512_v39 = vmul.f32 1.442695, %v4819_v13 }
 0x315   :  { %s7819_s6 = sld [smem:[#allocation64_spill]]  ;;  %3849 = vpow2.f32 %v1497_v22 }
 0x316   :  { %s5229_s11 = sld [smem:[#allocation2 + $0x127]]  ;;  %v927_v37 = vstv %s7817_s23  ;;  %v917_v4 = vadd.f32 %v916_v60, %v913_v48  ;;  %v1517_v60 = vmul.f32 1.442695, %v4825_v16  ;;  %3851 = vpow2.f32 %v1507_v40 }
 0x317   :  { %s7821_s8 = sld [smem:[#allocation59_spill]]  ;;  %v928_v52 = vmul.f32 %v927_v37, %v4473_v24  ;;  %v995_v37 = vstv %s4796_s1  ;;  %3853 = vpow2.f32 %v1512_v39  ;;  %v1532_v39 = vmul.f32 1.442695, %v5094_v27 }
 0x318   :  { %s5234_s18 = sld [smem:[#allocation2 + $0x16e]]  ;;  %v996_v48 = vmul.f32 %v995_v37, %v4447_v9  ;;  %3855 = vpow2.f32 %v1517_v60 }
 0x319   :  { %v943_v47 = vstv %s7818_s19  ;;  %s5239_s16 = sld [smem:[#allocation2 + $0x129]]  ;;  %v929_v8 = vadd.f32 %v928_v52, %v925_v15 }
 0x31a   :  { %s7823_s22 = sld [smem:[#allocation74_spill]]  ;;  %v944_v1 = vadd.f32 %v943_v47, %v942_v38 }
 0x31b   :  { %v919_v11 = vstv %s7819_s6  ;;  %s5245_s23 = sld [smem:[#allocation2 + $0x12a]] }
 0x31c   :  { %7820 = sst [smem:[#allocation140_spill]] %s5229_s11  ;;  %v5262_v55 = vmul.f32 %v919_v11, %v4572_v26  ;;  %v951_v18 = vadd.f32 %v950_v3, %v944_v1 }
 0x31d   :  { %s7825_s11 = sld [smem:[#allocation73_spill]]  ;;  %v931_v58 = vstv %s7821_s8 }
 0x31e   :  { %7822 = sst [smem:[#allocation141_spill]] %s5234_s18  ;;  %v932_v45 = vmul.f32 %v931_v58, %v4503_v36  ;;  %v955_v47 = vadd.f32 %v954_v19, %v951_v18  ;;  %v921_v40 = vadd.f32 %v5262_v55, %v917_v4 }
 0x31f   :  { %s5250_s30 = sld [smem:[#allocation2 + $0x12b]] }
 0x320   :  { %s5257_s19 = sld [smem:[#allocation2 + $0x12d]]  ;;  %v935_v30 = vstv %s7823_s22  ;;  %v933_v38 = vadd.f32 %v932_v45, %v929_v8 }
 0x321   :  { %7824 = sst [smem:[#allocation16_spill]] %s5245_s23  ;;  %v936_v14 = vmul.f32 %v935_v30, %v4547_v7 }
 0x322   :  { %s5266_s6 = sld [smem:[#allocation2 + $0x12f]] }
 0x323   :  { %s7829_s8 = sld [smem:[#allocation76_spill]]  ;;  %v946_v56 = vstv %s7825_s11 }
 0x324   :  { %s5271_s23 = sld [smem:[#allocation2 + $0x131]]  ;;  %v947_v23 = vmul.f32 %v946_v56, %v4439_v5  ;;  %v1522_v56 = vmul.f32 1.442695, %v5080_v54 }
 0x325   :  { %7826 = sst [smem:[#allocation132_spill]] %s5250_s30 }
 0x326   :  { %7827 = sst [smem:[#allocation133_spill]] %s5257_s19  ;;  %v971_v15 = vadd.f32 %v970_v34, %v947_v23  ;;  %3857 = vpow2.f32 %v1522_v56 }
 0x327   :  { %s7831_s30 = sld [smem:[#allocation63_spill]]  ;;  %3859 = vpow2.f32 %v1527_v0 }
 0x328   :  { %7828 = sst [smem:[#allocation135_spill]] %s5266_s6  ;;  %3861 = vpow2.f32 %v1532_v39 }
 0x329   :  { %s7832_s19 = sld [smem:[#allocation77_spill]]  ;;  %v957_v25 = vstv %s7829_s8 }
 0x32a   :  { %7830 = sst [smem:[#allocation142_spill]] %s5271_s23  ;;  %v958_v49 = vmul.f32 %v957_v25, %v4488_v32 }
 0x32b   :  { %s5274_s18 = sld [smem:[#allocation2 + $0x133]] }
 0x32c   :  { %s7834_s5 = sld [smem:[#allocation69_spill]]  ;;  %v959_v45 = vadd.f32 %v958_v49, %v955_v47 }
 0x32d   :  { %s5279_s25 = sld [smem:[#allocation2 + $0x12c]]  ;;  %v961_v28 = vstv %s7831_s30 }
 0x32e   :  { %s5285_s24 = sld [smem:[#allocation2 + $0x12e]]  ;;  %v962_v11 = vmul.f32 %v961_v28, %v4518_v41  ;;  %v937_v28 = vadd.f32 %v936_v14, %v933_v38 }
 0x32f   :  { %v989_v35 = vstv %s7832_s19  ;;  %s5292_s11 = sld [smem:[#allocation2 + $0x130]] }
 0x330   :  { %s7838_s22 = sld [smem:[#allocation86_spill]]  ;;  %v990_v29 = vadd.f32 %v989_v35, %v988_v31  ;;  %v3846_v31 = vpop.eup %3845  ;;  %v963_v37 = vadd.f32 %v962_v11, %v959_v45  ;;  %v5349_v11 = vadd.f32 %v5259_v6, %v5254_v33 }
 0x331   :  { %7833 = sst [smem:[#allocation128_spill]] %s5274_s18 }
 0x332   :  { %v973_v46 = vstv %s7834_s5  ;;  %s5295_s18 = sld [smem:[#allocation2 + $0x132]]  ;;  %v997_v17 = vadd.f32 %v996_v48, %v990_v29  ;;  %v1023_v29 = vstv %s4836_s20  ;;  %vm1566_vm10 = vcmp.gt.f32.partialorder %v5349_v11, 0.0 }
 0x333   :  { %7835 = sst [smem:[#allocation21_spill]] %s5279_s25  ;;  %v974_v52 = vmul.f32 %v973_v46, %v4473_v24  ;;  %v1033_v46 = vstv %s4853_s27 }
 0x334   :  { %7836 = sst [smem:[#allocation22_spill]] %s5285_s24  ;;  %v1034_v48 = vmul.f32 %v1033_v46, %v4423_v61 }
 0x335   :  { %7837 = sst [smem:[#allocation136_spill]] %s5292_s11  ;;  %v975_v19 = vadd.f32 %v974_v52, %v971_v15  ;;  %v3438_v15 = vadd.f32 -1.0, %v3846_v31  ;;  %v3848_v52 = vpop.eup %3847 }
 0x336   :  { %s7840_s23 = sld [smem:[#allocation81_spill]]  ;;  %v977_v58 = vstv %s7838_s22 }
 0x337   :  { %s7841_s8 = sld [smem:[#allocation66_spill]]  ;;  %v978_v8 = vmul.f32 %v977_v58, %v4503_v36  ;;  %v5355_v58 = vadd.f32 %v937_v28, %v921_v40  ;;  %v3440_v40 = vadd.f32 -1.0, %v3848_v52 }
 0x338   :  { %7839 = sst [smem:[#allocation13_spill]] %s5295_s18 }
 0x339   :  { %s7842_s24 = sld [smem:[#allocation75_spill]]  ;;  %v979_v4 = vadd.f32 %v978_v8, %v975_v19 }
 0x33a   :  { %s7843_s30 = sld [smem:[#allocation85_spill]] }
 0x33b   :  { %s5299_s6 = sld [smem:[#allocation2 + $0x16f]] }
 0x33c   :  { %s5304_s1 = sld [smem:[#allocation2 + $0x134]]  ;;  %v999_v1 = vstv %s7840_s23 }
 0x33d   :  { %s7845_s19 = sld [smem:[#allocation67_spill]]  ;;  %v965_v3 = vstv %s7841_s8  ;;  %v1000_v18 = vmul.f32 %v999_v1, %v4467_v20  ;;  %v1035_v1 = vstv %s4848_s3 }
 0x33e   :  { %s5309_s5 = sld [smem:[#allocation2 + $0x135]]  ;;  %v966_v34 = vmul.f32 %v965_v3, %v4572_v26  ;;  %v1041_v3 = vstv %s4863_s4 }
 0x33f   :  { %v992_v30 = vstv %s7842_s24  ;;  %s7846_s18 = sld [smem:[#allocation68_spill]]  ;;  %v1001_v49 = vadd.f32 %v1000_v18, %v997_v17  ;;  %v1036_v18 = vadd.f32 %v1035_v1, %v1034_v48  ;;  %v1042_v19 = vmul.f32 %v1041_v3, %v4447_v9 }
 0x340   :  { %v1015_v53 = vstv %s7843_s30  ;;  %s5314_s11 = sld [smem:[#allocation2 + $0x136]]  ;;  %v993_v22 = vmul.f32 %v992_v30, %v4439_v5  ;;  %v3850_v30 = vpop.eup %3849  ;;  %v967_v33 = vadd.f32 %v966_v34, %v963_v37  ;;  %v1061_v3 = vstv %s4888_s9 }
 0x341   :  { %7844 = sst [smem:[#allocation134_spill]] %s5299_s6  ;;  %v1016_v25 = vmul.f32 %v1015_v53, %v4450_v10  ;;  %v3852_v45 = vpop.eup %3851  ;;  %v3439_v31 = vadd.f32 -1.0, %v3850_v30 }
 0x342   :  { %s5316_s6 = sld [smem:[#allocation2 + $0x138]] }
 0x343   :  { %s7847_s25 = sld [smem:[#allocation88_spill]]  ;;  %v981_v12 = vstv %s7845_s19  ;;  %v1017_v38 = vadd.f32 %v1016_v25, %v993_v22  ;;  %v5376_v22 = vsel %vm1491_vm11, %v4670_v57, %v3438_v15  ;;  %v1045_v25 = vstv %s4868_s26 }
 0x344   :  { %s5323_s23 = sld [smem:[#allocation2 + $0x13a]]  ;;  %v982_v47 = vmul.f32 %v981_v12, %v4547_v7  ;;  %v1024_v12 = vmul.f32 %v1023_v29, %v4503_v36  ;;  %v3441_v57 = vadd.f32 -1.0, %v3852_v45  ;;  %v1079_v15 = vstv %s4914_s0 }
 0x345   :  { %v1003_v23 = vstv %s7846_s18  ;;  %s5328_s24 = sld [smem:[#allocation2 + $0x13c]]  ;;  %v1057_v45 = vstv %s4883_s14  ;;  %vm1571_vm11 = vcmp.gt.f32.partialorder %v5355_v58, 0.0 }
 0x346   :  { %s7848_s22 = sld [smem:[#allocation70_spill]]  ;;  %v1004_v55 = vmul.f32 %v1003_v23, %v4488_v32  ;;  %v983_v56 = vadd.f32 %v982_v47, %v979_v4  ;;  %v3854_v23 = vpop.eup %3853  ;;  %v5412_v52 = vsel %vm1506_vm14, %v4808_v62, %v3441_v57 }
 0x347   :  { %s5333_s8 = sld [smem:[#allocation2 + $0x13e]]  ;;  %v3856_v28 = vpop.eup %3855  ;;  %v3442_v4 = vadd.f32 -1.0, %v3854_v23 }
 0x348   :  { %s5336_s30 = sld [smem:[#allocation2 + $0x137]]  ;;  %v1005_v6 = vadd.f32 %v1004_v55, %v1001_v49  ;;  %v5386_v37 = vadd.f32 %v983_v56, %v967_v33  ;;  %v1043_v49 = vadd.f32 %v1042_v19, %v1036_v18  ;;  %v1046_v55 = vmul.f32 %v1045_v25, %v4467_v20  ;;  %v3858_v29 = vpop.eup %3857 }
 0x349   :  { %v1019_v35 = vstv %s7847_s25  ;;  %s5341_s18 = sld [smem:[#allocation2 + $0x139]]  ;;  %v3443_v30 = vadd.f32 -1.0, %v3856_v28  ;;  %v5426_v62 = vsel %vm1511_vm15, %v4819_v13, %v3442_v4  ;;  %v1080_v56 = vmul.f32 %v1079_v15, %v4423_v61 }
 0x34a   :  { %v1020_v60 = vmul.f32 %v1019_v35, %v4473_v24  ;;  %s5345_s27 = sld [smem:[#allocation2 + $0x13b]]  ;;  %v1047_v33 = vadd.f32 %v1046_v55, %v1043_v49  ;;  %v5450_v28 = vmul.f32 %v1057_v45, %v4572_v26  ;;  %v1547_v45 = vmul.f32 1.442695, %v5112_v63 }
 0x34b   :  { %s5353_s25 = sld [smem:[#allocation2 + $0x13d]]  ;;  %v5447_v25 = vsel %vm1516_vm0, %v4825_v16, %v3443_v30 }
 0x34c   :  { %v1007_v14 = vstv %s7848_s22  ;;  %s7851_s19 = sld [smem:[#allocation71_spill]]  ;;  %v1021_v8 = vadd.f32 %v1020_v60, %v1017_v38  ;;  %v5400_v38 = vsel %vm1496_vm13, %v4672_v43, %v3439_v31  ;;  %v5405_v60 = vsel %vm1501_vm12, %v4683_v2, %v3440_v40  ;;  %v3860_v43 = vpop.eup %3859 }
 0x34d   :  { %7849 = sst [smem:[#allocation143_spill]] %s5333_s8  ;;  %v1008_v53 = vmul.f32 %v1007_v14, %v4518_v41  ;;  %v1049_v14 = vstv %s4873_s10  ;;  %v3862_v19 = vpop.eup %3861  ;;  %v3445_v31 = vadd.f32 -1.0, %v3860_v43  ;;  %vm1576_vm12 = vcmp.gt.f32.partialorder %v5386_v37, 0.0 }
 0x34e   :  { %s7852_s22 = sld [smem:[#allocation78_spill]]  ;;  %v1025_v46 = vadd.f32 %v1024_v12, %v1021_v8  ;;  %v1062_v8 = vmul.f32 %v1061_v3, %v4450_v10  ;;  %v1065_v12 = vstv %s4893_s12  ;;  %v5469_v55 = vadd.f32 -1.0, %v3862_v19 }
 0x34f   :  { %s5359_s8 = sld [smem:[#allocation2 + $0x170]]  ;;  %v1009_v34 = vadd.f32 %v1008_v53, %v1005_v6  ;;  %v1050_v6 = vmul.f32 %v1049_v14, %v4488_v32  ;;  %v1053_v53 = vstv %s4878_s29 }
 0x350   :  { %s5363_s20 = sld [smem:[#allocation2 + $0x13f]]  ;;  %v1054_v13 = vmul.f32 %v1053_v53, %v4518_v41 }
 0x351   :  { %7850 = sst [smem:[#allocation17_spill]] %s5353_s25  ;;  %v1051_v40 = vadd.f32 %v1050_v6, %v1047_v33 }
 0x352   :  { %v1011_v0 = vstv %s7851_s19  ;;  %s5367_s3 = sld [smem:[#allocation2 + $0x140]] }
 0x353   :  { %s5371_s4 = sld [smem:[#allocation2 + $0x141]]  ;;  %v1012_v35 = vmul.f32 %v1011_v0, %v4572_v26  ;;  %v3444_v0 = vadd.f32 -1.0, %v3858_v29  ;;  %v5476_v29 = vsel %vm1526_vm2, %v5091_v21, %v3445_v31 }
 0x354   :  { %v1027_v17 = vstv %s7852_s22  ;;  %s7853_s25 = sld [smem:[#allocation82_spill]]  ;;  %7878 = vst [vmem:[#allocation146_spill] sm:$0xff] %v5476_v29 }
 0x355   :  { %s5379_s19 = sld [smem:[#allocation2 + $0x143]]  ;;  %v1028_v39 = vmul.f32 %v1027_v17, %v4547_v7  ;;  %v1013_v48 = vadd.f32 %v1012_v35, %v1009_v34  ;;  %v1081_v17 = vstv %s4909_s13  ;;  %v1066_v35 = vmul.f32 %v1065_v12, %v4473_v24 }
 0x356   :  { %s5383_s22 = sld [smem:[#allocation2 + $0x145]]  ;;  %v1082_v57 = vadd.f32 %v1081_v17, %v1080_v56  ;;  %v5463_v16 = vsel %vm1521_vm1, %v5080_v54, %v3444_v0  ;;  %v1537_v54 = vmul.f32 1.442695, %v5096_v44 }
 0x357   :  { %s5389_s26 = sld [smem:[#allocation2 + $0x147]]  ;;  %v1029_v1 = vadd.f32 %v1028_v39, %v1025_v46 }
 0x358   :  { %s7859_s10 = sld [smem:[#allocation93_spill]]  ;;  %3863 = vpow2.f32 %v1537_v54 }
 0x359   :  { %s5421_s0 = sld [smem:[#allocation2 + $0x148]]  ;;  %v5439_v23 = vadd.f32 %v1029_v1, %v1013_v48  ;;  %v1055_v48 = vadd.f32 %v1054_v13, %v1051_v40  ;;  %v1542_v1 = vmul.f32 1.442695, %v5110_v59  ;;  %v1552_v40 = vmul.f32 1.442695, %v5123_v51 }
 0x35a   :  { %v1038_v47 = vstv %s7853_s25  ;;  %s5409_s25 = sld [smem:[#allocation2 + $0x144]] }
 0x35b   :  { %7854 = sst [smem:[#allocation18_spill]] %s5379_s19  ;;  %v1039_v2 = vmul.f32 %v1038_v47, %v4439_v5  ;;  %3865 = vpow2.f32 %v1542_v1  ;;  %vm1581_vm13 = vcmp.gt.f32.partialorder %v5439_v23, 0.0 }
 0x35c   :  { %7855 = sst [smem:[#allocation137_spill]] %s5383_s22  ;;  %3867 = vpow2.f32 %v1547_v45 }
 0x35d   :  { %7856 = sst [smem:[#allocation15_spill]] %s5389_s26  ;;  %v1063_v39 = vadd.f32 %v1062_v8, %v1039_v2  ;;  %3869 = vpow2.f32 %v1552_v40 }
 0x35e   :  { %s5394_s19 = sld [smem:[#allocation2 + $0x149]]  ;;  %v1087_v18 = vstv %s7859_s10 }
 0x35f   :  { %s5397_s22 = sld [smem:[#allocation2 + $0x142]]  ;;  %v1088_v46 = vmul.f32 %v1087_v18, %v4447_v9  ;;  %v1067_v12 = vadd.f32 %v1066_v35, %v1063_v39 }
 0x360   :  { %7858 = sst [smem:[#allocation145_spill]] %s5409_s25 }
 0x361   :  { %7861 = sst [smem:[#allocation25_spill]] %s5421_s0  ;;  %v1089_v2 = vadd.f32 %v1088_v46, %v1082_v57  ;;  %v1557_v57 = vmul.f32 1.442695, %v5241_v42 }
 0x362   :  { %s5430_s26 = sld [smem:[#allocation2 + $0x171]] }
 0x363   :  { %s7863_s9 = sld [smem:[#allocation79_spill]]  ;;  %3871 = vpow2.f32 %v1557_v57 }
 0x364   :  { %7857 = sst [smem:[#allocation144_spill]] %s5394_s19 }
 0x365   :  { %s5417_s19 = sld [smem:[#allocation2 + $0x146]] }
 0x366   :  { %s5437_s29 = sld [smem:[#allocation2 + $0x14a]] }
 0x367   :  { %s7865_s14 = sld [smem:[#allocation72_spill]] }
 0x368   :  { %7862 = sst [smem:[#allocation30_spill]] %s5430_s26 }
 0x369   :  { %s7866_s0 = sld [smem:[#allocation91_spill]]  ;;  %v1069_v34 = vstv %s7863_s9 }
 0x36a   :  { %s7868_s12 = sld [smem:[#allocation89_spill]]  ;;  %v1070_v4 = vmul.f32 %v1069_v34, %v4503_v36 }
 0x36b   :  { %7860 = sst [smem:[#allocation20_spill]] %s5417_s19 }
 0x36c   :  { %7864 = sst [smem:[#allocation37_spill]] %s5437_s29 }
 0x36d   :  { %s5442_s19 = sld [smem:[#allocation2 + $0x14b]]  ;;  %v1091_v47 = vstv %s7865_s14 }
 0x36e   :  { %s5453_s13 = sld [smem:[#allocation2 + $0x14c]]  ;;  %v1092_v3 = vmul.f32 %v1091_v47, %v4467_v20 }
 0x36f   :  { %s7870_s10 = sld [smem:[#allocation87_spill]]  ;;  %v1125_v49 = vstv %s7866_s0 }
 0x370   :  { %s5458_s26 = sld [smem:[#allocation2 + $0x14e]]  ;;  %v1073_v14 = vstv %s7868_s12  ;;  %v1126_v33 = vmul.f32 %v1125_v49, %v4423_v61  ;;  %v1093_v19 = vadd.f32 %v1092_v3, %v1089_v2  ;;  %v1562_v49 = vmul.f32 1.442695, %v5252_v50 }
 0x371   :  { %s7873_s9 = sld [smem:[#allocation83_spill]]  ;;  %v1074_v21 = vmul.f32 %v1073_v14, %v4547_v7  ;;  %v1071_v14 = vadd.f32 %v1070_v4, %v1067_v12  ;;  %v5542_v12 = vsel %vm1531_vm3, %v5094_v27, %v5469_v55 }
 0x372   :  { %s7875_s29 = sld [smem:[#allocation100_spill]]  ;;  %3873 = vpow2.f32 %v1562_v49 }
 0x373   :  { %7867 = sst [smem:[#allocation26_spill]] %s5442_s19 }
 0x374   :  { %7869 = sst [smem:[#allocation28_spill]] %s5453_s13 }
 0x375   :  { %s7871_s19 = sld [smem:[#allocation90_spill]]  ;;  %v1084_v15 = vstv %s7870_s10 }
 0x376   :  { %7872 = sst [smem:[#allocation19_spill]] %s5458_s26  ;;  %v1085_v56 = vmul.f32 %v1084_v15, %v4439_v5 }
 0x377   :  { %s5467_s13 = sld [smem:[#allocation2 + $0x150]]  ;;  %v1095_v30 = vstv %s7873_s9 }
 0x378   :  { %s5473_s25 = sld [smem:[#allocation2 + $0x152]]  ;;  %v1127_v6 = vstv %s7875_s29  ;;  %v1096_v17 = vmul.f32 %v1095_v30, %v4488_v32 }
 0x379   :  { %s7877_s26 = sld [smem:[#allocation101_spill]]  ;;  %v1128_v13 = vadd.f32 %v1127_v6, %v1126_v33 }
 0x37a   :  { %s7879_s0 = sld [smem:[#allocation94_spill]]  ;;  %v1097_v1 = vadd.f32 %v1096_v17, %v1093_v19 }
 0x37b   :  { %v1107_v43 = vstv %s7871_s19  ;;  %s5481_s14 = sld [smem:[#allocation2 + $0x154]] }
 0x37c   :  { %s7881_s12 = sld [smem:[#allocation98_spill]]  ;;  %v1108_v0 = vmul.f32 %v1107_v43, %v4450_v10 }
 0x37d   :  { %7874 = sst [smem:[#allocation23_spill]] %s5467_s13 }
 0x37e   :  { %7876 = sst [smem:[#allocation27_spill]] %s5473_s25  ;;  %v1109_v46 = vadd.f32 %v1108_v0, %v1085_v56  ;;  %v1059_v56 = vadd.f32 %v5450_v28, %v1055_v48  ;;  %v1075_v0 = vadd.f32 %v1074_v21, %v1071_v14 }
 0x37f   :  { %s5487_s25 = sld [smem:[#allocation2 + $0x14d]]  ;;  %v1133_v53 = vstv %s7877_s26 }
 0x380   :  { %s5493_s19 = sld [smem:[#allocation2 + $0x14f]]  ;;  %v1111_v8 = vstv %s7879_s0  ;;  %v1134_v31 = vmul.f32 %v1133_v53, %v4447_v9 }
 0x381   :  { %7880 = sst [smem:[#allocation34_spill]] %s5481_s14  ;;  %v1112_v34 = vmul.f32 %v1111_v8, %v4473_v24 }
 0x382   :  { %s7884_s10 = sld [smem:[#allocation92_spill]]  ;;  %v1099_v18 = vstv %s7881_s12  ;;  %v1135_v2 = vadd.f32 %v1134_v31, %v1128_v13  ;;  %v1567_v31 = vmul.f32 1.442695, %v5349_v11 }
 0x383   :  { %s5499_s9 = sld [smem:[#allocation2 + $0x151]]  ;;  %v1100_v54 = vmul.f32 %v1099_v18, %v4518_v41  ;;  %v1113_v6 = vadd.f32 %v1112_v34, %v1109_v46 }
 0x384   :  { %s7886_s14 = sld [smem:[#allocation95_spill]]  ;;  %3875 = vpow2.f32 %v1567_v31 }
 0x385   :  { %7882 = sst [smem:[#allocation40_spill]] %s5487_s25  ;;  %v1101_v27 = vadd.f32 %v1100_v54, %v1097_v1 }
 0x386   :  { %7883 = sst [smem:[#allocation24_spill]] %s5493_s19 }
 0x387   :  { %s7887_s13 = sld [smem:[#allocation99_spill]] }
 0x388   :  { %s5503_s26 = sld [smem:[#allocation2 + $0x153]]  ;;  %v1137_v35 = vstv %s7884_s10 }
 0x389   :  { %7885 = sst [smem:[#allocation39_spill]] %s5499_s9  ;;  %v1138_v3 = vmul.f32 %v1137_v35, %v4467_v20  ;;  %v3864_v35 = vpop.eup %3863 }
 0x38a   :  { %s7889_s29 = sld [smem:[#allocation80_spill]]  ;;  %v1130_v39 = vstv %s7886_s14  ;;  %v3866_v46 = vpop.eup %3865 }
 0x38b   :  { %s7890_s19 = sld [smem:[#allocation84_spill]]  ;;  %v1131_v30 = vmul.f32 %v1130_v39, %v4439_v5  ;;  %v1139_v18 = vadd.f32 %v1138_v3, %v1135_v2  ;;  %v3868_v1 = vpop.eup %3867  ;;  %v5575_v2 = vadd.f32 %v1075_v0, %v1059_v56 }
 0x38c   :  { %s5507_s0 = sld [smem:[#allocation2 + $0x2b1]]  ;;  %v3870_v0 = vpop.eup %3869  ;;  %v3449_v31 = vadd.f32 -1.0, %v3868_v1 }
 0x38d   :  { %s5512_s12 = sld [smem:[#allocation2 + $0x172]]  ;;  %v1153_v47 = vstv %s7887_s13  ;;  %vm1586_vm14 = vcmp.gt.f32.partialorder %v5575_v2, 0.0 }
 0x38e   :  { %7888 = sst [smem:[#allocation38_spill]] %s5503_s26  ;;  %v1154_v4 = vmul.f32 %v1153_v47, %v4450_v10  ;;  %v5625_v1 = vsel %vm1546_vm6, %v5112_v63, %v3449_v31 }
 0x38f   :  { %s7892_s26 = sld [smem:[#allocation96_spill]]  ;;  %7929 = vst [vmem:[#allocation148_spill] sm:$0xff] %v5625_v1 }
 0x390   :  { %s5517_s9 = sld [smem:[#allocation2 + $0x173]]  ;;  %v1103_v15 = vstv %s7889_s29  ;;  %v1155_v48 = vadd.f32 %v1154_v4, %v1131_v30 }
 0x391   :  { %v1115_v43 = vstv %s7890_s19  ;;  %s5522_s10 = sld [smem:[#allocation2 + $0x174]]  ;;  %v1104_v17 = vmul.f32 %v1103_v15, %v4572_v26 }
 0x392   :  { %7891 = sst [smem:[#allocation52_spill]] %s5507_s0  ;;  %v1116_v53 = vmul.f32 %v1115_v43, %v4503_v36 }
 0x393   :  { %s7894_s0 = sld [smem:[#allocation105_spill]]  ;;  %v1105_v3 = vadd.f32 %v1104_v17, %v1101_v27 }
 0x394   :  { %s7896_s25 = sld [smem:[#allocation97_spill]]  ;;  %v1117_v55 = vadd.f32 %v1116_v53, %v1113_v6  ;;  %v3447_v53 = vadd.f32 -1.0, %v3864_v35  ;;  %v1572_v35 = vmul.f32 1.442695, %v5355_v58 }
 0x395   :  { %s5525_s14 = sld [smem:[#allocation2 + $0x176]]  ;;  %v1141_v33 = vstv %s7892_s26 }
 0x396   :  { %7893 = sst [smem:[#allocation46_spill]] %s5517_s9  ;;  %v1142_v19 = vmul.f32 %v1141_v33, %v4488_v32  ;;  %3877 = vpow2.f32 %v1572_v35 }
 0x397   :  { %7895 = sst [smem:[#allocation29_spill]] %s5522_s10 }
 0x398   :  { %s7898_s13 = sld [smem:[#allocation106_spill]]  ;;  %v1143_v39 = vadd.f32 %v1142_v19, %v1139_v18 }
 0x399   :  { %s5530_s9 = sld [smem:[#allocation2 + $0x178]]  ;;  %v1157_v45 = vstv %s7894_s0 }
 0x39a   :  { %s7900_s19 = sld [smem:[#allocation109_spill]]  ;;  %v1119_v8 = vstv %s7896_s25  ;;  %v1158_v21 = vmul.f32 %v1157_v45, %v4473_v24 }
 0x39b   :  { %7897 = sst [smem:[#allocation50_spill]] %s5525_s14  ;;  %v1120_v40 = vmul.f32 %v1119_v8, %v4547_v7 }
 0x39c   :  { %s5534_s29 = sld [smem:[#allocation2 + $0x17a]]  ;;  %v1159_v15 = vadd.f32 %v1158_v21, %v1155_v48  ;;  %v3448_v21 = vadd.f32 -1.0, %v3866_v46 }
 0x39d   :  { %s7902_s26 = sld [smem:[#allocation111_spill]]  ;;  %v1121_v30 = vadd.f32 %v1120_v40, %v1117_v55 }
 0x39e   :  { %v1171_v13 = vstv %s7898_s13  ;;  %s5549_s0 = sld [smem:[#allocation2 + $0x17e]] }
 0x39f   :  { %7899 = sst [smem:[#allocation41_spill]] %s5530_s9  ;;  %v1172_v57 = vmul.f32 %v1171_v13, %v4423_v61  ;;  %v5594_v48 = vadd.f32 %v1121_v30, %v1105_v3 }
 0x3a0   :  { %s5544_s9 = sld [smem:[#allocation2 + $0x17c]]  ;;  %v1145_v28 = vstv %s7900_s19 }
 0x3a1   :  { %s7905_s25 = sld [smem:[#allocation104_spill]]  ;;  %v1146_v47 = vmul.f32 %v1145_v28, %v4518_v41  ;;  %v3872_v28 = vpop.eup %3871  ;;  %vm1591_vm15 = vcmp.gt.f32.partialorder %v5594_v48, 0.0 }
 0x3a2   :  { %7901 = sst [smem:[#allocation31_spill]] %s5534_s29  ;;  %v3874_v27 = vpop.eup %3873 }
 0x3a3   :  { %s5554_s29 = sld [smem:[#allocation2 + $0x180]]  ;;  %v1161_v34 = vstv %s7902_s26  ;;  %v1147_v45 = vadd.f32 %v1146_v47, %v1143_v39  ;;  %v3450_v47 = vadd.f32 -1.0, %v3870_v0  ;;  %v3452_v3 = vadd.f32 -1.0, %v3874_v27 }
 0x3a4   :  { %7904 = sst [smem:[#allocation32_spill]] %s5549_s0  ;;  %v1162_v43 = vmul.f32 %v1161_v34, %v4503_v36  ;;  %v5603_v34 = vsel %vm1536_vm4, %v5096_v44, %v3447_v53  ;;  %v1263_v53 = vstv %s5185_s17 }
 0x3a5   :  { %s7907_s14 = sld [smem:[#allocation107_spill]]  ;;  %7924 = vst [vmem:[#allocation147_spill] sm:$0xff] %v5603_v34  ;;  %v5638_v63 = vsel %vm1551_vm7, %v5123_v51, %v3450_v47  ;;  %v1264_v31 = vmul.f32 %v1263_v53, %v4423_v61 }
 0x3a6   :  { %7903 = sst [smem:[#allocation44_spill]] %s5544_s9  ;;  %v1163_v17 = vadd.f32 %v1162_v43, %v1159_v15  ;;  %v3451_v15 = vadd.f32 -1.0, %v3872_v28  ;;  %v5620_v43 = vsel %vm1541_vm5, %v5110_v59, %v3448_v21 }
 0x3a7   :  { %s7908_s9 = sld [smem:[#allocation102_spill]]  ;;  %v1173_v49 = vstv %s7905_s25 }
 0x3a8   :  { %s5558_s10 = sld [smem:[#allocation2 + $0x182]]  ;;  %v1174_v4 = vadd.f32 %v1173_v49, %v1172_v57  ;;  %v5649_v0 = vsel %vm1556_vm8, %v5241_v42, %v3451_v15 }
 0x3a9   :  { %7906 = sst [smem:[#allocation42_spill]] %s5554_s29  ;;  %7936 = vst [vmem:[#allocation149_spill] sm:$0xff] %v5649_v0  ;;  %v1375_v0 = vstv %s5328_s24 }
 0x3aa   :  { %s5564_s13 = sld [smem:[#allocation2 + $0x184]] }
 0x3ab   :  { %s7911_s19 = sld [smem:[#allocation103_spill]]  ;;  %v1179_v14 = vstv %s7907_s14 }
 0x3ac   :  { %s5569_s26 = sld [smem:[#allocation2 + $0x186]]  ;;  %v1180_v6 = vmul.f32 %v1179_v14, %v4447_v9 }
 0x3ad   :  { %v1149_v54 = vstv %s7908_s9  ;;  %s5573_s29 = sld [smem:[#allocation2 + $0x188]] }
 0x3ae   :  { %7909 = sst [smem:[#allocation47_spill]] %s5558_s10  ;;  %v1150_v8 = vmul.f32 %v1149_v54, %v4572_v26  ;;  %v1181_v55 = vadd.f32 %v1180_v6, %v1174_v4  ;;  %v1217_v4 = vstv %s5121_s15 }
 0x3af   :  { %s7913_s10 = sld [smem:[#allocation112_spill]]  ;;  %v1218_v51 = vmul.f32 %v1217_v4, %v4423_v61 }
 0x3b0   :  { %7910 = sst [smem:[#allocation45_spill]] %s5564_s13  ;;  %v1151_v49 = vadd.f32 %v1150_v8, %v1147_v45 }
 0x3b1   :  { %s7915_s13 = sld [smem:[#allocation119_spill]]  ;;  %v1165_v33 = vstv %s7911_s19 }
 0x3b2   :  { %7912 = sst [smem:[#allocation57_spill]] %s5569_s26  ;;  %v1166_v18 = vmul.f32 %v1165_v33, %v4547_v7 }
 0x3b3   :  { %7914 = sst [smem:[#allocation62_spill]] %s5573_s29 }
 0x3b4   :  { %s7916_s0 = sld [smem:[#allocation113_spill]]  ;;  %v1167_v14 = vadd.f32 %v1166_v18, %v1163_v17  ;;  %v3876_v17 = vpop.eup %3875 }
 0x3b5   :  { %s5578_s25 = sld [smem:[#allocation2 + $0x18a]]  ;;  %v1183_v56 = vstv %s7913_s10 }
 0x3b6   :  { %s5582_s9 = sld [smem:[#allocation2 + $0x18c]]  ;;  %v1184_v40 = vmul.f32 %v1183_v56, %v4467_v20  ;;  %v5642_v45 = vadd.f32 %v1167_v14, %v1151_v49 }
 0x3b7   :  { %s5587_s14 = sld [smem:[#allocation2 + $0x18e]]  ;;  %v1176_v19 = vstv %s7915_s13 }
 0x3b8   :  { %s7920_s19 = sld [smem:[#allocation110_spill]]  ;;  %v1177_v57 = vmul.f32 %v1176_v19, %v4439_v5  ;;  %v1185_v30 = vadd.f32 %v1184_v40, %v1181_v55  ;;  %v5658_v19 = vsel %vm1561_vm9, %v5252_v50, %v3452_v3  ;;  %v1265_v40 = vstv %s5179_s7 }
 0x3b9   :  { %s7921_s10 = sld [smem:[#allocation116_spill]]  ;;  %7940 = vst [vmem:[#allocation150_spill] sm:$0xff] %v5658_v19  ;;  %v1266_v3 = vadd.f32 %v1265_v40, %v1264_v31  ;;  %v5708_v31 = vpop.eup %3877  ;;  %vm1596_vm0 = vcmp.gt.f32.partialorder %v5642_v45, 0.0 }
 0x3ba   :  { %v1199_v13 = vstv %s7916_s0  ;;  %s5606_s0 = sld [smem:[#allocation2 + $0x179]] }
 0x3bb   :  { %7917 = sst [smem:[#allocation33_spill]] %s5578_s25  ;;  %v1200_v39 = vmul.f32 %v1199_v13, %v4450_v10  ;;  %v1577_v13 = vmul.f32 1.442695, %v5386_v37 }
 0x3bc   :  { %7918 = sst [smem:[#allocation53_spill]] %s5582_s9 }
 0x3bd   :  { %7919 = sst [smem:[#allocation36_spill]] %s5587_s14  ;;  %v1201_v6 = vadd.f32 %v1200_v39, %v1177_v57  ;;  %v1582_v39 = vmul.f32 1.442695, %v5439_v23  ;;  %3879 = vpow2.f32 %v1577_v13 }
 0x3be   :  { %s5592_s25 = sld [smem:[#allocation2 + $0x175]]  ;;  %v1187_v46 = vstv %s7920_s19 }
 0x3bf   :  { %s5597_s9 = sld [smem:[#allocation2 + $0x177]]  ;;  %v1203_v54 = vstv %s7921_s10  ;;  %v1188_v33 = vmul.f32 %v1187_v46, %v4488_v32  ;;  %v5675_v46 = vadd.f32 -1.0, %v3876_v17  ;;  %3881 = vpow2.f32 %v1582_v39 }
 0x3c0   :  { %s7923_s14 = sld [smem:[#allocation115_spill]]  ;;  %v1204_v59 = vmul.f32 %v1203_v54, %v4473_v24 }
 0x3c1   :  { %7925 = sst [smem:[#allocation55_spill]] %s5606_s0  ;;  %v1189_v28 = vadd.f32 %v1188_v33, %v1185_v30 }
 0x3c2   :  { %s5611_s13 = sld [smem:[#allocation2 + $0x17b]]  ;;  %v1205_v27 = vadd.f32 %v1204_v59, %v1201_v6 }
 0x3c3   :  { %s5614_s29 = sld [smem:[#allocation2 + $0x17d]] }
 0x3c4   :  { %s7928_s19 = sld [smem:[#allocation120_spill]] }
 0x3c5   :  { %7922 = sst [smem:[#allocation49_spill]] %s5597_s9 }
 0x3c6   :  { %v1191_v44 = vstv %s7923_s14  ;;  %s5627_s26 = sld [smem:[#allocation2 + $0x17f]] }
 0x3c7   :  { %s7931_s10 = sld [smem:[#allocation108_spill]]  ;;  %v1192_v8 = vmul.f32 %v1191_v44, %v4518_v41 }
 0x3c8   :  { %7926 = sst [smem:[#allocation35_spill]] %s5611_s13 }
 0x3c9   :  { %7927 = sst [smem:[#allocation54_spill]] %s5614_s29  ;;  %v1193_v15 = vadd.f32 %v1192_v8, %v1189_v28 }
 0x3ca   :  { %s5631_s14 = sld [smem:[#allocation2 + $0x181]]  ;;  %v1207_v56 = vstv %s7928_s19 }
 0x3cb   :  { %s7933_s29 = sld [smem:[#allocation117_spill]]  ;;  %v1208_v55 = vmul.f32 %v1207_v56, %v4503_v36 }
 0x3cc   :  { %7930 = sst [smem:[#allocation48_spill]] %s5627_s26 }
 0x3cd   :  { %s7934_s13 = sld [smem:[#allocation118_spill]]  ;;  %v1195_v18 = vstv %s7931_s10  ;;  %v1209_v33 = vadd.f32 %v1208_v55, %v1205_v27 }
 0x3ce   :  { %s5640_s26 = sld [smem:[#allocation2 + $0x183]]  ;;  %v1196_v35 = vmul.f32 %v1195_v18, %v4572_v26 }
 0x3cf   :  { %s7937_s15 = sld [smem:[#allocation14_spill]] }
 0x3d0   :  { %7932 = sst [smem:[#allocation58_spill]] %s5631_s14  ;;  %v1197_v27 = vadd.f32 %v1196_v35, %v1193_v15  ;;  %v1295_v15 = vstv %s5220_s21 }
 0x3d1   :  { %s5651_s17 = sld [smem:[#allocation2 + $0x185]]  ;;  %v1219_v42 = vstv %s7933_s29 }
 0x3d2   :  { %s7939_s14 = sld [smem:[#allocation114_spill]]  ;;  %v1220_v47 = vadd.f32 %v1219_v42, %v1218_v51  ;;  %v1291_v51 = vstv %s5215_s28 }
 0x3d3   :  { %s5661_s19 = sld [smem:[#allocation2 + $0x187]]  ;;  %v1225_v21 = vstv %s7934_s13 }
 0x3d4   :  { %7935 = sst [smem:[#allocation43_spill]] %s5640_s26  ;;  %v1226_v14 = vmul.f32 %v1225_v21, %v4447_v9  ;;  %v1587_v21 = vmul.f32 1.442695, %v5575_v2 }
 0x3d5   :  { %s7942_s26 = sld [smem:[#allocation121_spill]]  ;;  %v1271_v50 = vstv %s7937_s15 }
 0x3d6   :  { %s5666_s10 = sld [smem:[#allocation2 + $0x189]]  ;;  %v1272_v30 = vmul.f32 %v1271_v50, %v4447_v9  ;;  %v1227_v56 = vadd.f32 %v1226_v14, %v1220_v47  ;;  %3883 = vpow2.f32 %v1587_v21 }
 0x3d7   :  { %7938 = sst [smem:[#allocation60_spill]] %s5651_s17 }
 0x3d8   :  { %s7943_s17 = sld [smem:[#allocation122_spill]]  ;;  %v1211_v57 = vstv %s7939_s14  ;;  %v1273_v28 = vadd.f32 %v1272_v30, %v1266_v3 }
 0x3d9   :  { %7941 = sst [smem:[#allocation51_spill]] %s5661_s19  ;;  %v1212_v4 = vmul.f32 %v1211_v57, %v4547_v7 }
 0x3da   :  { %s7945_s0 = sld [smem:[#allocation123_spill]] }
 0x3db   :  { %s5671_s9 = sld [smem:[#allocation2 + $0x18b]]  ;;  %v1222_v49 = vstv %s7942_s26  ;;  %v1213_v55 = vadd.f32 %v1212_v4, %v1209_v33 }
 0x3dc   :  { %7944 = sst [smem:[#allocation61_spill]] %s5666_s10  ;;  %v1223_v59 = vmul.f32 %v1222_v49, %v4439_v5  ;;  %v1292_v49 = vmul.f32 %v1291_v51, %v4450_v10 }
 0x3dd   :  { %s7947_s19 = sld [smem:[#allocation12_spill]]  ;;  %v5729_v33 = vadd.f32 %v1213_v55, %v1197_v27 }
 0x3de   :  { %s5678_s29 = sld [smem:[#allocation2 + $0x18d]]  ;;  %v1229_v54 = vstv %s7943_s17 }
 0x3df   :  { %s7949_s13 = sld [smem:[#allocation139_spill]]  ;;  %v1230_v53 = vmul.f32 %v1229_v54, %v4467_v20  ;;  %vm1601_vm1 = vcmp.gt.f32.partialorder %v5729_v33, 0.0 }
 0x3e0   :  { %s5683_s7 = sld [smem:[#allocation2 + $0x2b2]]  ;;  %v1245_v44 = vstv %s7945_s0 }
 0x3e1   :  { %7946 = sst [smem:[#allocation56_spill]] %s5671_s9  ;;  %v1246_v17 = vmul.f32 %v1245_v44, %v4450_v10  ;;  %v1231_v14 = vadd.f32 %v1230_v53, %v1227_v56  ;;  %v1296_v56 = vmul.f32 %v1295_v15, %v4473_v24 }
 0x3e2   :  { %s7950_s15 = sld [smem:[#allocation138_spill]] }
 0x3e3   :  { %s5687_s14 = sld [smem:[#allocation2 + $0x18f]]  ;;  %v1275_v6 = vstv %s7947_s19  ;;  %v1247_v54 = vadd.f32 %v1246_v17, %v1223_v59  ;;  %v1309_v59 = vstv %s5239_s16  ;;  %v1592_v17 = vmul.f32 1.442695, %v5594_v48 }
 0x3e4   :  { %7948 = sst [smem:[#allocation65_spill]] %s5678_s29  ;;  %v1276_v42 = vmul.f32 %v1275_v6, %v4467_v20  ;;  %v1310_v55 = vmul.f32 %v1309_v59, %v4423_v61 }
 0x3e5   :  { %s7951_s9 = sld [smem:[#allocation124_spill]]  ;;  %v1233_v8 = vstv %s7949_s13  ;;  %3885 = vpow2.f32 %v1592_v17 }
 0x3e6   :  { %s5691_s26 = sld [smem:[#allocation2 + $0x190]]  ;;  %v1234_v40 = vmul.f32 %v1233_v8, %v4488_v32  ;;  %v1277_v3 = vadd.f32 %v1276_v42, %v1273_v28  ;;  %v1299_v28 = vstv %s5224_s2 }
 0x3e7   :  { %s7953_s0 = sld [smem:[#allocation130_spill]] }
 0x3e8   :  { %s5696_s17 = sld [smem:[#allocation2 + $0x191]]  ;;  %v1268_v18 = vstv %s7950_s15 }
 0x3e9   :  { %s7954_s29 = sld [smem:[#allocation129_spill]]  ;;  %v1269_v47 = vmul.f32 %v1268_v18, %v4439_v5  ;;  %v1235_v18 = vadd.f32 %v1234_v40, %v1231_v14  ;;  %v1597_v40 = vmul.f32 1.442695, %v5642_v45  ;;  %v1300_v14 = vmul.f32 %v1299_v28, %v4503_v36 }
 0x3ea   :  { %s7955_s10 = sld [smem:[#allocation131_spill]] }
 0x3eb   :  { %s5701_s19 = sld [smem:[#allocation2 + $0x193]]  ;;  %v1249_v13 = vstv %s7951_s9  ;;  %v1293_v8 = vadd.f32 %v1292_v49, %v1269_v47  ;;  %v5756_v47 = vpop.eup %3879  ;;  %3887 = vpow2.f32 %v1597_v40 }
 0x3ec   :  { %7952 = sst [smem:[#allocation64_spill]] %s5691_s26  ;;  %v1250_v35 = vmul.f32 %v1249_v13, %v4473_v24  ;;  %v5763_v15 = vpop.eup %3881 }
 0x3ed   :  { %s5706_s13 = sld [smem:[#allocation2 + $0x195]]  ;;  %v1279_v50 = vstv %s7953_s0  ;;  %v1297_v49 = vadd.f32 %v1296_v56, %v1293_v8 }
 0x3ee   :  { %s7957_s26 = sld [smem:[#allocation125_spill]]  ;;  %v1280_v30 = vmul.f32 %v1279_v50, %v4488_v32  ;;  %v1251_v51 = vadd.f32 %v1250_v35, %v1247_v54  ;;  %v1355_v35 = vstv %s5304_s1 }
 0x3ef   :  { %s5712_s28 = sld [smem:[#allocation2 + $0x197]]  ;;  %v1237_v57 = vstv %s7954_s29  ;;  %v1301_v17 = vadd.f32 %v1300_v14, %v1297_v49 }
 0x3f0   :  { %v1241_v39 = vstv %s7955_s10  ;;  %s7958_s9 = sld [smem:[#allocation11_spill]]  ;;  %v1238_v4 = vmul.f32 %v1237_v57, %v4518_v41  ;;  %v1281_v21 = vadd.f32 %v1280_v30, %v1277_v3 }
 0x3f1   :  { %s5718_s15 = sld [smem:[#allocation2 + $0x199]]  ;;  %v1242_v53 = vmul.f32 %v1241_v39, %v4572_v26 }
 0x3f2   :  { %s5727_s10 = sld [smem:[#allocation2 + $0x19d]] }
 0x3f3   :  { %7956 = sst [smem:[#allocation59_spill]] %s5706_s13 }
 0x3f4   :  { %s5722_s13 = sld [smem:[#allocation2 + $0x19b]]  ;;  %v1253_v44 = vstv %s7957_s26 }
 0x3f5   :  { %s7961_s29 = sld [smem:[#allocation126_spill]]  ;;  %v1254_v13 = vmul.f32 %v1253_v44, %v4503_v36  ;;  %v1239_v44 = vadd.f32 %v1238_v4, %v1235_v18 }
 0x3f6   :  { %v1283_v6 = vstv %s7958_s9  ;;  %s5734_s21 = sld [smem:[#allocation2 + $0x19f]] }
 0x3f7   :  { %s7963_s26 = sld [smem:[#allocation127_spill]]  ;;  %v1284_v27 = vmul.f32 %v1283_v6, %v4518_v41  ;;  %v1255_v3 = vadd.f32 %v1254_v13, %v1251_v51  ;;  %v1356_v51 = vmul.f32 %v1355_v35, %v4423_v61 }
 0x3f8   :  { %7960 = sst [smem:[#allocation73_spill]] %s5727_s10 }
 0x3f9   :  { %s7964_s0 = sld [smem:[#allocation141_spill]]  ;;  %v1285_v6 = vadd.f32 %v1284_v27, %v1281_v21  ;;  %v1363_v21 = vstv %s5314_s11  ;;  %v1243_v27 = vadd.f32 %v1242_v53, %v1239_v44  ;;  %v5796_v53 = vpop.eup %3883 }
 0x3fa   :  { %7959 = sst [smem:[#allocation74_spill]] %s5722_s13  ;;  %v1364_v40 = vmul.f32 %v1363_v21, %v4447_v9 }
 0x3fb   :  { %s7965_s13 = sld [smem:[#allocation132_spill]]  ;;  %v1257_v42 = vstv %s7961_s29 }
 0x3fc   :  { %7962 = sst [smem:[#allocation76_spill]] %s5734_s21  ;;  %v1258_v30 = vmul.f32 %v1257_v42, %v4547_v7 }
 0x3fd   :  { %s5739_s10 = sld [smem:[#allocation2 + $0x1a1]]  ;;  %v1287_v50 = vstv %s7963_s26 }
 0x3fe   :  { %s7967_s9 = sld [smem:[#allocation140_spill]]  ;;  %v1288_v59 = vmul.f32 %v1287_v50, %v4572_v26  ;;  %v5787_v50 = vsel %vm1566_vm10, %v5349_v11, %v5675_v46 }
 0x3ff   :  { %s5743_s16 = sld [smem:[#allocation2 + $0x1a3]]  ;;  %v1311_v57 = vstv %s7964_s0  ;;  %7979 = vst [vmem:[#allocation151_spill] sm:$0xff] %v5787_v50 }
 0x400   :  { %s5748_s21 = sld [smem:[#allocation2 + $0x1a5]]  ;;  %v1312_v8 = vadd.f32 %v1311_v57, %v1310_v55  ;;  %v1259_v55 = vadd.f32 %v1258_v30, %v1255_v3  ;;  %v1289_v35 = vadd.f32 %v1288_v59, %v1285_v6  ;;  %v1367_v3 = vstv %s5316_s6 }
 0x401   :  { %v1317_v39 = vstv %s7965_s13  ;;  %s7971_s2 = sld [smem:[#allocation16_spill]]  ;;  %v5805_v30 = vmul.f32 1.442695, %v5729_v33  ;;  %v1368_v21 = vmul.f32 %v1367_v3, %v4467_v20  ;;  %v1409_v3 = vstv %s5371_s4 }
 0x402   :  { %s7972_s29 = sld [smem:[#allocation133_spill]]  ;;  %v1318_v56 = vmul.f32 %v1317_v39, %v4447_v9 }
 0x403   :  { %7966 = sst [smem:[#allocation63_spill]] %s5739_s10  ;;  %3889 = vpow2.f32 %v5805_v30 }
 0x404   :  { %s5754_s10 = sld [smem:[#allocation2 + $0x1a7]]  ;;  %v1303_v54 = vstv %s7967_s9  ;;  %v1319_v39 = vadd.f32 %v1318_v56, %v1312_v8  ;;  %v5809_v8 = vadd.f32 %v1259_v55, %v1243_v27 }
 0x405   :  { %7968 = sst [smem:[#allocation77_spill]] %s5743_s16  ;;  %v1304_v28 = vmul.f32 %v1303_v54, %v4547_v7 }
 0x406   :  { %7969 = sst [smem:[#allocation69_spill]] %s5748_s21  ;;  %vm1606_vm2 = vcmp.gt.f32.partialorder %v5809_v8, 0.0 }
 0x407   :  { %s5761_s16 = sld [smem:[#allocation2 + $0x1a9]]  ;;  %v1314_v4 = vstv %s7971_s2  ;;  %v1305_v44 = vadd.f32 %v1304_v28, %v1301_v17  ;;  %v1401_v28 = vstv %s5363_s20 }
 0x408   :  { %s7974_s26 = sld [smem:[#allocation21_spill]]  ;;  %v1321_v18 = vstv %s7972_s29  ;;  %v1315_v57 = vmul.f32 %v1314_v4, %v4439_v5  ;;  %v1360_v4 = vstv %s5309_s5 }
 0x409   :  { %s7975_s13 = sld [smem:[#allocation134_spill]]  ;;  %v1322_v49 = vmul.f32 %v1321_v18, %v4467_v20  ;;  %v1383_v18 = vstv %s5336_s30  ;;  %v5825_v27 = vadd.f32 %v1305_v44, %v1289_v35  ;;  %v1361_v55 = vmul.f32 %v1360_v4, %v4439_v5 }
 0x40a   :  { %7970 = sst [smem:[#allocation86_spill]] %s5754_s10  ;;  %v1403_v44 = vstv %s5359_s8 }
 0x40b   :  { %s5766_s0 = sld [smem:[#allocation2 + $0x1ab]]  ;;  %vm1611_vm3 = vcmp.gt.f32.partialorder %v5825_v27, 0.0 }
 0x40c   :  { %s5770_s1 = sld [smem:[#allocation2 + $0x192]] }
 0x40d   :  { %7973 = sst [smem:[#allocation81_spill]] %s5761_s16 }
 0x40e   :  { %s7977_s9 = sld [smem:[#allocation135_spill]]  ;;  %v1337_v13 = vstv %s7974_s26 }
 0x40f   :  { %s5776_s16 = sld [smem:[#allocation2 + $0x194]]  ;;  %v1357_v42 = vstv %s7975_s13  ;;  %v1338_v54 = vmul.f32 %v1337_v13, %v4450_v10 }
 0x410   :  { %s5781_s10 = sld [smem:[#allocation2 + $0x196]]  ;;  %v1358_v46 = vadd.f32 %v1357_v42, %v1356_v51  ;;  %v1323_v51 = vadd.f32 %v1322_v49, %v1319_v39  ;;  %v1371_v39 = vstv %s5323_s23  ;;  %v1384_v49 = vmul.f32 %v1383_v18, %v4450_v10 }
 0x411   :  { %7976 = sst [smem:[#allocation66_spill]] %s5766_s0  ;;  %v1339_v17 = vadd.f32 %v1338_v54, %v1315_v57  ;;  %v1387_v54 = vstv %s5341_s18  ;;  %v1372_v50 = vmul.f32 %v1371_v39, %v4488_v32 }
 0x412   :  { %s7978_s0 = sld [smem:[#allocation22_spill]]  ;;  %v1365_v42 = vadd.f32 %v1364_v40, %v1358_v46  ;;  %v5838_v46 = vpop.eup %3885 }
 0x413   :  { %s5789_s2 = sld [smem:[#allocation2 + $0x198]] }
 0x414   :  { %v1325_v14 = vstv %s7977_s9  ;;  %s5794_s11 = sld [smem:[#allocation2 + $0x19a]] }
 0x415   :  { %s7980_s29 = sld [smem:[#allocation142_spill]]  ;;  %v1326_v56 = vmul.f32 %v1325_v14, %v4488_v32 }
 0x416   :  { %s5801_s26 = sld [smem:[#allocation2 + $0x19c]] }
 0x417   :  { %s7981_s13 = sld [smem:[#allocation136_spill]]  ;;  %v1327_v40 = vadd.f32 %v1326_v56, %v1323_v51  ;;  %v1385_v56 = vadd.f32 %v1384_v49, %v1361_v55  ;;  %v1388_v51 = vmul.f32 %v1387_v54, %v4473_v24  ;;  %v1429_v49 = vstv %s5397_s22 }
 0x418   :  { %v1341_v11 = vstv %s7978_s0  ;;  %s5807_s9 = sld [smem:[#allocation2 + $0x19e]] }
 0x419   :  { %s5814_s0 = sld [smem:[#allocation2 + $0x1a0]]  ;;  %v1342_v59 = vmul.f32 %v1341_v11, %v4473_v24  ;;  %v1402_v11 = vmul.f32 %v1401_v28, %v4423_v61 }
 0x41a   :  { %s7983_s21 = sld [smem:[#allocation128_spill]] }
 0x41b   :  { %v1329_v6 = vstv %s7980_s29  ;;  %s5819_s6 = sld [smem:[#allocation2 + $0x1a2]]  ;;  %v1343_v4 = vadd.f32 %v1342_v59, %v1339_v17  ;;  %v1404_v1 = vadd.f32 %v1403_v44, %v1402_v11  ;;  %v1406_v59 = vstv %s5367_s3 }
 0x41c   :  { %s5823_s5 = sld [smem:[#allocation2 + $0x1a4]]  ;;  %v1330_v57 = vmul.f32 %v1329_v6, %v4518_v41  ;;  %v1369_v6 = vadd.f32 %v1368_v21, %v1365_v42  ;;  %v1410_v17 = vmul.f32 %v1409_v3, %v4447_v9  ;;  %v5859_v42 = vpop.eup %3887  ;;  %v1376_v11 = vmul.f32 %v1375_v0, %v4518_v41 }
 0x41d   :  { %v1345_v13 = vstv %s7981_s13  ;;  %s7986_s30 = sld [smem:[#allocation13_spill]]  ;;  %v1389_v3 = vadd.f32 %v1388_v51, %v1385_v56 }
 0x41e   :  { %s5830_s20 = sld [smem:[#allocation2 + $0x1a6]]  ;;  %v1346_v35 = vmul.f32 %v1345_v13, %v4503_v36  ;;  %v1391_v13 = vstv %s5345_s27  ;;  %v1331_v21 = vadd.f32 %v1330_v57, %v1327_v40  ;;  %v1373_v54 = vadd.f32 %v1372_v50, %v1369_v6 }
 0x41f   :  { %7982 = sst [smem:[#allocation75_spill]] %s5814_s0  ;;  %v1392_v34 = vmul.f32 %v1391_v13, %v4503_v36  ;;  %v1407_v57 = vmul.f32 %v1406_v59, %v4439_v5  ;;  %v1411_v40 = vadd.f32 %v1410_v17, %v1404_v1  ;;  %v1430_v50 = vmul.f32 %v1429_v49, %v4450_v10 }
 0x420   :  { %v1333_v14 = vstv %s7983_s21  ;;  %s5836_s29 = sld [smem:[#allocation2 + $0x1a8]]  ;;  %v1377_v13 = vadd.f32 %v1376_v11, %v1373_v54 }
 0x421   :  { %7984 = sst [smem:[#allocation85_spill]] %s5819_s6  ;;  %v1334_v28 = vmul.f32 %v1333_v14, %v4572_v26  ;;  %v1347_v14 = vadd.f32 %v1346_v35, %v1343_v4  ;;  %v1607_v35 = vmul.f32 1.442695, %v5809_v8  ;;  %v1612_v4 = vmul.f32 1.442695, %v5825_v27 }
 0x422   :  { %7985 = sst [smem:[#allocation67_spill]] %s5823_s5  ;;  %v1393_v59 = vadd.f32 %v1392_v34, %v1389_v3  ;;  %v1638_v3 = vstv %s5512_s12 }
 0x423   :  { %s5843_s23 = sld [smem:[#allocation2 + $0x1aa]]  ;;  %v1349_v18 = vstv %s7986_s30  ;;  %v1335_v6 = vadd.f32 %v1334_v28, %v1331_v21  ;;  %v1431_v28 = vadd.f32 %v1430_v50, %v1407_v57  ;;  %3891 = vpow2.f32 %v1607_v35 }
 0x424   :  { %7987 = sst [smem:[#allocation68_spill]] %s5830_s20  ;;  %v1350_v39 = vmul.f32 %v1349_v18, %v4547_v7  ;;  %3893 = vpow2.f32 %v1612_v4 }
 0x425   :  { %s7990_s18 = sld [smem:[#allocation18_spill]] }
 0x426   :  { %7988 = sst [smem:[#allocation88_spill]] %s5836_s29  ;;  %v1351_v1 = vadd.f32 %v1350_v39, %v1347_v14 }
 0x427   :  { %s5847_s21 = sld [smem:[#allocation2 + $0x2b3]] }
 0x428   :  { %s7991_s13 = sld [smem:[#allocation143_spill]] }
 0x429   :  { %7989 = sst [smem:[#allocation70_spill]] %s5843_s23 }
 0x42a   :  { %s5852_s8 = sld [smem:[#allocation2 + $0x1ac]] }
 0x42b   :  { %s7992_s4 = sld [smem:[#allocation17_spill]]  ;;  %v1413_v55 = vstv %s7990_s18 }
 0x42c   :  { %s5857_s30 = sld [smem:[#allocation2 + $0x1ad]]  ;;  %v1414_v18 = vmul.f32 %v1413_v55, %v4467_v20 }
 0x42d   :  { %s7994_s24 = sld [smem:[#allocation137_spill]] }
 0x42e   :  { %s5864_s23 = sld [smem:[#allocation2 + $0x1ae]]  ;;  %v1379_v44 = vstv %s7991_s13  ;;  %v1415_v55 = vadd.f32 %v1414_v18, %v1411_v40 }
 0x42f   :  { %s7995_s29 = sld [smem:[#allocation145_spill]]  ;;  %v1380_v56 = vmul.f32 %v1379_v44, %v4572_v26 }
 0x430   :  { %s5868_s27 = sld [smem:[#allocation2 + $0x1b0]] }
 0x431   :  { %v1395_v29 = vstv %s7992_s4  ;;  %s7996_s3 = sld [smem:[#allocation37_spill]]  ;;  %v1381_v11 = vadd.f32 %v1380_v56, %v1377_v13 }
 0x432   :  { %7993 = sst [smem:[#allocation71_spill]] %s5857_s30  ;;  %v1396_v17 = vmul.f32 %v1395_v29, %v4547_v7  ;;  %v3454_v29 = vadd.f32 -1.0, %v5708_v31 }
 0x433   :  { %s5873_s20 = sld [smem:[#allocation2 + $0x1b2]]  ;;  %v1417_v19 = vstv %s7994_s24 }
 0x434   :  { %s5878_s22 = sld [smem:[#allocation2 + $0x1b4]]  ;;  %v1418_v30 = vmul.f32 %v1417_v19, %v4488_v32  ;;  %v5904_v19 = vadd.f32 %v1351_v1, %v1335_v6  ;;  %v1397_v44 = vadd.f32 %v1396_v17, %v1393_v59 }
 0x435   :  { %v1433_v0 = vstv %s7995_s29  ;;  %s7997_s18 = sld [smem:[#allocation15_spill]] }
 0x436   :  { %s5884_s13 = sld [smem:[#allocation2 + $0x1b6]]  ;;  %v1434_v21 = vmul.f32 %v1433_v0, %v4473_v24  ;;  %v1419_v31 = vadd.f32 %v1418_v30, %v1415_v55  ;;  %v1617_v56 = vmul.f32 1.442695, %v5904_v19  ;;  %v5929_v13 = vadd.f32 %v1397_v44, %v1381_v11 }
 0x437   :  { %s7999_s4 = sld [smem:[#allocation20_spill]]  ;;  %v1447_v51 = vstv %s7996_s3  ;;  %vm1616_vm4 = vcmp.gt.f32.partialorder %v5904_v19, 0.0 }
 0x438   :  { %s5888_s24 = sld [smem:[#allocation2 + $0x1b8]]  ;;  %v1448_v34 = vmul.f32 %v1447_v51, %v4423_v61  ;;  %v1435_v40 = vadd.f32 %v1434_v21, %v1431_v28  ;;  %v1639_v51 = vmul.f32 %v1638_v3, %v5376_v22  ;;  %3895 = vpow2.f32 %v1617_v56 }
 0x439   :  { %s8001_s29 = sld [smem:[#allocation30_spill]]  ;;  %vm1621_vm5 = vcmp.gt.f32.partialorder %v5929_v13, 0.0 }
 0x43a   :  { %s8002_s5 = sld [smem:[#allocation28_spill]] }
 0x43b   :  { %s5892_s6 = sld [smem:[#allocation2 + $0x1ba]]  ;;  %v1421_v49 = vstv %s7997_s18 }
 0x43c   :  { %7998 = sst [smem:[#allocation78_spill]] %s5884_s13  ;;  %v1422_v61 = vmul.f32 %v1421_v49, %v4518_v41 }
 0x43d   :  { %s5897_s3 = sld [smem:[#allocation2 + $0x1bc]]  ;;  %v1437_v39 = vstv %s7999_s4 }
 0x43e   :  { %8000 = sst [smem:[#allocation82_spill]] %s5888_s24  ;;  %v1438_v18 = vmul.f32 %v1437_v39, %v4503_v36 }
 0x43f   :  { %s8005_s24 = sld [smem:[#allocation144_spill]]  ;;  %v1449_v14 = vstv %s8001_s29 }
 0x440   :  { %s5902_s13 = sld [smem:[#allocation2 + $0x1be]]  ;;  %v1455_v54 = vstv %s8002_s5  ;;  %v1450_v0 = vadd.f32 %v1449_v14, %v1448_v34  ;;  %v1439_v55 = vadd.f32 %v1438_v18, %v1435_v40 }
 0x441   :  { %8003 = sst [smem:[#allocation93_spill]] %s5892_s6  ;;  %v1456_v4 = vmul.f32 %v1455_v54, %v4447_v9  ;;  %v1423_v9 = vadd.f32 %v1422_v61, %v1419_v31  ;;  %v5947_v54 = vpop.eup %3889 }
 0x442   :  { %s8007_s6 = sld [smem:[#allocation25_spill]] }
 0x443   :  { %8004 = sst [smem:[#allocation79_spill]] %s5897_s3  ;;  %v1457_v21 = vadd.f32 %v1456_v4, %v1450_v0 }
 0x444   :  { %s8008_s18 = sld [smem:[#allocation26_spill]] }
 0x445   :  { %s5908_s0 = sld [smem:[#allocation2 + $0x1c0]]  ;;  %v1425_v57 = vstv %s8005_s24 }
 0x446   :  { %8006 = sst [smem:[#allocation72_spill]] %s5902_s13  ;;  %v1426_v59 = vmul.f32 %v1425_v57, %v4572_v26  ;;  %v1622_v57 = vmul.f32 1.442695, %v5929_v13 }
 0x447   :  { %s8010_s30 = sld [smem:[#allocation19_spill]] }
 0x448   :  { %s8011_s4 = sld [smem:[#allocation40_spill]]  ;;  %v1441_v50 = vstv %s8007_s6  ;;  %v1427_v61 = vadd.f32 %v1426_v59, %v1423_v9  ;;  %v3457_v59 = vadd.f32 -1.0, %v5796_v53  ;;  %3897 = vpow2.f32 %v1622_v57 }
 0x449   :  { %s5912_s3 = sld [smem:[#allocation2 + $0x1c2]]  ;;  %v1442_v49 = vmul.f32 %v1441_v50, %v4547_v7  ;;  %v3892_v50 = vpop.eup %3891 }
 0x44a   :  { %s8013_s13 = sld [smem:[#allocation52_spill]]  ;;  %v1452_v35 = vstv %s8008_s18  ;;  %v3894_v4 = vpop.eup %3893 }
 0x44b   :  { %8009 = sst [smem:[#allocation91_spill]] %s5908_s0  ;;  %v1453_v28 = vmul.f32 %v1452_v35, %v4439_v5  ;;  %v1443_v3 = vadd.f32 %v1442_v49, %v1439_v55  ;;  %v3458_v55 = vadd.f32 -1.0, %v5838_v46 }
 0x44c   :  { %s8014_s29 = sld [smem:[#allocation29_spill]] }
 0x44d   :  { %s5916_s5 = sld [smem:[#allocation2 + $0x1c4]]  ;;  %v1459_v6 = vstv %s8010_s30  ;;  %v5982_v56 = vadd.f32 %v1443_v3, %v1427_v61  ;;  %v1702_v3 = vstv %s5592_s25 }
 0x44e   :  { %s5921_s0 = sld [smem:[#allocation2 + $0x1c6]]  ;;  %v1475_v1 = vstv %s8011_s4  ;;  %v1460_v39 = vmul.f32 %v1459_v6, %v4467_v20  ;;  %v5957_v20 = vsel %vm1571_vm11, %v5355_v58, %v3454_v29  ;;  %v3455_v6 = vadd.f32 -1.0, %v5756_v47 }
 0x44f   :  { %8012 = sst [smem:[#allocation89_spill]] %s5912_s3  ;;  %v1476_v14 = vmul.f32 %v1475_v1, %v4450_v10  ;;  %v3456_v1 = vadd.f32 -1.0, %v5763_v15  ;;  %vm1626_vm6 = vcmp.gt.f32.partialorder %v5982_v56, 0.0 }
 0x450   :  { %s8017_s12 = sld [smem:[#allocation23_spill]]  ;;  %v1640_v17 = vstv %s8013_s13  ;;  %v1461_v40 = vadd.f32 %v1460_v39, %v1457_v21  ;;  %v6000_v53 = vsel %vm1576_vm12, %v5386_v37, %v3455_v6  ;;  %v6015_v39 = vsel %vm1586_vm14, %v5575_v2, %v3457_v59 }
 0x451   :  { %s5927_s24 = sld [smem:[#allocation2 + $0x1c8]]  ;;  %v1641_v5 = vadd.f32 %v1640_v17, %v1639_v51  ;;  %v1477_v58 = vadd.f32 %v1476_v14, %v1453_v28  ;;  %v3459_v28 = vadd.f32 -1.0, %v5859_v42  ;;  %v1627_v37 = vmul.f32 1.442695, %v5982_v56 }
 0x452   :  { %s8019_s6 = sld [smem:[#allocation24_spill]]  ;;  %v1646_v30 = vstv %s8014_s29  ;;  %v1756_v14 = vstv %s5687_s14  ;;  %v3460_v2 = vadd.f32 -1.0, %v5947_v54 }
 0x453   :  { %8015 = sst [smem:[#allocation87_spill]] %s5916_s5  ;;  %v1647_v44 = vmul.f32 %v1646_v30, %v5405_v60  ;;  %3899 = vpow2.f32 %v1627_v37 }
 0x454   :  { %8016 = sst [smem:[#allocation90_spill]] %s5921_s0 }
 0x455   :  { %s5934_s18 = sld [smem:[#allocation2 + $0x1af]]  ;;  %v1648_v35 = vadd.f32 %v1647_v44, %v1641_v5  ;;  %v3461_v44 = vadd.f32 -1.0, %v3892_v50 }
 0x456   :  { %s8020_s30 = sld [smem:[#allocation50_spill]]  ;;  %v1463_v34 = vstv %s8017_s12 }
 0x457   :  { %8018 = sst [smem:[#allocation83_spill]] %s5927_s24  ;;  %v1464_v31 = vmul.f32 %v1463_v34, %v4488_v32 }
 0x458   :  { %s5940_s4 = sld [smem:[#allocation2 + $0x1b1]]  ;;  %v1479_v11 = vstv %s8019_s6 }
 0x459   :  { %s5945_s13 = sld [smem:[#allocation2 + $0x1b3]]  ;;  %v1480_v29 = vmul.f32 %v1479_v11, %v4473_v24  ;;  %v1465_v17 = vadd.f32 %v1464_v31, %v1461_v40  ;;  %v1757_v31 = vmul.f32 %v1756_v14, %v5376_v22 }
 0x45a   :  { %s8021_s29 = sld [smem:[#allocation27_spill]] }
 0x45b   :  { %s5952_s24 = sld [smem:[#allocation2 + $0x1b5]]  ;;  %v1481_v47 = vadd.f32 %v1480_v29, %v1477_v58  ;;  %v6054_v58 = vsel %vm1601_vm1, %v5729_v33, %v3460_v2  ;;  %v1703_v33 = vmul.f32 %v1702_v3, %v5412_v52 }
 0x45c   :  { %s8022_s12 = sld [smem:[#allocation39_spill]]  ;;  %v1650_v10 = vstv %s8020_s30 }
 0x45d   :  { %s5961_s0 = sld [smem:[#allocation2 + $0x1b7]]  ;;  %v1651_v32 = vmul.f32 %v1650_v10, %v5426_v62  ;;  %v3462_v10 = vadd.f32 -1.0, %v3894_v4 }
 0x45e   :  { %s5965_s6 = sld [smem:[#allocation2 + $0x1b9]] }
 0x45f   :  { %s8025_s5 = sld [smem:[#allocation41_spill]]  ;;  %v1652_v49 = vadd.f32 %v1651_v32, %v1648_v35 }
 0x460   :  { %v1467_v18 = vstv %s8021_s29  ;;  %s5969_s3 = sld [smem:[#allocation2 + $0x1bb]] }
 0x461   :  { %s8027_s30 = sld [smem:[#allocation34_spill]]  ;;  %v1468_v51 = vmul.f32 %v1467_v18, %v4518_v41  ;;  %v1758_v18 = vstv %s5683_s7 }
 0x462   :  { %v1483_v0 = vstv %s8022_s12  ;;  %s5980_s29 = sld [smem:[#allocation2 + $0x1bf]]  ;;  %v1759_v6 = vadd.f32 %v1758_v18, %v1757_v31 }
 0x463   :  { %8023 = sst [smem:[#allocation100_spill]] %s5961_s0  ;;  %v1484_v15 = vmul.f32 %v1483_v0, %v4503_v36  ;;  %v6005_v36 = vsel %vm1581_vm13, %v5439_v23, %v3456_v1  ;;  %v1469_v23 = vadd.f32 %v1468_v51, %v1465_v17  ;;  %v6063_v0 = vsel %vm1606_vm2, %v5809_v8, %v3461_v44 }
 0x464   :  { %8024 = sst [smem:[#allocation101_spill]] %s5965_s6  ;;  %v6080_v51 = vsel %vm1611_vm3, %v5825_v27, %v3462_v10  ;;  %v1768_v17 = vstv %s5701_s19  ;;  %v1824_v44 = vstv %s5776_s16 }
 0x465   :  { %s5974_s0 = sld [smem:[#allocation2 + $0x1bd]]  ;;  %v1654_v24 = vstv %s8025_s5  ;;  %v1485_v34 = vadd.f32 %v1484_v15, %v1481_v47 }
 0x466   :  { %8026 = sst [smem:[#allocation94_spill]] %s5969_s3  ;;  %v1655_v41 = vmul.f32 %v1654_v24, %v5463_v16 }
 0x467   :  { %s8029_s6 = sld [smem:[#allocation38_spill]]  ;;  %v1471_v30 = vstv %s8027_s30 }
 0x468   :  { %8030 = sst [smem:[#allocation92_spill]] %s5980_s29  ;;  %v1472_v46 = vmul.f32 %v1471_v30, %v4572_v26  ;;  %v6028_v26 = vsel %vm1591_vm15, %v5594_v48, %v3458_v55  ;;  %v1656_v11 = vadd.f32 %v1655_v41, %v1652_v49  ;;  %v3896_v48 = vpop.eup %3895 }
 0x469   :  { %s8031_s12 = sld [smem:[#allocation31_spill]]  ;;  %v3898_v8 = vpop.eup %3897  ;;  %v3463_v59 = vadd.f32 -1.0, %v3896_v48 }
 0x46a   :  { %s5990_s3 = sld [smem:[#allocation2 + $0x1c3]]  ;;  %v1473_v57 = vadd.f32 %v1472_v46, %v1469_v23  ;;  %v3464_v41 = vadd.f32 -1.0, %v3898_v8  ;;  %v1769_v46 = vmul.f32 %v1768_v17, %v5426_v62  ;;  %v3900_v18 = vpop.eup %3899 }
 0x46b   :  { %8028 = sst [smem:[#allocation98_spill]] %s5974_s0  ;;  %v6108_v14 = vsel %vm1616_vm4, %v5904_v19, %v3463_v59  ;;  %v1874_v59 = vstv %s5852_s8  ;;  %v3465_v17 = vadd.f32 -1.0, %v3900_v18  ;;  %v1836_v18 = vstv %s5794_s11 }
 0x46c   :  { %s5986_s0 = sld [smem:[#allocation2 + $0x1c1]]  ;;  %v6122_v19 = vsel %vm1621_vm5, %v5929_v13, %v3464_v41 }
 0x46d   :  { %v1487_v9 = vstv %s8029_s6  ;;  %s5995_s5 = sld [smem:[#allocation2 + $0x1c5]] }
 0x46e   :  { %s6009_s6 = sld [smem:[#allocation2 + $0x1c7]]  ;;  %v1488_v42 = vmul.f32 %v1487_v9, %v4547_v7  ;;  %v6037_v7 = vsel %vm1596_vm0, %v5642_v45, %v3459_v28  ;;  %v1764_v45 = vstv %s5696_s17  ;;  %v1820_v9 = vstv %s5770_s1 }
 0x46f   :  { %v1658_v21 = vstv %s8031_s12  ;;  %s8036_s30 = sld [smem:[#allocation44_spill]]  ;;  %v1765_v1 = vmul.f32 %v1764_v45, %v5405_v60  ;;  %v1776_v45 = vstv %s5712_s28 }
 0x470   :  { %8033 = sst [smem:[#allocation99_spill]] %s5990_s3  ;;  %v1659_v5 = vmul.f32 %v1658_v21, %v5542_v12  ;;  %v1489_v40 = vadd.f32 %v1488_v42, %v1485_v34  ;;  %v1821_v42 = vmul.f32 %v1820_v9, %v5412_v52 }
 0x471   :  { %s8038_s12 = sld [smem:[#allocation46_spill]]  ;;  %v1766_v21 = vadd.f32 %v1765_v1, %v1759_v6  ;;  %v8064_v1 = vld [vmem:[#allocation147_spill] sm:$0xff] }
 0x472   :  { %8032 = sst [smem:[#allocation95_spill]] %s5986_s0  ;;  %v1660_v29 = vadd.f32 %v1659_v5, %v1656_v11  ;;  %v6075_v24 = vadd.f32 %v1489_v40, %v1473_v57  ;;  %v8056_v11 = vld [vmem:[#allocation150_spill] sm:$0xff] }
 0x473   :  { %8034 = sst [smem:[#allocation80_spill]] %s5995_s5  ;;  %v1770_v57 = vadd.f32 %v1769_v46, %v1766_v21  ;;  %v1832_v21 = vstv %s5789_s2  ;;  %v1875_v46 = vmul.f32 %v1874_v59, %v5376_v22 }
 0x474   :  { %8035 = sst [smem:[#allocation84_spill]] %s6009_s6  ;;  %v1632_v37 = vmul.f32 1.442695, %v6075_v24  ;;  %vm1631_vm7 = vcmp.gt.f32.partialorder %v6075_v24, 0.0 }
 0x475   :  { %s6019_s5 = sld [smem:[#allocation2 + $0x2b4]]  ;;  %v1662_v61 = vstv %s8036_s30 }
 0x476   :  { %s6023_s6 = sld [smem:[#allocation2 + $0x1c9]]  ;;  %v1663_v50 = vmul.f32 %v1662_v61, %v5620_v43  ;;  %3901 = vpow2.f32 %v1632_v37 }
 0x477   :  { %s6032_s3 = sld [smem:[#allocation2 + $0x1ca]]  ;;  %v1643_v54 = vstv %s8038_s12 }
 0x478   :  { %s6040_s14 = sld [smem:[#allocation2 + $0x1cb]]  ;;  %v1644_v35 = vmul.f32 %v1643_v54, %v5400_v38  ;;  %v1664_v30 = vadd.f32 %v1663_v50, %v1660_v29  ;;  %v8058_v54 = vld [vmem:[#allocation146_spill] sm:$0xff]  ;;  %v1825_v50 = vmul.f32 %v1824_v44, %v5447_v25 }
 0x479   :  { %s8040_s0 = sld [smem:[#allocation32_spill]] }
 0x47a   :  { %s6045_s29 = sld [smem:[#allocation2 + $0x1cd]]  ;;  %v1704_v49 = vadd.f32 %v1703_v33, %v1644_v35  ;;  %v1828_v33 = vstv %s5781_s10 }
 0x47b   :  { %8037 = sst [smem:[#allocation96_spill]] %s6019_s5 }
 0x47c   :  { %s6049_s5 = sld [smem:[#allocation2 + $0x1cf]] }
 0x47d   :  { %8039 = sst [smem:[#allocation105_spill]] %s6032_s3 }
 0x47e   :  { %s8041_s3 = sld [smem:[#allocation49_spill]] }
 0x47f   :  { %s6058_s25 = sld [smem:[#allocation2 + $0x1d1]]  ;;  %v1666_v32 = vstv %s8040_s0 }
 0x480   :  { %s8043_s7 = sld [smem:[#allocation64_spill]]  ;;  %v1667_v47 = vmul.f32 %v1666_v32, %v5638_v63 }
 0x481   :  { %s6068_s17 = sld [smem:[#allocation2 + $0x1d3]] }
 0x482   :  { %s8045_s30 = sld [smem:[#allocation42_spill]]  ;;  %v1668_v2 = vadd.f32 %v1667_v47, %v1664_v30 }
 0x483   :  { %s6073_s12 = sld [smem:[#allocation2 + $0x1d5]] }
 0x484   :  { %v1706_v4 = vstv %s8041_s3  ;;  %s8047_s0 = sld [smem:[#allocation55_spill]] }
 0x485   :  { %8042 = sst [smem:[#allocation97_spill]] %s6058_s25  ;;  %v1707_v27 = vmul.f32 %v1706_v4, %v5447_v25 }
 0x486   :  { %s8049_s3 = sld [smem:[#allocation59_spill]]  ;;  %v1761_v15 = vstv %s8043_s7 }
 0x487   :  { %8044 = sst [smem:[#allocation106_spill]] %s6068_s17  ;;  %v1762_v23 = vmul.f32 %v1761_v15, %v5400_v38  ;;  %v1708_v48 = vadd.f32 %v1707_v27, %v1704_v49  ;;  %v1777_v15 = vmul.f32 %v1776_v45, %v5542_v12  ;;  %v1829_v27 = vmul.f32 %v1828_v33, %v8058_v54 }
 0x488   :  { %s6083_s17 = sld [smem:[#allocation2 + $0x1d7]]  ;;  %v1670_v55 = vstv %s8045_s30 }
 0x489   :  { %8046 = sst [smem:[#allocation109_spill]] %s6073_s12  ;;  %v1671_v5 = vmul.f32 %v1670_v55, %v8056_v11  ;;  %v1822_v29 = vadd.f32 %v1821_v42, %v1762_v23  ;;  %v1780_v55 = vstv %s5718_s15  ;;  %v8070_v23 = vld [vmem:[#allocation148_spill] sm:$0xff]  ;;  %v1876_v42 = vstv %s5847_s21 }
 0x48a   :  { %s6088_s12 = sld [smem:[#allocation2 + $0x1d9]]  ;;  %v1710_v28 = vstv %s8047_s0  ;;  %v1877_v45 = vadd.f32 %v1876_v42, %v1875_v46  ;;  %v8085_v46 = vld [vmem:[#allocation151_spill] sm:$0xff] }
 0x48b   :  { %s6093_s25 = sld [smem:[#allocation2 + $0x1db]]  ;;  %v1711_v3 = vmul.f32 %v1710_v28, %v8058_v54  ;;  %v1672_v13 = vadd.f32 %v1671_v5, %v1668_v2  ;;  %v1826_v49 = vadd.f32 %v1825_v50, %v1822_v29  ;;  %v1882_v2 = vstv %s5864_s23 }
 0x48c   :  { %s8051_s19 = sld [smem:[#allocation47_spill]]  ;;  %v1772_v34 = vstv %s8049_s3  ;;  %v1883_v29 = vmul.f32 %v1882_v2, %v5405_v60 }
 0x48d   :  { %s6097_s7 = sld [smem:[#allocation2 + $0x1dd]]  ;;  %v1773_v40 = vmul.f32 %v1772_v34, %v5463_v16  ;;  %v1712_v6 = vadd.f32 %v1711_v3, %v1708_v48 }
 0x48e   :  { %8048 = sst [smem:[#allocation111_spill]] %s6083_s17 }
 0x48f   :  { %s8052_s17 = sld [smem:[#allocation45_spill]]  ;;  %v1774_v47 = vadd.f32 %v1773_v40, %v1770_v57  ;;  %v1833_v57 = vmul.f32 %v1832_v21, %v8064_v1 }
 0x490   :  { %s8054_s1 = sld [smem:[#allocation35_spill]] }
 0x491   :  { %8050 = sst [smem:[#allocation104_spill]] %s6093_s25 }
 0x492   :  { %s6103_s30 = sld [smem:[#allocation2 + $0x1df]]  ;;  %v1674_v10 = vstv %s8051_s19 }
 0x493   :  { %8053 = sst [smem:[#allocation107_spill]] %s6097_s7  ;;  %v1675_v35 = vmul.f32 %v1674_v10, %v5957_v20  ;;  %v1778_v10 = vadd.f32 %v1777_v15, %v1774_v47 }
 0x494   :  { %s6112_s0 = sld [smem:[#allocation2 + $0x1e1]] }
 0x495   :  { %v1678_v61 = vstv %s8052_s17  ;;  %s6117_s3 = sld [smem:[#allocation2 + $0x1e3]]  ;;  %v1676_v41 = vadd.f32 %v1675_v35, %v1672_v13  ;;  %v8077_v35 = vld [vmem:[#allocation149_spill] sm:$0xff] }
 0x496   :  { %v1714_v31 = vstv %s8054_s1  ;;  %s6126_s16 = sld [smem:[#allocation2 + $0x1e5]]  ;;  %v1679_v32 = vmul.f32 %v1678_v61, %v6005_v36  ;;  %v1781_v61 = vmul.f32 %v1780_v55, %v5620_v43  ;;  %v1840_v55 = vstv %s5801_s26 }
 0x497   :  { %s8062_s17 = sld [smem:[#allocation54_spill]]  ;;  %v1715_v8 = vmul.f32 %v1714_v31, %v8064_v1  ;;  %v1830_v31 = vadd.f32 %v1829_v27, %v1826_v49  ;;  %v1884_v49 = vadd.f32 %v1883_v29, %v1877_v45 }
 0x498   :  { %8055 = sst [smem:[#allocation102_spill]] %s6103_s30  ;;  %v1680_v50 = vadd.f32 %v1679_v32, %v1676_v41  ;;  %v1782_v59 = vadd.f32 %v1781_v61, %v1778_v10 }
 0x499   :  { %s8060_s30 = sld [smem:[#allocation57_spill]]  ;;  %v1716_v37 = vadd.f32 %v1715_v8, %v1712_v6  ;;  %v6184_v6 = vsel %vm1626_vm6, %v5982_v56, %v3465_v17  ;;  %v1834_v15 = vadd.f32 %v1833_v57, %v1830_v31  ;;  %v3902_v56 = vpop.eup %3901  ;;  %v1844_v57 = vstv %s5807_s9 }
 0x49a   :  { %8057 = sst [smem:[#allocation103_spill]] %s6112_s0  ;;  %v3466_v61 = vadd.f32 -1.0, %v3902_v56 }
 0x49b   :  { %8059 = sst [smem:[#allocation112_spill]] %s6117_s3 }
 0x49c   :  { %8061 = sst [smem:[#allocation119_spill]] %s6126_s16 }
 0x49d   :  { %s6131_s19 = sld [smem:[#allocation2 + $0x1cc]]  ;;  %v1718_v30 = vstv %s8062_s17 }
 0x49e   :  { %s8063_s3 = sld [smem:[#allocation62_spill]]  ;;  %v1719_v34 = vmul.f32 %v1718_v30, %v8070_v23 }
 0x49f   :  { %s6136_s1 = sld [smem:[#allocation2 + $0x1ce]]  ;;  %v1682_v4 = vstv %s8060_s30 }
 0x4a0   :  { %s6141_s28 = sld [smem:[#allocation2 + $0x1d0]]  ;;  %v1683_v28 = vmul.f32 %v1682_v4, %v6028_v26  ;;  %v1720_v13 = vadd.f32 %v1719_v34, %v1716_v37  ;;  %v1886_v4 = vstv %s5868_s27  ;;  %v1890_v34 = vstv %s5873_s20 }
 0x4a1   :  { %s6145_s16 = sld [smem:[#allocation2 + $0x1d2]]  ;;  %v1887_v27 = vmul.f32 %v1886_v4, %v5426_v62 }
 0x4a2   :  { %s8065_s10 = sld [smem:[#allocation48_spill]]  ;;  %v1684_v41 = vadd.f32 %v1683_v28, %v1680_v50  ;;  %v1841_v28 = vmul.f32 %v1840_v55, %v8077_v35 }
 0x4a3   :  { %s6150_s30 = sld [smem:[#allocation2 + $0x1d4]] }
 0x4a4   :  { %v1686_v9 = vstv %s8063_s3  ;;  %s8066_s8 = sld [smem:[#allocation33_spill]] }
 0x4a5   :  { %s8067_s0 = sld [smem:[#allocation74_spill]]  ;;  %v1687_v5 = vmul.f32 %v1686_v9, %v6054_v58  ;;  %v1837_v9 = vmul.f32 %v1836_v18, %v8070_v23  ;;  %v1891_v18 = vmul.f32 %v1890_v34, %v5463_v16  ;;  %v6250_v34 = vsel %vm1631_vm7, %v6075_v24, %v3466_v61 }
 0x4a6   :  { %s6155_s17 = sld [smem:[#allocation2 + $0x1d6]] }
 0x4a7   :  { %s8069_s7 = sld [smem:[#allocation53_spill]]  ;;  %v1688_v45 = vadd.f32 %v1687_v5, %v1684_v41  ;;  %v1845_v5 = vmul.f32 %v1844_v57, %v8085_v46 }
 0x4a8   :  { %s6160_s15 = sld [smem:[#allocation2 + $0x1d8]]  ;;  %v1722_v44 = vstv %s8065_s10 }
 0x4a9   :  { %s6165_s2 = sld [smem:[#allocation2 + $0x1da]]  ;;  %v1723_v33 = vmul.f32 %v1722_v44, %v8077_v35 }
 0x4aa   :  { %v1690_v48 = vstv %s8066_s8  ;;  %s8073_s3 = sld [smem:[#allocation58_spill]] }
 0x4ab   :  { %v1784_v3 = vstv %s8067_s0  ;;  %s8075_s23 = sld [smem:[#allocation73_spill]]  ;;  %v6192_v32 = vmul.f32 %v1690_v48, %v6080_v51  ;;  %v1724_v21 = vadd.f32 %v1723_v33, %v1720_v13  ;;  %v1894_v13 = vstv %s5878_s22 }
 0x4ac   :  { %8068 = sst [smem:[#allocation113_spill]] %s6155_s17  ;;  %v1785_v30 = vmul.f32 %v1784_v3, %v5638_v63  ;;  %v1838_v3 = vadd.f32 %v1837_v9, %v1834_v15 }
 0x4ad   :  { %s6170_s17 = sld [smem:[#allocation2 + $0x1dc]]  ;;  %v1694_v40 = vstv %s8069_s7 }
 0x4ae   :  { %8071 = sst [smem:[#allocation110_spill]] %s6160_s15  ;;  %v6199_v17 = vmul.f32 %v1694_v40, %v6122_v19  ;;  %v1786_v44 = vadd.f32 %v1785_v30, %v1782_v59  ;;  %v1888_v40 = vadd.f32 %v1887_v27, %v1884_v49  ;;  %v1938_v59 = vstv %s5934_s18 }
 0x4af   :  { %8072 = sst [smem:[#allocation116_spill]] %s6165_s2  ;;  %v1842_v15 = vadd.f32 %v1841_v28, %v1838_v3  ;;  %v1895_v49 = vmul.f32 %v1894_v13, %v5542_v12 }
 0x4b0   :  { %s6175_s21 = sld [smem:[#allocation2 + $0x1de]]  ;;  %v1726_v8 = vstv %s8073_s3  ;;  %v1892_v55 = vadd.f32 %v1891_v18, %v1888_v40 }
 0x4b1   :  { %s6179_s0 = sld [smem:[#allocation2 + $0x1e0]]  ;;  %v1788_v47 = vstv %s8075_s23  ;;  %v1727_v37 = vmul.f32 %v1726_v8, %v8085_v46  ;;  %v1846_v28 = vadd.f32 %v1845_v5, %v1842_v15 }
 0x4b2   :  { %s6188_s11 = sld [smem:[#allocation2 + $0x1e2]]  ;;  %v1789_v10 = vmul.f32 %v1788_v47, %v8056_v11  ;;  %v1896_v61 = vadd.f32 %v1895_v49, %v1892_v55 }
 0x4b3   :  { %8074 = sst [smem:[#allocation115_spill]] %s6170_s17  ;;  %v1728_v29 = vadd.f32 %v1727_v37, %v1724_v21  ;;  %v1939_v37 = vmul.f32 %v1938_v59, %v5412_v52  ;;  %v1946_v59 = vstv %s5945_s13 }
 0x4b4   :  { %s8080_s27 = sld [smem:[#allocation36_spill]]  ;;  %v1790_v33 = vadd.f32 %v1789_v10, %v1786_v44  ;;  %v1942_v10 = vstv %s5940_s4 }
 0x4b5   :  { %s8081_s7 = sld [smem:[#allocation43_spill]]  ;;  %v1943_v13 = vmul.f32 %v1942_v10, %v5447_v25 }
 0x4b6   :  { %8076 = sst [smem:[#allocation120_spill]] %s6175_s21 }
 0x4b7   :  { %8078 = sst [smem:[#allocation108_spill]] %s6179_s0 }
 0x4b8   :  { %8079 = sst [smem:[#allocation117_spill]] %s6188_s11 }
 0x4b9   :  { %s6196_s10 = sld [smem:[#allocation2 + $0x1e4]] }
 0x4ba   :  { %s8083_s8 = sld [smem:[#allocation76_spill]]  ;;  %v1698_v42 = vstv %s8080_s27 }
 0x4bb   :  { %s6203_s3 = sld [smem:[#allocation2 + $0x2b5]]  ;;  %v1730_v2 = vstv %s8081_s7 }
 0x4bc   :  { %s8084_s11 = sld [smem:[#allocation60_spill]]  ;;  %v1731_v50 = vmul.f32 %v1730_v2, %v6000_v53 }
 0x4bd   :  { %s6207_s23 = sld [smem:[#allocation2 + $0x1e6]] }
 0x4be   :  { %s6212_s26 = sld [smem:[#allocation2 + $0x1e7]]  ;;  %v1732_v27 = vadd.f32 %v1731_v50, %v1728_v29 }
 0x4bf   :  { %8082 = sst [smem:[#allocation118_spill]] %s6196_s10 }
 0x4c0   :  { %v1792_v48 = vstv %s8083_s8  ;;  %s8086_s10 = sld [smem:[#allocation71_spill]] }
 0x4c1   :  { %s6216_s0 = sld [smem:[#allocation2 + $0x1e8]]  ;;  %v1793_v4 = vmul.f32 %v1792_v48, %v5957_v20 }
 0x4c2   :  { %v1734_v31 = vstv %s8084_s11  ;;  %s8087_s20 = sld [smem:[#allocation63_spill]] }
 0x4c3   :  { %s6221_s7 = sld [smem:[#allocation2 + $0x1ea]]  ;;  %v1735_v30 = vmul.f32 %v1734_v31, %v6015_v39  ;;  %v1794_v2 = vadd.f32 %v1793_v4, %v1790_v33  ;;  %v1692_v33 = vadd.f32 %v6192_v32, %v1688_v45 }
 0x4c4   :  { %s8088_s21 = sld [smem:[#allocation51_spill]] }
 0x4c5   :  { %s8089_s17 = sld [smem:[#allocation75_spill]]  ;;  %v1736_v18 = vadd.f32 %v1735_v30, %v1732_v27 }
 0x4c6   :  { %s6225_s8 = sld [smem:[#allocation2 + $0x1ec]]  ;;  %v1879_v8 = vstv %s8086_s10 }
 0x4c7   :  { %s8090_s11 = sld [smem:[#allocation78_spill]]  ;;  %v1880_v41 = vmul.f32 %v1879_v8, %v5400_v38 }
 0x4c8   :  { %s6230_s9 = sld [smem:[#allocation2 + $0x1ee]]  ;;  %v1796_v47 = vstv %s8087_s20 }
 0x4c9   :  { %s6235_s2 = sld [smem:[#allocation2 + $0x1f0]]  ;;  %v1797_v44 = vmul.f32 %v1796_v47, %v6005_v36  ;;  %v1940_v50 = vadd.f32 %v1939_v37, %v1880_v41  ;;  %v1947_v41 = vmul.f32 %v1946_v59, %v8058_v54 }
 0x4ca   :  { %v1738_v9 = vstv %s8088_s21  ;;  %s8091_s22 = sld [smem:[#allocation77_spill]] }
 0x4cb   :  { %v1848_v56 = vstv %s8089_s17  ;;  %s6240_s15 = sld [smem:[#allocation2 + $0x1f2]]  ;;  %v1739_v48 = vmul.f32 %v1738_v9, %v6037_v7  ;;  %v1798_v4 = vadd.f32 %v1797_v44, %v1794_v2  ;;  %v1944_v27 = vadd.f32 %v1943_v13, %v1940_v50 }
 0x4cc   :  { %s8093_s18 = sld [smem:[#allocation61_spill]]  ;;  %v1849_v31 = vmul.f32 %v1848_v56, %v6000_v53  ;;  %v1950_v44 = vstv %s5952_s24  ;;  %v1696_v50 = vadd.f32 %v6199_v17, %v1692_v33  ;;  %v1992_v33 = vstv %s6023_s6 }
 0x4cd   :  { %s8094_s10 = sld [smem:[#allocation85_spill]]  ;;  %v1898_v21 = vstv %s8090_s11  ;;  %v1740_v55 = vadd.f32 %v1739_v48, %v1736_v18  ;;  %v1948_v18 = vadd.f32 %v1947_v41, %v1944_v27 }
 0x4ce   :  { %s6245_s20 = sld [smem:[#allocation2 + $0x1f4]]  ;;  %v1899_v40 = vmul.f32 %v1898_v21, %v5620_v43  ;;  %v1850_v15 = vadd.f32 %v1849_v31, %v1846_v28  ;;  %v1699_v21 = vmul.f32 %v1698_v42, %v6250_v34 }
 0x4cf   :  { %s8096_s17 = sld [smem:[#allocation82_spill]] }
 0x4d0   :  { %s6254_s21 = sld [smem:[#allocation2 + $0x1f6]]  ;;  %v1800_v3 = vstv %s8091_s22  ;;  %v1900_v45 = vadd.f32 %v1899_v40, %v1896_v61 }
 0x4d1   :  { %8092 = sst [smem:[#allocation14_spill]] %s6240_s15  ;;  %v1801_v8 = vmul.f32 %v1800_v3, %v6028_v26 }
 0x4d2   :  { %s6259_s11 = sld [smem:[#allocation2 + $0x1f8]]  ;;  %v1742_v57 = vstv %s8093_s18 }
 0x4d3   :  { %v1852_v24 = vstv %s8094_s10  ;;  %s6264_s15 = sld [smem:[#allocation2 + $0x1fa]]  ;;  %v1743_v47 = vmul.f32 %v1742_v57, %v6063_v0  ;;  %v1802_v37 = vadd.f32 %v1801_v8, %v1798_v4 }
 0x4d4   :  { %8095 = sst [smem:[#allocation114_spill]] %s6245_s20  ;;  %v1853_v5 = vmul.f32 %v1852_v24, %v6015_v39 }
 0x4d5   :  { %s8099_s20 = sld [smem:[#allocation69_spill]]  ;;  %v1902_v29 = vstv %s8096_s17  ;;  %v1744_v61 = vadd.f32 %v1743_v47, %v1740_v55 }
 0x4d6   :  { %8097 = sst [smem:[#allocation121_spill]] %s6254_s21  ;;  %v1903_v56 = vmul.f32 %v1902_v29, %v5638_v63  ;;  %v1854_v48 = vadd.f32 %v1853_v5, %v1850_v15  ;;  %v1951_v29 = vmul.f32 %v1950_v44, %v8064_v1 }
 0x4d7   :  { %s8101_s4 = sld [smem:[#allocation56_spill]] }
 0x4d8   :  { %8098 = sst [smem:[#allocation122_spill]] %s6259_s11  ;;  %v1904_v42 = vadd.f32 %v1903_v56, %v1900_v45  ;;  %v1952_v56 = vadd.f32 %v1951_v29, %v1948_v18 }
 0x4d9   :  { %8100 = sst [smem:[#allocation123_spill]] %s6264_s15 }
 0x4da   :  { %s8102_s21 = sld [smem:[#allocation67_spill]] }
 0x4db   :  { %s6268_s22 = sld [smem:[#allocation2 + $0x1fc]]  ;;  %v1804_v30 = vstv %s8099_s20 }
 0x4dc   :  { %s8104_s11 = sld [smem:[#allocation93_spill]]  ;;  %v1805_v2 = vmul.f32 %v1804_v30, %v6054_v58 }
 0x4dd   :  { %s6273_s18 = sld [smem:[#allocation2 + $0x1fe]]  ;;  %v1746_v9 = vstv %s8101_s4 }
 0x4de   :  { %s6278_s10 = sld [smem:[#allocation2 + $0x200]]  ;;  %v1747_v31 = vmul.f32 %v1746_v9, %v6108_v14  ;;  %v1806_v13 = vadd.f32 %v1805_v2, %v1802_v37 }
 0x4df   :  { %s8107_s17 = sld [smem:[#allocation65_spill]] }
 0x4e0   :  { %v1856_v32 = vstv %s8102_s21  ;;  %s6283_s13 = sld [smem:[#allocation2 + $0x202]] }
 0x4e1   :  { %8103 = sst [smem:[#allocation12_spill]] %s6268_s22  ;;  %v1857_v28 = vmul.f32 %v1856_v32, %v6037_v7  ;;  %v1748_v32 = vadd.f32 %v1747_v31, %v1744_v61 }
 0x4e2   :  { %s8108_s22 = sld [smem:[#allocation86_spill]]  ;;  %v1906_v49 = vstv %s8104_s11 }
 0x4e3   :  { %8105 = sst [smem:[#allocation139_spill]] %s6273_s18  ;;  %v1907_v24 = vmul.f32 %v1906_v49, %v8056_v11  ;;  %v1858_v47 = vadd.f32 %v1857_v28, %v1854_v48 }
 0x4e4   :  { %8106 = sst [smem:[#allocation138_spill]] %s6278_s10 }
 0x4e5   :  { %s8110_s18 = sld [smem:[#allocation68_spill]]  ;;  %v1750_v10 = vstv %s8107_s17  ;;  %v1908_v9 = vadd.f32 %v1907_v24, %v1904_v42  ;;  %v1700_v42 = vadd.f32 %v1699_v21, %v1696_v50 }
 0x4e6   :  { %8109 = sst [smem:[#allocation124_spill]] %s6283_s13  ;;  %v1751_v59 = vmul.f32 %v1750_v10, %v6184_v6 }
 0x4e7   :  { %s6287_s20 = sld [smem:[#allocation2 + $0x1e9]] }
 0x4e8   :  { %s8111_s10 = sld [smem:[#allocation79_spill]]  ;;  %v1808_v3 = vstv %s8108_s22  ;;  %v1752_v18 = vadd.f32 %v1751_v59, %v1748_v32  ;;  %v2004_v59 = vstv %s6045_s29 }
 0x4e9   :  { %s6294_s21 = sld [smem:[#allocation2 + $0x1eb]]  ;;  %v1809_v4 = vmul.f32 %v1808_v3, %v6080_v51  ;;  %v1993_v3 = vmul.f32 %v1992_v33, %v5376_v22 }
 0x4ea   :  { %s8112_s11 = sld [smem:[#allocation100_spill]]  ;;  %v6365_v32 = vadd.f32 %v1752_v18, %v1700_v42 }
 0x4eb   :  { %s6299_s4 = sld [smem:[#allocation2 + $0x1ed]]  ;;  %v1860_v57 = vstv %s8110_s18  ;;  %v1810_v49 = vadd.f32 %v1809_v4, %v1806_v13 }
 0x4ec   :  { %s8113_s13 = sld [smem:[#allocation81_spill]]  ;;  %v1861_v15 = vmul.f32 %v1860_v57, %v6063_v0  ;;  %v2000_v57 = vstv %s6040_s14  ;;  %vm2934_vm8 = vcmp.gt.f32.partialorder %v6365_v32, 0.0 }
 0x4ed   :  { %s6304_s27 = sld [smem:[#allocation2 + $0x1ef]] }
 0x4ee   :  { %s8115_s24 = sld [smem:[#allocation88_spill]]  ;;  %v1910_v40 = vstv %s8111_s10  ;;  %v1862_v2 = vadd.f32 %v1861_v15, %v1858_v47 }
 0x4ef   :  { %s6308_s22 = sld [smem:[#allocation2 + $0x1f1]]  ;;  %v1911_v17 = vmul.f32 %v1910_v40, %v5957_v20 }
 0x4f0   :  { %s8117_s17 = sld [smem:[#allocation72_spill]]  ;;  %v1954_v8 = vstv %s8112_s11 }
 0x4f1   :  { %s6313_s18 = sld [smem:[#allocation2 + $0x1f3]]  ;;  %v1955_v55 = vmul.f32 %v1954_v8, %v8070_v23  ;;  %v1912_v48 = vadd.f32 %v1911_v17, %v1908_v9 }
 0x4f2   :  { %v1812_v30 = vstv %s8113_s13  ;;  %s8118_s15 = sld [smem:[#allocation66_spill]] }
 0x4f3   :  { %8114 = sst [smem:[#allocation130_spill]] %s6304_s27  ;;  %v1813_v27 = vmul.f32 %v1812_v30, %v6122_v19  ;;  %v1956_v61 = vadd.f32 %v1955_v55, %v1952_v56  ;;  %v2001_v30 = vmul.f32 %v2000_v57, %v5405_v60 }
 0x4f4   :  { %s8119_s10 = sld [smem:[#allocation101_spill]]  ;;  %v1864_v5 = vstv %s8115_s24 }
 0x4f5   :  { %8116 = sst [smem:[#allocation129_spill]] %s6308_s22  ;;  %v1865_v44 = vmul.f32 %v1864_v5, %v6108_v14  ;;  %v1814_v29 = vadd.f32 %v1813_v27, %v1810_v49  ;;  %v2005_v27 = vmul.f32 %v2004_v59, %v5426_v62  ;;  %v2060_v59 = vstv %s6136_s1 }
 0x4f6   :  { %s6318_s27 = sld [smem:[#allocation2 + $0x1f5]]  ;;  %v1914_v45 = vstv %s8117_s17 }
 0x4f7   :  { %s8121_s22 = sld [smem:[#allocation70_spill]]  ;;  %v1915_v28 = vmul.f32 %v1914_v45, %v6005_v36  ;;  %v1866_v8 = vadd.f32 %v1865_v44, %v1862_v2 }
 0x4f8   :  { %s6323_s25 = sld [smem:[#allocation2 + $0x1f7]]  ;;  %v1816_v41 = vstv %s8118_s15 }
 0x4f9   :  { %s8123_s11 = sld [smem:[#allocation96_spill]]  ;;  %v1817_v13 = vmul.f32 %v1816_v41, %v6250_v34  ;;  %v1916_v47 = vadd.f32 %v1915_v28, %v1912_v48  ;;  %v2110_v41 = vstv %s6207_s23 }
 0x4fa   :  { %s6327_s13 = sld [smem:[#allocation2 + $0x1f9]]  ;;  %v1958_v37 = vstv %s8119_s10 }
 0x4fb   :  { %s6332_s24 = sld [smem:[#allocation2 + $0x1fb]]  ;;  %v1959_v40 = vmul.f32 %v1958_v37, %v8077_v35  ;;  %v6367_v45 = vadd.f32 %v1817_v13, %v1814_v29  ;;  %v2112_v29 = vstv %s6203_s3  ;;  %v2118_v13 = vstv %s6216_s0 }
 0x4fc   :  { %8120 = sst [smem:[#allocation131_spill]] %s6318_s27 }
 0x4fd   :  { %s8125_s27 = sld [smem:[#allocation91_spill]]  ;;  %v1868_v10 = vstv %s8121_s22  ;;  %v1960_v17 = vadd.f32 %v1959_v40, %v1956_v61  ;;  %v2111_v61 = vmul.f32 %v2110_v41, %v5376_v22  ;;  %v2122_v41 = vstv %s6221_s7 }
 0x4fe   :  { %8122 = sst [smem:[#allocation125_spill]] %s6323_s25  ;;  %v1869_v21 = vmul.f32 %v1868_v10, %v6184_v6  ;;  %v2008_v10 = vstv %s6049_s5 }
 0x4ff   :  { %s8127_s6 = sld [smem:[#allocation94_spill]]  ;;  %v1994_v31 = vstv %s8123_s11  ;;  %v2009_v18 = vmul.f32 %v2008_v10, %v5463_v16 }
 0x500   :  { %8124 = sst [smem:[#allocation11_spill]] %s6327_s13  ;;  %v1995_v50 = vadd.f32 %v1994_v31, %v1993_v3  ;;  %v6372_v55 = vadd.f32 %v1869_v21, %v1866_v8  ;;  %v2056_v31 = vstv %s6131_s19 }
 0x501   :  { %8126 = sst [smem:[#allocation126_spill]] %s6332_s24 }
 0x502   :  { %s6337_s17 = sld [smem:[#allocation2 + $0x1fd]]  ;;  %v2002_v49 = vadd.f32 %v2001_v30, %v1995_v50  ;;  %v2057_v50 = vmul.f32 %v2056_v31, %v5412_v52 }
 0x503   :  { %s6342_s13 = sld [smem:[#allocation2 + $0x1ff]]  ;;  %v1918_v24 = vstv %s8125_s27 }
 0x504   :  { %s8130_s15 = sld [smem:[#allocation89_spill]]  ;;  %v1919_v15 = vmul.f32 %v1918_v24, %v6028_v26  ;;  %v2006_v40 = vadd.f32 %v2005_v27, %v2002_v49 }
 0x505   :  { %s6346_s22 = sld [smem:[#allocation2 + $0x201]]  ;;  %v1962_v4 = vstv %s8127_s6 }
 0x506   :  { %s8132_s10 = sld [smem:[#allocation87_spill]]  ;;  %v1963_v33 = vmul.f32 %v1962_v4, %v8085_v46  ;;  %v1920_v37 = vadd.f32 %v1919_v15, %v1916_v47  ;;  %v2010_v49 = vadd.f32 %v2009_v18, %v2006_v40  ;;  %v2174_v40 = vstv %s6287_s20 }
 0x507   :  { %s8133_s14 = sld [smem:[#allocation98_spill]] }
 0x508   :  { %8128 = sst [smem:[#allocation127_spill]] %s6337_s17  ;;  %v1964_v3 = vadd.f32 %v1963_v33, %v1960_v17  ;;  %v2113_v17 = vadd.f32 %v2112_v29, %v2111_v61  ;;  %v2119_v33 = vmul.f32 %v2118_v13, %v5405_v60  ;;  %v2123_v61 = vmul.f32 %v2122_v41, %v5426_v62 }
 0x509   :  { %8129 = sst [smem:[#allocation141_spill]] %s6342_s13 }
 0x50a   :  { %s6350_s17 = sld [smem:[#allocation2 + $0x2b6]]  ;;  %v1922_v5 = vstv %s8130_s15 }
 0x50b   :  { %8131 = sst [smem:[#allocation132_spill]] %s6346_s22  ;;  %v1923_v2 = vmul.f32 %v1922_v5, %v6054_v58 }
 0x50c   :  { %s6354_s27 = sld [smem:[#allocation2 + $0x203]]  ;;  %v1926_v9 = vstv %s8132_s10 }
 0x50d   :  { %s6358_s11 = sld [smem:[#allocation2 + $0x204]]  ;;  %v1966_v56 = vstv %s8133_s14  ;;  %v1927_v44 = vmul.f32 %v1926_v9, %v6080_v51  ;;  %v1924_v4 = vadd.f32 %v1923_v2, %v1920_v37 }
 0x50e   :  { %s6363_s6 = sld [smem:[#allocation2 + $0x205]]  ;;  %v1967_v48 = vmul.f32 %v1966_v56, %v6000_v53 }
 0x50f   :  { %s8135_s22 = sld [smem:[#allocation105_spill]] }
 0x510   :  { %s6370_s13 = sld [smem:[#allocation2 + $0x207]]  ;;  %v1968_v30 = vadd.f32 %v1967_v48, %v1964_v3  ;;  %v2061_v3 = vmul.f32 %v2060_v59, %v5447_v25  ;;  %v1928_v48 = vadd.f32 %v1927_v44, %v1924_v4  ;;  %v2126_v44 = vstv %s6225_s8 }
 0x511   :  { %s8136_s29 = sld [smem:[#allocation90_spill]]  ;;  %v2175_v59 = vmul.f32 %v2174_v40, %v5412_v52 }
 0x512   :  { %s8137_s15 = sld [smem:[#allocation83_spill]] }
 0x513   :  { %8134 = sst [smem:[#allocation140_spill]] %s6358_s11 }
 0x514   :  { %s8138_s10 = sld [smem:[#allocation92_spill]] }
 0x515   :  { %s6376_s24 = sld [smem:[#allocation2 + $0x209]]  ;;  %v1997_v28 = vstv %s8135_s22 }
 0x516   :  { %s6381_s14 = sld [smem:[#allocation2 + $0x20b]]  ;;  %v1998_v8 = vmul.f32 %v1997_v28, %v5400_v38 }
 0x517   :  { %s8141_s25 = sld [smem:[#allocation97_spill]]  ;;  %v1930_v57 = vstv %s8136_s29 }
 0x518   :  { %s6386_s11 = sld [smem:[#allocation2 + $0x20d]]  ;;  %v1934_v42 = vstv %s8137_s15  ;;  %v1931_v5 = vmul.f32 %v1930_v57, %v6122_v19  ;;  %v2058_v10 = vadd.f32 %v2057_v50, %v1998_v8  ;;  %v2064_v57 = vstv %s6141_s28 }
 0x519   :  { %s8142_s23 = sld [smem:[#allocation95_spill]]  ;;  %v1935_v56 = vmul.f32 %v1934_v42, %v6250_v34  ;;  %v2115_v42 = vstv %s6212_s26  ;;  %v2065_v50 = vmul.f32 %v2064_v57, %v8058_v54  ;;  %v2072_v57 = vstv %s6150_s30 }
 0x51a   :  { %v1970_v24 = vstv %s8138_s10  ;;  %s8143_s5 = sld [smem:[#allocation99_spill]] }
 0x51b   :  { %8139 = sst [smem:[#allocation16_spill]] %s6376_s24  ;;  %v1971_v47 = vmul.f32 %v1970_v24, %v6015_v39  ;;  %v2120_v24 = vadd.f32 %v2119_v33, %v2113_v17  ;;  %v2127_v33 = vmul.f32 %v2126_v44, %v5463_v16 }
 0x51c   :  { %8140 = sst [smem:[#allocation133_spill]] %s6381_s14 }
 0x51d   :  { %s6392_s24 = sld [smem:[#allocation2 + $0x20f]]  ;;  %v2012_v21 = vstv %s8141_s25  ;;  %v1972_v28 = vadd.f32 %v1971_v47, %v1968_v30  ;;  %v2068_v47 = vstv %s6145_s16  ;;  %v2124_v17 = vadd.f32 %v2123_v61, %v2120_v24 }
 0x51e   :  { %s6397_s14 = sld [smem:[#allocation2 + $0x211]]  ;;  %v2013_v27 = vmul.f32 %v2012_v21, %v5542_v12  ;;  %v2062_v21 = vadd.f32 %v2061_v3, %v2058_v10 }
 0x51f   :  { %s6402_s19 = sld [smem:[#allocation2 + $0x213]]  ;;  %v1974_v15 = vstv %s8142_s23  ;;  %v2128_v40 = vadd.f32 %v2127_v33, %v2124_v17 }
 0x520   :  { %s8144_s22 = sld [smem:[#allocation106_spill]]  ;;  %v1978_v9 = vstv %s8143_s5  ;;  %v1975_v37 = vmul.f32 %v1974_v15, %v6037_v7  ;;  %v2014_v29 = vadd.f32 %v2013_v27, %v2010_v49  ;;  %v2116_v15 = vmul.f32 %v2115_v42, %v5400_v38 }
 0x521   :  { %s6407_s29 = sld [smem:[#allocation2 + $0x215]]  ;;  %v1979_v31 = vmul.f32 %v1978_v9, %v6063_v0  ;;  %v1932_v9 = vadd.f32 %v1931_v5, %v1928_v48  ;;  %v2178_v49 = vstv %s6294_s21  ;;  %v2066_v5 = vadd.f32 %v2065_v50, %v2062_v21 }
 0x522   :  { %s6412_s25 = sld [smem:[#allocation2 + $0x217]]  ;;  %v1976_v30 = vadd.f32 %v1975_v37, %v1972_v28  ;;  %v2069_v48 = vmul.f32 %v2068_v47, %v8064_v1  ;;  %v2176_v42 = vadd.f32 %v2175_v59, %v2116_v15  ;;  %v2179_v24 = vmul.f32 %v2178_v49, %v5447_v25 }
 0x523   :  { %s6417_s1 = sld [smem:[#allocation2 + $0x219]]  ;;  %v6466_v61 = vadd.f32 %v1935_v56, %v1932_v9  ;;  %v2073_v56 = vmul.f32 %v2072_v57, %v8070_v23 }
 0x524   :  { %s8145_s0 = sld [smem:[#allocation80_spill]]  ;;  %v1980_v28 = vadd.f32 %v1979_v31, %v1976_v30  ;;  %v2028_v31 = vstv %s6088_s12  ;;  %v2070_v50 = vadd.f32 %v2069_v48, %v2066_v5  ;;  %v2180_v15 = vadd.f32 %v2179_v24, %v2176_v42 }
 0x525   :  { %s6422_s3 = sld [smem:[#allocation2 + $0x21b]]  ;;  %v2029_v9 = vmul.f32 %v2028_v31, %v5957_v20 }
 0x526   :  { %v2016_v2 = vstv %s8144_s22  ;;  %s8147_s15 = sld [smem:[#allocation84_spill]]  ;;  %v2074_v5 = vadd.f32 %v2073_v56, %v2070_v50  ;;  %v2230_v56 = vstv %s6350_s17 }
 0x527   :  { %s8148_s10 = sld [smem:[#allocation109_spill]]  ;;  %v2017_v13 = vmul.f32 %v2016_v2, %v5620_v43  ;;  %v2130_v2 = vstv %s6230_s9 }
 0x528   :  { %s6426_s7 = sld [smem:[#allocation2 + $0x21d]] }
 0x529   :  { %s6431_s23 = sld [smem:[#allocation2 + $0x21f]]  ;;  %v2018_v41 = vadd.f32 %v2017_v13, %v2014_v29  ;;  %v2182_v29 = vstv %s6299_s4 }
 0x52a   :  { %v1982_v18 = vstv %s8145_s0  ;;  %s6436_s5 = sld [smem:[#allocation2 + $0x206]]  ;;  %v2183_v59 = vmul.f32 %v2182_v29, %v8058_v54 }
 0x52b   :  { %8146 = sst [smem:[#allocation21_spill]] %s6422_s3  ;;  %v1983_v27 = vmul.f32 %v1982_v18, %v6108_v14  ;;  %v2131_v18 = vmul.f32 %v2130_v2, %v5542_v12 }
 0x52c   :  { %v1986_v4 = vstv %s8147_s15  ;;  %s6441_s28 = sld [smem:[#allocation2 + $0x208]]  ;;  %v2184_v24 = vadd.f32 %v2183_v59, %v2180_v15 }
 0x52d   :  { %v2020_v8 = vstv %s8148_s10  ;;  %s8151_s26 = sld [smem:[#allocation111_spill]]  ;;  %v1987_v10 = vmul.f32 %v1986_v4, %v6184_v6  ;;  %v2134_v4 = vstv %s6235_s2  ;;  %v1984_v30 = vadd.f32 %v1983_v27, %v1980_v28 }
 0x52e   :  { %8149 = sst [smem:[#allocation134_spill]] %s6426_s7  ;;  %v2021_v37 = vmul.f32 %v2020_v8, %v5638_v63  ;;  %v2132_v17 = vadd.f32 %v2131_v18, %v2128_v40  ;;  %v2135_v33 = vmul.f32 %v2134_v4, %v5620_v43  ;;  %v2228_v28 = vstv %s6354_s27 }
 0x52f   :  { %8150 = sst [smem:[#allocation135_spill]] %s6431_s23  ;;  %v6503_v57 = vadd.f32 %v1987_v10, %v1984_v30  ;;  %v2236_v30 = vstv %s6363_s6 }
 0x530   :  { %s6446_s20 = sld [smem:[#allocation2 + $0x20a]]  ;;  %v2022_v13 = vadd.f32 %v2021_v37, %v2018_v41  ;;  %v2136_v29 = vadd.f32 %v2135_v33, %v2132_v17 }
 0x531   :  { %s6450_s8 = sld [smem:[#allocation2 + $0x20c]] }
 0x532   :  { %s6455_s16 = sld [smem:[#allocation2 + $0x20e]] }
 0x533   :  { %v2024_v3 = vstv %s8151_s26  ;;  %s6460_s21 = sld [smem:[#allocation2 + $0x210]] }
 0x534   :  { %s8152_s22 = sld [smem:[#allocation104_spill]]  ;;  %v2025_v44 = vmul.f32 %v2024_v3, %v8056_v11 }
 0x535   :  { %s8153_s0 = sld [smem:[#allocation107_spill]] }
 0x536   :  { %s6464_s9 = sld [smem:[#allocation2 + $0x212]]  ;;  %v2026_v41 = vadd.f32 %v2025_v44, %v2022_v13 }
 0x537   :  { %s8154_s15 = sld [smem:[#allocation113_spill]] }
 0x538   :  { %s6470_s10 = sld [smem:[#allocation2 + $0x214]]  ;;  %v2030_v31 = vadd.f32 %v2029_v9, %v2026_v41  ;;  %v2194_v41 = vstv %s6313_s18 }
 0x539   :  { %s8155_s26 = sld [smem:[#allocation130_spill]] }
 0x53a   :  { %s6475_s30 = sld [smem:[#allocation2 + $0x216]]  ;;  %v2032_v8 = vstv %s8152_s22 }
 0x53b   :  { %v2036_v21 = vstv %s8153_s0  ;;  %s8157_s23 = sld [smem:[#allocation14_spill]]  ;;  %v2033_v27 = vmul.f32 %v2032_v8, %v6005_v36  ;;  %v2229_v8 = vmul.f32 %v2228_v28, %v5376_v22 }
 0x53c   :  { %s6480_s7 = sld [smem:[#allocation2 + $0x218]]  ;;  %v6493_v37 = vmul.f32 %v2036_v21, %v6028_v26 }
 0x53d   :  { %s8159_s3 = sld [smem:[#allocation102_spill]]  ;;  %v2076_v47 = vstv %s8154_s15  ;;  %v2034_v28 = vadd.f32 %v2033_v27, %v2030_v31 }
 0x53e   :  { %s6484_s12 = sld [smem:[#allocation2 + $0x21a]]  ;;  %v2077_v48 = vmul.f32 %v2076_v47, %v8077_v35 }
 0x53f   :  { %s8161_s2 = sld [smem:[#allocation110_spill]]  ;;  %v2186_v49 = vstv %s8155_s26 }
 0x540   :  { %8156 = sst [smem:[#allocation22_spill]] %s6475_s30  ;;  %v2187_v40 = vmul.f32 %v2186_v49, %v8064_v1  ;;  %v2078_v21 = vadd.f32 %v2077_v48, %v2074_v5  ;;  %v2231_v5 = vadd.f32 %v2230_v56, %v2229_v8  ;;  %v2237_v48 = vmul.f32 %v2236_v30, %v5405_v60 }
 0x541   :  { %s6489_s4 = sld [smem:[#allocation2 + $0x21c]]  ;;  %v2138_v2 = vstv %s8157_s23 }
 0x542   :  { %8158 = sst [smem:[#allocation142_spill]] %s6480_s7  ;;  %v2139_v13 = vmul.f32 %v2138_v2, %v5638_v63  ;;  %v2188_v59 = vadd.f32 %v2187_v40, %v2184_v24  ;;  %v2240_v40 = vstv %s6370_s13  ;;  %v2238_v56 = vadd.f32 %v2237_v48, %v2231_v5 }
 0x543   :  { %s8163_s22 = sld [smem:[#allocation103_spill]]  ;;  %v2040_v3 = vstv %s8159_s3  ;;  %v2241_v30 = vmul.f32 %v2240_v40, %v5426_v62 }
 0x544   :  { %8160 = sst [smem:[#allocation136_spill]] %s6484_s12  ;;  %v6515_v10 = vmul.f32 %v2040_v3, %v6054_v58  ;;  %v2140_v33 = vadd.f32 %v2139_v13, %v2136_v29 }
 0x545   :  { %s8164_s0 = sld [smem:[#allocation129_spill]]  ;;  %v2080_v42 = vstv %s8161_s2 }
 0x546   :  { %s6496_s15 = sld [smem:[#allocation2 + $0x21e]]  ;;  %v2081_v50 = vmul.f32 %v2080_v42, %v8085_v46 }
 0x547   :  { %8162 = sst [smem:[#allocation128_spill]] %s6489_s4 }
 0x548   :  { %s8166_s12 = sld [smem:[#allocation114_spill]]  ;;  %v2082_v42 = vadd.f32 %v2081_v50, %v2078_v21 }
 0x549   :  { %s6501_s26 = sld [smem:[#allocation2 + $0x2b7]]  ;;  %v2044_v18 = vstv %s8163_s22 }
 0x54a   :  { %s6507_s4 = sld [smem:[#allocation2 + $0x220]]  ;;  %v6527_v47 = vmul.f32 %v2044_v18, %v6080_v51 }
 0x54b   :  { %s8167_s23 = sld [smem:[#allocation116_spill]]  ;;  %v2190_v44 = vstv %s8164_s0 }
 0x54c   :  { %8165 = sst [smem:[#allocation13_spill]] %s6496_s15  ;;  %v2191_v9 = vmul.f32 %v2190_v44, %v8070_v23  ;;  %v2195_v44 = vmul.f32 %v2194_v41, %v8077_v35 }
 0x54d   :  { %s6512_s3 = sld [smem:[#allocation2 + $0x221]] }
 0x54e   :  { %s8169_s27 = sld [smem:[#allocation112_spill]]  ;;  %v2142_v4 = vstv %s8166_s12  ;;  %v2192_v13 = vadd.f32 %v2191_v9, %v2188_v59 }
 0x54f   :  { %s6519_s2 = sld [smem:[#allocation2 + $0x222]]  ;;  %v2143_v49 = vmul.f32 %v2142_v4, %v8056_v11 }
 0x550   :  { %s8170_s15 = sld [smem:[#allocation119_spill]] }
 0x551   :  { %s8171_s22 = sld [smem:[#allocation121_spill]]  ;;  %v2084_v15 = vstv %s8167_s23  ;;  %v2144_v27 = vadd.f32 %v2143_v49, %v2140_v33  ;;  %v2196_v33 = vadd.f32 %v2195_v44, %v2192_v13 }
 0x552   :  { %s6524_s0 = sld [smem:[#allocation2 + $0x224]]  ;;  %v2085_v24 = vmul.f32 %v2084_v15, %v6000_v53  ;;  %v2038_v15 = vadd.f32 %v6493_v37, %v2034_v28 }
 0x553   :  { %8168 = sst [smem:[#allocation18_spill]] %s6512_s3 }
 0x554   :  { %s6531_s12 = sld [smem:[#allocation2 + $0x226]]  ;;  %v2048_v17 = vstv %s8169_s27  ;;  %v2086_v59 = vadd.f32 %v2085_v24, %v2082_v42  ;;  %v2242_v24 = vadd.f32 %v2241_v30, %v2238_v56 }
 0x555   :  { %s8172_s7 = sld [smem:[#allocation115_spill]]  ;;  %v6548_v18 = vmul.f32 %v2048_v17, %v6122_v19 }
 0x556   :  { %s6536_s17 = sld [smem:[#allocation2 + $0x228]]  ;;  %v2052_v2 = vstv %s8170_s15 }
 0x557   :  { %v2146_v3 = vstv %s8171_s22  ;;  %s8174_s6 = sld [smem:[#allocation131_spill]]  ;;  %v6555_v4 = vmul.f32 %v2052_v2, %v6250_v34  ;;  %v2292_v2 = vstv %s6436_s5 }
 0x558   :  { %s6541_s23 = sld [smem:[#allocation2 + $0x22a]]  ;;  %v2147_v31 = vmul.f32 %v2146_v3, %v5957_v20 }
 0x559   :  { %s8176_s30 = sld [smem:[#allocation120_spill]] }
 0x55a   :  { %s8177_s3 = sld [smem:[#allocation122_spill]]  ;;  %v2148_v5 = vadd.f32 %v2147_v31, %v2144_v27  ;;  %v2293_v27 = vmul.f32 %v2292_v2, %v5412_v52  ;;  %v2042_v31 = vadd.f32 %v6515_v10, %v2038_v15 }
 0x55b   :  { %s6545_s27 = sld [smem:[#allocation2 + $0x22c]]  ;;  %v2088_v29 = vstv %s8172_s7 }
 0x55c   :  { %8173 = sst [smem:[#allocation143_spill]] %s6536_s17  ;;  %v2089_v9 = vmul.f32 %v2088_v29, %v6015_v39 }
 0x55d   :  { %s8179_s18 = sld [smem:[#allocation16_spill]]  ;;  %v2198_v8 = vstv %s8174_s6 }
 0x55e   :  { %8175 = sst [smem:[#allocation17_spill]] %s6541_s23  ;;  %v2199_v49 = vmul.f32 %v2198_v8, %v8085_v46  ;;  %v2090_v29 = vadd.f32 %v2089_v9, %v2086_v59 }
 0x55f   :  { %s6552_s15 = sld [smem:[#allocation2 + $0x22e]]  ;;  %v2092_v21 = vstv %s8176_s30 }
 0x560   :  { %s8181_s22 = sld [smem:[#allocation140_spill]]  ;;  %v2150_v50 = vstv %s8177_s3  ;;  %v2093_v3 = vmul.f32 %v2092_v21, %v6037_v7  ;;  %v2200_v8 = vadd.f32 %v2199_v49, %v2196_v33  ;;  %v2252_v33 = vstv %s6386_s11 }
 0x561   :  { %8178 = sst [smem:[#allocation137_spill]] %s6545_s27  ;;  %v2151_v37 = vmul.f32 %v2150_v50, %v6005_v36  ;;  %v2296_v50 = vstv %s6441_s28 }
 0x562   :  { %s6559_s13 = sld [smem:[#allocation2 + $0x230]]  ;;  %v2094_v15 = vadd.f32 %v2093_v3, %v2090_v29 }
 0x563   :  { %s8182_s7 = sld [smem:[#allocation125_spill]]  ;;  %v2244_v17 = vstv %s8179_s18  ;;  %v2152_v30 = vadd.f32 %v2151_v37, %v2148_v5  ;;  %v2297_v5 = vmul.f32 %v2296_v50, %v5447_v25  ;;  %v2046_v37 = vadd.f32 %v6527_v47, %v2042_v31 }
 0x564   :  { %s6564_s27 = sld [smem:[#allocation2 + $0x232]]  ;;  %v2245_v40 = vmul.f32 %v2244_v17, %v5463_v16 }
 0x565   :  { %8180 = sst [smem:[#allocation145_spill]] %s6552_s15 }
 0x566   :  { %s8183_s15 = sld [smem:[#allocation108_spill]]  ;;  %v2233_v41 = vstv %s8181_s22  ;;  %v2246_v2 = vadd.f32 %v2245_v40, %v2242_v24 }
 0x567   :  { %s8184_s23 = sld [smem:[#allocation123_spill]]  ;;  %v2234_v13 = vmul.f32 %v2233_v41, %v5400_v38 }
 0x568   :  { %s6569_s17 = sld [smem:[#allocation2 + $0x234]] }
 0x569   :  { %s8186_s30 = sld [smem:[#allocation133_spill]]  ;;  %v2202_v48 = vstv %s8182_s7  ;;  %v2294_v49 = vadd.f32 %v2293_v27, %v2234_v13  ;;  %v2253_v27 = vmul.f32 %v2252_v33, %v5620_v43 }
 0x56a   :  { %s6574_s3 = sld [smem:[#allocation2 + $0x236]]  ;;  %v2203_v21 = vmul.f32 %v2202_v48, %v6000_v53 }
 0x56b   :  { %s6579_s6 = sld [smem:[#allocation2 + $0x238]] }
 0x56c   :  { %v2096_v28 = vstv %s8183_s15  ;;  %s8189_s18 = sld [smem:[#allocation11_spill]]  ;;  %v2204_v48 = vadd.f32 %v2203_v21, %v2200_v8  ;;  %v2256_v8 = vstv %s6392_s24  ;;  %v2298_v21 = vadd.f32 %v2297_v5, %v2294_v49 }
 0x56d   :  { %v2154_v42 = vstv %s8184_s23  ;;  %s8191_s5 = sld [smem:[#allocation117_spill]]  ;;  %v2097_v56 = vmul.f32 %v2096_v28, %v6063_v0  ;;  %v2346_v49 = vstv %s6507_s4 }
 0x56e   :  { %8185 = sst [smem:[#allocation37_spill]] %s6569_s17  ;;  %v2155_v59 = vmul.f32 %v2154_v42, %v6028_v26  ;;  %v2300_v42 = vstv %s6446_s20 }
 0x56f   :  { %s6584_s17 = sld [smem:[#allocation2 + $0x23a]]  ;;  %v2248_v44 = vstv %s8186_s30  ;;  %v2098_v31 = vadd.f32 %v2097_v56, %v2094_v15  ;;  %v2301_v50 = vmul.f32 %v2300_v42, %v8058_v54 }
 0x570   :  { %8187 = sst [smem:[#allocation15_spill]] %s6574_s3  ;;  %v2249_v10 = vmul.f32 %v2248_v44, %v5542_v12  ;;  %v2156_v40 = vadd.f32 %v2155_v59, %v2152_v30  ;;  %v2050_v30 = vadd.f32 %v6548_v18, %v2046_v37  ;;  %v2257_v18 = vmul.f32 %v2256_v8, %v5638_v63 }
 0x571   :  { %8188 = sst [smem:[#allocation20_spill]] %s6579_s6  ;;  %v2260_v37 = vstv %s6397_s14  ;;  %v2348_v8 = vstv %s6501_s26 }
 0x572   :  { %s8192_s22 = sld [smem:[#allocation12_spill]]  ;;  %v2206_v9 = vstv %s8189_s18  ;;  %v2250_v47 = vadd.f32 %v2249_v10, %v2246_v2 }
 0x573   :  { %s6589_s3 = sld [smem:[#allocation2 + $0x23c]]  ;;  %v2100_v17 = vstv %s8191_s5  ;;  %v2207_v28 = vmul.f32 %v2206_v9, %v6015_v39 }
 0x574   :  { %s6594_s23 = sld [smem:[#allocation2 + $0x223]]  ;;  %v2101_v24 = vmul.f32 %v2100_v17, %v6108_v14  ;;  %v2304_v17 = vstv %s6450_s8  ;;  %v2254_v33 = vadd.f32 %v2253_v27, %v2250_v47  ;;  %v2347_v47 = vmul.f32 %v2346_v49, %v5376_v22 }
 0x575   :  { %8190 = sst [smem:[#allocation30_spill]] %s6584_s17  ;;  %v2208_v59 = vadd.f32 %v2207_v28, %v2204_v48  ;;  %v2302_v48 = vadd.f32 %v2301_v50, %v2298_v21  ;;  %v2305_v28 = vmul.f32 %v2304_v17, %v8064_v1  ;;  %v2354_v21 = vstv %s6519_s2 }
 0x576   :  { %s6599_s15 = sld [smem:[#allocation2 + $0x225]]  ;;  %v2102_v5 = vadd.f32 %v2101_v24, %v2098_v31  ;;  %v2258_v27 = vadd.f32 %v2257_v18, %v2254_v33  ;;  %v2261_v31 = vmul.f32 %v2260_v37, %v8056_v11  ;;  %v2054_v50 = vadd.f32 %v6555_v4, %v2050_v30 }
 0x577   :  { %s8194_s7 = sld [smem:[#allocation126_spill]]  ;;  %v2349_v49 = vadd.f32 %v2348_v8, %v2347_v47  ;;  %v2355_v4 = vmul.f32 %v2354_v21, %v5405_v60  ;;  %v2276_v8 = vstv %s6417_s1 }
 0x578   :  { %v2158_v41 = vstv %s8192_s22  ;;  %s6604_s30 = sld [smem:[#allocation2 + $0x227]]  ;;  %v2262_v37 = vadd.f32 %v2261_v31, %v2258_v27  ;;  %v2362_v31 = vstv %s6531_s12 }
 0x579   :  { %8193 = sst [smem:[#allocation28_spill]] %s6589_s3  ;;  %v2159_v3 = vmul.f32 %v2158_v41, %v6054_v58 }
 0x57a   :  { %s8195_s28 = sld [smem:[#allocation118_spill]] }
 0x57b   :  { %s8196_s3 = sld [smem:[#allocation139_spill]]  ;;  %v2160_v41 = vadd.f32 %v2159_v3, %v2156_v40 }
 0x57c   :  { %s6608_s17 = sld [smem:[#allocation2 + $0x229]] }
 0x57d   :  { %s6613_s18 = sld [smem:[#allocation2 + $0x22b]]  ;;  %v2210_v29 = vstv %s8194_s7 }
 0x57e   :  { %s6618_s11 = sld [smem:[#allocation2 + $0x22d]]  ;;  %v2211_v9 = vmul.f32 %v2210_v29, %v6037_v7  ;;  %v2308_v29 = vstv %s6455_s16 }
 0x57f   :  { %s8197_s5 = sld [smem:[#allocation138_spill]]  ;;  %v2309_v17 = vmul.f32 %v2308_v29, %v8070_v23 }
 0x580   :  { %v2104_v13 = vstv %s8195_s28  ;;  %s8198_s22 = sld [smem:[#allocation127_spill]]  ;;  %v2212_v40 = vadd.f32 %v2211_v9, %v2208_v59  ;;  %v2264_v59 = vstv %s6402_s19  ;;  %v2306_v9 = vadd.f32 %v2305_v28, %v2302_v48 }
 0x581   :  { %v2162_v44 = vstv %s8196_s3  ;;  %s6623_s6 = sld [smem:[#allocation2 + $0x22f]]  ;;  %v2105_v15 = vmul.f32 %v2104_v13, %v6184_v6  ;;  %v6683_v48 = vadd.f32 %v6372_v55, %v6367_v45  ;;  %v2268_v28 = vstv %s6407_s29 }
 0x582   :  { %s6627_s20 = sld [smem:[#allocation2 + $0x231]]  ;;  %v2163_v2 = vmul.f32 %v2162_v44, %v6080_v51  ;;  %v2272_v55 = vstv %s6412_s25  ;;  %v2269_v27 = vmul.f32 %v2268_v28, %v6005_v36 }
 0x583   :  { %s6632_s3 = sld [smem:[#allocation2 + $0x233]]  ;;  %8205 = vst [vmem:[#allocation150_spill] sm:$0xff] %v6683_v48 }
 0x584   :  { %s6637_s24 = sld [smem:[#allocation2 + $0x235]]  ;;  %v2164_v13 = vadd.f32 %v2163_v2, %v2160_v41  ;;  %v2106_v41 = vadd.f32 %v2105_v15, %v2102_v5  ;;  %v2265_v15 = vmul.f32 %v2264_v59, %v5957_v20  ;;  %v2358_v5 = vstv %s6524_s0 }
 0x585   :  { %v2166_v56 = vstv %s8197_s5  ;;  %s8200_s7 = sld [smem:[#allocation124_spill]]  ;;  %v2359_v47 = vmul.f32 %v2358_v5, %v5426_v62  ;;  %v2320_v59 = vstv %s6470_s10 }
 0x586   :  { %v2214_v10 = vstv %s8198_s22  ;;  %s8201_s28 = sld [smem:[#allocation141_spill]]  ;;  %v2167_v42 = vmul.f32 %v2166_v56, %v6122_v19  ;;  %v6697_v45 = vadd.f32 %v2106_v41, %v2054_v50 }
 0x587   :  { %s6646_s8 = sld [smem:[#allocation2 + $0x239]]  ;;  %v2215_v3 = vmul.f32 %v2214_v10, %v6063_v0  ;;  %v2312_v10 = vstv %s6460_s21 }
 0x588   :  { %8199 = sst [smem:[#allocation144_spill]] %s6627_s20  ;;  %v2168_v30 = vadd.f32 %v2167_v42, %v2164_v13  ;;  %v6691_v42 = vadd.f32 %v6503_v57, %v6466_v61  ;;  %8206 = vst [vmem:[#allocation146_spill] sm:$0xff] %v6697_v45  ;;  %v2266_v57 = vadd.f32 %v2265_v15, %v2262_v37 }
 0x589   :  { %s6642_s20 = sld [smem:[#allocation2 + $0x237]]  ;;  %v2216_v2 = vadd.f32 %v2215_v3, %v2212_v40  ;;  %v2310_v40 = vadd.f32 %v2309_v17, %v2306_v9  ;;  %v2313_v3 = vmul.f32 %v2312_v10, %v8077_v35  ;;  %v2273_v17 = vmul.f32 %v2272_v55, %v6028_v26 }
 0x58a   :  { %s6651_s5 = sld [smem:[#allocation2 + $0x23b]]  ;;  %vm2944_vm9 = vcmp.gt.f32.partialorder %v6691_v42, 0.0 }
 0x58b   :  { %v2170_v44 = vstv %s8200_s7  ;;  %s6656_s14 = sld [smem:[#allocation2 + $0x2b8]]  ;;  %v2314_v21 = vadd.f32 %v2313_v3, %v2310_v40 }
 0x58c   :  { %v2218_v24 = vstv %s8201_s28  ;;  %s8204_s4 = sld [smem:[#allocation132_spill]]  ;;  %v2171_v33 = vmul.f32 %v2170_v44, %v6250_v34  ;;  %v2316_v44 = vstv %s6464_s9 }
 0x58d   :  { %8202 = sst [smem:[#allocation25_spill]] %s6646_s8  ;;  %v2219_v56 = vmul.f32 %v2218_v24, %v6108_v14  ;;  %v2356_v24 = vadd.f32 %v2355_v4, %v2349_v49  ;;  %v2317_v50 = vmul.f32 %v2316_v44, %v8085_v46  ;;  %v2270_v49 = vadd.f32 %v2269_v27, %v2266_v57 }
 0x58e   :  { %s6661_s22 = sld [smem:[#allocation2 + $0x23d]]  ;;  %v2172_v61 = vadd.f32 %v2171_v33, %v2168_v30  ;;  %v2363_v33 = vmul.f32 %v2362_v31, %v5463_v16  ;;  %v2277_v4 = vmul.f32 %v2276_v8, %v6054_v58  ;;  %v2321_v30 = vmul.f32 %v2320_v59, %v6000_v53 }
 0x58f   :  { %s6666_s16 = sld [smem:[#allocation2 + $0x23e]]  ;;  %v2220_v29 = vadd.f32 %v2219_v56, %v2216_v2  ;;  %v2410_v2 = vstv %s6594_s23  ;;  %v2360_v10 = vadd.f32 %v2359_v47, %v2356_v24  ;;  %v2318_v15 = vadd.f32 %v2317_v50, %v2314_v21 }
 0x590   :  { %8203 = sst [smem:[#allocation26_spill]] %s6651_s5  ;;  %v2411_v40 = vmul.f32 %v2410_v2, %v5412_v52  ;;  %v2274_v27 = vadd.f32 %v2273_v17, %v2270_v49 }
 0x591   :  { %s6670_s7 = sld [smem:[#allocation2 + $0x23f]]  ;;  %v2364_v55 = vadd.f32 %v2363_v33, %v2360_v10  ;;  %v2466_v47 = vstv %s6656_s14  ;;  %v2322_v50 = vadd.f32 %v2321_v30, %v2318_v15  ;;  %v2418_v10 = vstv %s6604_s30 }
 0x592   :  { %v2222_v18 = vstv %s8204_s4  ;;  %s6675_s19 = sld [smem:[#allocation2 + $0x241]]  ;;  %v2278_v15 = vadd.f32 %v2277_v4, %v2274_v27 }
 0x593   :  { %s6679_s26 = sld [smem:[#allocation2 + $0x243]]  ;;  %v2223_v13 = vmul.f32 %v2222_v18, %v6184_v6 }
 0x594   :  { %s6687_s21 = sld [smem:[#allocation2 + $0x245]]  ;;  %v2464_v18 = vstv %s6661_s22 }
 0x595   :  { %s6695_s2 = sld [smem:[#allocation2 + $0x247]]  ;;  %v2224_v9 = vadd.f32 %v2223_v13, %v2220_v29  ;;  %v2414_v13 = vstv %s6599_s15  ;;  %v2465_v44 = vmul.f32 %v2464_v18, %v5376_v22  ;;  %v2469_v4 = vstv %s6666_s16 }
 0x596   :  { %s8207_s29 = sld [smem:[#allocation18_spill]]  ;;  %v2415_v2 = vmul.f32 %v2414_v13, %v5447_v25  ;;  %v2419_v13 = vmul.f32 %v2418_v10, %v8058_v54  ;;  %v2426_v10 = vstv %s6613_s18 }
 0x597   :  { %s6701_s0 = sld [smem:[#allocation2 + $0x249]]  ;;  %v2472_v57 = vstv %s6670_s7  ;;  %v2467_v17 = vadd.f32 %v2466_v47, %v2465_v44  ;;  %v2422_v44 = vstv %s6608_s17 }
 0x598   :  { %s8208_s28 = sld [smem:[#allocation21_spill]]  ;;  %v2473_v33 = vmul.f32 %v2472_v57, %v5405_v60 }
 0x599   :  { %s6705_s9 = sld [smem:[#allocation2 + $0x24b]]  ;;  %v2480_v27 = vstv %s6679_s26 }
 0x59a   :  { %s8209_s25 = sld [smem:[#allocation143_spill]] }
 0x59b   :  { %s6710_s4 = sld [smem:[#allocation2 + $0x24d]] }
 0x59c   :  { %s8210_s5 = sld [smem:[#allocation22_spill]]  ;;  %v2351_v41 = vstv %s8207_s29 }
 0x59d   :  { %s6715_s8 = sld [smem:[#allocation2 + $0x24f]]  ;;  %v2352_v28 = vmul.f32 %v2351_v41, %v5400_v38 }
 0x59e   :  { %v2280_v56 = vstv %s8208_s28  ;;  %s8211_s12 = sld [smem:[#allocation134_spill]] }
 0x59f   :  { %s6720_s1 = sld [smem:[#allocation2 + $0x251]]  ;;  %v2281_v3 = vmul.f32 %v2280_v56, %v6080_v51  ;;  %v2412_v41 = vadd.f32 %v2411_v40, %v2352_v28  ;;  %v6752_v56 = vadd.f32 %v2224_v9, %v2172_v61 }
 0x5a0   :  { %v2366_v37 = vstv %s8209_s25  ;;  %s6725_s10 = sld [smem:[#allocation2 + $0x253]] }
 0x5a1   :  { %s8212_s23 = sld [smem:[#allocation135_spill]]  ;;  %v2367_v24 = vmul.f32 %v2366_v37, %v5542_v12  ;;  %8218 = vst [vmem:[#allocation147_spill] sm:$0xff] %v6752_v56  ;;  %v2476_v37 = vstv %s6675_s19 }
 0x5a2   :  { %v2324_v5 = vstv %s8210_s5  ;;  %s8213_s29 = sld [smem:[#allocation17_spill]] }
 0x5a3   :  { %s6730_s22 = sld [smem:[#allocation2 + $0x255]]  ;;  %v2325_v8 = vmul.f32 %v2324_v5, %v6015_v39  ;;  %v2368_v49 = vadd.f32 %v2367_v24, %v2364_v55  ;;  %v2474_v55 = vadd.f32 %v2473_v33, %v2467_v17  ;;  %v2477_v24 = vmul.f32 %v2476_v37, %v5426_v62 }
 0x5a4   :  { %s8214_s28 = sld [smem:[#allocation142_spill]]  ;;  %v2284_v29 = vstv %s8211_s12  ;;  %v2470_v17 = vmul.f32 %v2469_v4, %v5400_v38  ;;  %v2382_v4 = vstv %s6559_s13 }
 0x5a5   :  { %s6736_s25 = sld [smem:[#allocation2 + $0x257]]  ;;  %v2285_v18 = vmul.f32 %v2284_v29, %v6122_v19  ;;  %v2326_v28 = vadd.f32 %v2325_v8, %v2322_v50  ;;  %v2416_v29 = vadd.f32 %v2415_v2, %v2412_v41  ;;  %v2282_v8 = vadd.f32 %v2281_v3, %v2278_v15 }
 0x5a6   :  { %s6741_s5 = sld [smem:[#allocation2 + $0x240]]  ;;  %v2423_v2 = vmul.f32 %v2422_v44, %v8064_v1  ;;  %v2478_v33 = vadd.f32 %v2477_v24, %v2474_v55  ;;  %v2481_v3 = vmul.f32 %v2480_v27, %v5463_v16  ;;  %v2427_v24 = vmul.f32 %v2426_v10, %v8070_v23 }
 0x5a7   :  { %v2288_v31 = vstv %s8212_s23  ;;  %s6746_s12 = sld [smem:[#allocation2 + $0x259]]  ;;  %v2420_v41 = vadd.f32 %v2419_v13, %v2416_v29  ;;  %v2286_v29 = vadd.f32 %v2285_v18, %v2282_v8  ;;  %v2386_v10 = vstv %s6564_s27 }
 0x5a8   :  { %v2370_v21 = vstv %s8213_s29  ;;  %s8217_s15 = sld [smem:[#allocation137_spill]]  ;;  %v2289_v61 = vmul.f32 %v2288_v31, %v6250_v34 }
 0x5a9   :  { %s8219_s14 = sld [smem:[#allocation136_spill]]  ;;  %v2371_v30 = vmul.f32 %v2370_v21, %v5620_v43  ;;  %v2424_v55 = vadd.f32 %v2423_v2, %v2420_v41 }
 0x5aa   :  { %v2328_v59 = vstv %s8214_s28  ;;  %s6756_s7 = sld [smem:[#allocation2 + $0x244]]  ;;  %v2290_v41 = vadd.f32 %v2289_v61, %v2286_v29  ;;  %v2492_v61 = vstv %s6701_s0  ;;  %v2387_v29 = vmul.f32 %v2386_v10, %v6005_v36 }
 0x5ab   :  { %8215 = sst [smem:[#allocation19_spill]] %s6736_s25  ;;  %v2329_v9 = vmul.f32 %v2328_v59, %v6037_v7  ;;  %v2372_v47 = vadd.f32 %v2371_v30, %v2368_v49  ;;  %v2484_v49 = vstv %s6687_s21 }
 0x5ac   :  { %s6750_s25 = sld [smem:[#allocation2 + $0x242]]  ;;  %v2528_v31 = vstv %s6741_s5 }
 0x5ad   :  { %8216 = sst [smem:[#allocation40_spill]] %s6746_s12  ;;  %v2529_v30 = vmul.f32 %v2528_v31, %v5412_v52  ;;  %v2330_v37 = vadd.f32 %v2329_v9, %v2326_v28  ;;  %v2430_v9 = vstv %s6618_s11  ;;  %v2485_v28 = vmul.f32 %v2484_v49, %v5542_v12 }
 0x5ae   :  { %s6761_s23 = sld [smem:[#allocation2 + $0x246]]  ;;  %v2374_v5 = vstv %s8217_s15 }
 0x5af   :  { %s6766_s30 = sld [smem:[#allocation2 + $0x248]]  ;;  %v2332_v40 = vstv %s8219_s14  ;;  %v2375_v57 = vmul.f32 %v2374_v5, %v5638_v63  ;;  %v2530_v18 = vadd.f32 %v2529_v30, %v2470_v17  ;;  %v2428_v17 = vadd.f32 %v2427_v24, %v2424_v55 }
 0x5b0   :  { %s8220_s29 = sld [smem:[#allocation128_spill]]  ;;  %v2333_v21 = vmul.f32 %v2332_v40, %v6063_v0 }
 0x5b1   :  { %s8221_s28 = sld [smem:[#allocation145_spill]]  ;;  %v2376_v15 = vadd.f32 %v2375_v57, %v2372_v47  ;;  %v2482_v47 = vadd.f32 %v2481_v3, %v2478_v33  ;;  %v2488_v57 = vstv %s6695_s2  ;;  %v2431_v3 = vmul.f32 %v2430_v9, %v8077_v35 }
 0x5b2   :  { %s6770_s19 = sld [smem:[#allocation2 + $0x24a]]  ;;  %v2532_v40 = vstv %s6750_s25  ;;  %v2334_v31 = vadd.f32 %v2333_v21, %v2330_v37  ;;  %v2434_v21 = vstv %s6623_s6  ;;  %v2489_v49 = vmul.f32 %v2488_v57, %v5620_v43 }
 0x5b3   :  { %s6775_s12 = sld [smem:[#allocation2 + $0x24c]]  ;;  %v2533_v27 = vmul.f32 %v2532_v40, %v5447_v25  ;;  %v2486_v30 = vadd.f32 %v2485_v28, %v2482_v47  ;;  %v2435_v9 = vmul.f32 %v2434_v21, %v8085_v46  ;;  %v2432_v28 = vadd.f32 %v2431_v3, %v2428_v17 }
 0x5b4   :  { %s6780_s15 = sld [smem:[#allocation2 + $0x24e]]  ;;  %v2442_v21 = vstv %s6632_s3 }
 0x5b5   :  { %s6785_s17 = sld [smem:[#allocation2 + $0x250]]  ;;  %v2534_v37 = vadd.f32 %v2533_v27, %v2530_v18  ;;  %v2490_v18 = vadd.f32 %v2489_v49, %v2486_v30  ;;  %v2496_v27 = vstv %s6705_s9 }
 0x5b6   :  { %v2336_v50 = vstv %s8220_s29  ;;  %s8222_s16 = sld [smem:[#allocation13_spill]]  ;;  %v2497_v30 = vmul.f32 %v2496_v27, %v8056_v11  ;;  %v2446_v27 = vstv %s6637_s24 }
 0x5b7   :  { %v2378_v59 = vstv %s8221_s28  ;;  %s6790_s26 = sld [smem:[#allocation2 + $0x252]]  ;;  %v2337_v13 = vmul.f32 %v2336_v50, %v6108_v14  ;;  %v2383_v50 = vmul.f32 %v2382_v4, %v5957_v20 }
 0x5b8   :  { %s6795_s5 = sld [smem:[#allocation2 + $0x254]]  ;;  %v2379_v5 = vmul.f32 %v2378_v59, %v8056_v11  ;;  %v2536_v59 = vstv %s6756_s7 }
 0x5b9   :  { %s6799_s18 = sld [smem:[#allocation2 + $0x256]] }
 0x5ba   :  { %s6804_s14 = sld [smem:[#allocation2 + $0x258]]  ;;  %v2380_v8 = vadd.f32 %v2379_v5, %v2376_v15  ;;  %v2537_v15 = vmul.f32 %v2536_v59, %v8058_v54  ;;  %v2338_v5 = vadd.f32 %v2337_v13, %v2334_v31  ;;  %v2493_v13 = vmul.f32 %v2492_v61, %v5638_v63 }
 0x5bb   :  { %s8223_s21 = sld [smem:[#allocation37_spill]] }
 0x5bc   :  { %v2340_v44 = vstv %s8222_s16  ;;  %s6809_s29 = sld [smem:[#allocation2 + $0x25a]]  ;;  %v2384_v40 = vadd.f32 %v2383_v50, %v2380_v8  ;;  %v2538_v31 = vadd.f32 %v2537_v15, %v2534_v37  ;;  %v2494_v15 = vadd.f32 %v2493_v13, %v2490_v18 }
 0x5bd   :  { %s6813_s25 = sld [smem:[#allocation2 + $0x2b9]]  ;;  %v2341_v2 = vmul.f32 %v2340_v44, %v6184_v6  ;;  %v2540_v44 = vstv %s6761_s23 }
 0x5be   :  { %s6817_s13 = sld [smem:[#allocation2 + $0x25b]]  ;;  %v2541_v8 = vmul.f32 %v2540_v44, %v8064_v1  ;;  %v2388_v59 = vadd.f32 %v2387_v29, %v2384_v40 }
 0x5bf   :  { %s6822_s11 = sld [smem:[#allocation2 + $0x25c]]  ;;  %v2342_v50 = vadd.f32 %v2341_v2, %v2338_v5  ;;  %v2436_v2 = vadd.f32 %v2435_v9, %v2432_v28  ;;  %v2500_v5 = vstv %s6710_s4  ;;  %v2548_v9 = vstv %s6770_s19 }
 0x5c0   :  { %s8224_s2 = sld [smem:[#allocation15_spill]]  ;;  %v2542_v40 = vadd.f32 %v2541_v8, %v2538_v31  ;;  %v2504_v8 = vstv %s6715_s8 }
 0x5c1   :  { %v2390_v33 = vstv %s8223_s21  ;;  %s8225_s28 = sld [smem:[#allocation20_spill]]  ;;  %v6871_v44 = vadd.f32 %v2342_v50, %v2290_v41  ;;  %v2501_v41 = vmul.f32 %v2500_v5, %v5957_v20 }
 0x5c2   :  { %s6827_s16 = sld [smem:[#allocation2 + $0x25e]]  ;;  %v2391_v4 = vmul.f32 %v2390_v33, %v6028_v26  ;;  %v2582_v57 = vstv %s6809_s29  ;;  %v2544_v33 = vstv %s6766_s30 }
 0x5c3   :  { %s8226_s7 = sld [smem:[#allocation144_spill]]  ;;  %v2583_v49 = vmul.f32 %v2582_v57, %v5376_v22  ;;  %v2584_v61 = vstv %s6813_s25  ;;  %v2545_v29 = vmul.f32 %v2544_v33, %v8070_v23  ;;  %vm2959_vm13 = vcmp.gt.f32.partialorder %v6871_v44, 0.0 }
 0x5c4   :  { %s6831_s27 = sld [smem:[#allocation2 + $0x260]] }
 0x5c5   :  { %s6835_s6 = sld [smem:[#allocation2 + $0x262]]  ;;  %v2590_v37 = vstv %s6822_s11  ;;  %v2585_v13 = vadd.f32 %v2584_v61, %v2583_v49  ;;  %v2546_v50 = vadd.f32 %v2545_v29, %v2542_v40  ;;  %v2552_v49 = vstv %s6775_s12 }
 0x5c6   :  { %v2394_v55 = vstv %s8224_s2  ;;  %s6841_s0 = sld [smem:[#allocation2 + $0x264]]  ;;  %v2591_v57 = vmul.f32 %v2590_v37, %v5405_v60 }
 0x5c7   :  { %v2398_v24 = vstv %s8225_s28  ;;  %s6846_s21 = sld [smem:[#allocation2 + $0x266]]  ;;  %v2395_v10 = vmul.f32 %v2394_v55, %v6054_v58  ;;  %v2392_v55 = vadd.f32 %v2391_v4, %v2388_v59  ;;  %v2498_v4 = vadd.f32 %v2497_v30, %v2494_v15 }
 0x5c8   :  { %s6850_s23 = sld [smem:[#allocation2 + $0x268]]  ;;  %v2399_v17 = vmul.f32 %v2398_v24, %v6080_v51  ;;  %v2594_v31 = vstv %s6827_s16  ;;  %v2549_v59 = vmul.f32 %v2548_v9, %v8077_v35  ;;  %v2450_v30 = vstv %s6642_s20 }
 0x5c9   :  { %v2438_v47 = vstv %s8226_s7  ;;  %s6854_s2 = sld [smem:[#allocation2 + $0x26a]]  ;;  %v2396_v33 = vadd.f32 %v2395_v10, %v2392_v55  ;;  %v2592_v61 = vadd.f32 %v2591_v57, %v2585_v13  ;;  %v2595_v37 = vmul.f32 %v2594_v31, %v5426_v62 }
 0x5ca   :  { %v2439_v3 = vmul.f32 %v2438_v47, %v6000_v53  ;;  %s8227_s9 = sld [smem:[#allocation30_spill]]  ;;  %v2443_v47 = vmul.f32 %v2442_v21, %v6015_v39  ;;  %v2505_v10 = vmul.f32 %v2504_v8, %v6005_v36  ;;  %v2598_v40 = vstv %s6831_s27 }
 0x5cb   :  { %s6860_s29 = sld [smem:[#allocation2 + $0x26c]]  ;;  %v2502_v29 = vadd.f32 %v2501_v41, %v2498_v4  ;;  %v2508_v55 = vstv %s6720_s1  ;;  %v2553_v9 = vmul.f32 %v2552_v49, %v8085_v46  ;;  %v2451_v13 = vmul.f32 %v2450_v30, %v6063_v0 }
 0x5cc   :  { %s8228_s28 = sld [smem:[#allocation28_spill]]  ;;  %v2440_v18 = vadd.f32 %v2439_v3, %v2436_v2  ;;  %v2447_v2 = vmul.f32 %v2446_v27, %v6037_v7  ;;  %v2935_v57 = vmul.f32 1.442695, %v6365_v32  ;;  %v2596_v27 = vadd.f32 %v2595_v37, %v2592_v61 }
 0x5cd   :  { %s6865_s30 = sld [smem:[#allocation2 + $0x26e]]  ;;  %v2599_v41 = vmul.f32 %v2598_v40, %v5463_v16  ;;  %v2945_v31 = vmul.f32 1.442695, %v6691_v42  ;;  %v2509_v8 = vmul.f32 %v2508_v55, %v6028_v26  ;;  %v2560_v37 = vstv %s6785_s17 }
 0x5ce   :  { %s6869_s3 = sld [smem:[#allocation2 + $0x270]]  ;;  %v2444_v15 = vadd.f32 %v2443_v47, %v2440_v18  ;;  %v2556_v47 = vstv %s6780_s15  ;;  %3903 = vpow2.f32 %v2935_v57  ;;  %v2606_v55 = vstv %s6841_s0 }
 0x5cf   :  { %s6875_s7 = sld [smem:[#allocation2 + $0x272]]  ;;  %v2557_v30 = vmul.f32 %v2556_v47, %v6000_v53  ;;  %3905 = vpow2.f32 %v2945_v31  ;;  %v2561_v47 = vmul.f32 %v2560_v37, %v6015_v39 }
 0x5d0   :  { %v2402_v24 = vstv %s8227_s9  ;;  %s6880_s4 = sld [smem:[#allocation2 + $0x274]]  ;;  %v2448_v4 = vadd.f32 %v2447_v2, %v2444_v15  ;;  %v2940_v2 = vmul.f32 1.442695, %v6683_v48 }
 0x5d1   :  { %s6885_s25 = sld [smem:[#allocation2 + $0x276]]  ;;  %v2403_v3 = vmul.f32 %v2402_v24, %v6122_v19  ;;  %v2550_v24 = vadd.f32 %v2549_v59, %v2546_v50  ;;  %v2602_v50 = vstv %s6835_s6  ;;  %v2506_v59 = vadd.f32 %v2505_v10, %v2502_v29 }
 0x5d2   :  { %v2406_v28 = vstv %s8228_s28  ;;  %s8229_s19 = sld [smem:[#allocation25_spill]]  ;;  %v2603_v10 = vmul.f32 %v2602_v50, %v5542_v12  ;;  %v2452_v40 = vadd.f32 %v2451_v13, %v2448_v4  ;;  %v2516_v29 = vstv %s6730_s22 }
 0x5d3   :  { %s6889_s11 = sld [smem:[#allocation2 + $0x25d]]  ;;  %v2407_v21 = vmul.f32 %v2406_v28, %v6250_v34  ;;  %v2400_v28 = vadd.f32 %v2399_v17, %v2396_v33  ;;  %v2512_v33 = vstv %s6725_s10  ;;  %v2554_v49 = vadd.f32 %v2553_v9, %v2550_v24 }
 0x5d4   :  { %s6894_s24 = sld [smem:[#allocation2 + $0x25f]]  ;;  %v2510_v24 = vadd.f32 %v2509_v8, %v2506_v59  ;;  %3907 = vpow2.f32 %v2940_v2  ;;  %v2950_v13 = vmul.f32 1.442695, %v6697_v45  ;;  %v2607_v4 = vmul.f32 %v2606_v55, %v5620_v43 }
 0x5d5   :  { %s6899_s8 = sld [smem:[#allocation2 + $0x261]]  ;;  %v2404_v61 = vadd.f32 %v2403_v3, %v2400_v28  ;;  %v2513_v3 = vmul.f32 %v2512_v33, %v6054_v58  ;;  %v2558_v28 = vadd.f32 %v2557_v30, %v2554_v49  ;;  %v2610_v59 = vstv %s6846_s21 }
 0x5d6   :  { %s6904_s16 = sld [smem:[#allocation2 + $0x263]]  ;;  %3909 = vpow2.f32 %v2950_v13 }
 0x5d7   :  { %s8230_s12 = sld [smem:[#allocation26_spill]]  ;;  %v6948_v57 = vadd.f32 %v2407_v21, %v2404_v61  ;;  %v2517_v21 = vmul.f32 %v2516_v29, %v6080_v51  ;;  %v2514_v33 = vadd.f32 %v2513_v3, %v2510_v24  ;;  %v2562_v49 = vadd.f32 %v2561_v47, %v2558_v28 }
 0x5d8   :  { %v2454_v5 = vstv %s8229_s19  ;;  %s6908_s20 = sld [smem:[#allocation2 + $0x265]]  ;;  %v2568_v61 = vstv %s6795_s5  ;;  %v2572_v24 = vstv %s6799_s18 }
 0x5d9   :  { %s6912_s9 = sld [smem:[#allocation2 + $0x267]]  ;;  %v2455_v18 = vmul.f32 %v2454_v5, %v6108_v14  ;;  %v2600_v5 = vadd.f32 %v2599_v41, %v2596_v27  ;;  %v2564_v27 = vstv %s6790_s26  ;;  %v2587_v41 = vstv %s6817_s13 }
 0x5da   :  { %s6917_s1 = sld [smem:[#allocation2 + $0x269]]  ;;  %v2565_v30 = vmul.f32 %v2564_v27, %v6037_v7  ;;  %v2650_v3 = vstv %s6894_s24  ;;  %v2569_v55 = vmul.f32 %v2568_v61, %v6063_v0 }
 0x5db   :  { %s6923_s15 = sld [smem:[#allocation2 + $0x26b]]  ;;  %v2604_v31 = vadd.f32 %v2603_v10, %v2600_v5  ;;  %v6959_v8 = vadd.f32 %v2455_v18, %v2452_v40  ;;  %v2588_v18 = vmul.f32 %v2587_v41, %v5400_v38  ;;  %v2611_v40 = vmul.f32 %v2610_v59, %v5638_v63 }
 0x5dc   :  { %s6927_s27 = sld [smem:[#allocation2 + $0x26d]]  ;;  %v2566_v47 = vadd.f32 %v2565_v30, %v2562_v49 }
 0x5dd   :  { %v2458_v17 = vstv %s8230_s12  ;;  %s8231_s28 = sld [smem:[#allocation19_spill]]  ;;  %v2608_v10 = vadd.f32 %v2607_v4, %v2604_v31 }
 0x5de   :  { %s6930_s19 = sld [smem:[#allocation2 + $0x26f]]  ;;  %v6934_v15 = vmul.f32 %v2458_v17, %v6184_v6  ;;  %v2646_v17 = vstv %s6889_s11  ;;  %v2570_v45 = vadd.f32 %v2569_v55, %v2566_v47  ;;  %v2658_v47 = vstv %s6904_s16 }
 0x5df   :  { %s6937_s10 = sld [smem:[#allocation2 + $0x2ba]]  ;;  %v2647_v37 = vmul.f32 %v2646_v17, %v5412_v52  ;;  %v2651_v17 = vmul.f32 %v2650_v3, %v5447_v25  ;;  %v2612_v49 = vadd.f32 %v2611_v40, %v2608_v10  ;;  %v2618_v3 = vstv %s6854_s2 }
 0x5e0   :  { %s6942_s17 = sld [smem:[#allocation2 + $0x277]]  ;;  %v2573_v10 = vmul.f32 %v2572_v24, %v6108_v14  ;;  %v2619_v24 = vmul.f32 %v2618_v3, %v5957_v20 }
 0x5e1   :  { %s6946_s6 = sld [smem:[#allocation2 + $0x271]]  ;;  %v2648_v4 = vadd.f32 %v2647_v37, %v2588_v18  ;;  %v2518_v18 = vadd.f32 %v2517_v21, %v2514_v33 }
 0x5e2   :  { %s6951_s12 = sld [smem:[#allocation2 + $0x279]]  ;;  %v2574_v13 = vadd.f32 %v2573_v10, %v2570_v45  ;;  %v7046_v10 = vmul.f32 1.442695, %v6752_v56  ;;  %v2670_v56 = vstv %s6917_s1 }
 0x5e3   :  { %v2520_v9 = vstv %s8231_s28  ;;  %s6957_s22 = sld [smem:[#allocation2 + $0x27b]] }
 0x5e4   :  { %v2521_v50 = vmul.f32 %v2520_v9, %v6122_v19  ;;  %s6964_s26 = sld [smem:[#allocation2 + $0x27d]]  ;;  %v2614_v9 = vstv %s6850_s23  ;;  %3911 = vpow2.f32 %v7046_v10 }
 0x5e5   :  { %s6968_s13 = sld [smem:[#allocation2 + $0x27f]]  ;;  %v2702_v5 = vstv %s6937_s10  ;;  %v2615_v30 = vmul.f32 %v2614_v9, %v8056_v11 }
 0x5e6   :  { %s6972_s0 = sld [smem:[#allocation2 + $0x273]]  ;;  %v2700_v2 = vstv %s6942_s17 }
 0x5e7   :  { %s6978_s21 = sld [smem:[#allocation2 + $0x275]]  ;;  %v2701_v29 = vmul.f32 %v2700_v2, %v5376_v22  ;;  %v6996_v2 = vpop.eup %3903  ;;  %v2616_v55 = vadd.f32 %v2615_v30, %v2612_v49  ;;  %v7035_v49 = vadd.f32 %v6934_v15, %v6959_v8  ;;  %v2659_v30 = vmul.f32 %v2658_v47, %v8064_v1 }
 0x5e8   :  { %s6984_s5 = sld [smem:[#allocation2 + $0x278]]  ;;  %v2708_v28 = vstv %s6951_s12 }
 0x5e9   :  { %v2703_v27 = vadd.f32 %v2702_v5, %v2701_v29  ;;  %v2709_v41 = vmul.f32 %v2708_v28, %v5405_v60  ;;  %s8232_s11 = sld [smem:[#allocation40_spill]]  ;;  %v2712_v31 = vstv %s6957_s22  ;;  %v2654_v5 = vstv %s6899_s8  ;;  %v7002_v28 = vpop.eup %3905 }
 0x5ea   :  { %s6989_s24 = sld [smem:[#allocation2 + $0x281]]  ;;  %v2713_v59 = vmul.f32 %v2712_v31, %v5426_v62  ;;  %v2716_v61 = vstv %s6964_s26  ;;  %8233 = vst [vmem:[#allocation148_spill] sm:$0xff] %v7002_v28  ;;  %v2655_v48 = vmul.f32 %v2654_v5, %v8058_v54  ;;  %v7017_v21 = vpop.eup %3907  ;;  %v2620_v45 = vadd.f32 %v2619_v24, %v2616_v55 }
 0x5eb   :  { %s6994_s18 = sld [smem:[#allocation2 + $0x283]]  ;;  %v2710_v29 = vadd.f32 %v2709_v41, %v2703_v27  ;;  %v2717_v31 = vmul.f32 %v2716_v61, %v5463_v16  ;;  %v2720_v9 = vstv %s6968_s13  ;;  %v2576_v27 = vstv %s6804_s14  ;;  %8234 = vst [vmem:[#allocation149_spill] sm:$0xff] %v7017_v21 }
 0x5ec   :  { %s7000_s23 = sld [smem:[#allocation2 + $0x285]]  ;;  %v2652_v41 = vadd.f32 %v2651_v17, %v2648_v4  ;;  %v2622_v4 = vstv %s6860_s29  ;;  %v2721_v61 = vmul.f32 %v2720_v9, %v5542_v12  ;;  %v2577_v5 = vmul.f32 %v2576_v27, %v6184_v6 }
 0x5ed   :  { %s7007_s28 = sld [smem:[#allocation2 + $0x287]]  ;;  %v2714_v40 = vadd.f32 %v2713_v59, %v2710_v29  ;;  %v2522_v59 = vadd.f32 %v2521_v50, %v2518_v18  ;;  %v2626_v29 = vstv %s6865_s30  ;;  %v2623_v3 = vmul.f32 %v2622_v4, %v6005_v36 }
 0x5ee   :  { %s7011_s8 = sld [smem:[#allocation2 + $0x289]]  ;;  %v2656_v50 = vadd.f32 %v2655_v48, %v2652_v41  ;;  %v2705_v18 = vstv %s6984_s5  ;;  %v2627_v48 = vmul.f32 %v2626_v29, %v6028_v26  ;;  %v7054_v9 = vadd.f32 %v2577_v5, %v2574_v13 }
 0x5ef   :  { %v2524_v37 = vstv %s8232_s11  ;;  %s7015_s10 = sld [smem:[#allocation2 + $0x28b]]  ;;  %v2718_v17 = vadd.f32 %v2717_v31, %v2714_v40  ;;  %v2662_v31 = vstv %s6908_s20  ;;  %v2630_v27 = vstv %s6869_s3 }
 0x5f0   :  { %v2525_v33 = vmul.f32 %v2524_v37, %v6250_v34  ;;  %s7022_s2 = sld [smem:[#allocation2 + $0x28d]]  ;;  %v2724_v37 = vstv %s6989_s24  ;;  %v2706_v41 = vmul.f32 %v2705_v18, %v5400_v38  ;;  %v2660_v24 = vadd.f32 %v2659_v30, %v2656_v50 }
 0x5f1   :  { %s7026_s14 = sld [smem:[#allocation2 + $0x27a]]  ;;  %v2722_v8 = vadd.f32 %v2721_v61, %v2718_v17  ;;  %v2725_v40 = vmul.f32 %v2724_v37, %v5620_v43  ;;  %v2728_v55 = vstv %s6994_s18  ;;  %v2663_v47 = vmul.f32 %v2662_v31, %v8070_v23 }
 0x5f2   :  { %s7031_s17 = sld [smem:[#allocation2 + $0x27c]]  ;;  %v7048_v15 = vadd.f32 %v2525_v33, %v2522_v59  ;;  %v2634_v33 = vstv %s6875_s7  ;;  %v2624_v4 = vadd.f32 %v2623_v3, %v2620_v45  ;;  %v2666_v17 = vstv %s6912_s9 }
 0x5f3   :  { %s7039_s29 = sld [smem:[#allocation2 + $0x27e]]  ;;  %v2726_v5 = vadd.f32 %v2725_v40, %v2722_v8  ;;  %v2729_v29 = vmul.f32 %v2728_v55, %v5638_v63  ;;  %v2732_v30 = vstv %s7000_s23  ;;  %v2631_v31 = vmul.f32 %v2630_v27, %v6054_v58 }
 0x5f4   :  { %s7043_s30 = sld [smem:[#allocation2 + $0x280]]  ;;  %v2664_v8 = vadd.f32 %v2663_v47, %v2660_v24  ;;  %v2667_v40 = vmul.f32 %v2666_v17, %v8077_v35  ;;  %v2638_v27 = vstv %s6880_s4  ;;  %v2733_v47 = vmul.f32 %v2732_v30, %v8056_v11 }
 0x5f5   :  { %s7052_s16 = sld [smem:[#allocation2 + $0x282]]  ;;  %v2730_v24 = vadd.f32 %v2729_v29, %v2726_v5  ;;  %v2671_v21 = vmul.f32 %v2670_v56, %v8085_v46  ;;  %v2674_v5 = vstv %s6923_s15  ;;  %v2678_v29 = vstv %s6927_s27 }
 0x5f6   :  { %s7059_s20 = sld [smem:[#allocation2 + $0x284]] }
 0x5f7   :  { %s7063_s12 = sld [smem:[#allocation2 + $0x28f]]  ;;  %v2764_v59 = vstv %s7026_s14 }
 0x5f8   :  { %v2765_v61 = vmul.f32 %v2764_v59, %v5412_v52  ;;  %v2768_v13 = vstv %s7031_s17  ;;  %s7069_s3 = sld [smem:[#allocation2 + $0x286]]  ;;  %v7086_v59 = vpop.eup %3909 }
 0x5f9   :  { %s7072_s7 = sld [smem:[#allocation2 + $0x291]]  ;;  %v2769_v37 = vmul.f32 %v2768_v13, %v5447_v25  ;;  %v2772_v50 = vstv %s7039_s29  ;;  %8235 = vst [vmem:[#allocation151_spill] sm:$0xff] %v7086_v59  ;;  %v2635_v13 = vmul.f32 %v2634_v33, %v6080_v51  ;;  %v2736_v59 = vstv %s7007_s28 }
 0x5fa   :  { %s7077_s22 = sld [smem:[#allocation2 + $0x293]]  ;;  %v2766_v18 = vadd.f32 %v2765_v61, %v2706_v41  ;;  %v2773_v45 = vmul.f32 %v2772_v50, %v8058_v54  ;;  %v2776_v3 = vstv %s7043_s30  ;;  %v2628_v50 = vadd.f32 %v2627_v48, %v2624_v4 }
 0x5fb   :  { %v2780_v55 = vstv %s7052_s16  ;;  %s7084_s9 = sld [smem:[#allocation2 + $0x288]]  ;;  %v2777_v61 = vmul.f32 %v2776_v3, %v8064_v1  ;;  %v2668_v3 = vadd.f32 %v2667_v40, %v2664_v8  ;;  %v7113_v4 = vmul.f32 %v2638_v27, %v6122_v19 }
 0x5fc   :  { %v2770_v41 = vadd.f32 %v2769_v37, %v2766_v18  ;;  %s7091_s26 = sld [smem:[#allocation2 + $0x28a]]  ;;  %v2784_v17 = vstv %s7059_s20  ;;  %v2781_v37 = vmul.f32 %v2780_v55, %v8070_v23  ;;  %v2642_v18 = vstv %s6885_s25 }
 0x5fd   :  { %s7096_s13 = sld [smem:[#allocation2 + $0x28c]]  ;;  %v2785_v28 = vmul.f32 %v2784_v17, %v8077_v35  ;;  %v2734_v55 = vadd.f32 %v2733_v47, %v2730_v24  ;;  %v2737_v8 = vmul.f32 %v2736_v59, %v5957_v20  ;;  %v2632_v56 = vadd.f32 %v2631_v31, %v2628_v50 }
 0x5fe   :  { %v2774_v33 = vadd.f32 %v2773_v45, %v2770_v41  ;;  %s7100_s1 = sld [smem:[#allocation2 + $0x2bb]]  ;;  %v2788_v48 = vstv %s7069_s3  ;;  %v2682_v45 = vstv %s6930_s19  ;;  %v7120_v40 = vmul.f32 %v2642_v18, %v6250_v34 }
 0x5ff   :  { %s7105_s4 = sld [smem:[#allocation2 + $0x294]]  ;;  %v2740_v41 = vstv %s7011_s8  ;;  %v2672_v27 = vadd.f32 %v2671_v21, %v2668_v3  ;;  %v2675_v17 = vmul.f32 %v2674_v5, %v6000_v53  ;;  %v2679_v24 = vmul.f32 %v2678_v29, %v6015_v39 }
 0x600   :  { %v2778_v30 = vadd.f32 %v2777_v61, %v2774_v33  ;;  %s7110_s5 = sld [smem:[#allocation2 + $0x28e]]  ;;  %v2789_v59 = vmul.f32 %v2788_v48, %v8085_v46  ;;  %v2683_v31 = vmul.f32 %v2682_v45, %v6037_v7  ;;  %v2686_v47 = vstv %s6946_s6 }
 0x601   :  { %s7117_s25 = sld [smem:[#allocation2 + $0x296]]  ;;  %v2792_v33 = vstv %s7084_s9  ;;  %v2738_v21 = vadd.f32 %v2737_v8, %v2734_v55  ;;  %v2636_v5 = vadd.f32 %v2635_v13, %v2632_v56  ;;  %v2690_v29 = vstv %s6972_s0 }
 0x602   :  { %v2782_v61 = vadd.f32 %v2781_v37, %v2778_v30  ;;  %s7123_s15 = sld [smem:[#allocation2 + $0x298]]  ;;  %v2741_v37 = vmul.f32 %v2740_v41, %v6005_v36  ;;  %v2744_v30 = vstv %s7015_s10  ;;  %v2793_v55 = vmul.f32 %v2792_v33, %v6000_v53 }
 0x603   :  { %s7128_s27 = sld [smem:[#allocation2 + $0x29a]]  ;;  %v2796_v41 = vstv %s7091_s26 }
 0x604   :  { %v2786_v50 = vadd.f32 %v2785_v28, %v2782_v61  ;;  %s7133_s19 = sld [smem:[#allocation2 + $0x29c]]  ;;  %v2820_v3 = vstv %s7100_s1  ;;  %v2676_v28 = vadd.f32 %v2675_v17, %v2672_v27 }
 0x605   :  { %v2818_v18 = vstv %s7105_s4  ;;  %s7138_s11 = sld [smem:[#allocation2 + $0x29e]] }
 0x606   :  { %v2819_v48 = vmul.f32 %v2818_v18, %v5376_v22  ;;  %s7143_s6 = sld [smem:[#allocation2 + $0x2a0]]  ;;  %v2790_v45 = vadd.f32 %v2789_v59, %v2786_v50  ;;  %v2742_v22 = vadd.f32 %v2741_v37, %v2738_v21  ;;  %v2745_v18 = vmul.f32 %v2744_v30, %v6028_v26 }
 0x607   :  { %v2826_v8 = vstv %s7117_s25  ;;  %s7147_s24 = sld [smem:[#allocation2 + $0x2a2]]  ;;  %v2748_v59 = vstv %s7022_s2  ;;  %v2797_v37 = vmul.f32 %v2796_v41, %v6015_v39 }
 0x608   :  { %v2821_v61 = vadd.f32 %v2820_v3, %v2819_v48  ;;  %s7150_s18 = sld [smem:[#allocation2 + $0x295]]  ;;  %v2827_v13 = vmul.f32 %v2826_v8, %v5405_v60  ;;  %v2830_v56 = vstv %s7123_s15  ;;  %v2680_v60 = vadd.f32 %v2679_v24, %v2676_v28 }
 0x609   :  { %v2831_v27 = vmul.f32 %v2830_v56, %v5426_v62  ;;  %v2834_v17 = vstv %s7128_s27  ;;  %s7157_s0 = sld [smem:[#allocation2 + $0x2a4]]  ;;  %v2794_v21 = vadd.f32 %v2793_v55, %v2790_v45  ;;  %v2687_v62 = vmul.f32 %v2686_v47, %v6063_v0 }
 0x60a   :  { %s7160_s23 = sld [smem:[#allocation2 + $0x290]]  ;;  %v2828_v50 = vadd.f32 %v2827_v13, %v2821_v61  ;;  %v2835_v33 = vmul.f32 %v2834_v17, %v5463_v16  ;;  %v2838_v3 = vstv %s7133_s19  ;;  %v2800_v48 = vstv %s7096_s13 }
 0x60b   :  { %v2842_v30 = vstv %s7138_s11  ;;  %s7166_s28 = sld [smem:[#allocation2 + $0x2a6]]  ;;  %v2839_v61 = vmul.f32 %v2838_v3, %v5542_v12  ;;  %v2746_v13 = vadd.f32 %v2745_v18, %v2742_v22  ;;  %v2749_v16 = vmul.f32 %v2748_v59, %v6054_v58 }
 0x60c   :  { %s7170_s8 = sld [smem:[#allocation2 + $0x292]]  ;;  %v2832_v8 = vadd.f32 %v2831_v27, %v2828_v50  ;;  %v2752_v24 = vstv %s7063_s12  ;;  %v2846_v28 = vstv %s7143_s6  ;;  %v2691_v45 = vmul.f32 %v2690_v29, %v6108_v14 }
 0x60d   :  { %s7176_s10 = sld [smem:[#allocation2 + $0x2a8]]  ;;  %v2694_v55 = vstv %s6978_s21  ;;  %v2843_v41 = vmul.f32 %v2842_v30, %v5620_v43  ;;  %v2684_v12 = vadd.f32 %v2683_v31, %v2680_v60  ;;  %v2798_v56 = vadd.f32 %v2797_v37, %v2794_v21 }
 0x60e   :  { %v2836_v47 = vadd.f32 %v2835_v33, %v2832_v8  ;;  %s7181_s2 = sld [smem:[#allocation2 + $0x2aa]]  ;;  %v2801_v22 = vmul.f32 %v2800_v48, %v6037_v7  ;;  %v2850_v18 = vstv %s7147_s24  ;;  %v2753_v27 = vmul.f32 %v2752_v24, %v6080_v51 }
 0x60f   :  { %s7185_s14 = sld [smem:[#allocation2 + $0x297]]  ;;  %v2804_v29 = vstv %s7110_s5  ;;  %v2847_v59 = vmul.f32 %v2846_v28, %v5638_v63  ;;  %v2750_v43 = vadd.f32 %v2749_v16, %v2746_v13  ;;  %v2756_v50 = vstv %s7072_s7 }
 0x610   :  { %v2840_v17 = vadd.f32 %v2839_v61, %v2836_v47  ;;  %s7190_s21 = sld [smem:[#allocation2 + $0x299]]  ;;  %v2823_v33 = vstv %s7150_s18  ;;  %v2854_v31 = vstv %s7157_s0  ;;  %v2640_v3 = vadd.f32 %v7113_v4, %v2636_v5 }
 0x611   :  { %s7195_s17 = sld [smem:[#allocation2 + $0x29b]]  ;;  %v2808_v60 = vstv %s7160_s23  ;;  %v2851_v37 = vmul.f32 %v2850_v18, %v8056_v11  ;;  %v2688_v30 = vadd.f32 %v2687_v62, %v2684_v12  ;;  %v2802_v63 = vadd.f32 %v2801_v22, %v2798_v56 }
 0x612   :  { %v2844_v21 = vadd.f32 %v2843_v41, %v2840_v17  ;;  %s7200_s29 = sld [smem:[#allocation2 + $0x29d]]  ;;  %v2805_v48 = vmul.f32 %v2804_v29, %v6063_v0  ;;  %v2858_v8 = vstv %s7166_s28  ;;  %v2757_v61 = vmul.f32 %v2756_v50, %v6122_v19 }
 0x613   :  { %s7204_s30 = sld [smem:[#allocation2 + $0x29f]]  ;;  %v2824_v4 = vmul.f32 %v2823_v33, %v5400_v38  ;;  %v2855_v13 = vmul.f32 %v2854_v31, %v5957_v20  ;;  %v2754_v11 = vadd.f32 %v2753_v27, %v2750_v43  ;;  %v2760_v62 = vstv %s7077_s22 }
 0x614   :  { %v2848_v5 = vadd.f32 %v2847_v59, %v2844_v21  ;;  %s7209_s16 = sld [smem:[#allocation2 + $0x2a1]]  ;;  %v2809_v16 = vmul.f32 %v2808_v60, %v6108_v14  ;;  %v2859_v47 = vmul.f32 %v2858_v8, %v6005_v36  ;;  %v2806_v41 = vadd.f32 %v2805_v48, %v2802_v63 }
 0x615   :  { %v2882_v24 = vstv %s7185_s14  ;;  %s7214_s20 = sld [smem:[#allocation2 + $0x2a3]]  ;;  %v2862_v12 = vstv %s7176_s10  ;;  %v2692_v17 = vadd.f32 %v2691_v45, %v2688_v30  ;;  %v2695_v59 = vmul.f32 %v2694_v55, %v6184_v6 }
 0x616   :  { %v2852_v28 = vadd.f32 %v2851_v37, %v2848_v5  ;;  %s7217_s12 = sld [smem:[#allocation2 + $0x2ac]]  ;;  %v2883_v38 = vmul.f32 %v2882_v24, %v5412_v52  ;;  %v2886_v20 = vstv %s7190_s21  ;;  %v2812_v43 = vstv %s7170_s8  ;;  %s3985_s8 = smov [#allocation7]  }
 0x617   :  { %v2887_v56 = vmul.f32 %v2886_v20, %v5447_v25  ;;  %v2890_v22 = vstv %s7195_s17  ;;  %s7224_s3 = sld [smem:[#allocation2 + $0x2a5]]  ;;  %v2863_v25 = vmul.f32 %v2862_v12, %v6028_v26  ;;  %v2758_v60 = vadd.f32 %v2757_v61, %v2754_v11  ;;  %s3048_s10 = sshll.u32 %s3985_s8, 4  ;;  %s3049_s10 = int_to_ptr.vmem [resolvable:$true] %s3048_s10 }
 0x618   :  { %v2856_v18 = vadd.f32 %v2855_v13, %v2852_v28  ;;  %v2884_v27 = vadd.f32 %v2883_v38, %v2824_v4  ;;  %v2891_v29 = vmul.f32 %v2890_v22, %v8058_v54  ;;  %v2894_v36 = vstv %s7200_s29  ;;  %s7231_s7 = sld [smem:[#allocation2 + $0x2a7]]  ;;  %p3962_p6 = scmp.lt.s32.totalorder %s3049_s10, %s3049_s10 }
 0x619   :  { %v2898_v52 = vstv %s7204_s30  ;;  %s7234_s22 = sld [smem:[#allocation2 + $0x2ae]]  ;;  %v2895_v31 = vmul.f32 %v2894_v36, %v8064_v1  ;;  %v2761_v54 = vmul.f32 %v2760_v62, %v6250_v34  ;;  %v2866_v21 = vstv %s7181_s2  ;;  %s3957_s2 = scalar_lea.vmem %s3049_s10, 128 }
 0x61a   :  { %v2860_v50 = vadd.f32 %v2859_v47, %v2856_v18  ;;  %v2888_v33 = vadd.f32 %v2887_v56, %v2884_v27  ;;  %v2902_v45 = vstv %s7209_s16  ;;  %s7240_s9 = sld [smem:[#allocation2 + $0x2a9]]  ;;  %v2810_v55 = vadd.f32 %v2809_v16, %v2806_v41  ;;  %p3958_p5 = scmp.ne.s32.totalorder %s3049_s10, %s3957_s2 }
 0x61b   :  { %v2813_v37 = vmul.f32 %v2812_v43, %v6184_v6  ;;  %v2899_v26 = vmul.f32 %v2898_v52, %v8070_v23  ;;  %v7246_v63 = vadd.f32 %v7035_v49, %v6948_v57  ;;  %v2644_v1 = vadd.f32 %v7120_v40, %v2640_v3  ;;  %s7250_s26 = sld [smem:[#allocation2 + $0x2ab]]  ;;  %p3963_p7 = scmp.lt.s32.totalorder %s3957_s2, %s3957_s2 }
 0x61c   :  { %v2892_v30 = vadd.f32 %v2891_v29, %v2888_v33  ;;  %v2696_v48 = vadd.f32 %v2695_v59, %v2692_v17  ;;  %v2906_v8 = vstv %s7214_s20  ;;  %v2864_v61 = vadd.f32 %v2863_v25, %v2860_v50  ;;  %s7253_s13 = sld [smem:[#allocation2 + $0x2b0]] }
 0x61d   :  { %v2867_v4 = vmul.f32 %v2866_v21, %v6054_v58  ;;  %v2903_v13 = vmul.f32 %v2902_v45, %v8077_v35  ;;  %v7258_v23 = vadd.f32 %v7054_v9, %v7048_v15  ;;  %v2870_v57 = vstv %s7217_s12  ;;  %s7262_s1 = sld [smem:[#allocation2 + $0x2ad]]  ;;  %v8237_v45 = vld [vmem:[#allocation149_spill] sm:$0xff]  ;;  %p3964_p8 = por %p3963_p7, %p3962_p6 }
 0x61e   :  { %v2896_v5 = vadd.f32 %v2895_v31, %v2892_v30  ;;  %v2910_v49 = vstv %s7224_s3  ;;  %v2960_v40 = vmul.f32 1.442695, %v6871_v44  ;;  %v2762_v3 = vadd.f32 %v2761_v54, %v2758_v60  ;;  %s7269_s4 = sld [smem:[#allocation2 + $0x2af]]  ;;  %v3912_v31 = vpop.eup %3911 }
 0x61f   :  { %v2814_v11 = vadd.f32 %v2813_v37, %v2810_v55  ;;  %v2907_v62 = vmul.f32 %v2906_v8, %v8085_v46  ;;  %v7266_v16 = vadd.f32 %v2696_v48, %v2644_v1  ;;  %v2914_v35 = vstv %s7231_s7  ;;  %s7285_s5 = sld [smem:[#allocation2 + $0x2bc]]  ;;  %v8239_v1 = vld [vmem:[#allocation150_spill] sm:$0xff]  ;;  %p3965_p9 = pnand %p3964_p8, %p3958_p5 }
 0x620   :  { %v2900_v58 = vadd.f32 %v2899_v26, %v2896_v5  ;;  %v2965_v15 = vmul.f32 1.442695, %v7246_v63  ;;  %v2868_v9 = vadd.f32 %v2867_v4, %v2864_v61  ;;  %v2871_v24 = vmul.f32 %v2870_v57, %v6080_v51  ;;  %s7293_s25 = sld [smem:[#allocation2 + $0x2c7]]  ;;  %v8240_v48 = vld [vmem:[#allocation146_spill] sm:$0xff] }
 0x621   :  { %v2911_v47 = vmul.f32 %v2910_v49, %v6000_v53  ;;  %v2874_v38 = vstv %s7234_s22  ;;  %v2918_v46 = vstv %s7240_s9  ;;  %3913 = vpow2.f32 %v2960_v40  ;;  %s7297_s15 = sld [smem:[#allocation2 + $0x2be]] }
 0x622   :  { %v2904_v28 = vadd.f32 %v2903_v13, %v2900_v58  ;;  %v7277_v20 = vadd.f32 %v2814_v11, %v2762_v3  ;;  %v2915_v12 = vmul.f32 %v2914_v35, %v6015_v39  ;;  %v2970_v10 = vmul.f32 1.442695, %v7258_v23  ;;  %s7300_s27 = sld [smem:[#allocation2 + $0x2bd]]  ;;  %v8241_v3 = vld [vmem:[#allocation147_spill] sm:$0xff] }
 0x623   :  { %v2922_v56 = vstv %s7250_s26  ;;  %3915 = vpow2.f32 %v2965_v15  ;;  %v2975_v51 = vmul.f32 1.442695, %v7266_v16  ;;  %v2872_v22 = vadd.f32 %v2871_v24, %v2868_v9  ;;  %s7303_s19 = sld [smem:[#allocation2 + $0x2bf]] }
 0x624   :  { %v2908_v41 = vadd.f32 %v2907_v62, %v2904_v28  ;;  %v2875_v53 = vmul.f32 %v2874_v38, %v6122_v19  ;;  %v2919_v27 = vmul.f32 %v2918_v46, %v6037_v7  ;;  %v2878_v29 = vstv %s7253_s13  ;;  %s7309_s11 = sld [smem:[#allocation2 + $0x2c0]] }
 0x625   :  { %v2926_v36 = vstv %s7262_s1  ;;  %v2923_v39 = vmul.f32 %v2922_v56, %v6063_v0  ;;  %3917 = vpow2.f32 %v2970_v10  ;;  %v2980_v59 = vmul.f32 1.442695, %v7277_v20  ;;  %s7315_s6 = sld [smem:[#allocation2 + $0x2c1]] }
 0x626   :  { %v2912_v18 = vadd.f32 %v2911_v47, %v2908_v41  ;;  %v2930_v43 = vstv %s7269_s4  ;;  %v3797_v52 = vadd.f32 -1.0, %v6996_v2  ;;  %3919 = vpow2.f32 %v2975_v51  ;;  %v8236_v2 = vld [vmem:[#allocation148_spill] sm:$0xff]  ;;  %s7322_s24 = sld [smem:[#allocation2 + $0x2c2]] }
 0x627   :  { %v2876_v19 = vadd.f32 %v2875_v53, %v2872_v22  ;;  %v2879_v50 = vmul.f32 %v2878_v29, %v6250_v34  ;;  %v2927_v25 = vmul.f32 %v2926_v36, %v6108_v14  ;;  %v2931_v33 = vmul.f32 %v2930_v43, %v6184_v6  ;;  %v8238_v6 = vld [vmem:[#allocation151_spill] sm:$0xff]  ;;  %s7330_s18 = sld [smem:[#allocation2 + $0x2c3]] }
 0x628   :  { %v2916_v17 = vadd.f32 %v2915_v12, %v2912_v18  ;;  %3921 = vpow2.f32 %v2980_v59  ;;  %v3799_v34 = vadd.f32 -1.0, %v8236_v2  ;;  %v2938_v14 = vsel %vm2934_vm8, %v6365_v32, %v3797_v52  ;;  %s7335_s0 = sld [smem:[#allocation2 + $0x2c4]] }
 0x629   :  { %v2880_v60 = vadd.f32 %v2879_v50, %v2876_v19  ;;  %v2991_v21 = vstv %s7285_s5  ;;  %v3798_v55 = vadd.f32 -1.0, %v8237_v45  ;;  %v3800_v37 = vadd.f32 -1.0, %v8238_v6  ;;  %s3819_s23 = sld [smem:[#allocation2 + $0x2c5]] }
 0x62a   :  { %v2920_v7 = vadd.f32 %v2919_v27, %v2916_v17  ;;  %vm2939_vm10 = vcmp.gt.f32.partialorder %v8239_v1, 0.0  ;;  %vm2949_vm11 = vcmp.gt.f32.partialorder %v8240_v48, 0.0  ;;  %v2948_v32 = vsel %vm2944_vm9, %v6691_v42, %v3799_v34  ;;  %s3815_s28 = sld [smem:[#allocation2 + $0x2c6]] }
 0x62b   :  { %v2992_v8 = vmul.f32 %v2991_v21, %v2938_v14  ;;  %v3801_v5 = vadd.f32 -1.0, %v3912_v31  ;;  %v2993_v13 = vstv %s7293_s25  ;;  %v2999_v57 = vstv %s7297_s15 }
 0x62c   :  { %v2924_v0 = vadd.f32 %v2923_v39, %v2920_v7  ;;  %v2943_v49 = vsel %vm2939_vm10, %v8239_v1, %v3798_v55  ;;  %v2953_v40 = vsel %vm2949_vm11, %v8240_v48, %v3800_v37  ;;  %vm2954_vm12 = vcmp.gt.f32.partialorder %v8241_v3, 0.0 }
 0x62d   :  { %v2996_v42 = vstv %s7300_s27  ;;  %v3019_v62 = vstv %s7303_s19  ;;  %v2994_v15 = vadd.f32 %v2993_v13, %v2992_v8  ;;  %v3000_v9 = vmul.f32 %v2999_v57, %v2948_v32 }
 0x62e   :  { %v2928_v54 = vadd.f32 %v2927_v25, %v2924_v0  ;;  %v3914_v30 = vpop.eup %3913  ;;  %v2958_v28 = vsel %vm2954_vm12, %v8241_v3, %v3801_v5  ;;  %v3003_v38 = vstv %s7309_s11  ;;  %vm2964_vm14 = vcmp.gt.f32.partialorder %v7246_v63, 0.0 }
 0x62f   :  { %v3802_v11 = vadd.f32 -1.0, %v3914_v30  ;;  %v2997_v46 = vmul.f32 %v2996_v42, %v2943_v49  ;;  %v3020_v41 = vmul.f32 %v3019_v62, %v2953_v40  ;;  %v3023_v56 = vstv %s7315_s6 }
 0x630   :  { %v2932_v26 = vadd.f32 %v2931_v33, %v2928_v54  ;;  %v3916_v61 = vpop.eup %3915  ;;  %vm2969_vm15 = vcmp.gt.f32.partialorder %v7258_v23, 0.0  ;;  %v3001_v22 = vadd.f32 %v3000_v9, %v2994_v15  ;;  %v3004_v53 = vmul.f32 %v3003_v38, %v2958_v28 }
 0x631   :  { %v3803_v47 = vadd.f32 -1.0, %v3916_v61  ;;  %v2963_v12 = vsel %vm2959_vm13, %v6871_v44, %v3802_v11  ;;  %v3007_v29 = vstv %s7322_s24  ;;  %vm2974_vm0 = vcmp.gt.f32.partialorder %v7266_v16, 0.0 }
 0x632   :  { %v7318_v4 = vadd.f32 %v2932_v26, %v2880_v60  ;;  %v3918_v35 = vpop.eup %3917  ;;  %v3021_v36 = vadd.f32 %v3020_v41, %v2997_v46  ;;  %v3024_v17 = vmul.f32 %v3023_v56, %v2963_v12  ;;  %v3027_v59 = vstv %s7330_s18 }
 0x633   :  { %v3920_v24 = vpop.eup %3919  ;;  %v3804_v10 = vadd.f32 -1.0, %v3918_v35  ;;  %v2968_v18 = vsel %vm2964_vm14, %v7246_v63, %v3803_v47  ;;  %vm2979_vm1 = vcmp.gt.f32.partialorder %v7277_v20, 0.0  ;;  %v3005_v43 = vadd.f32 %v3004_v53, %v3001_v22 }
 0x634   :  { %v2985_v58 = vmul.f32 1.442695, %v7318_v4  ;;  %v3805_v27 = vadd.f32 -1.0, %v3920_v24  ;;  %v3008_v52 = vmul.f32 %v3007_v29, %v2968_v18  ;;  %v3011_v50 = vstv %s7335_s0 }
 0x635   :  { %v3922_v51 = vpop.eup %3921  ;;  %v2973_v44 = vsel %vm2969_vm15, %v7258_v23, %v3804_v10  ;;  %v3025_v7 = vadd.f32 %v3024_v17, %v3021_v36  ;;  %v3031_v0 = vstv %s3819_s23  ;;  %vm2984_vm2 = vcmp.gt.f32.partialorder %v7318_v4, 0.0 }
 0x636   :  { %3923 = vpow2.f32 %v2985_v58  ;;  %v3806_v39 = vadd.f32 -1.0, %v3922_v51  ;;  %v2978_v19 = vsel %vm2974_vm0, %v7266_v16, %v3805_v27  ;;  %v3028_v63 = vmul.f32 %v3027_v59, %v2973_v44 }
 0x637   :  { %v3009_v33 = vadd.f32 %v3008_v52, %v3005_v43  ;;  %v3012_v2 = vmul.f32 %v3011_v50, %v2978_v19  ;;  %v3015_v54 = vstv %s3815_s28 }
 0x638   :  { %v2983_v25 = vsel %vm2979_vm1, %v7277_v20, %v3806_v39  ;;  %v3029_v23 = vadd.f32 %v3028_v63, %v3025_v7 }
 0x639   :  { %v3032_v31 = vmul.f32 %v3031_v0, %v2983_v25  ;;  %v3013_v14 = vadd.f32 %v3012_v2, %v3009_v33 }
 0x63b   :  { %v3033_v16 = vadd.f32 %v3032_v31, %v3029_v23 }
 0x643   :  { %v3924_v34 = vpop.eup %3923 }
 0x644   :  { %v3807_v60 = vadd.f32 -1.0, %v3924_v34 }
 0x646   :  { %v2988_v21 = vsel %vm2984_vm2, %v7318_v4, %v3807_v60 }
 0x647   :  { %v3016_v45 = vmul.f32 %v3015_v54, %v2988_v21 }
 0x649   :  { %v3017_v55 = vadd.f32 %v3016_v45, %v3013_v14 }
 0x64b   :  { %v3034_v6 = vadd.f32 %v3033_v16, %v3017_v55 }
 0x64d   :  { %v3035_v37 = vsub.f32 0.0, %v3034_v6 }
 0x64f   :  { %v3036_v30 = vmul.f32 1.442695, %v3035_v37 }
 0x651   :  { %3925 = vpow2.f32 %v3036_v30 }
 0x65e   :  { %v3926_v20 = vpop.eup %3925 }
 0x65f   :  { %v3038_v26 = vadd.f32 1.0, %v3926_v20 }
 0x661   :  { %3927 = vrcp.f32 %v3038_v26 }
 0x66e   :  { %v3928_v1 = vpop.eup %3927 }
 0x66f   :  { %3041 = vst [vmem:[#allocation7] sm:$0xff] %v3928_v1 }
 0x670   :  { %3968 = shalt.err (!%p3965_p9)
}
 0x671   :  { %s8242_s17 = sld [smem:[#allocation152_spill]] }
 0x677   :  { %3051 = dma.vmem_to_hbm [thread:$0]  %s3049_s10, 128, %s8242_s17, [#allocation4]  }
 0x678   :  { %3981 = dma.done.wait [#allocation4], 128  }
 0x679   :  { %3982 = vsyncadd [#allocation4], 4294967168 }
 0x67a   :  { %3055 = vsyncpa [#allocation3], 1 }
 0x67b   :  { %3056 = vsyncpa [#allocation4], 1 }
 0x67c   :  { %3057 = vsyncpa [#allocation5], 1 }

</bundles_post_ra>
